<compile_context>
chip_gen: v7x
topology: tpu7x:2x2x1
jax: 0.10.0
libtpu: 0.0.40
codegen_flags: <defaults>
</compile_context>

<pallas_src>
import math

import jax
import jax.numpy as jnp
from jax.experimental import pallas as pl
from jax.experimental.pallas import tpu as pltpu

BN_EPS = 1e-5
MXU_DTYPE = jnp.bfloat16   # MXU operand dtype (accumulation is always f32).


# ----------------------------------------------------------------------------
# In-kernel helpers
# ----------------------------------------------------------------------------
def _epilogue(acc, a_ref):
    """conv/linear bias + ReLU + eval-mode BatchNorm affine.  acc: (M, C) f32."""
    bias = a_ref[0:1, :]
    scale = a_ref[1:2, :]
    shift = a_ref[2:3, :]
    return jnp.maximum(acc + bias, 0.0) * scale + shift


# ----------------------------------------------------------------------------
# Stage kernel: frameN TDNN layer + residual TDNNBlock (3 convs, one kernel)
# ----------------------------------------------------------------------------
def _make_stage_kernel(context, dilation):
    def kernel(x_ref, w0_ref, a0_ref, w1_ref, a1_ref, w2_ref, a2_ref,
               o_ref, unf0_ref, unf1_ref):
        B, _, c_in = x_ref.shape
        _, t_out, c_out = o_ref.shape

        # --- frameN: Conv1d(context, pad=0) as one (B*t_out, context*c_in) matmul
        for b in range(B):
            r0 = b * t_out
            for k in range(context):
                unf0_ref[r0:r0 + t_out, k * c_in:(k + 1) * c_in] = (
                    x_ref[b, k * dilation:k * dilation + t_out, :])
        y = jnp.dot(unf0_ref[...].astype(MXU_DTYPE), w0_ref[...],
                    preferred_element_type=jnp.float32)
        y = _epilogue(y, a0_ref)                 # (B*t_out, c_out) f32 = block identity

        # --- residual block conv #1: context=3, pad=1 (zero halo built in VMEM)
        unf1_ref[...] = jnp.zeros_like(unf1_ref)   # halo entries stay 0 for both convs
        for b in range(B):
            r0 = b * t_out
            yb = y[r0:r0 + t_out, :]
            unf1_ref[r0 + 1:r0 + t_out, 0:c_out] = yb[0:t_out - 1, :]       # tap x[t-1]
            unf1_ref[r0:r0 + t_out, c_out:2 * c_out] = yb                   # tap x[t]
            unf1_ref[r0:r0 + t_out - 1, 2 * c_out:3 * c_out] = yb[1:t_out, :]  # tap x[t+1]
        h = jnp.dot(unf1_ref[...].astype(MXU_DTYPE), w1_ref[...],
                    preferred_element_type=jnp.float32)
        h = _epilogue(h, a1_ref)

        # --- residual block conv #2 (reuse unfold buffer; halo entries still zero)
        for b in range(B):
            r0 = b * t_out
            hb = h[r0:r0 + t_out, :]
            unf1_ref[r0 + 1:r0 + t_out, 0:c_out] = hb[0:t_out - 1, :]
            unf1_ref[r0:r0 + t_out, c_out:2 * c_out] = hb
            unf1_ref[r0:r0 + t_out - 1, 2 * c_out:3 * c_out] = hb[1:t_out, :]
        out = jnp.dot(unf1_ref[...].astype(MXU_DTYPE), w2_ref[...],
                      preferred_element_type=jnp.float32)
        out = _epilogue(out, a2_ref) + y          # residual add, no post-add activation

        for b in range(B):
            o_ref[b] = out[b * t_out:(b + 1) * t_out, :]

    return kernel


def tdnn_stage(x, p_frame, p_blk1, p_blk2, *, context, dilation=1):
    """x: (B, T, Cin) -> (B, T-(context-1)*dilation, Cout). One fused pallas_call."""
    w0, a0 = p_frame
    w1, a1 = p_blk1
    w2, a2 = p_blk2
    B, t_in, c_in = x.shape
    c_out = w0.shape[1]
    t_out = t_in - (context - 1) * dilation
    return pl.pallas_call(
        _make_stage_kernel(context, dilation),
        out_shape=jax.ShapeDtypeStruct((B, t_out, c_out), jnp.float32),
        scratch_shapes=[
            pltpu.VMEM((B * t_out, context * c_in), jnp.float32),  # unfold, frameN
            pltpu.VMEM((B * t_out, 3 * c_out), jnp.float32),       # unfold, block convs
        ],
    )(x, w0, a0, w1, a1, w2, a2)


# ----------------------------------------------------------------------------
# Tail kernel: frame13 + frame14 + StatisticPooling + segment1/2 + classifier
# ----------------------------------------------------------------------------
def _tail_kernel(x_ref, w13_ref, a13_ref, w14_ref, a14_ref,
                 ws1_ref, as1_ref, ws2_ref, as2_ref, wc_ref, bc_ref,
                 logits_ref, emb_ref, pooled_ref):
    B, T, _ = x_ref.shape
    c14 = w14_ref.shape[1]

    # frame13 / frame14 (1x1 convs) + pooling stats, per batch row
    for b in range(B):
        h = jnp.dot(x_ref[b].astype(MXU_DTYPE), w13_ref[...],
                    preferred_element_type=jnp.float32)
        h = _epilogue(h, a13_ref)                                   # (T, c13)
        h = jnp.dot(h.astype(MXU_DTYPE), w14_ref[...],
                    preferred_element_type=jnp.float32)
        h = _epilogue(h, a14_ref)                                   # (T, c14)
        mean = jnp.sum(h, axis=0, keepdims=True) / T                # (1, c14)
        d = h - mean
        std = jnp.sqrt(jnp.sum(d * d, axis=0, keepdims=True) / (T - 1))  # unbiased
        pooled_ref[b:b + 1, 0:c14] = mean
        pooled_ref[b:b + 1, c14:2 * c14] = std

    # segment1 -> segment2 -> classifier on the (B, 2*c14) pooled stats
    e1 = _epilogue(jnp.dot(pooled_ref[...].astype(MXU_DTYPE), ws1_ref[...],
                           preferred_element_type=jnp.float32), as1_ref)
    e2 = _epilogue(jnp.dot(e1.astype(MXU_DTYPE), ws2_ref[...],
                           preferred_element_type=jnp.float32), as2_ref)
    emb_ref[...] = e2
    logits_ref[...] = jnp.dot(e2.astype(MXU_DTYPE), wc_ref[...],
                              preferred_element_type=jnp.float32) + bc_ref[...]


def tdnn_tail(x, p):
    B, T, _ = x.shape
    w13, a13 = p["frame13"]
    w14, a14 = p["frame14"]
    ws1, as1 = p["segment1"]
    ws2, as2 = p["segment2"]
    wc, bc = p["classifier"]
    c14 = w14.shape[1]
    emb = ws2.shape[1]
    nc = wc.shape[1]
    return pl.pallas_call(
        _tail_kernel,
        out_shape=(jax.ShapeDtypeStruct((B, nc), jnp.float32),
                   jax.ShapeDtypeStruct((B, emb), jnp.float32)),
        scratch_shapes=[pltpu.VMEM((B, 2 * c14), jnp.float32)],
    )(x, w13, a13, w14, a14, ws1, as1, ws2, as2, wc, bc)


# ----------------------------------------------------------------------------
# Parameter construction (deterministic, synthetic)
# ----------------------------------------------------------------------------
def make_conv_params(key, c_in, c_out, context):
    k1, k2 = jax.random.split(key)
    std = math.sqrt(2.0 / (c_out * context))        # kaiming_normal, fan_out, relu
    w = jax.random.normal(k1, (context, c_in, c_out), jnp.float32) * std
    b = jax.random.normal(k2, (c_out,), jnp.float32) * 0.01
    bn_scale = jnp.full((c_out,), 1.0 / math.sqrt(1.0 + BN_EPS), jnp.float32)
    bn_shift = jnp.zeros((c_out,), jnp.float32)
    w_mat = w.reshape(context * c_in, c_out).astype(MXU_DTYPE)     # tap-major K
    affine = jnp.stack([b, bn_scale, bn_shift], axis=0)            # (3, c_out) f32
    return (w_mat, affine)


def make_dense_params(key, f_in, f_out, bn):
    k1, k2 = jax.random.split(key)
    w = jax.random.normal(k1, (f_in, f_out), jnp.float32) * math.sqrt(1.0 / f_in)
    b = jax.random.normal(k2, (f_out,), jnp.float32) * 0.01
    if bn:
        scale = jnp.full((f_out,), 1.0 / math.sqrt(1.0 + BN_EPS), jnp.float32)
    else:
        scale = jnp.ones((f_out,), jnp.float32)
    shift = jnp.zeros((f_out,), jnp.float32)
    return (w.astype(MXU_DTYPE), jnp.stack([b, scale, shift], axis=0))


def make_classifier_params(key, f_in, f_out):
    k1, k2 = jax.random.split(key)
    w = jax.random.normal(k1, (f_in, f_out), jnp.float32) * math.sqrt(1.0 / f_in)
    b = jax.random.normal(k2, (f_out,), jnp.float32) * 0.01
    return (w.astype(MXU_DTYPE), b.reshape(1, f_out))


def build_params(input_dim, channels, context, embedding_size, num_classes):
    keys = iter(jax.random.split(jax.random.PRNGKey(0), 32))
    p = {}
    p["frame1"] = make_conv_params(next(keys), input_dim, channels[0], context[0])
    p["frame2_1"] = make_conv_params(next(keys), channels[0], channels[0], 3)
    p["frame2_2"] = make_conv_params(next(keys), channels[0], channels[0], 3)
    p["frame4"] = make_conv_params(next(keys), channels[0], channels[1], context[1])
    p["frame5_1"] = make_conv_params(next(keys), channels[1], channels[1], 3)
    p["frame5_2"] = make_conv_params(next(keys), channels[1], channels[1], 3)
    p["frame7"] = make_conv_params(next(keys), channels[1], channels[2], context[2])
    p["frame8_1"] = make_conv_params(next(keys), channels[2], channels[2], 3)
    p["frame8_2"] = make_conv_params(next(keys), channels[2], channels[2], 3)
    p["frame10"] = make_conv_params(next(keys), channels[2], channels[3], context[3])
    p["frame11_1"] = make_conv_params(next(keys), channels[3], channels[3], 3)
    p["frame11_2"] = make_conv_params(next(keys), channels[3], channels[3], 3)
    p["frame13"] = make_conv_params(next(keys), channels[3], channels[4], 1)
    p["frame14"] = make_conv_params(next(keys), channels[4], channels[5], 1)
    p["segment1"] = make_dense_params(next(keys), channels[5] * 2, 512, bn=True)
    p["segment2"] = make_dense_params(next(keys), 512, embedding_size, bn=True)
    p["classifier"] = make_classifier_params(next(keys), embedding_size, num_classes)
    return p


# ----------------------------------------------------------------------------
# RET_v2 forward (resnet_size=17 -> layers=[1,1,1,1], Basic blocks, STAP)
# ----------------------------------------------------------------------------
def ret_v2_forward(x, p, context):
    x = tdnn_stage(x, p["frame1"], p["frame2_1"], p["frame2_2"], context=context[0])
    x = tdnn_stage(x, p["frame4"], p["frame5_1"], p["frame5_2"], context=context[1])
    x = tdnn_stage(x, p["frame7"], p["frame8_1"], p["frame8_2"], context=context[2])
    x = tdnn_stage(x, p["frame10"], p["frame11_1"], p["frame11_2"], context=context[3])
    return tdnn_tail(x, p)                     # (logits, embedding_b)


# ----------------------------------------------------------------------------
# Pure-JAX reference (same operand precision policy) for a correctness check
# ----------------------------------------------------------------------------
def _ref_conv(x, w_mat, affine, *, context, dilation=1, padding=0):
    B, _, c_in = x.shape
    if padding:
        x = jnp.pad(x, ((0, 0), (padding, padding), (0, 0)))
    t_out = x.shape[1] - (context - 1) * dilation
    y = jnp.zeros((B, t_out, w_mat.shape[1]), jnp.float32)
    for k in range(context):
        xs = x[:, k * dilation:k * dilation + t_out, :].astype(MXU_DTYPE)
        wk = w_mat[k * c_in:(k + 1) * c_in, :]
        y = y + jnp.einsum("btc,cd->btd", xs, wk,
                           preferred_element_type=jnp.float32)
    return jnp.maximum(y + affine[0], 0.0) * affine[1] + affine[2]


def _ref_dense(v, w, affine, *, relu, bn):
    y = jnp.dot(v.astype(MXU_DTYPE), w, preferred_element_type=jnp.float32) + affine[0]
    if relu:
        y = jnp.maximum(y, 0.0)
    if bn:
        y = y * affine[1] + affine[2]
    return y


def _ref_forward(x, p, context):
    def stage(x, pf, p1, p2, cx):
        y = _ref_conv(x, *pf, context=cx)
        h = _ref_conv(y, *p1, context=3, padding=1)
        h = _ref_conv(h, *p2, context=3, padding=1)
        return h + y

    x = stage(x, p["frame1"], p["frame2_1"], p["frame2_2"], context[0])
    x = stage(x, p["frame4"], p["frame5_1"], p["frame5_2"], context[1])
    x = stage(x, p["frame7"], p["frame8_1"], p["frame8_2"], context[2])
    x = stage(x, p["frame10"], p["frame11_1"], p["frame11_2"], context[3])
    x = _ref_conv(x, *p["frame13"], context=1)
    x = _ref_conv(x, *p["frame14"], context=1)
    mean = x.mean(axis=1)
    std = jnp.sqrt(((x - mean[:, None, :]) ** 2).sum(axis=1) / (x.shape[1] - 1))
    pooled = jnp.concatenate([mean, std], axis=1)
    e1 = _ref_dense(pooled, *p["segment1"], relu=True, bn=True)
    e2 = _ref_dense(e1, *p["segment2"], relu=True, bn=True)
    wc, bc = p["classifier"]
    logits = jnp.dot(e2.astype(MXU_DTYPE), wc,
                     preferred_element_type=jnp.float32) + bc
    return logits, e2


# ----------------------------------------------------------------------------
if __name__ == "__main__":
    # Small, shape-consistent config; channels are multiples of 128 so every
    # activation store is lane-dense (unmasked vst).
    B, T, input_dim = 2, 32, 64
    channels = [128, 128, 128, 128, 128, 256]
    context = [5, 3, 3, 5]
    embedding_size = 128
    num_classes = 16

    x = jax.random.normal(jax.random.PRNGKey(0), (B, T, input_dim), jnp.float32)
    params = build_params(input_dim, channels, context, embedding_size, num_classes)

    fwd = jax.jit(lambda inp: ret_v2_forward(inp, params, context))
    logits, emb = fwd(x)
    logits = jax.block_until_ready(logits)
    emb = jax.block_until_ready(emb)

    assert logits.shape == (B, num_classes) and emb.shape == (B, embedding_size)

    ref_logits, ref_emb = _ref_forward(x, params, context)
    assert jnp.allclose(logits, ref_logits, atol=1e-2, rtol=1e-2), (
        float(jnp.max(jnp.abs(logits - ref_logits))))
    assert jnp.allclose(emb, ref_emb, atol=1e-2, rtol=1e-2), (
        float(jnp.max(jnp.abs(emb - ref_emb))))

    print("KERNEL_OK")
</pallas_src>

<mosaic_0001>
module attributes {stable_mosaic.version = 11 : i64} {
  func.func @kernel(%arg0: memref<2x32x64xf32, #tpu.memory_space<vmem>>, %arg1: memref<320x128xbf16, #tpu.memory_space<vmem>>, %arg2: memref<3x128xf32, #tpu.memory_space<vmem>>, %arg3: memref<384x128xbf16, #tpu.memory_space<vmem>>, %arg4: memref<3x128xf32, #tpu.memory_space<vmem>>, %arg5: memref<384x128xbf16, #tpu.memory_space<vmem>>, %arg6: memref<3x128xf32, #tpu.memory_space<vmem>>, %arg7: memref<2x28x128xf32, #tpu.memory_space<vmem>>, %arg8: memref<56x320xf32, #tpu.memory_space<vmem>>, %arg9: memref<56x384xf32, #tpu.memory_space<vmem>>) attributes {dimension_semantics = [], scalar_prefetch = 0 : i64, scratch_operands = 2 : i64, tpu.core_type = #tpu.core_type<tc>} {
    %c0 = arith.constant 0 : index
    %c0_0 = arith.constant 0 : index
    %c0_1 = arith.constant 0 : index
    %0 = vector.load %arg0[%c0, %c0_0, %c0_1] : memref<2x32x64xf32, #tpu.memory_space<vmem>>, vector<1x28x64xf32>
    %1 = vector.shape_cast %0 : vector<1x28x64xf32> to vector<28x64xf32>
    %c0_2 = arith.constant 0 : index
    %c0_3 = arith.constant 0 : index
    %2 = vector.load %arg8[%c0_2, %c0_3] : memref<56x320xf32, #tpu.memory_space<vmem>>, vector<28x64xf32>
    tpu.vector_store %arg8[%c0_2, %c0_3], %1 {strides = array<i32>} : memref<56x320xf32, #tpu.memory_space<vmem>>, vector<28x64xf32>,
    %c0_4 = arith.constant 0 : index
    %c1 = arith.constant 1 : index
    %c0_5 = arith.constant 0 : index
    %3 = vector.load %arg0[%c0_4, %c1, %c0_5] : memref<2x32x64xf32, #tpu.memory_space<vmem>>, vector<1x28x64xf32>
    %4 = vector.shape_cast %3 : vector<1x28x64xf32> to vector<28x64xf32>
    %c0_6 = arith.constant 0 : index
    %c64 = arith.constant 64 : index
    %5 = vector.load %arg8[%c0_6, %c64] : memref<56x320xf32, #tpu.memory_space<vmem>>, vector<28x64xf32>
    tpu.vector_store %arg8[%c0_6, %c64], %4 {strides = array<i32>} : memref<56x320xf32, #tpu.memory_space<vmem>>, vector<28x64xf32>,
    %c0_7 = arith.constant 0 : index
    %c2 = arith.constant 2 : index
    %c0_8 = arith.constant 0 : index
    %6 = vector.load %arg0[%c0_7, %c2, %c0_8] : memref<2x32x64xf32, #tpu.memory_space<vmem>>, vector<1x28x64xf32>
    %7 = vector.shape_cast %6 : vector<1x28x64xf32> to vector<28x64xf32>
    %c0_9 = arith.constant 0 : index
    %c128 = arith.constant 128 : index
    %8 = vector.load %arg8[%c0_9, %c128] : memref<56x320xf32, #tpu.memory_space<vmem>>, vector<28x64xf32>
    tpu.vector_store %arg8[%c0_9, %c128], %7 {strides = array<i32>} : memref<56x320xf32, #tpu.memory_space<vmem>>, vector<28x64xf32>,
    %c0_10 = arith.constant 0 : index
    %c3 = arith.constant 3 : index
    %c0_11 = arith.constant 0 : index
    %9 = vector.load %arg0[%c0_10, %c3, %c0_11] : memref<2x32x64xf32, #tpu.memory_space<vmem>>, vector<1x28x64xf32>
    %10 = vector.shape_cast %9 : vector<1x28x64xf32> to vector<28x64xf32>
    %c0_12 = arith.constant 0 : index
    %c192 = arith.constant 192 : index
    %11 = vector.load %arg8[%c0_12, %c192] : memref<56x320xf32, #tpu.memory_space<vmem>>, vector<28x64xf32>
    tpu.vector_store %arg8[%c0_12, %c192], %10 {strides = array<i32>} : memref<56x320xf32, #tpu.memory_space<vmem>>, vector<28x64xf32>,
    %c0_13 = arith.constant 0 : index
    %c4 = arith.constant 4 : index
    %c0_14 = arith.constant 0 : index
    %12 = vector.load %arg0[%c0_13, %c4, %c0_14] : memref<2x32x64xf32, #tpu.memory_space<vmem>>, vector<1x28x64xf32>
    %13 = vector.shape_cast %12 : vector<1x28x64xf32> to vector<28x64xf32>
    %c0_15 = arith.constant 0 : index
    %c256 = arith.constant 256 : index
    %14 = vector.load %arg8[%c0_15, %c256] : memref<56x320xf32, #tpu.memory_space<vmem>>, vector<28x64xf32>
    tpu.vector_store %arg8[%c0_15, %c256], %13 {strides = array<i32>} : memref<56x320xf32, #tpu.memory_space<vmem>>, vector<28x64xf32>,
    %c1_16 = arith.constant 1 : index
    %c0_17 = arith.constant 0 : index
    %c0_18 = arith.constant 0 : index
    %15 = vector.load %arg0[%c1_16, %c0_17, %c0_18] : memref<2x32x64xf32, #tpu.memory_space<vmem>>, vector<1x28x64xf32>
    %16 = vector.shape_cast %15 : vector<1x28x64xf32> to vector<28x64xf32>
    %c28 = arith.constant 28 : index
    %c0_19 = arith.constant 0 : index
    %17 = vector.load %arg8[%c28, %c0_19] : memref<56x320xf32, #tpu.memory_space<vmem>>, vector<28x64xf32>
    tpu.vector_store %arg8[%c28, %c0_19], %16 {strides = array<i32>} : memref<56x320xf32, #tpu.memory_space<vmem>>, vector<28x64xf32>,
    %c1_20 = arith.constant 1 : index
    %c1_21 = arith.constant 1 : index
    %c0_22 = arith.constant 0 : index
    %18 = vector.load %arg0[%c1_20, %c1_21, %c0_22] : memref<2x32x64xf32, #tpu.memory_space<vmem>>, vector<1x28x64xf32>
    %19 = vector.shape_cast %18 : vector<1x28x64xf32> to vector<28x64xf32>
    %c28_23 = arith.constant 28 : index
    %c64_24 = arith.constant 64 : index
    %20 = vector.load %arg8[%c28_23, %c64_24] : memref<56x320xf32, #tpu.memory_space<vmem>>, vector<28x64xf32>
    tpu.vector_store %arg8[%c28_23, %c64_24], %19 {strides = array<i32>} : memref<56x320xf32, #tpu.memory_space<vmem>>, vector<28x64xf32>,
    %c1_25 = arith.constant 1 : index
    %c2_26 = arith.constant 2 : index
    %c0_27 = arith.constant 0 : index
    %21 = vector.load %arg0[%c1_25, %c2_26, %c0_27] : memref<2x32x64xf32, #tpu.memory_space<vmem>>, vector<1x28x64xf32>
    %22 = vector.shape_cast %21 : vector<1x28x64xf32> to vector<28x64xf32>
    %c28_28 = arith.constant 28 : index
    %c128_29 = arith.constant 128 : index
    %23 = vector.load %arg8[%c28_28, %c128_29] : memref<56x320xf32, #tpu.memory_space<vmem>>, vector<28x64xf32>
    tpu.vector_store %arg8[%c28_28, %c128_29], %22 {strides = array<i32>} : memref<56x320xf32, #tpu.memory_space<vmem>>, vector<28x64xf32>,
    %c1_30 = arith.constant 1 : index
    %c3_31 = arith.constant 3 : index
    %c0_32 = arith.constant 0 : index
    %24 = vector.load %arg0[%c1_30, %c3_31, %c0_32] : memref<2x32x64xf32, #tpu.memory_space<vmem>>, vector<1x28x64xf32>
    %25 = vector.shape_cast %24 : vector<1x28x64xf32> to vector<28x64xf32>
    %c28_33 = arith.constant 28 : index
    %c192_34 = arith.constant 192 : index
    %26 = vector.load %arg8[%c28_33, %c192_34] : memref<56x320xf32, #tpu.memory_space<vmem>>, vector<28x64xf32>
    tpu.vector_store %arg8[%c28_33, %c192_34], %25 {strides = array<i32>} : memref<56x320xf32, #tpu.memory_space<vmem>>, vector<28x64xf32>,
    %c1_35 = arith.constant 1 : index
    %c4_36 = arith.constant 4 : index
    %c0_37 = arith.constant 0 : index
    %27 = vector.load %arg0[%c1_35, %c4_36, %c0_37] : memref<2x32x64xf32, #tpu.memory_space<vmem>>, vector<1x28x64xf32>
    %28 = vector.shape_cast %27 : vector<1x28x64xf32> to vector<28x64xf32>
    %c28_38 = arith.constant 28 : index
    %c256_39 = arith.constant 256 : index
    %29 = vector.load %arg8[%c28_38, %c256_39] : memref<56x320xf32, #tpu.memory_space<vmem>>, vector<28x64xf32>
    tpu.vector_store %arg8[%c28_38, %c256_39], %28 {strides = array<i32>} : memref<56x320xf32, #tpu.memory_space<vmem>>, vector<28x64xf32>,
    %c0_40 = arith.constant 0 : index
    %c0_41 = arith.constant 0 : index
    %30 = vector.load %arg8[%c0_40, %c0_41] : memref<56x320xf32, #tpu.memory_space<vmem>>, vector<56x320xf32>
    %31 = arith.truncf %30 : vector<56x320xf32> to vector<56x320xbf16>
    %c0_42 = arith.constant 0 : index
    %c0_43 = arith.constant 0 : index
    %32 = vector.load %arg1[%c0_42, %c0_43] : memref<320x128xbf16, #tpu.memory_space<vmem>>, vector<320x128xbf16>
    %cst = arith.constant dense<0.000000e+00> : vector<56x128xf32>
    %33 = tpu.matmul %31, %32, %cst {dimension_numbers = #tpu.dot_dimension_numbers<[1], [0], [0], [1], [0, 0, 1, 1], [], []>} : vector<56x320xbf16>, vector<320x128xbf16>, vector<56x128xf32> -> vector<56x128xf32>
    %c0_44 = arith.constant 0 : index
    %c0_45 = arith.constant 0 : index
    %34 = vector.load %arg2[%c0_44, %c0_45] : memref<3x128xf32, #tpu.memory_space<vmem>>, vector<1x128xf32>
    %c1_46 = arith.constant 1 : index
    %c0_47 = arith.constant 0 : index
    %35 = vector.load %arg2[%c1_46, %c0_47] : memref<3x128xf32, #tpu.memory_space<vmem>>, vector<1x128xf32>
    %c2_48 = arith.constant 2 : index
    %c0_49 = arith.constant 0 : index
    %36 = vector.load %arg2[%c2_48, %c0_49] : memref<3x128xf32, #tpu.memory_space<vmem>>, vector<1x128xf32>
    %37 = vector.broadcast %34 : vector<1x128xf32> to vector<56x128xf32>
    %38 = arith.addf %33, %37 : vector<56x128xf32>
    %cst_50 = arith.constant 0.000000e+00 : f32
    %39 = vector.broadcast %cst_50 : f32 to vector<56x128xf32>
    %40 = arith.maximumf %38, %39 : vector<56x128xf32>
    %41 = vector.broadcast %35 : vector<1x128xf32> to vector<56x128xf32>
    %42 = arith.mulf %40, %41 : vector<56x128xf32>
    %43 = vector.broadcast %36 : vector<1x128xf32> to vector<56x128xf32>
    %44 = arith.addf %42, %43 : vector<56x128xf32>
    %cst_51 = arith.constant 0.000000e+00 : f32
    %45 = vector.broadcast %cst_51 : f32 to vector<56x384xf32>
    %c0_52 = arith.constant 0 : index
    %c0_53 = arith.constant 0 : index
    %46 = vector.load %arg9[%c0_52, %c0_53] : memref<56x384xf32, #tpu.memory_space<vmem>>, vector<56x384xf32>
    tpu.vector_store %arg9[%c0_52, %c0_53], %45 {strides = array<i32>} : memref<56x384xf32, #tpu.memory_space<vmem>>, vector<56x384xf32>,
    %47 = vector.extract_strided_slice %44 {offsets = [0, 0], sizes = [28, 128], strides = [1, 1]} : vector<56x128xf32> to vector<28x128xf32>
    %48 = vector.extract_strided_slice %47 {offsets = [0, 0], sizes = [27, 128], strides = [1, 1]} : vector<28x128xf32> to vector<27x128xf32>
    %c1_54 = arith.constant 1 : index
    %c0_55 = arith.constant 0 : index
    %49 = vector.load %arg9[%c1_54, %c0_55] : memref<56x384xf32, #tpu.memory_space<vmem>>, vector<27x128xf32>
    tpu.vector_store %arg9[%c1_54, %c0_55], %48 {strides = array<i32>} : memref<56x384xf32, #tpu.memory_space<vmem>>, vector<27x128xf32>,
    %c0_56 = arith.constant 0 : index
    %c128_57 = arith.constant 128 : index
    %50 = vector.load %arg9[%c0_56, %c128_57] : memref<56x384xf32, #tpu.memory_space<vmem>>, vector<28x128xf32>
    tpu.vector_store %arg9[%c0_56, %c128_57], %47 {strides = array<i32>} : memref<56x384xf32, #tpu.memory_space<vmem>>, vector<28x128xf32>,
    %51 = vector.extract_strided_slice %47 {offsets = [1, 0], sizes = [27, 128], strides = [1, 1]} : vector<28x128xf32> to vector<27x128xf32>
    %c0_58 = arith.constant 0 : index
    %c256_59 = arith.constant 256 : index
    %52 = vector.load %arg9[%c0_58, %c256_59] : memref<56x384xf32, #tpu.memory_space<vmem>>, vector<27x128xf32>
    tpu.vector_store %arg9[%c0_58, %c256_59], %51 {strides = array<i32>} : memref<56x384xf32, #tpu.memory_space<vmem>>, vector<27x128xf32>,
    %53 = vector.extract_strided_slice %44 {offsets = [28, 0], sizes = [28, 128], strides = [1, 1]} : vector<56x128xf32> to vector<28x128xf32>
    %54 = vector.extract_strided_slice %53 {offsets = [0, 0], sizes = [27, 128], strides = [1, 1]} : vector<28x128xf32> to vector<27x128xf32>
    %c29 = arith.constant 29 : index
    %c0_60 = arith.constant 0 : index
    %55 = vector.load %arg9[%c29, %c0_60] : memref<56x384xf32, #tpu.memory_space<vmem>>, vector<27x128xf32>
    tpu.vector_store %arg9[%c29, %c0_60], %54 {strides = array<i32>} : memref<56x384xf32, #tpu.memory_space<vmem>>, vector<27x128xf32>,
    %c28_61 = arith.constant 28 : index
    %c128_62 = arith.constant 128 : index
    %56 = vector.load %arg9[%c28_61, %c128_62] : memref<56x384xf32, #tpu.memory_space<vmem>>, vector<28x128xf32>
    tpu.vector_store %arg9[%c28_61, %c128_62], %53 {strides = array<i32>} : memref<56x384xf32, #tpu.memory_space<vmem>>, vector<28x128xf32>,
    %57 = vector.extract_strided_slice %53 {offsets = [1, 0], sizes = [27, 128], strides = [1, 1]} : vector<28x128xf32> to vector<27x128xf32>
    %c28_63 = arith.constant 28 : index
    %c256_64 = arith.constant 256 : index
    %58 = vector.load %arg9[%c28_63, %c256_64] : memref<56x384xf32, #tpu.memory_space<vmem>>, vector<27x128xf32>
    tpu.vector_store %arg9[%c28_63, %c256_64], %57 {strides = array<i32>} : memref<56x384xf32, #tpu.memory_space<vmem>>, vector<27x128xf32>,
    %c0_65 = arith.constant 0 : index
    %c0_66 = arith.constant 0 : index
    %59 = vector.load %arg9[%c0_65, %c0_66] : memref<56x384xf32, #tpu.memory_space<vmem>>, vector<56x384xf32>
    %60 = arith.truncf %59 : vector<56x384xf32> to vector<56x384xbf16>
    %c0_67 = arith.constant 0 : index
    %c0_68 = arith.constant 0 : index
    %61 = vector.load %arg3[%c0_67, %c0_68] : memref<384x128xbf16, #tpu.memory_space<vmem>>, vector<384x128xbf16>
    %cst_69 = arith.constant dense<0.000000e+00> : vector<56x128xf32>
    %62 = tpu.matmul %60, %61, %cst_69 {dimension_numbers = #tpu.dot_dimension_numbers<[1], [0], [0], [1], [0, 0, 1, 1], [], []>} : vector<56x384xbf16>, vector<384x128xbf16>, vector<56x128xf32> -> vector<56x128xf32>
    %c0_70 = arith.constant 0 : index
    %c0_71 = arith.constant 0 : index
    %63 = vector.load %arg4[%c0_70, %c0_71] : memref<3x128xf32, #tpu.memory_space<vmem>>, vector<1x128xf32>
    %c1_72 = arith.constant 1 : index
    %c0_73 = arith.constant 0 : index
    %64 = vector.load %arg4[%c1_72, %c0_73] : memref<3x128xf32, #tpu.memory_space<vmem>>, vector<1x128xf32>
    %c2_74 = arith.constant 2 : index
    %c0_75 = arith.constant 0 : index
    %65 = vector.load %arg4[%c2_74, %c0_75] : memref<3x128xf32, #tpu.memory_space<vmem>>, vector<1x128xf32>
    %66 = vector.broadcast %63 : vector<1x128xf32> to vector<56x128xf32>
    %67 = arith.addf %62, %66 : vector<56x128xf32>
    %cst_76 = arith.constant 0.000000e+00 : f32
    %68 = vector.broadcast %cst_76 : f32 to vector<56x128xf32>
    %69 = arith.maximumf %67, %68 : vector<56x128xf32>
    %70 = vector.broadcast %64 : vector<1x128xf32> to vector<56x128xf32>
    %71 = arith.mulf %69, %70 : vector<56x128xf32>
    %72 = vector.broadcast %65 : vector<1x128xf32> to vector<56x128xf32>
    %73 = arith.addf %71, %72 : vector<56x128xf32>
    %74 = vector.extract_strided_slice %73 {offsets = [0, 0], sizes = [28, 128], strides = [1, 1]} : vector<56x128xf32> to vector<28x128xf32>
    %75 = vector.extract_strided_slice %74 {offsets = [0, 0], sizes = [27, 128], strides = [1, 1]} : vector<28x128xf32> to vector<27x128xf32>
    %c1_77 = arith.constant 1 : index
    %c0_78 = arith.constant 0 : index
    %76 = vector.load %arg9[%c1_77, %c0_78] : memref<56x384xf32, #tpu.memory_space<vmem>>, vector<27x128xf32>
    tpu.vector_store %arg9[%c1_77, %c0_78], %75 {strides = array<i32>} : memref<56x384xf32, #tpu.memory_space<vmem>>, vector<27x128xf32>,
    %c0_79 = arith.constant 0 : index
    %c128_80 = arith.constant 128 : index
    %77 = vector.load %arg9[%c0_79, %c128_80] : memref<56x384xf32, #tpu.memory_space<vmem>>, vector<28x128xf32>
    tpu.vector_store %arg9[%c0_79, %c128_80], %74 {strides = array<i32>} : memref<56x384xf32, #tpu.memory_space<vmem>>, vector<28x128xf32>,
    %78 = vector.extract_strided_slice %74 {offsets = [1, 0], sizes = [27, 128], strides = [1, 1]} : vector<28x128xf32> to vector<27x128xf32>
    %c0_81 = arith.constant 0 : index
    %c256_82 = arith.constant 256 : index
    %79 = vector.load %arg9[%c0_81, %c256_82] : memref<56x384xf32, #tpu.memory_space<vmem>>, vector<27x128xf32>
    tpu.vector_store %arg9[%c0_81, %c256_82], %78 {strides = array<i32>} : memref<56x384xf32, #tpu.memory_space<vmem>>, vector<27x128xf32>,
    %80 = vector.extract_strided_slice %73 {offsets = [28, 0], sizes = [28, 128], strides = [1, 1]} : vector<56x128xf32> to vector<28x128xf32>
    %81 = vector.extract_strided_slice %80 {offsets = [0, 0], sizes = [27, 128], strides = [1, 1]} : vector<28x128xf32> to vector<27x128xf32>
    %c29_83 = arith.constant 29 : index
    %c0_84 = arith.constant 0 : index
    %82 = vector.load %arg9[%c29_83, %c0_84] : memref<56x384xf32, #tpu.memory_space<vmem>>, vector<27x128xf32>
    tpu.vector_store %arg9[%c29_83, %c0_84], %81 {strides = array<i32>} : memref<56x384xf32, #tpu.memory_space<vmem>>, vector<27x128xf32>,
    %c28_85 = arith.constant 28 : index
    %c128_86 = arith.constant 128 : index
    %83 = vector.load %arg9[%c28_85, %c128_86] : memref<56x384xf32, #tpu.memory_space<vmem>>, vector<28x128xf32>
    tpu.vector_store %arg9[%c28_85, %c128_86], %80 {strides = array<i32>} : memref<56x384xf32, #tpu.memory_space<vmem>>, vector<28x128xf32>,
    %84 = vector.extract_strided_slice %80 {offsets = [1, 0], sizes = [27, 128], strides = [1, 1]} : vector<28x128xf32> to vector<27x128xf32>
    %c28_87 = arith.constant 28 : index
    %c256_88 = arith.constant 256 : index
    %85 = vector.load %arg9[%c28_87, %c256_88] : memref<56x384xf32, #tpu.memory_space<vmem>>, vector<27x128xf32>
    tpu.vector_store %arg9[%c28_87, %c256_88], %84 {strides = array<i32>} : memref<56x384xf32, #tpu.memory_space<vmem>>, vector<27x128xf32>,
    %c0_89 = arith.constant 0 : index
    %c0_90 = arith.constant 0 : index
    %86 = vector.load %arg9[%c0_89, %c0_90] : memref<56x384xf32, #tpu.memory_space<vmem>>, vector<56x384xf32>
    %87 = arith.truncf %86 : vector<56x384xf32> to vector<56x384xbf16>
    %c0_91 = arith.constant 0 : index
    %c0_92 = arith.constant 0 : index
    %88 = vector.load %arg5[%c0_91, %c0_92] : memref<384x128xbf16, #tpu.memory_space<vmem>>, vector<384x128xbf16>
    %cst_93 = arith.constant dense<0.000000e+00> : vector<56x128xf32>
    %89 = tpu.matmul %87, %88, %cst_93 {dimension_numbers = #tpu.dot_dimension_numbers<[1], [0], [0], [1], [0, 0, 1, 1], [], []>} : vector<56x384xbf16>, vector<384x128xbf16>, vector<56x128xf32> -> vector<56x128xf32>
    %c0_94 = arith.constant 0 : index
    %c0_95 = arith.constant 0 : index
    %90 = vector.load %arg6[%c0_94, %c0_95] : memref<3x128xf32, #tpu.memory_space<vmem>>, vector<1x128xf32>
    %c1_96 = arith.constant 1 : index
    %c0_97 = arith.constant 0 : index
    %91 = vector.load %arg6[%c1_96, %c0_97] : memref<3x128xf32, #tpu.memory_space<vmem>>, vector<1x128xf32>
    %c2_98 = arith.constant 2 : index
    %c0_99 = arith.constant 0 : index
    %92 = vector.load %arg6[%c2_98, %c0_99] : memref<3x128xf32, #tpu.memory_space<vmem>>, vector<1x128xf32>
    %93 = vector.broadcast %90 : vector<1x128xf32> to vector<56x128xf32>
    %94 = arith.addf %89, %93 : vector<56x128xf32>
    %cst_100 = arith.constant 0.000000e+00 : f32
    %95 = vector.broadcast %cst_100 : f32 to vector<56x128xf32>
    %96 = arith.maximumf %94, %95 : vector<56x128xf32>
    %97 = vector.broadcast %91 : vector<1x128xf32> to vector<56x128xf32>
    %98 = arith.mulf %96, %97 : vector<56x128xf32>
    %99 = vector.broadcast %92 : vector<1x128xf32> to vector<56x128xf32>
    %100 = arith.addf %98, %99 : vector<56x128xf32>
    %101 = arith.addf %100, %44 : vector<56x128xf32>
    %102 = vector.extract_strided_slice %101 {offsets = [0, 0], sizes = [28, 128], strides = [1, 1]} : vector<56x128xf32> to vector<28x128xf32>
    %c0_101 = arith.constant 0 : index
    %c0_102 = arith.constant 0 : index
    %c0_103 = arith.constant 0 : index
    %103 = vector.load %arg7[%c0_101, %c0_102, %c0_103] : memref<2x28x128xf32, #tpu.memory_space<vmem>>, vector<1x28x128xf32>
    %104 = vector.shape_cast %103 : vector<1x28x128xf32> to vector<28x128xf32>
    %105 = vector.shape_cast %102 : vector<28x128xf32> to vector<1x28x128xf32>
    tpu.vector_store %arg7[%c0_101, %c0_102, %c0_103], %105 {strides = array<i32>} : memref<2x28x128xf32, #tpu.memory_space<vmem>>, vector<1x28x128xf32>,
    %106 = vector.extract_strided_slice %101 {offsets = [28, 0], sizes = [28, 128], strides = [1, 1]} : vector<56x128xf32> to vector<28x128xf32>
    %c1_104 = arith.constant 1 : index
    %c0_105 = arith.constant 0 : index
    %c0_106 = arith.constant 0 : index
    %107 = vector.load %arg7[%c1_104, %c0_105, %c0_106] : memref<2x28x128xf32, #tpu.memory_space<vmem>>, vector<1x28x128xf32>
    %108 = vector.shape_cast %107 : vector<1x28x128xf32> to vector<28x128xf32>
    %109 = vector.shape_cast %106 : vector<28x128xf32> to vector<1x28x128xf32>
    tpu.vector_store %arg7[%c1_104, %c0_105, %c0_106], %109 {strides = array<i32>} : memref<2x28x128xf32, #tpu.memory_space<vmem>>, vector<1x28x128xf32>,
    return
  }
}

module attributes {stable_mosaic.version = 11 : i64} {
  func.func @kernel(%arg0: memref<2x26x128xf32, #tpu.memory_space<vmem>>, %arg1: memref<384x128xbf16, #tpu.memory_space<vmem>>, %arg2: memref<3x128xf32, #tpu.memory_space<vmem>>, %arg3: memref<384x128xbf16, #tpu.memory_space<vmem>>, %arg4: memref<3x128xf32, #tpu.memory_space<vmem>>, %arg5: memref<384x128xbf16, #tpu.memory_space<vmem>>, %arg6: memref<3x128xf32, #tpu.memory_space<vmem>>, %arg7: memref<2x24x128xf32, #tpu.memory_space<vmem>>, %arg8: memref<48x384xf32, #tpu.memory_space<vmem>>, %arg9: memref<48x384xf32, #tpu.memory_space<vmem>>) attributes {dimension_semantics = [], scalar_prefetch = 0 : i64, scratch_operands = 2 : i64, tpu.core_type = #tpu.core_type<tc>} {
    %c0 = arith.constant 0 : index
    %c0_0 = arith.constant 0 : index
    %c0_1 = arith.constant 0 : index
    %0 = vector.load %arg0[%c0, %c0_0, %c0_1] : memref<2x26x128xf32, #tpu.memory_space<vmem>>, vector<1x24x128xf32>
    %1 = vector.shape_cast %0 : vector<1x24x128xf32> to vector<24x128xf32>
    %c0_2 = arith.constant 0 : index
    %c0_3 = arith.constant 0 : index
    %2 = vector.load %arg8[%c0_2, %c0_3] : memref<48x384xf32, #tpu.memory_space<vmem>>, vector<24x128xf32>
    tpu.vector_store %arg8[%c0_2, %c0_3], %1 {strides = array<i32>} : memref<48x384xf32, #tpu.memory_space<vmem>>, vector<24x128xf32>,
    %c0_4 = arith.constant 0 : index
    %c1 = arith.constant 1 : index
    %c0_5 = arith.constant 0 : index
    %3 = vector.load %arg0[%c0_4, %c1, %c0_5] : memref<2x26x128xf32, #tpu.memory_space<vmem>>, vector<1x24x128xf32>
    %4 = vector.shape_cast %3 : vector<1x24x128xf32> to vector<24x128xf32>
    %c0_6 = arith.constant 0 : index
    %c128 = arith.constant 128 : index
    %5 = vector.load %arg8[%c0_6, %c128] : memref<48x384xf32, #tpu.memory_space<vmem>>, vector<24x128xf32>
    tpu.vector_store %arg8[%c0_6, %c128], %4 {strides = array<i32>} : memref<48x384xf32, #tpu.memory_space<vmem>>, vector<24x128xf32>,
    %c0_7 = arith.constant 0 : index
    %c2 = arith.constant 2 : index
    %c0_8 = arith.constant 0 : index
    %6 = vector.load %arg0[%c0_7, %c2, %c0_8] : memref<2x26x128xf32, #tpu.memory_space<vmem>>, vector<1x24x128xf32>
    %7 = vector.shape_cast %6 : vector<1x24x128xf32> to vector<24x128xf32>
    %c0_9 = arith.constant 0 : index
    %c256 = arith.constant 256 : index
    %8 = vector.load %arg8[%c0_9, %c256] : memref<48x384xf32, #tpu.memory_space<vmem>>, vector<24x128xf32>
    tpu.vector_store %arg8[%c0_9, %c256], %7 {strides = array<i32>} : memref<48x384xf32, #tpu.memory_space<vmem>>, vector<24x128xf32>,
    %c1_10 = arith.constant 1 : index
    %c0_11 = arith.constant 0 : index
    %c0_12 = arith.constant 0 : index
    %9 = vector.load %arg0[%c1_10, %c0_11, %c0_12] : memref<2x26x128xf32, #tpu.memory_space<vmem>>, vector<1x24x128xf32>
    %10 = vector.shape_cast %9 : vector<1x24x128xf32> to vector<24x128xf32>
    %c24 = arith.constant 24 : index
    %c0_13 = arith.constant 0 : index
    %11 = vector.load %arg8[%c24, %c0_13] : memref<48x384xf32, #tpu.memory_space<vmem>>, vector<24x128xf32>
    tpu.vector_store %arg8[%c24, %c0_13], %10 {strides = array<i32>} : memref<48x384xf32, #tpu.memory_space<vmem>>, vector<24x128xf32>,
    %c1_14 = arith.constant 1 : index
    %c1_15 = arith.constant 1 : index
    %c0_16 = arith.constant 0 : index
    %12 = vector.load %arg0[%c1_14, %c1_15, %c0_16] : memref<2x26x128xf32, #tpu.memory_space<vmem>>, vector<1x24x128xf32>
    %13 = vector.shape_cast %12 : vector<1x24x128xf32> to vector<24x128xf32>
    %c24_17 = arith.constant 24 : index
    %c128_18 = arith.constant 128 : index
    %14 = vector.load %arg8[%c24_17, %c128_18] : memref<48x384xf32, #tpu.memory_space<vmem>>, vector<24x128xf32>
    tpu.vector_store %arg8[%c24_17, %c128_18], %13 {strides = array<i32>} : memref<48x384xf32, #tpu.memory_space<vmem>>, vector<24x128xf32>,
    %c1_19 = arith.constant 1 : index
    %c2_20 = arith.constant 2 : index
    %c0_21 = arith.constant 0 : index
    %15 = vector.load %arg0[%c1_19, %c2_20, %c0_21] : memref<2x26x128xf32, #tpu.memory_space<vmem>>, vector<1x24x128xf32>
    %16 = vector.shape_cast %15 : vector<1x24x128xf32> to vector<24x128xf32>
    %c24_22 = arith.constant 24 : index
    %c256_23 = arith.constant 256 : index
    %17 = vector.load %arg8[%c24_22, %c256_23] : memref<48x384xf32, #tpu.memory_space<vmem>>, vector<24x128xf32>
    tpu.vector_store %arg8[%c24_22, %c256_23], %16 {strides = array<i32>} : memref<48x384xf32, #tpu.memory_space<vmem>>, vector<24x128xf32>,
    %c0_24 = arith.constant 0 : index
    %c0_25 = arith.constant 0 : index
    %18 = vector.load %arg8[%c0_24, %c0_25] : memref<48x384xf32, #tpu.memory_space<vmem>>, vector<48x384xf32>
    %19 = arith.truncf %18 : vector<48x384xf32> to vector<48x384xbf16>
    %c0_26 = arith.constant 0 : index
    %c0_27 = arith.constant 0 : index
    %20 = vector.load %arg1[%c0_26, %c0_27] : memref<384x128xbf16, #tpu.memory_space<vmem>>, vector<384x128xbf16>
    %cst = arith.constant dense<0.000000e+00> : vector<48x128xf32>
    %21 = tpu.matmul %19, %20, %cst {dimension_numbers = #tpu.dot_dimension_numbers<[1], [0], [0], [1], [0, 0, 1, 1], [], []>} : vector<48x384xbf16>, vector<384x128xbf16>, vector<48x128xf32> -> vector<48x128xf32>
    %c0_28 = arith.constant 0 : index
    %c0_29 = arith.constant 0 : index
    %22 = vector.load %arg2[%c0_28, %c0_29] : memref<3x128xf32, #tpu.memory_space<vmem>>, vector<1x128xf32>
    %c1_30 = arith.constant 1 : index
    %c0_31 = arith.constant 0 : index
    %23 = vector.load %arg2[%c1_30, %c0_31] : memref<3x128xf32, #tpu.memory_space<vmem>>, vector<1x128xf32>
    %c2_32 = arith.constant 2 : index
    %c0_33 = arith.constant 0 : index
    %24 = vector.load %arg2[%c2_32, %c0_33] : memref<3x128xf32, #tpu.memory_space<vmem>>, vector<1x128xf32>
    %25 = vector.broadcast %22 : vector<1x128xf32> to vector<48x128xf32>
    %26 = arith.addf %21, %25 : vector<48x128xf32>
    %cst_34 = arith.constant 0.000000e+00 : f32
    %27 = vector.broadcast %cst_34 : f32 to vector<48x128xf32>
    %28 = arith.maximumf %26, %27 : vector<48x128xf32>
    %29 = vector.broadcast %23 : vector<1x128xf32> to vector<48x128xf32>
    %30 = arith.mulf %28, %29 : vector<48x128xf32>
    %31 = vector.broadcast %24 : vector<1x128xf32> to vector<48x128xf32>
    %32 = arith.addf %30, %31 : vector<48x128xf32>
    %cst_35 = arith.constant 0.000000e+00 : f32
    %33 = vector.broadcast %cst_35 : f32 to vector<48x384xf32>
    %c0_36 = arith.constant 0 : index
    %c0_37 = arith.constant 0 : index
    %34 = vector.load %arg9[%c0_36, %c0_37] : memref<48x384xf32, #tpu.memory_space<vmem>>, vector<48x384xf32>
    tpu.vector_store %arg9[%c0_36, %c0_37], %33 {strides = array<i32>} : memref<48x384xf32, #tpu.memory_space<vmem>>, vector<48x384xf32>,
    %35 = vector.extract_strided_slice %32 {offsets = [0, 0], sizes = [24, 128], strides = [1, 1]} : vector<48x128xf32> to vector<24x128xf32>
    %36 = vector.extract_strided_slice %35 {offsets = [0, 0], sizes = [23, 128], strides = [1, 1]} : vector<24x128xf32> to vector<23x128xf32>
    %c1_38 = arith.constant 1 : index
    %c0_39 = arith.constant 0 : index
    %37 = vector.load %arg9[%c1_38, %c0_39] : memref<48x384xf32, #tpu.memory_space<vmem>>, vector<23x128xf32>
    tpu.vector_store %arg9[%c1_38, %c0_39], %36 {strides = array<i32>} : memref<48x384xf32, #tpu.memory_space<vmem>>, vector<23x128xf32>,
    %c0_40 = arith.constant 0 : index
    %c128_41 = arith.constant 128 : index
    %38 = vector.load %arg9[%c0_40, %c128_41] : memref<48x384xf32, #tpu.memory_space<vmem>>, vector<24x128xf32>
    tpu.vector_store %arg9[%c0_40, %c128_41], %35 {strides = array<i32>} : memref<48x384xf32, #tpu.memory_space<vmem>>, vector<24x128xf32>,
    %39 = vector.extract_strided_slice %35 {offsets = [1, 0], sizes = [23, 128], strides = [1, 1]} : vector<24x128xf32> to vector<23x128xf32>
    %c0_42 = arith.constant 0 : index
    %c256_43 = arith.constant 256 : index
    %40 = vector.load %arg9[%c0_42, %c256_43] : memref<48x384xf32, #tpu.memory_space<vmem>>, vector<23x128xf32>
    tpu.vector_store %arg9[%c0_42, %c256_43], %39 {strides = array<i32>} : memref<48x384xf32, #tpu.memory_space<vmem>>, vector<23x128xf32>,
    %41 = vector.extract_strided_slice %32 {offsets = [24, 0], sizes = [24, 128], strides = [1, 1]} : vector<48x128xf32> to vector<24x128xf32>
    %42 = vector.extract_strided_slice %41 {offsets = [0, 0], sizes = [23, 128], strides = [1, 1]} : vector<24x128xf32> to vector<23x128xf32>
    %c25 = arith.constant 25 : index
    %c0_44 = arith.constant 0 : index
    %43 = vector.load %arg9[%c25, %c0_44] : memref<48x384xf32, #tpu.memory_space<vmem>>, vector<23x128xf32>
    tpu.vector_store %arg9[%c25, %c0_44], %42 {strides = array<i32>} : memref<48x384xf32, #tpu.memory_space<vmem>>, vector<23x128xf32>,
    %c24_45 = arith.constant 24 : index
    %c128_46 = arith.constant 128 : index
    %44 = vector.load %arg9[%c24_45, %c128_46] : memref<48x384xf32, #tpu.memory_space<vmem>>, vector<24x128xf32>
    tpu.vector_store %arg9[%c24_45, %c128_46], %41 {strides = array<i32>} : memref<48x384xf32, #tpu.memory_space<vmem>>, vector<24x128xf32>,
    %45 = vector.extract_strided_slice %41 {offsets = [1, 0], sizes = [23, 128], strides = [1, 1]} : vector<24x128xf32> to vector<23x128xf32>
    %c24_47 = arith.constant 24 : index
    %c256_48 = arith.constant 256 : index
    %46 = vector.load %arg9[%c24_47, %c256_48] : memref<48x384xf32, #tpu.memory_space<vmem>>, vector<23x128xf32>
    tpu.vector_store %arg9[%c24_47, %c256_48], %45 {strides = array<i32>} : memref<48x384xf32, #tpu.memory_space<vmem>>, vector<23x128xf32>,
    %c0_49 = arith.constant 0 : index
    %c0_50 = arith.constant 0 : index
    %47 = vector.load %arg9[%c0_49, %c0_50] : memref<48x384xf32, #tpu.memory_space<vmem>>, vector<48x384xf32>
    %48 = arith.truncf %47 : vector<48x384xf32> to vector<48x384xbf16>
    %c0_51 = arith.constant 0 : index
    %c0_52 = arith.constant 0 : index
    %49 = vector.load %arg3[%c0_51, %c0_52] : memref<384x128xbf16, #tpu.memory_space<vmem>>, vector<384x128xbf16>
    %cst_53 = arith.constant dense<0.000000e+00> : vector<48x128xf32>
    %50 = tpu.matmul %48, %49, %cst_53 {dimension_numbers = #tpu.dot_dimension_numbers<[1], [0], [0], [1], [0, 0, 1, 1], [], []>} : vector<48x384xbf16>, vector<384x128xbf16>, vector<48x128xf32> -> vector<48x128xf32>
    %c0_54 = arith.constant 0 : index
    %c0_55 = arith.constant 0 : index
    %51 = vector.load %arg4[%c0_54, %c0_55] : memref<3x128xf32, #tpu.memory_space<vmem>>, vector<1x128xf32>
    %c1_56 = arith.constant 1 : index
    %c0_57 = arith.constant 0 : index
    %52 = vector.load %arg4[%c1_56, %c0_57] : memref<3x128xf32, #tpu.memory_space<vmem>>, vector<1x128xf32>
    %c2_58 = arith.constant 2 : index
    %c0_59 = arith.constant 0 : index
    %53 = vector.load %arg4[%c2_58, %c0_59] : memref<3x128xf32, #tpu.memory_space<vmem>>, vector<1x128xf32>
    %54 = vector.broadcast %51 : vector<1x128xf32> to vector<48x128xf32>
    %55 = arith.addf %50, %54 : vector<48x128xf32>
    %cst_60 = arith.constant 0.000000e+00 : f32
    %56 = vector.broadcast %cst_60 : f32 to vector<48x128xf32>
    %57 = arith.maximumf %55, %56 : vector<48x128xf32>
    %58 = vector.broadcast %52 : vector<1x128xf32> to vector<48x128xf32>
    %59 = arith.mulf %57, %58 : vector<48x128xf32>
    %60 = vector.broadcast %53 : vector<1x128xf32> to vector<48x128xf32>
    %61 = arith.addf %59, %60 : vector<48x128xf32>
    %62 = vector.extract_strided_slice %61 {offsets = [0, 0], sizes = [24, 128], strides = [1, 1]} : vector<48x128xf32> to vector<24x128xf32>
    %63 = vector.extract_strided_slice %62 {offsets = [0, 0], sizes = [23, 128], strides = [1, 1]} : vector<24x128xf32> to vector<23x128xf32>
    %c1_61 = arith.constant 1 : index
    %c0_62 = arith.constant 0 : index
    %64 = vector.load %arg9[%c1_61, %c0_62] : memref<48x384xf32, #tpu.memory_space<vmem>>, vector<23x128xf32>
    tpu.vector_store %arg9[%c1_61, %c0_62], %63 {strides = array<i32>} : memref<48x384xf32, #tpu.memory_space<vmem>>, vector<23x128xf32>,
    %c0_63 = arith.constant 0 : index
    %c128_64 = arith.constant 128 : index
    %65 = vector.load %arg9[%c0_63, %c128_64] : memref<48x384xf32, #tpu.memory_space<vmem>>, vector<24x128xf32>
    tpu.vector_store %arg9[%c0_63, %c128_64], %62 {strides = array<i32>} : memref<48x384xf32, #tpu.memory_space<vmem>>, vector<24x128xf32>,
    %66 = vector.extract_strided_slice %62 {offsets = [1, 0], sizes = [23, 128], strides = [1, 1]} : vector<24x128xf32> to vector<23x128xf32>
    %c0_65 = arith.constant 0 : index
    %c256_66 = arith.constant 256 : index
    %67 = vector.load %arg9[%c0_65, %c256_66] : memref<48x384xf32, #tpu.memory_space<vmem>>, vector<23x128xf32>
    tpu.vector_store %arg9[%c0_65, %c256_66], %66 {strides = array<i32>} : memref<48x384xf32, #tpu.memory_space<vmem>>, vector<23x128xf32>,
    %68 = vector.extract_strided_slice %61 {offsets = [24, 0], sizes = [24, 128], strides = [1, 1]} : vector<48x128xf32> to vector<24x128xf32>
    %69 = vector.extract_strided_slice %68 {offsets = [0, 0], sizes = [23, 128], strides = [1, 1]} : vector<24x128xf32> to vector<23x128xf32>
    %c25_67 = arith.constant 25 : index
    %c0_68 = arith.constant 0 : index
    %70 = vector.load %arg9[%c25_67, %c0_68] : memref<48x384xf32, #tpu.memory_space<vmem>>, vector<23x128xf32>
    tpu.vector_store %arg9[%c25_67, %c0_68], %69 {strides = array<i32>} : memref<48x384xf32, #tpu.memory_space<vmem>>, vector<23x128xf32>,
    %c24_69 = arith.constant 24 : index
    %c128_70 = arith.constant 128 : index
    %71 = vector.load %arg9[%c24_69, %c128_70] : memref<48x384xf32, #tpu.memory_space<vmem>>, vector<24x128xf32>
    tpu.vector_store %arg9[%c24_69, %c128_70], %68 {strides = array<i32>} : memref<48x384xf32, #tpu.memory_space<vmem>>, vector<24x128xf32>,
    %72 = vector.extract_strided_slice %68 {offsets = [1, 0], sizes = [23, 128], strides = [1, 1]} : vector<24x128xf32> to vector<23x128xf32>
    %c24_71 = arith.constant 24 : index
    %c256_72 = arith.constant 256 : index
    %73 = vector.load %arg9[%c24_71, %c256_72] : memref<48x384xf32, #tpu.memory_space<vmem>>, vector<23x128xf32>
    tpu.vector_store %arg9[%c24_71, %c256_72], %72 {strides = array<i32>} : memref<48x384xf32, #tpu.memory_space<vmem>>, vector<23x128xf32>,
    %c0_73 = arith.constant 0 : index
    %c0_74 = arith.constant 0 : index
    %74 = vector.load %arg9[%c0_73, %c0_74] : memref<48x384xf32, #tpu.memory_space<vmem>>, vector<48x384xf32>
    %75 = arith.truncf %74 : vector<48x384xf32> to vector<48x384xbf16>
    %c0_75 = arith.constant 0 : index
    %c0_76 = arith.constant 0 : index
    %76 = vector.load %arg5[%c0_75, %c0_76] : memref<384x128xbf16, #tpu.memory_space<vmem>>, vector<384x128xbf16>
    %cst_77 = arith.constant dense<0.000000e+00> : vector<48x128xf32>
    %77 = tpu.matmul %75, %76, %cst_77 {dimension_numbers = #tpu.dot_dimension_numbers<[1], [0], [0], [1], [0, 0, 1, 1], [], []>} : vector<48x384xbf16>, vector<384x128xbf16>, vector<48x128xf32> -> vector<48x128xf32>
    %c0_78 = arith.constant 0 : index
    %c0_79 = arith.constant 0 : index
    %78 = vector.load %arg6[%c0_78, %c0_79] : memref<3x128xf32, #tpu.memory_space<vmem>>, vector<1x128xf32>
    %c1_80 = arith.constant 1 : index
    %c0_81 = arith.constant 0 : index
    %79 = vector.load %arg6[%c1_80, %c0_81] : memref<3x128xf32, #tpu.memory_space<vmem>>, vector<1x128xf32>
    %c2_82 = arith.constant 2 : index
    %c0_83 = arith.constant 0 : index
    %80 = vector.load %arg6[%c2_82, %c0_83] : memref<3x128xf32, #tpu.memory_space<vmem>>, vector<1x128xf32>
    %81 = vector.broadcast %78 : vector<1x128xf32> to vector<48x128xf32>
    %82 = arith.addf %77, %81 : vector<48x128xf32>
    %cst_84 = arith.constant 0.000000e+00 : f32
    %83 = vector.broadcast %cst_84 : f32 to vector<48x128xf32>
    %84 = arith.maximumf %82, %83 : vector<48x128xf32>
    %85 = vector.broadcast %79 : vector<1x128xf32> to vector<48x128xf32>
    %86 = arith.mulf %84, %85 : vector<48x128xf32>
    %87 = vector.broadcast %80 : vector<1x128xf32> to vector<48x128xf32>
    %88 = arith.addf %86, %87 : vector<48x128xf32>
    %89 = arith.addf %88, %32 : vector<48x128xf32>
    %90 = vector.extract_strided_slice %89 {offsets = [0, 0], sizes = [24, 128], strides = [1, 1]} : vector<48x128xf32> to vector<24x128xf32>
    %c0_85 = arith.constant 0 : index
    %c0_86 = arith.constant 0 : index
    %c0_87 = arith.constant 0 : index
    %91 = vector.load %arg7[%c0_85, %c0_86, %c0_87] : memref<2x24x128xf32, #tpu.memory_space<vmem>>, vector<1x24x128xf32>
    %92 = vector.shape_cast %91 : vector<1x24x128xf32> to vector<24x128xf32>
    %93 = vector.shape_cast %90 : vector<24x128xf32> to vector<1x24x128xf32>
    tpu.vector_store %arg7[%c0_85, %c0_86, %c0_87], %93 {strides = array<i32>} : memref<2x24x128xf32, #tpu.memory_space<vmem>>, vector<1x24x128xf32>,
    %94 = vector.extract_strided_slice %89 {offsets = [24, 0], sizes = [24, 128], strides = [1, 1]} : vector<48x128xf32> to vector<24x128xf32>
    %c1_88 = arith.constant 1 : index
    %c0_89 = arith.constant 0 : index
    %c0_90 = arith.constant 0 : index
    %95 = vector.load %arg7[%c1_88, %c0_89, %c0_90] : memref<2x24x128xf32, #tpu.memory_space<vmem>>, vector<1x24x128xf32>
    %96 = vector.shape_cast %95 : vector<1x24x128xf32> to vector<24x128xf32>
    %97 = vector.shape_cast %94 : vector<24x128xf32> to vector<1x24x128xf32>
    tpu.vector_store %arg7[%c1_88, %c0_89, %c0_90], %97 {strides = array<i32>} : memref<2x24x128xf32, #tpu.memory_space<vmem>>, vector<1x24x128xf32>,
    return
  }
}

module attributes {stable_mosaic.version = 11 : i64} {
  func.func @kernel(%arg0: memref<2x28x128xf32, #tpu.memory_space<vmem>>, %arg1: memref<384x128xbf16, #tpu.memory_space<vmem>>, %arg2: memref<3x128xf32, #tpu.memory_space<vmem>>, %arg3: memref<384x128xbf16, #tpu.memory_space<vmem>>, %arg4: memref<3x128xf32, #tpu.memory_space<vmem>>, %arg5: memref<384x128xbf16, #tpu.memory_space<vmem>>, %arg6: memref<3x128xf32, #tpu.memory_space<vmem>>, %arg7: memref<2x26x128xf32, #tpu.memory_space<vmem>>, %arg8: memref<52x384xf32, #tpu.memory_space<vmem>>, %arg9: memref<52x384xf32, #tpu.memory_space<vmem>>) attributes {dimension_semantics = [], scalar_prefetch = 0 : i64, scratch_operands = 2 : i64, tpu.core_type = #tpu.core_type<tc>} {
    %c0 = arith.constant 0 : index
    %c0_0 = arith.constant 0 : index
    %c0_1 = arith.constant 0 : index
    %0 = vector.load %arg0[%c0, %c0_0, %c0_1] : memref<2x28x128xf32, #tpu.memory_space<vmem>>, vector<1x26x128xf32>
    %1 = vector.shape_cast %0 : vector<1x26x128xf32> to vector<26x128xf32>
    %c0_2 = arith.constant 0 : index
    %c0_3 = arith.constant 0 : index
    %2 = vector.load %arg8[%c0_2, %c0_3] : memref<52x384xf32, #tpu.memory_space<vmem>>, vector<26x128xf32>
    tpu.vector_store %arg8[%c0_2, %c0_3], %1 {strides = array<i32>} : memref<52x384xf32, #tpu.memory_space<vmem>>, vector<26x128xf32>,
    %c0_4 = arith.constant 0 : index
    %c1 = arith.constant 1 : index
    %c0_5 = arith.constant 0 : index
    %3 = vector.load %arg0[%c0_4, %c1, %c0_5] : memref<2x28x128xf32, #tpu.memory_space<vmem>>, vector<1x26x128xf32>
    %4 = vector.shape_cast %3 : vector<1x26x128xf32> to vector<26x128xf32>
    %c0_6 = arith.constant 0 : index
    %c128 = arith.constant 128 : index
    %5 = vector.load %arg8[%c0_6, %c128] : memref<52x384xf32, #tpu.memory_space<vmem>>, vector<26x128xf32>
    tpu.vector_store %arg8[%c0_6, %c128], %4 {strides = array<i32>} : memref<52x384xf32, #tpu.memory_space<vmem>>, vector<26x128xf32>,
    %c0_7 = arith.constant 0 : index
    %c2 = arith.constant 2 : index
    %c0_8 = arith.constant 0 : index
    %6 = vector.load %arg0[%c0_7, %c2, %c0_8] : memref<2x28x128xf32, #tpu.memory_space<vmem>>, vector<1x26x128xf32>
    %7 = vector.shape_cast %6 : vector<1x26x128xf32> to vector<26x128xf32>
    %c0_9 = arith.constant 0 : index
    %c256 = arith.constant 256 : index
    %8 = vector.load %arg8[%c0_9, %c256] : memref<52x384xf32, #tpu.memory_space<vmem>>, vector<26x128xf32>
    tpu.vector_store %arg8[%c0_9, %c256], %7 {strides = array<i32>} : memref<52x384xf32, #tpu.memory_space<vmem>>, vector<26x128xf32>,
    %c1_10 = arith.constant 1 : index
    %c0_11 = arith.constant 0 : index
    %c0_12 = arith.constant 0 : index
    %9 = vector.load %arg0[%c1_10, %c0_11, %c0_12] : memref<2x28x128xf32, #tpu.memory_space<vmem>>, vector<1x26x128xf32>
    %10 = vector.shape_cast %9 : vector<1x26x128xf32> to vector<26x128xf32>
    %c26 = arith.constant 26 : index
    %c0_13 = arith.constant 0 : index
    %11 = vector.load %arg8[%c26, %c0_13] : memref<52x384xf32, #tpu.memory_space<vmem>>, vector<26x128xf32>
    tpu.vector_store %arg8[%c26, %c0_13], %10 {strides = array<i32>} : memref<52x384xf32, #tpu.memory_space<vmem>>, vector<26x128xf32>,
    %c1_14 = arith.constant 1 : index
    %c1_15 = arith.constant 1 : index
    %c0_16 = arith.constant 0 : index
    %12 = vector.load %arg0[%c1_14, %c1_15, %c0_16] : memref<2x28x128xf32, #tpu.memory_space<vmem>>, vector<1x26x128xf32>
    %13 = vector.shape_cast %12 : vector<1x26x128xf32> to vector<26x128xf32>
    %c26_17 = arith.constant 26 : index
    %c128_18 = arith.constant 128 : index
    %14 = vector.load %arg8[%c26_17, %c128_18] : memref<52x384xf32, #tpu.memory_space<vmem>>, vector<26x128xf32>
    tpu.vector_store %arg8[%c26_17, %c128_18], %13 {strides = array<i32>} : memref<52x384xf32, #tpu.memory_space<vmem>>, vector<26x128xf32>,
    %c1_19 = arith.constant 1 : index
    %c2_20 = arith.constant 2 : index
    %c0_21 = arith.constant 0 : index
    %15 = vector.load %arg0[%c1_19, %c2_20, %c0_21] : memref<2x28x128xf32, #tpu.memory_space<vmem>>, vector<1x26x128xf32>
    %16 = vector.shape_cast %15 : vector<1x26x128xf32> to vector<26x128xf32>
    %c26_22 = arith.constant 26 : index
    %c256_23 = arith.constant 256 : index
    %17 = vector.load %arg8[%c26_22, %c256_23] : memref<52x384xf32, #tpu.memory_space<vmem>>, vector<26x128xf32>
    tpu.vector_store %arg8[%c26_22, %c256_23], %16 {strides = array<i32>} : memref<52x384xf32, #tpu.memory_space<vmem>>, vector<26x128xf32>,
    %c0_24 = arith.constant 0 : index
    %c0_25 = arith.constant 0 : index
    %18 = vector.load %arg8[%c0_24, %c0_25] : memref<52x384xf32, #tpu.memory_space<vmem>>, vector<52x384xf32>
    %19 = arith.truncf %18 : vector<52x384xf32> to vector<52x384xbf16>
    %c0_26 = arith.constant 0 : index
    %c0_27 = arith.constant 0 : index
    %20 = vector.load %arg1[%c0_26, %c0_27] : memref<384x128xbf16, #tpu.memory_space<vmem>>, vector<384x128xbf16>
    %cst = arith.constant dense<0.000000e+00> : vector<52x128xf32>
    %21 = tpu.matmul %19, %20, %cst {dimension_numbers = #tpu.dot_dimension_numbers<[1], [0], [0], [1], [0, 0, 1, 1], [], []>} : vector<52x384xbf16>, vector<384x128xbf16>, vector<52x128xf32> -> vector<52x128xf32>
    %c0_28 = arith.constant 0 : index
    %c0_29 = arith.constant 0 : index
    %22 = vector.load %arg2[%c0_28, %c0_29] : memref<3x128xf32, #tpu.memory_space<vmem>>, vector<1x128xf32>
    %c1_30 = arith.constant 1 : index
    %c0_31 = arith.constant 0 : index
    %23 = vector.load %arg2[%c1_30, %c0_31] : memref<3x128xf32, #tpu.memory_space<vmem>>, vector<1x128xf32>
    %c2_32 = arith.constant 2 : index
    %c0_33 = arith.constant 0 : index
    %24 = vector.load %arg2[%c2_32, %c0_33] : memref<3x128xf32, #tpu.memory_space<vmem>>, vector<1x128xf32>
    %25 = vector.broadcast %22 : vector<1x128xf32> to vector<52x128xf32>
    %26 = arith.addf %21, %25 : vector<52x128xf32>
    %cst_34 = arith.constant 0.000000e+00 : f32
    %27 = vector.broadcast %cst_34 : f32 to vector<52x128xf32>
    %28 = arith.maximumf %26, %27 : vector<52x128xf32>
    %29 = vector.broadcast %23 : vector<1x128xf32> to vector<52x128xf32>
    %30 = arith.mulf %28, %29 : vector<52x128xf32>
    %31 = vector.broadcast %24 : vector<1x128xf32> to vector<52x128xf32>
    %32 = arith.addf %30, %31 : vector<52x128xf32>
    %cst_35 = arith.constant 0.000000e+00 : f32
    %33 = vector.broadcast %cst_35 : f32 to vector<52x384xf32>
    %c0_36 = arith.constant 0 : index
    %c0_37 = arith.constant 0 : index
    %34 = vector.load %arg9[%c0_36, %c0_37] : memref<52x384xf32, #tpu.memory_space<vmem>>, vector<52x384xf32>
    tpu.vector_store %arg9[%c0_36, %c0_37], %33 {strides = array<i32>} : memref<52x384xf32, #tpu.memory_space<vmem>>, vector<52x384xf32>,
    %35 = vector.extract_strided_slice %32 {offsets = [0, 0], sizes = [26, 128], strides = [1, 1]} : vector<52x128xf32> to vector<26x128xf32>
    %36 = vector.extract_strided_slice %35 {offsets = [0, 0], sizes = [25, 128], strides = [1, 1]} : vector<26x128xf32> to vector<25x128xf32>
    %c1_38 = arith.constant 1 : index
    %c0_39 = arith.constant 0 : index
    %37 = vector.load %arg9[%c1_38, %c0_39] : memref<52x384xf32, #tpu.memory_space<vmem>>, vector<25x128xf32>
    tpu.vector_store %arg9[%c1_38, %c0_39], %36 {strides = array<i32>} : memref<52x384xf32, #tpu.memory_space<vmem>>, vector<25x128xf32>,
    %c0_40 = arith.constant 0 : index
    %c128_41 = arith.constant 128 : index
    %38 = vector.load %arg9[%c0_40, %c128_41] : memref<52x384xf32, #tpu.memory_space<vmem>>, vector<26x128xf32>
    tpu.vector_store %arg9[%c0_40, %c128_41], %35 {strides = array<i32>} : memref<52x384xf32, #tpu.memory_space<vmem>>, vector<26x128xf32>,
    %39 = vector.extract_strided_slice %35 {offsets = [1, 0], sizes = [25, 128], strides = [1, 1]} : vector<26x128xf32> to vector<25x128xf32>
    %c0_42 = arith.constant 0 : index
    %c256_43 = arith.constant 256 : index
    %40 = vector.load %arg9[%c0_42, %c256_43] : memref<52x384xf32, #tpu.memory_space<vmem>>, vector<25x128xf32>
    tpu.vector_store %arg9[%c0_42, %c256_43], %39 {strides = array<i32>} : memref<52x384xf32, #tpu.memory_space<vmem>>, vector<25x128xf32>,
    %41 = vector.extract_strided_slice %32 {offsets = [26, 0], sizes = [26, 128], strides = [1, 1]} : vector<52x128xf32> to vector<26x128xf32>
    %42 = vector.extract_strided_slice %41 {offsets = [0, 0], sizes = [25, 128], strides = [1, 1]} : vector<26x128xf32> to vector<25x128xf32>
    %c27 = arith.constant 27 : index
    %c0_44 = arith.constant 0 : index
    %43 = vector.load %arg9[%c27, %c0_44] : memref<52x384xf32, #tpu.memory_space<vmem>>, vector<25x128xf32>
    tpu.vector_store %arg9[%c27, %c0_44], %42 {strides = array<i32>} : memref<52x384xf32, #tpu.memory_space<vmem>>, vector<25x128xf32>,
    %c26_45 = arith.constant 26 : index
    %c128_46 = arith.constant 128 : index
    %44 = vector.load %arg9[%c26_45, %c128_46] : memref<52x384xf32, #tpu.memory_space<vmem>>, vector<26x128xf32>
    tpu.vector_store %arg9[%c26_45, %c128_46], %41 {strides = array<i32>} : memref<52x384xf32, #tpu.memory_space<vmem>>, vector<26x128xf32>,
    %45 = vector.extract_strided_slice %41 {offsets = [1, 0], sizes = [25, 128], strides = [1, 1]} : vector<26x128xf32> to vector<25x128xf32>
    %c26_47 = arith.constant 26 : index
    %c256_48 = arith.constant 256 : index
    %46 = vector.load %arg9[%c26_47, %c256_48] : memref<52x384xf32, #tpu.memory_space<vmem>>, vector<25x128xf32>
    tpu.vector_store %arg9[%c26_47, %c256_48], %45 {strides = array<i32>} : memref<52x384xf32, #tpu.memory_space<vmem>>, vector<25x128xf32>,
    %c0_49 = arith.constant 0 : index
    %c0_50 = arith.constant 0 : index
    %47 = vector.load %arg9[%c0_49, %c0_50] : memref<52x384xf32, #tpu.memory_space<vmem>>, vector<52x384xf32>
    %48 = arith.truncf %47 : vector<52x384xf32> to vector<52x384xbf16>
    %c0_51 = arith.constant 0 : index
    %c0_52 = arith.constant 0 : index
    %49 = vector.load %arg3[%c0_51, %c0_52] : memref<384x128xbf16, #tpu.memory_space<vmem>>, vector<384x128xbf16>
    %cst_53 = arith.constant dense<0.000000e+00> : vector<52x128xf32>
    %50 = tpu.matmul %48, %49, %cst_53 {dimension_numbers = #tpu.dot_dimension_numbers<[1], [0], [0], [1], [0, 0, 1, 1], [], []>} : vector<52x384xbf16>, vector<384x128xbf16>, vector<52x128xf32> -> vector<52x128xf32>
    %c0_54 = arith.constant 0 : index
    %c0_55 = arith.constant 0 : index
    %51 = vector.load %arg4[%c0_54, %c0_55] : memref<3x128xf32, #tpu.memory_space<vmem>>, vector<1x128xf32>
    %c1_56 = arith.constant 1 : index
    %c0_57 = arith.constant 0 : index
    %52 = vector.load %arg4[%c1_56, %c0_57] : memref<3x128xf32, #tpu.memory_space<vmem>>, vector<1x128xf32>
    %c2_58 = arith.constant 2 : index
    %c0_59 = arith.constant 0 : index
    %53 = vector.load %arg4[%c2_58, %c0_59] : memref<3x128xf32, #tpu.memory_space<vmem>>, vector<1x128xf32>
    %54 = vector.broadcast %51 : vector<1x128xf32> to vector<52x128xf32>
    %55 = arith.addf %50, %54 : vector<52x128xf32>
    %cst_60 = arith.constant 0.000000e+00 : f32
    %56 = vector.broadcast %cst_60 : f32 to vector<52x128xf32>
    %57 = arith.maximumf %55, %56 : vector<52x128xf32>
    %58 = vector.broadcast %52 : vector<1x128xf32> to vector<52x128xf32>
    %59 = arith.mulf %57, %58 : vector<52x128xf32>
    %60 = vector.broadcast %53 : vector<1x128xf32> to vector<52x128xf32>
    %61 = arith.addf %59, %60 : vector<52x128xf32>
    %62 = vector.extract_strided_slice %61 {offsets = [0, 0], sizes = [26, 128], strides = [1, 1]} : vector<52x128xf32> to vector<26x128xf32>
    %63 = vector.extract_strided_slice %62 {offsets = [0, 0], sizes = [25, 128], strides = [1, 1]} : vector<26x128xf32> to vector<25x128xf32>
    %c1_61 = arith.constant 1 : index
    %c0_62 = arith.constant 0 : index
    %64 = vector.load %arg9[%c1_61, %c0_62] : memref<52x384xf32, #tpu.memory_space<vmem>>, vector<25x128xf32>
    tpu.vector_store %arg9[%c1_61, %c0_62], %63 {strides = array<i32>} : memref<52x384xf32, #tpu.memory_space<vmem>>, vector<25x128xf32>,
    %c0_63 = arith.constant 0 : index
    %c128_64 = arith.constant 128 : index
    %65 = vector.load %arg9[%c0_63, %c128_64] : memref<52x384xf32, #tpu.memory_space<vmem>>, vector<26x128xf32>
    tpu.vector_store %arg9[%c0_63, %c128_64], %62 {strides = array<i32>} : memref<52x384xf32, #tpu.memory_space<vmem>>, vector<26x128xf32>,
    %66 = vector.extract_strided_slice %62 {offsets = [1, 0], sizes = [25, 128], strides = [1, 1]} : vector<26x128xf32> to vector<25x128xf32>
    %c0_65 = arith.constant 0 : index
    %c256_66 = arith.constant 256 : index
    %67 = vector.load %arg9[%c0_65, %c256_66] : memref<52x384xf32, #tpu.memory_space<vmem>>, vector<25x128xf32>
    tpu.vector_store %arg9[%c0_65, %c256_66], %66 {strides = array<i32>} : memref<52x384xf32, #tpu.memory_space<vmem>>, vector<25x128xf32>,
    %68 = vector.extract_strided_slice %61 {offsets = [26, 0], sizes = [26, 128], strides = [1, 1]} : vector<52x128xf32> to vector<26x128xf32>
    %69 = vector.extract_strided_slice %68 {offsets = [0, 0], sizes = [25, 128], strides = [1, 1]} : vector<26x128xf32> to vector<25x128xf32>
    %c27_67 = arith.constant 27 : index
    %c0_68 = arith.constant 0 : index
    %70 = vector.load %arg9[%c27_67, %c0_68] : memref<52x384xf32, #tpu.memory_space<vmem>>, vector<25x128xf32>
    tpu.vector_store %arg9[%c27_67, %c0_68], %69 {strides = array<i32>} : memref<52x384xf32, #tpu.memory_space<vmem>>, vector<25x128xf32>,
    %c26_69 = arith.constant 26 : index
    %c128_70 = arith.constant 128 : index
    %71 = vector.load %arg9[%c26_69, %c128_70] : memref<52x384xf32, #tpu.memory_space<vmem>>, vector<26x128xf32>
    tpu.vector_store %arg9[%c26_69, %c128_70], %68 {strides = array<i32>} : memref<52x384xf32, #tpu.memory_space<vmem>>, vector<26x128xf32>,
    %72 = vector.extract_strided_slice %68 {offsets = [1, 0], sizes = [25, 128], strides = [1, 1]} : vector<26x128xf32> to vector<25x128xf32>
    %c26_71 = arith.constant 26 : index
    %c256_72 = arith.constant 256 : index
    %73 = vector.load %arg9[%c26_71, %c256_72] : memref<52x384xf32, #tpu.memory_space<vmem>>, vector<25x128xf32>
    tpu.vector_store %arg9[%c26_71, %c256_72], %72 {strides = array<i32>} : memref<52x384xf32, #tpu.memory_space<vmem>>, vector<25x128xf32>,
    %c0_73 = arith.constant 0 : index
    %c0_74 = arith.constant 0 : index
    %74 = vector.load %arg9[%c0_73, %c0_74] : memref<52x384xf32, #tpu.memory_space<vmem>>, vector<52x384xf32>
    %75 = arith.truncf %74 : vector<52x384xf32> to vector<52x384xbf16>
    %c0_75 = arith.constant 0 : index
    %c0_76 = arith.constant 0 : index
    %76 = vector.load %arg5[%c0_75, %c0_76] : memref<384x128xbf16, #tpu.memory_space<vmem>>, vector<384x128xbf16>
    %cst_77 = arith.constant dense<0.000000e+00> : vector<52x128xf32>
    %77 = tpu.matmul %75, %76, %cst_77 {dimension_numbers = #tpu.dot_dimension_numbers<[1], [0], [0], [1], [0, 0, 1, 1], [], []>} : vector<52x384xbf16>, vector<384x128xbf16>, vector<52x128xf32> -> vector<52x128xf32>
    %c0_78 = arith.constant 0 : index
    %c0_79 = arith.constant 0 : index
    %78 = vector.load %arg6[%c0_78, %c0_79] : memref<3x128xf32, #tpu.memory_space<vmem>>, vector<1x128xf32>
    %c1_80 = arith.constant 1 : index
    %c0_81 = arith.constant 0 : index
    %79 = vector.load %arg6[%c1_80, %c0_81] : memref<3x128xf32, #tpu.memory_space<vmem>>, vector<1x128xf32>
    %c2_82 = arith.constant 2 : index
    %c0_83 = arith.constant 0 : index
    %80 = vector.load %arg6[%c2_82, %c0_83] : memref<3x128xf32, #tpu.memory_space<vmem>>, vector<1x128xf32>
    %81 = vector.broadcast %78 : vector<1x128xf32> to vector<52x128xf32>
    %82 = arith.addf %77, %81 : vector<52x128xf32>
    %cst_84 = arith.constant 0.000000e+00 : f32
    %83 = vector.broadcast %cst_84 : f32 to vector<52x128xf32>
    %84 = arith.maximumf %82, %83 : vector<52x128xf32>
    %85 = vector.broadcast %79 : vector<1x128xf32> to vector<52x128xf32>
    %86 = arith.mulf %84, %85 : vector<52x128xf32>
    %87 = vector.broadcast %80 : vector<1x128xf32> to vector<52x128xf32>
    %88 = arith.addf %86, %87 : vector<52x128xf32>
    %89 = arith.addf %88, %32 : vector<52x128xf32>
    %90 = vector.extract_strided_slice %89 {offsets = [0, 0], sizes = [26, 128], strides = [1, 1]} : vector<52x128xf32> to vector<26x128xf32>
    %c0_85 = arith.constant 0 : index
    %c0_86 = arith.constant 0 : index
    %c0_87 = arith.constant 0 : index
    %91 = vector.load %arg7[%c0_85, %c0_86, %c0_87] : memref<2x26x128xf32, #tpu.memory_space<vmem>>, vector<1x26x128xf32>
    %92 = vector.shape_cast %91 : vector<1x26x128xf32> to vector<26x128xf32>
    %93 = vector.shape_cast %90 : vector<26x128xf32> to vector<1x26x128xf32>
    tpu.vector_store %arg7[%c0_85, %c0_86, %c0_87], %93 {strides = array<i32>} : memref<2x26x128xf32, #tpu.memory_space<vmem>>, vector<1x26x128xf32>,
    %94 = vector.extract_strided_slice %89 {offsets = [26, 0], sizes = [26, 128], strides = [1, 1]} : vector<52x128xf32> to vector<26x128xf32>
    %c1_88 = arith.constant 1 : index
    %c0_89 = arith.constant 0 : index
    %c0_90 = arith.constant 0 : index
    %95 = vector.load %arg7[%c1_88, %c0_89, %c0_90] : memref<2x26x128xf32, #tpu.memory_space<vmem>>, vector<1x26x128xf32>
    %96 = vector.shape_cast %95 : vector<1x26x128xf32> to vector<26x128xf32>
    %97 = vector.shape_cast %94 : vector<26x128xf32> to vector<1x26x128xf32>
    tpu.vector_store %arg7[%c1_88, %c0_89, %c0_90], %97 {strides = array<i32>} : memref<2x26x128xf32, #tpu.memory_space<vmem>>, vector<1x26x128xf32>,
    return
  }
}

module attributes {stable_mosaic.version = 11 : i64} {
  func.func @kernel(%arg0: memref<2x24x128xf32, #tpu.memory_space<vmem>>, %arg1: memref<640x128xbf16, #tpu.memory_space<vmem>>, %arg2: memref<3x128xf32, #tpu.memory_space<vmem>>, %arg3: memref<384x128xbf16, #tpu.memory_space<vmem>>, %arg4: memref<3x128xf32, #tpu.memory_space<vmem>>, %arg5: memref<384x128xbf16, #tpu.memory_space<vmem>>, %arg6: memref<3x128xf32, #tpu.memory_space<vmem>>, %arg7: memref<2x20x128xf32, #tpu.memory_space<vmem>>, %arg8: memref<40x640xf32, #tpu.memory_space<vmem>>, %arg9: memref<40x384xf32, #tpu.memory_space<vmem>>) attributes {dimension_semantics = [], scalar_prefetch = 0 : i64, scratch_operands = 2 : i64, tpu.core_type = #tpu.core_type<tc>} {
    %c0 = arith.constant 0 : index
    %c0_0 = arith.constant 0 : index
    %c0_1 = arith.constant 0 : index
    %0 = vector.load %arg0[%c0, %c0_0, %c0_1] : memref<2x24x128xf32, #tpu.memory_space<vmem>>, vector<1x20x128xf32>
    %1 = vector.shape_cast %0 : vector<1x20x128xf32> to vector<20x128xf32>
    %c0_2 = arith.constant 0 : index
    %c0_3 = arith.constant 0 : index
    %2 = vector.load %arg8[%c0_2, %c0_3] : memref<40x640xf32, #tpu.memory_space<vmem>>, vector<20x128xf32>
    tpu.vector_store %arg8[%c0_2, %c0_3], %1 {strides = array<i32>} : memref<40x640xf32, #tpu.memory_space<vmem>>, vector<20x128xf32>,
    %c0_4 = arith.constant 0 : index
    %c1 = arith.constant 1 : index
    %c0_5 = arith.constant 0 : index
    %3 = vector.load %arg0[%c0_4, %c1, %c0_5] : memref<2x24x128xf32, #tpu.memory_space<vmem>>, vector<1x20x128xf32>
    %4 = vector.shape_cast %3 : vector<1x20x128xf32> to vector<20x128xf32>
    %c0_6 = arith.constant 0 : index
    %c128 = arith.constant 128 : index
    %5 = vector.load %arg8[%c0_6, %c128] : memref<40x640xf32, #tpu.memory_space<vmem>>, vector<20x128xf32>
    tpu.vector_store %arg8[%c0_6, %c128], %4 {strides = array<i32>} : memref<40x640xf32, #tpu.memory_space<vmem>>, vector<20x128xf32>,
    %c0_7 = arith.constant 0 : index
    %c2 = arith.constant 2 : index
    %c0_8 = arith.constant 0 : index
    %6 = vector.load %arg0[%c0_7, %c2, %c0_8] : memref<2x24x128xf32, #tpu.memory_space<vmem>>, vector<1x20x128xf32>
    %7 = vector.shape_cast %6 : vector<1x20x128xf32> to vector<20x128xf32>
    %c0_9 = arith.constant 0 : index
    %c256 = arith.constant 256 : index
    %8 = vector.load %arg8[%c0_9, %c256] : memref<40x640xf32, #tpu.memory_space<vmem>>, vector<20x128xf32>
    tpu.vector_store %arg8[%c0_9, %c256], %7 {strides = array<i32>} : memref<40x640xf32, #tpu.memory_space<vmem>>, vector<20x128xf32>,
    %c0_10 = arith.constant 0 : index
    %c3 = arith.constant 3 : index
    %c0_11 = arith.constant 0 : index
    %9 = vector.load %arg0[%c0_10, %c3, %c0_11] : memref<2x24x128xf32, #tpu.memory_space<vmem>>, vector<1x20x128xf32>
    %10 = vector.shape_cast %9 : vector<1x20x128xf32> to vector<20x128xf32>
    %c0_12 = arith.constant 0 : index
    %c384 = arith.constant 384 : index
    %11 = vector.load %arg8[%c0_12, %c384] : memref<40x640xf32, #tpu.memory_space<vmem>>, vector<20x128xf32>
    tpu.vector_store %arg8[%c0_12, %c384], %10 {strides = array<i32>} : memref<40x640xf32, #tpu.memory_space<vmem>>, vector<20x128xf32>,
    %c0_13 = arith.constant 0 : index
    %c4 = arith.constant 4 : index
    %c0_14 = arith.constant 0 : index
    %12 = vector.load %arg0[%c0_13, %c4, %c0_14] : memref<2x24x128xf32, #tpu.memory_space<vmem>>, vector<1x20x128xf32>
    %13 = vector.shape_cast %12 : vector<1x20x128xf32> to vector<20x128xf32>
    %c0_15 = arith.constant 0 : index
    %c512 = arith.constant 512 : index
    %14 = vector.load %arg8[%c0_15, %c512] : memref<40x640xf32, #tpu.memory_space<vmem>>, vector<20x128xf32>
    tpu.vector_store %arg8[%c0_15, %c512], %13 {strides = array<i32>} : memref<40x640xf32, #tpu.memory_space<vmem>>, vector<20x128xf32>,
    %c1_16 = arith.constant 1 : index
    %c0_17 = arith.constant 0 : index
    %c0_18 = arith.constant 0 : index
    %15 = vector.load %arg0[%c1_16, %c0_17, %c0_18] : memref<2x24x128xf32, #tpu.memory_space<vmem>>, vector<1x20x128xf32>
    %16 = vector.shape_cast %15 : vector<1x20x128xf32> to vector<20x128xf32>
    %c20 = arith.constant 20 : index
    %c0_19 = arith.constant 0 : index
    %17 = vector.load %arg8[%c20, %c0_19] : memref<40x640xf32, #tpu.memory_space<vmem>>, vector<20x128xf32>
    tpu.vector_store %arg8[%c20, %c0_19], %16 {strides = array<i32>} : memref<40x640xf32, #tpu.memory_space<vmem>>, vector<20x128xf32>,
    %c1_20 = arith.constant 1 : index
    %c1_21 = arith.constant 1 : index
    %c0_22 = arith.constant 0 : index
    %18 = vector.load %arg0[%c1_20, %c1_21, %c0_22] : memref<2x24x128xf32, #tpu.memory_space<vmem>>, vector<1x20x128xf32>
    %19 = vector.shape_cast %18 : vector<1x20x128xf32> to vector<20x128xf32>
    %c20_23 = arith.constant 20 : index
    %c128_24 = arith.constant 128 : index
    %20 = vector.load %arg8[%c20_23, %c128_24] : memref<40x640xf32, #tpu.memory_space<vmem>>, vector<20x128xf32>
    tpu.vector_store %arg8[%c20_23, %c128_24], %19 {strides = array<i32>} : memref<40x640xf32, #tpu.memory_space<vmem>>, vector<20x128xf32>,
    %c1_25 = arith.constant 1 : index
    %c2_26 = arith.constant 2 : index
    %c0_27 = arith.constant 0 : index
    %21 = vector.load %arg0[%c1_25, %c2_26, %c0_27] : memref<2x24x128xf32, #tpu.memory_space<vmem>>, vector<1x20x128xf32>
    %22 = vector.shape_cast %21 : vector<1x20x128xf32> to vector<20x128xf32>
    %c20_28 = arith.constant 20 : index
    %c256_29 = arith.constant 256 : index
    %23 = vector.load %arg8[%c20_28, %c256_29] : memref<40x640xf32, #tpu.memory_space<vmem>>, vector<20x128xf32>
    tpu.vector_store %arg8[%c20_28, %c256_29], %22 {strides = array<i32>} : memref<40x640xf32, #tpu.memory_space<vmem>>, vector<20x128xf32>,
    %c1_30 = arith.constant 1 : index
    %c3_31 = arith.constant 3 : index
    %c0_32 = arith.constant 0 : index
    %24 = vector.load %arg0[%c1_30, %c3_31, %c0_32] : memref<2x24x128xf32, #tpu.memory_space<vmem>>, vector<1x20x128xf32>
    %25 = vector.shape_cast %24 : vector<1x20x128xf32> to vector<20x128xf32>
    %c20_33 = arith.constant 20 : index
    %c384_34 = arith.constant 384 : index
    %26 = vector.load %arg8[%c20_33, %c384_34] : memref<40x640xf32, #tpu.memory_space<vmem>>, vector<20x128xf32>
    tpu.vector_store %arg8[%c20_33, %c384_34], %25 {strides = array<i32>} : memref<40x640xf32, #tpu.memory_space<vmem>>, vector<20x128xf32>,
    %c1_35 = arith.constant 1 : index
    %c4_36 = arith.constant 4 : index
    %c0_37 = arith.constant 0 : index
    %27 = vector.load %arg0[%c1_35, %c4_36, %c0_37] : memref<2x24x128xf32, #tpu.memory_space<vmem>>, vector<1x20x128xf32>
    %28 = vector.shape_cast %27 : vector<1x20x128xf32> to vector<20x128xf32>
    %c20_38 = arith.constant 20 : index
    %c512_39 = arith.constant 512 : index
    %29 = vector.load %arg8[%c20_38, %c512_39] : memref<40x640xf32, #tpu.memory_space<vmem>>, vector<20x128xf32>
    tpu.vector_store %arg8[%c20_38, %c512_39], %28 {strides = array<i32>} : memref<40x640xf32, #tpu.memory_space<vmem>>, vector<20x128xf32>,
    %c0_40 = arith.constant 0 : index
    %c0_41 = arith.constant 0 : index
    %30 = vector.load %arg8[%c0_40, %c0_41] : memref<40x640xf32, #tpu.memory_space<vmem>>, vector<40x640xf32>
    %31 = arith.truncf %30 : vector<40x640xf32> to vector<40x640xbf16>
    %c0_42 = arith.constant 0 : index
    %c0_43 = arith.constant 0 : index
    %32 = vector.load %arg1[%c0_42, %c0_43] : memref<640x128xbf16, #tpu.memory_space<vmem>>, vector<640x128xbf16>
    %cst = arith.constant dense<0.000000e+00> : vector<40x128xf32>
    %33 = tpu.matmul %31, %32, %cst {dimension_numbers = #tpu.dot_dimension_numbers<[1], [0], [0], [1], [0, 0, 1, 1], [], []>} : vector<40x640xbf16>, vector<640x128xbf16>, vector<40x128xf32> -> vector<40x128xf32>
    %c0_44 = arith.constant 0 : index
    %c0_45 = arith.constant 0 : index
    %34 = vector.load %arg2[%c0_44, %c0_45] : memref<3x128xf32, #tpu.memory_space<vmem>>, vector<1x128xf32>
    %c1_46 = arith.constant 1 : index
    %c0_47 = arith.constant 0 : index
    %35 = vector.load %arg2[%c1_46, %c0_47] : memref<3x128xf32, #tpu.memory_space<vmem>>, vector<1x128xf32>
    %c2_48 = arith.constant 2 : index
    %c0_49 = arith.constant 0 : index
    %36 = vector.load %arg2[%c2_48, %c0_49] : memref<3x128xf32, #tpu.memory_space<vmem>>, vector<1x128xf32>
    %37 = vector.broadcast %34 : vector<1x128xf32> to vector<40x128xf32>
    %38 = arith.addf %33, %37 : vector<40x128xf32>
    %cst_50 = arith.constant 0.000000e+00 : f32
    %39 = vector.broadcast %cst_50 : f32 to vector<40x128xf32>
    %40 = arith.maximumf %38, %39 : vector<40x128xf32>
    %41 = vector.broadcast %35 : vector<1x128xf32> to vector<40x128xf32>
    %42 = arith.mulf %40, %41 : vector<40x128xf32>
    %43 = vector.broadcast %36 : vector<1x128xf32> to vector<40x128xf32>
    %44 = arith.addf %42, %43 : vector<40x128xf32>
    %cst_51 = arith.constant 0.000000e+00 : f32
    %45 = vector.broadcast %cst_51 : f32 to vector<40x384xf32>
    %c0_52 = arith.constant 0 : index
    %c0_53 = arith.constant 0 : index
    %46 = vector.load %arg9[%c0_52, %c0_53] : memref<40x384xf32, #tpu.memory_space<vmem>>, vector<40x384xf32>
    tpu.vector_store %arg9[%c0_52, %c0_53], %45 {strides = array<i32>} : memref<40x384xf32, #tpu.memory_space<vmem>>, vector<40x384xf32>,
    %47 = vector.extract_strided_slice %44 {offsets = [0, 0], sizes = [20, 128], strides = [1, 1]} : vector<40x128xf32> to vector<20x128xf32>
    %48 = vector.extract_strided_slice %47 {offsets = [0, 0], sizes = [19, 128], strides = [1, 1]} : vector<20x128xf32> to vector<19x128xf32>
    %c1_54 = arith.constant 1 : index
    %c0_55 = arith.constant 0 : index
    %49 = vector.load %arg9[%c1_54, %c0_55] : memref<40x384xf32, #tpu.memory_space<vmem>>, vector<19x128xf32>
    tpu.vector_store %arg9[%c1_54, %c0_55], %48 {strides = array<i32>} : memref<40x384xf32, #tpu.memory_space<vmem>>, vector<19x128xf32>,
    %c0_56 = arith.constant 0 : index
    %c128_57 = arith.constant 128 : index
    %50 = vector.load %arg9[%c0_56, %c128_57] : memref<40x384xf32, #tpu.memory_space<vmem>>, vector<20x128xf32>
    tpu.vector_store %arg9[%c0_56, %c128_57], %47 {strides = array<i32>} : memref<40x384xf32, #tpu.memory_space<vmem>>, vector<20x128xf32>,
    %51 = vector.extract_strided_slice %47 {offsets = [1, 0], sizes = [19, 128], strides = [1, 1]} : vector<20x128xf32> to vector<19x128xf32>
    %c0_58 = arith.constant 0 : index
    %c256_59 = arith.constant 256 : index
    %52 = vector.load %arg9[%c0_58, %c256_59] : memref<40x384xf32, #tpu.memory_space<vmem>>, vector<19x128xf32>
    tpu.vector_store %arg9[%c0_58, %c256_59], %51 {strides = array<i32>} : memref<40x384xf32, #tpu.memory_space<vmem>>, vector<19x128xf32>,
    %53 = vector.extract_strided_slice %44 {offsets = [20, 0], sizes = [20, 128], strides = [1, 1]} : vector<40x128xf32> to vector<20x128xf32>
    %54 = vector.extract_strided_slice %53 {offsets = [0, 0], sizes = [19, 128], strides = [1, 1]} : vector<20x128xf32> to vector<19x128xf32>
    %c21 = arith.constant 21 : index
    %c0_60 = arith.constant 0 : index
    %55 = vector.load %arg9[%c21, %c0_60] : memref<40x384xf32, #tpu.memory_space<vmem>>, vector<19x128xf32>
    tpu.vector_store %arg9[%c21, %c0_60], %54 {strides = array<i32>} : memref<40x384xf32, #tpu.memory_space<vmem>>, vector<19x128xf32>,
    %c20_61 = arith.constant 20 : index
    %c128_62 = arith.constant 128 : index
    %56 = vector.load %arg9[%c20_61, %c128_62] : memref<40x384xf32, #tpu.memory_space<vmem>>, vector<20x128xf32>
    tpu.vector_store %arg9[%c20_61, %c128_62], %53 {strides = array<i32>} : memref<40x384xf32, #tpu.memory_space<vmem>>, vector<20x128xf32>,
    %57 = vector.extract_strided_slice %53 {offsets = [1, 0], sizes = [19, 128], strides = [1, 1]} : vector<20x128xf32> to vector<19x128xf32>
    %c20_63 = arith.constant 20 : index
    %c256_64 = arith.constant 256 : index
    %58 = vector.load %arg9[%c20_63, %c256_64] : memref<40x384xf32, #tpu.memory_space<vmem>>, vector<19x128xf32>
    tpu.vector_store %arg9[%c20_63, %c256_64], %57 {strides = array<i32>} : memref<40x384xf32, #tpu.memory_space<vmem>>, vector<19x128xf32>,
    %c0_65 = arith.constant 0 : index
    %c0_66 = arith.constant 0 : index
    %59 = vector.load %arg9[%c0_65, %c0_66] : memref<40x384xf32, #tpu.memory_space<vmem>>, vector<40x384xf32>
    %60 = arith.truncf %59 : vector<40x384xf32> to vector<40x384xbf16>
    %c0_67 = arith.constant 0 : index
    %c0_68 = arith.constant 0 : index
    %61 = vector.load %arg3[%c0_67, %c0_68] : memref<384x128xbf16, #tpu.memory_space<vmem>>, vector<384x128xbf16>
    %cst_69 = arith.constant dense<0.000000e+00> : vector<40x128xf32>
    %62 = tpu.matmul %60, %61, %cst_69 {dimension_numbers = #tpu.dot_dimension_numbers<[1], [0], [0], [1], [0, 0, 1, 1], [], []>} : vector<40x384xbf16>, vector<384x128xbf16>, vector<40x128xf32> -> vector<40x128xf32>
    %c0_70 = arith.constant 0 : index
    %c0_71 = arith.constant 0 : index
    %63 = vector.load %arg4[%c0_70, %c0_71] : memref<3x128xf32, #tpu.memory_space<vmem>>, vector<1x128xf32>
    %c1_72 = arith.constant 1 : index
    %c0_73 = arith.constant 0 : index
    %64 = vector.load %arg4[%c1_72, %c0_73] : memref<3x128xf32, #tpu.memory_space<vmem>>, vector<1x128xf32>
    %c2_74 = arith.constant 2 : index
    %c0_75 = arith.constant 0 : index
    %65 = vector.load %arg4[%c2_74, %c0_75] : memref<3x128xf32, #tpu.memory_space<vmem>>, vector<1x128xf32>
    %66 = vector.broadcast %63 : vector<1x128xf32> to vector<40x128xf32>
    %67 = arith.addf %62, %66 : vector<40x128xf32>
    %cst_76 = arith.constant 0.000000e+00 : f32
    %68 = vector.broadcast %cst_76 : f32 to vector<40x128xf32>
    %69 = arith.maximumf %67, %68 : vector<40x128xf32>
    %70 = vector.broadcast %64 : vector<1x128xf32> to vector<40x128xf32>
    %71 = arith.mulf %69, %70 : vector<40x128xf32>
    %72 = vector.broadcast %65 : vector<1x128xf32> to vector<40x128xf32>
    %73 = arith.addf %71, %72 : vector<40x128xf32>
    %74 = vector.extract_strided_slice %73 {offsets = [0, 0], sizes = [20, 128], strides = [1, 1]} : vector<40x128xf32> to vector<20x128xf32>
    %75 = vector.extract_strided_slice %74 {offsets = [0, 0], sizes = [19, 128], strides = [1, 1]} : vector<20x128xf32> to vector<19x128xf32>
    %c1_77 = arith.constant 1 : index
    %c0_78 = arith.constant 0 : index
    %76 = vector.load %arg9[%c1_77, %c0_78] : memref<40x384xf32, #tpu.memory_space<vmem>>, vector<19x128xf32>
    tpu.vector_store %arg9[%c1_77, %c0_78], %75 {strides = array<i32>} : memref<40x384xf32, #tpu.memory_space<vmem>>, vector<19x128xf32>,
    %c0_79 = arith.constant 0 : index
    %c128_80 = arith.constant 128 : index
    %77 = vector.load %arg9[%c0_79, %c128_80] : memref<40x384xf32, #tpu.memory_space<vmem>>, vector<20x128xf32>
    tpu.vector_store %arg9[%c0_79, %c128_80], %74 {strides = array<i32>} : memref<40x384xf32, #tpu.memory_space<vmem>>, vector<20x128xf32>,
    %78 = vector.extract_strided_slice %74 {offsets = [1, 0], sizes = [19, 128], strides = [1, 1]} : vector<20x128xf32> to vector<19x128xf32>
    %c0_81 = arith.constant 0 : index
    %c256_82 = arith.constant 256 : index
    %79 = vector.load %arg9[%c0_81, %c256_82] : memref<40x384xf32, #tpu.memory_space<vmem>>, vector<19x128xf32>
    tpu.vector_store %arg9[%c0_81, %c256_82], %78 {strides = array<i32>} : memref<40x384xf32, #tpu.memory_space<vmem>>, vector<19x128xf32>,
    %80 = vector.extract_strided_slice %73 {offsets = [20, 0], sizes = [20, 128], strides = [1, 1]} : vector<40x128xf32> to vector<20x128xf32>
    %81 = vector.extract_strided_slice %80 {offsets = [0, 0], sizes = [19, 128], strides = [1, 1]} : vector<20x128xf32> to vector<19x128xf32>
    %c21_83 = arith.constant 21 : index
    %c0_84 = arith.constant 0 : index
    %82 = vector.load %arg9[%c21_83, %c0_84] : memref<40x384xf32, #tpu.memory_space<vmem>>, vector<19x128xf32>
    tpu.vector_store %arg9[%c21_83, %c0_84], %81 {strides = array<i32>} : memref<40x384xf32, #tpu.memory_space<vmem>>, vector<19x128xf32>,
    %c20_85 = arith.constant 20 : index
    %c128_86 = arith.constant 128 : index
    %83 = vector.load %arg9[%c20_85, %c128_86] : memref<40x384xf32, #tpu.memory_space<vmem>>, vector<20x128xf32>
    tpu.vector_store %arg9[%c20_85, %c128_86], %80 {strides = array<i32>} : memref<40x384xf32, #tpu.memory_space<vmem>>, vector<20x128xf32>,
    %84 = vector.extract_strided_slice %80 {offsets = [1, 0], sizes = [19, 128], strides = [1, 1]} : vector<20x128xf32> to vector<19x128xf32>
    %c20_87 = arith.constant 20 : index
    %c256_88 = arith.constant 256 : index
    %85 = vector.load %arg9[%c20_87, %c256_88] : memref<40x384xf32, #tpu.memory_space<vmem>>, vector<19x128xf32>
    tpu.vector_store %arg9[%c20_87, %c256_88], %84 {strides = array<i32>} : memref<40x384xf32, #tpu.memory_space<vmem>>, vector<19x128xf32>,
    %c0_89 = arith.constant 0 : index
    %c0_90 = arith.constant 0 : index
    %86 = vector.load %arg9[%c0_89, %c0_90] : memref<40x384xf32, #tpu.memory_space<vmem>>, vector<40x384xf32>
    %87 = arith.truncf %86 : vector<40x384xf32> to vector<40x384xbf16>
    %c0_91 = arith.constant 0 : index
    %c0_92 = arith.constant 0 : index
    %88 = vector.load %arg5[%c0_91, %c0_92] : memref<384x128xbf16, #tpu.memory_space<vmem>>, vector<384x128xbf16>
    %cst_93 = arith.constant dense<0.000000e+00> : vector<40x128xf32>
    %89 = tpu.matmul %87, %88, %cst_93 {dimension_numbers = #tpu.dot_dimension_numbers<[1], [0], [0], [1], [0, 0, 1, 1], [], []>} : vector<40x384xbf16>, vector<384x128xbf16>, vector<40x128xf32> -> vector<40x128xf32>
    %c0_94 = arith.constant 0 : index
    %c0_95 = arith.constant 0 : index
    %90 = vector.load %arg6[%c0_94, %c0_95] : memref<3x128xf32, #tpu.memory_space<vmem>>, vector<1x128xf32>
    %c1_96 = arith.constant 1 : index
    %c0_97 = arith.constant 0 : index
    %91 = vector.load %arg6[%c1_96, %c0_97] : memref<3x128xf32, #tpu.memory_space<vmem>>, vector<1x128xf32>
    %c2_98 = arith.constant 2 : index
    %c0_99 = arith.constant 0 : index
    %92 = vector.load %arg6[%c2_98, %c0_99] : memref<3x128xf32, #tpu.memory_space<vmem>>, vector<1x128xf32>
    %93 = vector.broadcast %90 : vector<1x128xf32> to vector<40x128xf32>
    %94 = arith.addf %89, %93 : vector<40x128xf32>
    %cst_100 = arith.constant 0.000000e+00 : f32
    %95 = vector.broadcast %cst_100 : f32 to vector<40x128xf32>
    %96 = arith.maximumf %94, %95 : vector<40x128xf32>
    %97 = vector.broadcast %91 : vector<1x128xf32> to vector<40x128xf32>
    %98 = arith.mulf %96, %97 : vector<40x128xf32>
    %99 = vector.broadcast %92 : vector<1x128xf32> to vector<40x128xf32>
    %100 = arith.addf %98, %99 : vector<40x128xf32>
    %101 = arith.addf %100, %44 : vector<40x128xf32>
    %102 = vector.extract_strided_slice %101 {offsets = [0, 0], sizes = [20, 128], strides = [1, 1]} : vector<40x128xf32> to vector<20x128xf32>
    %c0_101 = arith.constant 0 : index
    %c0_102 = arith.constant 0 : index
    %c0_103 = arith.constant 0 : index
    %103 = vector.load %arg7[%c0_101, %c0_102, %c0_103] : memref<2x20x128xf32, #tpu.memory_space<vmem>>, vector<1x20x128xf32>
    %104 = vector.shape_cast %103 : vector<1x20x128xf32> to vector<20x128xf32>
    %105 = vector.shape_cast %102 : vector<20x128xf32> to vector<1x20x128xf32>
    tpu.vector_store %arg7[%c0_101, %c0_102, %c0_103], %105 {strides = array<i32>} : memref<2x20x128xf32, #tpu.memory_space<vmem>>, vector<1x20x128xf32>,
    %106 = vector.extract_strided_slice %101 {offsets = [20, 0], sizes = [20, 128], strides = [1, 1]} : vector<40x128xf32> to vector<20x128xf32>
    %c1_104 = arith.constant 1 : index
    %c0_105 = arith.constant 0 : index
    %c0_106 = arith.constant 0 : index
    %107 = vector.load %arg7[%c1_104, %c0_105, %c0_106] : memref<2x20x128xf32, #tpu.memory_space<vmem>>, vector<1x20x128xf32>
    %108 = vector.shape_cast %107 : vector<1x20x128xf32> to vector<20x128xf32>
    %109 = vector.shape_cast %106 : vector<20x128xf32> to vector<1x20x128xf32>
    tpu.vector_store %arg7[%c1_104, %c0_105, %c0_106], %109 {strides = array<i32>} : memref<2x20x128xf32, #tpu.memory_space<vmem>>, vector<1x20x128xf32>,
    return
  }
}

module attributes {stable_mosaic.version = 11 : i64} {
  func.func @_tail_kernel(%arg0: memref<2x20x128xf32, #tpu.memory_space<vmem>>, %arg1: memref<128x128xbf16, #tpu.memory_space<vmem>>, %arg2: memref<3x128xf32, #tpu.memory_space<vmem>>, %arg3: memref<128x256xbf16, #tpu.memory_space<vmem>>, %arg4: memref<3x256xf32, #tpu.memory_space<vmem>>, %arg5: memref<512x512xbf16, #tpu.memory_space<vmem>>, %arg6: memref<3x512xf32, #tpu.memory_space<vmem>>, %arg7: memref<512x128xbf16, #tpu.memory_space<vmem>>, %arg8: memref<3x128xf32, #tpu.memory_space<vmem>>, %arg9: memref<128x16xbf16, #tpu.memory_space<vmem>>, %arg10: memref<1x16xf32, #tpu.memory_space<vmem>>, %arg11: memref<2x16xf32, #tpu.memory_space<vmem>>, %arg12: memref<2x128xf32, #tpu.memory_space<vmem>>, %arg13: memref<2x512xf32, #tpu.memory_space<vmem>>) attributes {dimension_semantics = [], scalar_prefetch = 0 : i64, scratch_operands = 1 : i64, tpu.core_type = #tpu.core_type<tc>} {
    %c0 = arith.constant 0 : index
    %c0_0 = arith.constant 0 : index
    %c0_1 = arith.constant 0 : index
    %0 = vector.load %arg0[%c0, %c0_0, %c0_1] : memref<2x20x128xf32, #tpu.memory_space<vmem>>, vector<1x20x128xf32>
    %1 = vector.shape_cast %0 : vector<1x20x128xf32> to vector<20x128xf32>
    %2 = arith.truncf %1 : vector<20x128xf32> to vector<20x128xbf16>
    %c0_2 = arith.constant 0 : index
    %c0_3 = arith.constant 0 : index
    %3 = vector.load %arg1[%c0_2, %c0_3] : memref<128x128xbf16, #tpu.memory_space<vmem>>, vector<128x128xbf16>
    %cst = arith.constant dense<0.000000e+00> : vector<20x128xf32>
    %4 = tpu.matmul %2, %3, %cst {dimension_numbers = #tpu.dot_dimension_numbers<[1], [0], [0], [1], [0, 0, 1, 1], [], []>} : vector<20x128xbf16>, vector<128x128xbf16>, vector<20x128xf32> -> vector<20x128xf32>
    %c0_4 = arith.constant 0 : index
    %c0_5 = arith.constant 0 : index
    %5 = vector.load %arg2[%c0_4, %c0_5] : memref<3x128xf32, #tpu.memory_space<vmem>>, vector<1x128xf32>
    %c1 = arith.constant 1 : index
    %c0_6 = arith.constant 0 : index
    %6 = vector.load %arg2[%c1, %c0_6] : memref<3x128xf32, #tpu.memory_space<vmem>>, vector<1x128xf32>
    %c2 = arith.constant 2 : index
    %c0_7 = arith.constant 0 : index
    %7 = vector.load %arg2[%c2, %c0_7] : memref<3x128xf32, #tpu.memory_space<vmem>>, vector<1x128xf32>
    %8 = vector.broadcast %5 : vector<1x128xf32> to vector<20x128xf32>
    %9 = arith.addf %4, %8 : vector<20x128xf32>
    %cst_8 = arith.constant 0.000000e+00 : f32
    %10 = vector.broadcast %cst_8 : f32 to vector<20x128xf32>
    %11 = arith.maximumf %9, %10 : vector<20x128xf32>
    %12 = vector.broadcast %6 : vector<1x128xf32> to vector<20x128xf32>
    %13 = arith.mulf %11, %12 : vector<20x128xf32>
    %14 = vector.broadcast %7 : vector<1x128xf32> to vector<20x128xf32>
    %15 = arith.addf %13, %14 : vector<20x128xf32>
    %16 = arith.truncf %15 : vector<20x128xf32> to vector<20x128xbf16>
    %c0_9 = arith.constant 0 : index
    %c0_10 = arith.constant 0 : index
    %17 = vector.load %arg3[%c0_9, %c0_10] : memref<128x256xbf16, #tpu.memory_space<vmem>>, vector<128x256xbf16>
    %cst_11 = arith.constant dense<0.000000e+00> : vector<20x256xf32>
    %18 = tpu.matmul %16, %17, %cst_11 {dimension_numbers = #tpu.dot_dimension_numbers<[1], [0], [0], [1], [0, 0, 1, 1], [], []>} : vector<20x128xbf16>, vector<128x256xbf16>, vector<20x256xf32> -> vector<20x256xf32>
    %c0_12 = arith.constant 0 : index
    %c0_13 = arith.constant 0 : index
    %19 = vector.load %arg4[%c0_12, %c0_13] : memref<3x256xf32, #tpu.memory_space<vmem>>, vector<1x256xf32>
    %c1_14 = arith.constant 1 : index
    %c0_15 = arith.constant 0 : index
    %20 = vector.load %arg4[%c1_14, %c0_15] : memref<3x256xf32, #tpu.memory_space<vmem>>, vector<1x256xf32>
    %c2_16 = arith.constant 2 : index
    %c0_17 = arith.constant 0 : index
    %21 = vector.load %arg4[%c2_16, %c0_17] : memref<3x256xf32, #tpu.memory_space<vmem>>, vector<1x256xf32>
    %22 = vector.broadcast %19 : vector<1x256xf32> to vector<20x256xf32>
    %23 = arith.addf %18, %22 : vector<20x256xf32>
    %cst_18 = arith.constant 0.000000e+00 : f32
    %24 = vector.broadcast %cst_18 : f32 to vector<20x256xf32>
    %25 = arith.maximumf %23, %24 : vector<20x256xf32>
    %26 = vector.broadcast %20 : vector<1x256xf32> to vector<20x256xf32>
    %27 = arith.mulf %25, %26 : vector<20x256xf32>
    %28 = vector.broadcast %21 : vector<1x256xf32> to vector<20x256xf32>
    %29 = arith.addf %27, %28 : vector<20x256xf32>
    %cst_19 = arith.constant dense<0.000000e+00> : vector<256xf32>
    %30 = vector.multi_reduction <add>, %29, %cst_19 [0] : vector<20x256xf32> to vector<256xf32>
    %31 = vector.shape_cast %30 : vector<256xf32> to vector<1x256xf32>
    %cst_20 = arith.constant 2.000000e+01 : f32
    %32 = vector.broadcast %cst_20 : f32 to vector<1x256xf32>
    %33 = arith.divf %31, %32 : vector<1x256xf32>
    %34 = vector.broadcast %33 : vector<1x256xf32> to vector<20x256xf32>
    %35 = arith.subf %29, %34 : vector<20x256xf32>
    %36 = arith.mulf %35, %35 : vector<20x256xf32>
    %cst_21 = arith.constant dense<0.000000e+00> : vector<256xf32>
    %37 = vector.multi_reduction <add>, %36, %cst_21 [0] : vector<20x256xf32> to vector<256xf32>
    %38 = vector.shape_cast %37 : vector<256xf32> to vector<1x256xf32>
    %cst_22 = arith.constant 1.900000e+01 : f32
    %39 = vector.broadcast %cst_22 : f32 to vector<1x256xf32>
    %40 = arith.divf %38, %39 : vector<1x256xf32>
    %41 = math.sqrt %40 : vector<1x256xf32>
    %c0_23 = arith.constant 0 : index
    %c0_24 = arith.constant 0 : index
    %42 = vector.load %arg13[%c0_23, %c0_24] : memref<2x512xf32, #tpu.memory_space<vmem>>, vector<1x256xf32>
    tpu.vector_store %arg13[%c0_23, %c0_24], %33 {strides = array<i32>} : memref<2x512xf32, #tpu.memory_space<vmem>>, vector<1x256xf32>,
    %c0_25 = arith.constant 0 : index
    %c256 = arith.constant 256 : index
    %43 = vector.load %arg13[%c0_25, %c256] : memref<2x512xf32, #tpu.memory_space<vmem>>, vector<1x256xf32>
    tpu.vector_store %arg13[%c0_25, %c256], %41 {strides = array<i32>} : memref<2x512xf32, #tpu.memory_space<vmem>>, vector<1x256xf32>,
    %c1_26 = arith.constant 1 : index
    %c0_27 = arith.constant 0 : index
    %c0_28 = arith.constant 0 : index
    %44 = vector.load %arg0[%c1_26, %c0_27, %c0_28] : memref<2x20x128xf32, #tpu.memory_space<vmem>>, vector<1x20x128xf32>
    %45 = vector.shape_cast %44 : vector<1x20x128xf32> to vector<20x128xf32>
    %46 = arith.truncf %45 : vector<20x128xf32> to vector<20x128xbf16>
    %c0_29 = arith.constant 0 : index
    %c0_30 = arith.constant 0 : index
    %47 = vector.load %arg1[%c0_29, %c0_30] : memref<128x128xbf16, #tpu.memory_space<vmem>>, vector<128x128xbf16>
    %cst_31 = arith.constant dense<0.000000e+00> : vector<20x128xf32>
    %48 = tpu.matmul %46, %47, %cst_31 {dimension_numbers = #tpu.dot_dimension_numbers<[1], [0], [0], [1], [0, 0, 1, 1], [], []>} : vector<20x128xbf16>, vector<128x128xbf16>, vector<20x128xf32> -> vector<20x128xf32>
    %c0_32 = arith.constant 0 : index
    %c0_33 = arith.constant 0 : index
    %49 = vector.load %arg2[%c0_32, %c0_33] : memref<3x128xf32, #tpu.memory_space<vmem>>, vector<1x128xf32>
    %c1_34 = arith.constant 1 : index
    %c0_35 = arith.constant 0 : index
    %50 = vector.load %arg2[%c1_34, %c0_35] : memref<3x128xf32, #tpu.memory_space<vmem>>, vector<1x128xf32>
    %c2_36 = arith.constant 2 : index
    %c0_37 = arith.constant 0 : index
    %51 = vector.load %arg2[%c2_36, %c0_37] : memref<3x128xf32, #tpu.memory_space<vmem>>, vector<1x128xf32>
    %52 = vector.broadcast %49 : vector<1x128xf32> to vector<20x128xf32>
    %53 = arith.addf %48, %52 : vector<20x128xf32>
    %cst_38 = arith.constant 0.000000e+00 : f32
    %54 = vector.broadcast %cst_38 : f32 to vector<20x128xf32>
    %55 = arith.maximumf %53, %54 : vector<20x128xf32>
    %56 = vector.broadcast %50 : vector<1x128xf32> to vector<20x128xf32>
    %57 = arith.mulf %55, %56 : vector<20x128xf32>
    %58 = vector.broadcast %51 : vector<1x128xf32> to vector<20x128xf32>
    %59 = arith.addf %57, %58 : vector<20x128xf32>
    %60 = arith.truncf %59 : vector<20x128xf32> to vector<20x128xbf16>
    %c0_39 = arith.constant 0 : index
    %c0_40 = arith.constant 0 : index
    %61 = vector.load %arg3[%c0_39, %c0_40] : memref<128x256xbf16, #tpu.memory_space<vmem>>, vector<128x256xbf16>
    %cst_41 = arith.constant dense<0.000000e+00> : vector<20x256xf32>
    %62 = tpu.matmul %60, %61, %cst_41 {dimension_numbers = #tpu.dot_dimension_numbers<[1], [0], [0], [1], [0, 0, 1, 1], [], []>} : vector<20x128xbf16>, vector<128x256xbf16>, vector<20x256xf32> -> vector<20x256xf32>
    %c0_42 = arith.constant 0 : index
    %c0_43 = arith.constant 0 : index
    %63 = vector.load %arg4[%c0_42, %c0_43] : memref<3x256xf32, #tpu.memory_space<vmem>>, vector<1x256xf32>
    %c1_44 = arith.constant 1 : index
    %c0_45 = arith.constant 0 : index
    %64 = vector.load %arg4[%c1_44, %c0_45] : memref<3x256xf32, #tpu.memory_space<vmem>>, vector<1x256xf32>
    %c2_46 = arith.constant 2 : index
    %c0_47 = arith.constant 0 : index
    %65 = vector.load %arg4[%c2_46, %c0_47] : memref<3x256xf32, #tpu.memory_space<vmem>>, vector<1x256xf32>
    %66 = vector.broadcast %63 : vector<1x256xf32> to vector<20x256xf32>
    %67 = arith.addf %62, %66 : vector<20x256xf32>
    %cst_48 = arith.constant 0.000000e+00 : f32
    %68 = vector.broadcast %cst_48 : f32 to vector<20x256xf32>
    %69 = arith.maximumf %67, %68 : vector<20x256xf32>
    %70 = vector.broadcast %64 : vector<1x256xf32> to vector<20x256xf32>
    %71 = arith.mulf %69, %70 : vector<20x256xf32>
    %72 = vector.broadcast %65 : vector<1x256xf32> to vector<20x256xf32>
    %73 = arith.addf %71, %72 : vector<20x256xf32>
    %cst_49 = arith.constant dense<0.000000e+00> : vector<256xf32>
    %74 = vector.multi_reduction <add>, %73, %cst_49 [0] : vector<20x256xf32> to vector<256xf32>
    %75 = vector.shape_cast %74 : vector<256xf32> to vector<1x256xf32>
    %cst_50 = arith.constant 2.000000e+01 : f32
    %76 = vector.broadcast %cst_50 : f32 to vector<1x256xf32>
    %77 = arith.divf %75, %76 : vector<1x256xf32>
    %78 = vector.broadcast %77 : vector<1x256xf32> to vector<20x256xf32>
    %79 = arith.subf %73, %78 : vector<20x256xf32>
    %80 = arith.mulf %79, %79 : vector<20x256xf32>
    %cst_51 = arith.constant dense<0.000000e+00> : vector<256xf32>
    %81 = vector.multi_reduction <add>, %80, %cst_51 [0] : vector<20x256xf32> to vector<256xf32>
    %82 = vector.shape_cast %81 : vector<256xf32> to vector<1x256xf32>
    %cst_52 = arith.constant 1.900000e+01 : f32
    %83 = vector.broadcast %cst_52 : f32 to vector<1x256xf32>
    %84 = arith.divf %82, %83 : vector<1x256xf32>
    %85 = math.sqrt %84 : vector<1x256xf32>
    %c1_53 = arith.constant 1 : index
    %c0_54 = arith.constant 0 : index
    %86 = vector.load %arg13[%c1_53, %c0_54] : memref<2x512xf32, #tpu.memory_space<vmem>>, vector<1x256xf32>
    tpu.vector_store %arg13[%c1_53, %c0_54], %77 {strides = array<i32>} : memref<2x512xf32, #tpu.memory_space<vmem>>, vector<1x256xf32>,
    %c1_55 = arith.constant 1 : index
    %c256_56 = arith.constant 256 : index
    %87 = vector.load %arg13[%c1_55, %c256_56] : memref<2x512xf32, #tpu.memory_space<vmem>>, vector<1x256xf32>
    tpu.vector_store %arg13[%c1_55, %c256_56], %85 {strides = array<i32>} : memref<2x512xf32, #tpu.memory_space<vmem>>, vector<1x256xf32>,
    %c0_57 = arith.constant 0 : index
    %c0_58 = arith.constant 0 : index
    %88 = vector.load %arg13[%c0_57, %c0_58] : memref<2x512xf32, #tpu.memory_space<vmem>>, vector<2x512xf32>
    %89 = arith.truncf %88 : vector<2x512xf32> to vector<2x512xbf16>
    %c0_59 = arith.constant 0 : index
    %c0_60 = arith.constant 0 : index
    %90 = vector.load %arg5[%c0_59, %c0_60] : memref<512x512xbf16, #tpu.memory_space<vmem>>, vector<512x512xbf16>
    %cst_61 = arith.constant dense<0.000000e+00> : vector<2x512xf32>
    %91 = tpu.matmul %89, %90, %cst_61 {dimension_numbers = #tpu.dot_dimension_numbers<[1], [0], [0], [1], [0, 0, 1, 1], [], []>} : vector<2x512xbf16>, vector<512x512xbf16>, vector<2x512xf32> -> vector<2x512xf32>
    %c0_62 = arith.constant 0 : index
    %c0_63 = arith.constant 0 : index
    %92 = vector.load %arg6[%c0_62, %c0_63] : memref<3x512xf32, #tpu.memory_space<vmem>>, vector<1x512xf32>
    %c1_64 = arith.constant 1 : index
    %c0_65 = arith.constant 0 : index
    %93 = vector.load %arg6[%c1_64, %c0_65] : memref<3x512xf32, #tpu.memory_space<vmem>>, vector<1x512xf32>
    %c2_66 = arith.constant 2 : index
    %c0_67 = arith.constant 0 : index
    %94 = vector.load %arg6[%c2_66, %c0_67] : memref<3x512xf32, #tpu.memory_space<vmem>>, vector<1x512xf32>
    %95 = vector.broadcast %92 : vector<1x512xf32> to vector<2x512xf32>
    %96 = arith.addf %91, %95 : vector<2x512xf32>
    %cst_68 = arith.constant 0.000000e+00 : f32
    %97 = vector.broadcast %cst_68 : f32 to vector<2x512xf32>
    %98 = arith.maximumf %96, %97 : vector<2x512xf32>
    %99 = vector.broadcast %93 : vector<1x512xf32> to vector<2x512xf32>
    %100 = arith.mulf %98, %99 : vector<2x512xf32>
    %101 = vector.broadcast %94 : vector<1x512xf32> to vector<2x512xf32>
    %102 = arith.addf %100, %101 : vector<2x512xf32>
    %103 = arith.truncf %102 : vector<2x512xf32> to vector<2x512xbf16>
    %c0_69 = arith.constant 0 : index
    %c0_70 = arith.constant 0 : index
    %104 = vector.load %arg7[%c0_69, %c0_70] : memref<512x128xbf16, #tpu.memory_space<vmem>>, vector<512x128xbf16>
    %cst_71 = arith.constant dense<0.000000e+00> : vector<2x128xf32>
    %105 = tpu.matmul %103, %104, %cst_71 {dimension_numbers = #tpu.dot_dimension_numbers<[1], [0], [0], [1], [0, 0, 1, 1], [], []>} : vector<2x512xbf16>, vector<512x128xbf16>, vector<2x128xf32> -> vector<2x128xf32>
    %c0_72 = arith.constant 0 : index
    %c0_73 = arith.constant 0 : index
    %106 = vector.load %arg8[%c0_72, %c0_73] : memref<3x128xf32, #tpu.memory_space<vmem>>, vector<1x128xf32>
    %c1_74 = arith.constant 1 : index
    %c0_75 = arith.constant 0 : index
    %107 = vector.load %arg8[%c1_74, %c0_75] : memref<3x128xf32, #tpu.memory_space<vmem>>, vector<1x128xf32>
    %c2_76 = arith.constant 2 : index
    %c0_77 = arith.constant 0 : index
    %108 = vector.load %arg8[%c2_76, %c0_77] : memref<3x128xf32, #tpu.memory_space<vmem>>, vector<1x128xf32>
    %109 = vector.broadcast %106 : vector<1x128xf32> to vector<2x128xf32>
    %110 = arith.addf %105, %109 : vector<2x128xf32>
    %cst_78 = arith.constant 0.000000e+00 : f32
    %111 = vector.broadcast %cst_78 : f32 to vector<2x128xf32>
    %112 = arith.maximumf %110, %111 : vector<2x128xf32>
    %113 = vector.broadcast %107 : vector<1x128xf32> to vector<2x128xf32>
    %114 = arith.mulf %112, %113 : vector<2x128xf32>
    %115 = vector.broadcast %108 : vector<1x128xf32> to vector<2x128xf32>
    %116 = arith.addf %114, %115 : vector<2x128xf32>
    %c0_79 = arith.constant 0 : index
    %c0_80 = arith.constant 0 : index
    %117 = vector.load %arg12[%c0_79, %c0_80] : memref<2x128xf32, #tpu.memory_space<vmem>>, vector<2x128xf32>
    tpu.vector_store %arg12[%c0_79, %c0_80], %116 {strides = array<i32>} : memref<2x128xf32, #tpu.memory_space<vmem>>, vector<2x128xf32>,
    %118 = arith.truncf %116 : vector<2x128xf32> to vector<2x128xbf16>
    %c0_81 = arith.constant 0 : index
    %c0_82 = arith.constant 0 : index
    %119 = vector.load %arg9[%c0_81, %c0_82] : memref<128x16xbf16, #tpu.memory_space<vmem>>, vector<128x16xbf16>
    %cst_83 = arith.constant dense<0.000000e+00> : vector<2x16xf32>
    %120 = tpu.matmul %118, %119, %cst_83 {dimension_numbers = #tpu.dot_dimension_numbers<[1], [0], [0], [1], [0, 0, 1, 1], [], []>} : vector<2x128xbf16>, vector<128x16xbf16>, vector<2x16xf32> -> vector<2x16xf32>
    %c0_84 = arith.constant 0 : index
    %c0_85 = arith.constant 0 : index
    %121 = vector.load %arg10[%c0_84, %c0_85] : memref<1x16xf32, #tpu.memory_space<vmem>>, vector<1x16xf32>
    %122 = vector.broadcast %121 : vector<1x16xf32> to vector<2x16xf32>
    %123 = arith.addf %120, %122 : vector<2x16xf32>
    %c0_86 = arith.constant 0 : index
    %c0_87 = arith.constant 0 : index
    %124 = vector.load %arg11[%c0_86, %c0_87] : memref<2x16xf32, #tpu.memory_space<vmem>>, vector<2x16xf32>
    tpu.vector_store %arg11[%c0_86, %c0_87], %123 {strides = array<i32>} : memref<2x16xf32, #tpu.memory_space<vmem>>, vector<2x16xf32>,
    return
  }
}

</mosaic_0001>

<bundles_post_ra>
// kernel: _lambda_.5
= control target key start
LH: loop header
LB: loop body
LE: loop exit
PB: predicated region body
PF: predicated region fallthrough
CT: control target
= control target key end

     0   :  { %12 = vsyncpa [#allocation5], 0  ;;  %s2475_s0 = inlined_call_operand.hbm [shape: f32[2,32,64], index: 0, kind: input, shape index: {}]   ;;  %s2476_s1 = inlined_call_operand.hbm [shape: bf16[320,128], index: 1, kind: input, shape index: {}]   ;;  %s2477_s2 = inlined_call_operand.vmem [shape: f32[3,128], index: 2, kind: input, shape index: {}]   ;;  %s2478_s3 = inlined_call_operand.hbm [shape: bf16[384,128], index: 3, kind: input, shape index: {}]   ;;  %s2479_s4 = inlined_call_operand.vmem [shape: f32[3,128], index: 4, kind: input, shape index: {}]   ;;  %s2480_s5 = inlined_call_operand.hbm [shape: bf16[384,128], index: 5, kind: input, shape index: {}]   ;;  %s2481_s6 = inlined_call_operand.vmem [shape: f32[3,128], index: 6, kind: input, shape index: {}]   ;;  %s2482_s7 = inlined_call_operand.vmem [shape: f32[2,28,128], index: 7, kind: output, shape index: {}]  }
   0x1   :  { %13 = vsyncpa [#allocation7], 0 }
   0x2   :  { %14 = vsyncpa [#allocation10], 0  ;;  %s2104_s24 = smov [#allocation6]   ;;  %s2010_s28 = scalar_lea.hbm %s2476_s1, 2560 }
   0x3   :  { %s32_s25 = sshll.u32 %s2104_s24, 4  ;;  %p2011_p0 = scmp.ne.s32.totalorder %s2476_s1, %s2010_s28  ;;  %s33_s25 = int_to_ptr.vmem [resolvable:$true] %s32_s25 }
   0x4   :  { %p2014_p1 = scmp.lt.u32.totalorder %s2010_s28, %s2476_s1 }
   0x6   :  { %p2016_p2 = pnand %p2014_p1, %p2011_p0 }
   0x8   :  { %2019 = shalt.err (!%p2016_p2)
}
   0x9   :  { %s2020_s10 = scalar_lea.vmem %s33_s25, 2560  ;;  %p2025_p4 = scmp.lt.s32.totalorder %s33_s25, %s33_s25 }
   0xa   :  { %p2021_p3 = scmp.ne.s32.totalorder %s33_s25, %s2020_s10  ;;  %p2026_p5 = scmp.lt.s32.totalorder %s2020_s10, %s2020_s10 }
   0xc   :  { %p2027_p6 = por %p2026_p5, %p2025_p4 }
   0xe   :  { %p2028_p7 = pnand %p2027_p6, %p2021_p3 }
  0x10   :  { %2031 = shalt.err (!%p2028_p7)
}
  0x11   :  { %s2105_s11 = smov 64   ;;  %s2106_s12 = smov 4  }
  0x12   :  { %38 = dma.hbm_to_vmem [thread:$0]  %s2476_s1, 2560, %s33_s25, [#allocation7], %s2105_s11, %s2105_s11, %s2106_s12  }
  0x13   :  { %s2107_s15 = smov [#allocation4]   ;;  %s2032_s19 = scalar_lea.hbm %s2475_s0, 1024 }
  0x14   :  { %s20_s16 = sshll.u32 %s2107_s15, 4  ;;  %p2033_p8 = scmp.ne.s32.totalorder %s2475_s0, %s2032_s19  ;;  %s21_s16 = int_to_ptr.vmem [resolvable:$true] %s20_s16 }
  0x15   :  { %p2036_p9 = scmp.lt.u32.totalorder %s2032_s19, %s2475_s0 }
  0x17   :  { %p2038_p10 = pnand %p2036_p9, %p2033_p8 }
  0x19   :  { %2041 = shalt.err (!%p2038_p10)
}
  0x1a   :  { %s2042_s24 = scalar_lea.vmem %s21_s16, 1024  ;;  %p2047_p12 = scmp.lt.s32.totalorder %s21_s16, %s21_s16 }
  0x1b   :  { %p2043_p11 = scmp.ne.s32.totalorder %s21_s16, %s2042_s24  ;;  %p2048_p13 = scmp.lt.s32.totalorder %s2042_s24, %s2042_s24 }
  0x1d   :  { %p2049_p0 = por %p2048_p13, %p2047_p12 }
  0x1f   :  { %p2050_p1 = pnand %p2049_p0, %p2043_p11 }
  0x21   :  { %2053 = shalt.err (!%p2050_p1)
}
  0x22   :  { %s2108_s1 = smov 128   ;;  %s2109_s25 = smov 8  }
  0x23   :  { %26 = dma.hbm_to_vmem [thread:$0]  %s2475_s0, 1024, %s21_s16, [#allocation5], %s2108_s1, %s2108_s1, %s2109_s25  }
  0x24   :  { %s2110_s28 = smov [#allocation8]   ;;  %s2111_s30 = smov [#allocation9]  }
  0x25   :  { %s46_s29 = sshll.u32 %s2110_s28, 4  ;;  %s60_s8 = sshll.u32 %s2111_s30, 4  ;;  %s47_s29 = int_to_ptr.vmem [resolvable:$true] %s46_s29  ;;  %s2180_s8 = int_to_ptr.vmem [resolvable:$true] %s60_s8 }
  0x26   :  { %s2054_s13 = scalar_lea.hbm %s2478_s3, 3072 }
  0x27   :  { %p2055_p2 = scmp.ne.s32.totalorder %s2478_s3, %s2054_s13  ;;  %p2058_p3 = scmp.lt.u32.totalorder %s2054_s13, %s2478_s3 }
  0x29   :  { %p2060_p4 = pnand %p2058_p3, %p2055_p2 }
  0x2b   :  { %2063 = shalt.err (!%p2060_p4)
}
  0x2c   :  { %s2064_s0 = scalar_lea.vmem %s47_s29, 3072  ;;  %p2069_p6 = scmp.lt.s32.totalorder %s47_s29, %s47_s29 }
  0x2d   :  { %p2065_p5 = scmp.ne.s32.totalorder %s47_s29, %s2064_s0  ;;  %p2070_p7 = scmp.lt.s32.totalorder %s2064_s0, %s2064_s0 }
  0x2f   :  { %p2071_p8 = por %p2070_p7, %p2069_p6 }
  0x31   :  { %p2072_p9 = pnand %p2071_p8, %p2065_p5 }
  0x33   :  { %2075 = shalt.err (!%p2072_p9)
}
  0x34   :  { %52 = dma.hbm_to_vmem [thread:$0]  %s2478_s3, 3072, %s47_s29, [#allocation7], %s2105_s11, %s2105_s11, %s2106_s12  }
  0x35   :  { %s2076_s22 = scalar_lea.hbm %s2480_s5, 3072 }
  0x36   :  { %p2077_p10 = scmp.ne.s32.totalorder %s2480_s5, %s2076_s22  ;;  %p2080_p11 = scmp.lt.u32.totalorder %s2076_s22, %s2480_s5 }
  0x38   :  { %p2082_p12 = pnand %p2080_p11, %p2077_p10 }
  0x3a   :  { %2085 = shalt.err (!%p2082_p12)
}
  0x3b   :  { %s2086_s26 = scalar_lea.vmem %s2180_s8, 3072  ;;  %p2091_p0 = scmp.lt.s32.totalorder %s2180_s8, %s2180_s8 }
  0x3c   :  { %p2087_p13 = scmp.ne.s32.totalorder %s2180_s8, %s2086_s26  ;;  %p2092_p1 = scmp.lt.s32.totalorder %s2086_s26, %s2086_s26 }
  0x3e   :  { %p2093_p2 = por %p2092_p1, %p2091_p0 }
  0x40   :  { %p2094_p3 = pnand %p2093_p2, %p2087_p13 }
  0x42   :  { %2097 = shalt.err (!%p2094_p3)
}
  0x43   :  { %66 = dma.hbm_to_vmem [thread:$0]  %s2480_s5, 3072, %s2180_s8, [#allocation10], %s2105_s11, %s2105_s11, %s2106_s12  }
  0x44   :  { %2098 = dma.done.wait [#allocation5], 1024  }
  0x45   :  { %2099 = vsyncadd [#allocation5], 4294966272 }
  0x46   :  { %2100 = dma.done.wait [#allocation7], 5632  }
  0x47   :  { %2101 = vsyncadd [#allocation7], 4294961664 }
  0x48   :  { %2102 = dma.done.wait [#allocation10], 3072  }
  0x49   :  { %2103 = vsyncadd [#allocation10], 4294964224  ;;  %v126_v0 = vld [vmem:[#allocation4 + $0x3] sm:$0xff]  ;;  %v127_v2 = vld [vmem:[#allocation4 + $0xb] sm:$0xff]  ;;  %vm86_vm0 = vcmask 523264   ;;  %vm167_vm1 = vcmask 1043456  }
  0x4a   :  { %v92_v1 = vld [vmem:[#allocation4 + $0x1] sm:$0xff]  ;;  %134 = vrot.lane.b32.xlu0 %v126_v0, %s2105_s11  ;;  %v93_v3 = vld [vmem:[#allocation4 + $0x9] sm:$0xff]  ;;  %v128_v5 = vld [vmem:[#allocation4 + $0x13] sm:$0xff]  ;;  %vm90_vm2 = vcmask 519168   ;;  %vm179_vm3 = vcmask 523268   ;;  %vm112_vm4 = vcmask 1048064  }
  0x4b   :  { %100 = vrot.lane.b32.xlu1 %v92_v1, %s2105_s11  ;;  %v1942_v4 = vld [vmem:[#allocation6 + $0x40] sm:$0xff]   ;;  %v129_v6 = vld [vmem:[#allocation4 + $0x1b] sm:$0xf]  ;;  %v94_v10 = vld [vmem:[#allocation4 + $0x11] sm:$0xff]  ;;  %vm116_vm5 = vcmask 1043968   ;;  %vm211_vm6 = vcmask 1048068  }
  0x4c   :  { %v239_v7 = vld [vmem:[#allocation4 + $0x23] sm:$0xff]  ;;  %1717 = vmatprep.subr.bf16.mxu0 %v1942_v4  ;;  %v240_v11 = vld [vmem:[#allocation4 + $0x2b] sm:$0xff]  ;;  %v2223_v14 = vld [vmem:[#allocation4 + $0x33] sm:$0xff]  ;;  %vm687_vm7 = vcmask 1040384   ;;  %vm707_vm8 = vcmask 1046528  }
  0x4d   :  { %v184_v8 = vld [vmem:[#allocation4 + $0x21] sm:$0xff]  ;;  %v247_v13 = vrot.slane %v239_v7, 4  ;;  %v1946_v16 = vld [vmem:[#allocation6 + $0x50] sm:$0xff]   ;;  %v95_v17 = vld [vmem:[#allocation4 + $0x19] sm:$0xf]  ;;  %v248_v19 = vrot.slane %v240_v11, 4 }
  0x4e   :  { %136 = vrot.lane.b32.xlu0 %v127_v2, %s2105_s11  ;;  %v1943_v9 = vld [vmem:[#allocation6] sm:$0xff]   ;;  %v1944_v12 = vld [vmem:[#allocation6 + $0x48] sm:$0xff]   ;;  %v192_v18 = vrot.slane %v184_v8, 4  ;;  %v186_v21 = vld [vmem:[#allocation4 + $0x31] sm:$0xff]  ;;  %v250_v23 = vrot.slane %v2223_v14, 4 }
  0x4f   :  { %102 = vrot.lane.b32.xlu1 %v93_v3, %s2105_s11  ;;  %1718 = vmatpush3.bf16.msra.mxu0 %v1943_v9  ;;  %v1945_v15 = vld [vmem:[#allocation6 + $0x8] sm:$0xff]   ;;  %v1947_v22 = vld [vmem:[#allocation6 + $0x10] sm:$0xff]   ;;  %v1948_v24 = vld [vmem:[#allocation6 + $0x58] sm:$0xff]   ;;  %v249_v31 = vsel %vm167_vm1, %v247_v13, %v248_v19  ;;  %v195_v34 = vrot.slane %v186_v21, 4 }
  0x50   :  { %1719 = vmatprep.subr.bf16.mxu0 %v1944_v12  ;;  %v185_v20 = vld [vmem:[#allocation4 + $0x29] sm:$0xff]  ;;  %v82_v26 = vld [vmem:[#allocation4] sm:$0xff]  ;;  %v1949_v27 = vld [vmem:[#allocation6 + $0x18] sm:$0xff]   ;;  %v251_v32 = vsel %vm167_vm1, %v248_v19, %v250_v23 }
  0x51   :  { %v118_v25 = vld [vmem:[#allocation4 + $0x2] sm:$0xff]  ;;  %87 = vst.msk [vmem:[#allocation2] sm:$0xff] %vm86_vm0, %v82_v26  ;;  %v242_v28 = vld [vmem:[#allocation4 + $0x3b] sm:$0xf]  ;;  %v193_v33 = vrot.slane %v185_v20, 4  ;;  %v119_v36 = vld [vmem:[#allocation4 + $0xa] sm:$0xff] }
  0x52   :  { %138 = vrot.lane.b32.xlu0 %v128_v5, %s2105_s11  ;;  %122 = vst.msk [vmem:[#allocation2 + $0x8] sm:$0xff] %vm86_vm0, %v118_v25  ;;  %v187_v29 = vld [vmem:[#allocation4 + $0x39] sm:$0xf]  ;;  %v1950_v30 = vld [vmem:[#allocation6 + $0x60] sm:$0xff]   ;;  %123 = vst.msk [vmem:[#allocation2 + $0x20] sm:$0xff] %vm86_vm0, %v119_v36  ;;  %v252_v42 = vrot.slane %v242_v28, 4 }
  0x53   :  { %140 = vrot.lane.b32.xlu1 %v129_v6, %s2105_s11  ;;  %1720 = vmatpush3.bf16.msra.mxu0 %v1945_v15  ;;  %v1953_v35 = vld [vmem:[#allocation6 + $0x80] sm:$0xff]   ;;  %v83_v37 = vld [vmem:[#allocation4 + $0x8] sm:$0xff]  ;;  %v194_v40 = vsel %vm167_vm1, %v192_v18, %v193_v33  ;;  %v196_v41 = vsel %vm167_vm1, %v193_v33, %v195_v34  ;;  %v197_v43 = vrot.slane %v187_v29, 4  ;;  %v120_v45 = vld [vmem:[#allocation4 + $0x12] sm:$0xff] }
  0x54   :  { %1721 = vmatprep.subr.bf16.mxu0 %v1946_v16  ;;  %v1951_v38 = vld [vmem:[#allocation6 + $0x20] sm:$0xff]   ;;  %1869 = vmatprep.subr.bf16.mxu1 %v1953_v35  ;;  %88 = vst.msk [vmem:[#allocation2 + $0x18] sm:$0xff] %vm86_vm0, %v83_v37  ;;  %v1952_v39 = vld [vmem:[#allocation6 + $0x68] sm:$0xff]   ;;  %v121_v46 = vld [vmem:[#allocation4 + $0x1a] sm:$0xf]  ;;  %v253_v50 = vsel %vm167_vm1, %v250_v23, %v252_v42 }
  0x55   :  { %1870 = vmatpush3.bf16.msra.mxu1 %v1953_v35  ;;  %v1956_v44 = vld [vmem:[#allocation6 + $0x88] sm:$0xff]   ;;  %124 = vst.msk [vmem:[#allocation2 + $0x38] sm:$0xff] %vm86_vm0, %v120_v45  ;;  %v153_v47 = vld [vmem:[#allocation4 + $0x1c] sm:$0xf]  ;;  %v1955_v49 = vld [vmem:[#allocation6 + $0x70] sm:$0xff]   ;;  %v198_v51 = vsel %vm167_vm1, %v195_v34, %v197_v43 }
  0x56   :  { %254 = vrot.lane.b32.xlu0 %v247_v13, %s2105_s11  ;;  %125 = vst.msk [vmem:[#allocation2 + $0x50] sm:$0xf] %vm90_vm2, %v121_v46  ;;  %v1954_v48 = vld [vmem:[#allocation6 + $0x28] sm:$0xff]   ;;  %1871 = vmatprep.subr.bf16.mxu1 %v1956_v44  ;;  %157 = vst.msk [vmem:[#allocation2 + $0x58] sm:$0xf] %vm90_vm2, %v153_v47  ;;  %v1959_v52 = vld [vmem:[#allocation6 + $0x90] sm:$0xff]  }
  0x57   :  { %104 = vrot.lane.b32.xlu1 %v94_v10, %s2105_s11  ;;  %1722 = vmatpush3.bf16.msra.mxu0 %v1947_v22  ;;  %v216_v53 = vld [vmem:[#allocation4 + $0x22] sm:$0xff]  ;;  %v271_v56 = vld [vmem:[#allocation4 + $0x2c] sm:$0xff]  ;;  %v272_v57 = vld [vmem:[#allocation4 + $0x34] sm:$0xff] }
  0x58   :  { %1723 = vmatprep.subr.bf16.mxu0 %v1948_v24  ;;  %v270_v54 = vld [vmem:[#allocation4 + $0x24] sm:$0xff]  ;;  %v224_v55 = vrot.slane %v216_v53, 4  ;;  %v273_v58 = vld [vmem:[#allocation4 + $0x3c] sm:$0xf]  ;;  %v1957_v60 = vld [vmem:[#allocation6 + $0x30] sm:$0xff]   ;;  %v279_v61 = vrot.slane %v271_v56, 4 }
  0x59   :  { %1872 = vmatpush3.bf16.msra.mxu1 %v1956_v44  ;;  %v278_v59 = vrot.slane %v270_v54, 4  ;;  %v281_v62 = vrot.slane %v272_v57, 4  ;;  %v283_v63 = vrot.slane %v273_v58, 4  ;;  %v84_v0 = vld [vmem:[#allocation4 + $0x10] sm:$0xff]  ;;  %v1958_v1 = vld [vmem:[#allocation6 + $0x78] sm:$0xff]   ;;  %v159_v7 = vld [vmem:[#allocation4 + $0x20] sm:$0xff] }
  0x5a   :  { %106 = vrot.lane.b32.xlu0 %v95_v17, %s2105_s11  ;;  %1873 = vmatprep.subr.bf16.mxu1 %v1959_v52  ;;  %235 = vst.msk [vmem:[#allocation2 + $0x50] sm:$0xf0] %vm179_vm3, %v224_v55  ;;  %v1961_v5 = vld [vmem:[#allocation6 + $0x98] sm:$0xff]   ;;  %v150_v8 = vld [vmem:[#allocation4 + $0x4] sm:$0xff]  ;;  %v151_v9 = vld [vmem:[#allocation4 + $0xc] sm:$0xff]  ;;  %v168_v11 = vrot.slane %v159_v7, 4 }
  0x5b   :  { %199 = vrot.lane.b32.xlu1 %v192_v18, %s2105_s11  ;;  %1724 = vmatpush3.bf16.msra.mxu0 %v1949_v27  ;;  %289 = vst.msk [vmem:[#allocation2 + $0x58] sm:$0xf0] %vm179_vm3, %v278_v59  ;;  %v280_v2 = vsel %vm167_vm1, %v278_v59, %v279_v61  ;;  %v282_v3 = vsel %vm167_vm1, %v279_v61, %v281_v62  ;;  %v85_v6 = vld [vmem:[#allocation4 + $0x18] sm:$0xf]  ;;  %v217_v13 = vld [vmem:[#allocation4 + $0x2a] sm:$0xff]  ;;  %v1962_v24 = vld [vmem:[#allocation8 + $0x40] sm:$0xff]  }
  0x5c   :  { %1725 = vmatprep.subr.bf16.mxu0 %v1950_v30  ;;  %89 = vst.msk [vmem:[#allocation2 + $0x30] sm:$0xff] %vm86_vm0, %v84_v0  ;;  %v284_v4 = vsel %vm167_vm1, %v281_v62, %v283_v63  ;;  %290 = vst.msk [vmem:[#allocation2 + $0x70] sm:$0xff] %vm86_vm0, %v280_v2  ;;  %v1960_v10 = vld [vmem:[#allocation6 + $0x38] sm:$0xff]   ;;  %v225_v15 = vrot.slane %v217_v13, 4  ;;  %v160_v17 = vld [vmem:[#allocation4 + $0x28] sm:$0xff] }
  0x5d   :  { %1874 = vmatpush3.bf16.msra.mxu1 %v1959_v52  ;;  %291 = vst.msk [vmem:[#allocation2 + $0x88] sm:$0xff] %vm86_vm0, %v282_v3  ;;  %292 = vst.msk [vmem:[#allocation2 + $0xa0] sm:$0xff] %vm86_vm0, %v284_v4  ;;  %v152_v12 = vld [vmem:[#allocation4 + $0x14] sm:$0xff]  ;;  %v169_v20 = vrot.slane %v160_v17, 4  ;;  %v1963_v35 = vld [vmem:[#allocation8] sm:$0xff]  }
  0x5e   :  { %256 = vrot.lane.b32.xlu0 %v249_v31, %s2105_s11  ;;  %91 = vst.msk [vmem:[#allocation2 + $0x48] sm:$0xf] %vm90_vm2, %v85_v6  ;;  %1875 = vmatprep.subr.bf16.mxu1 %v1961_v5  ;;  %v218_v14 = vld [vmem:[#allocation4 + $0x32] sm:$0xff]  ;;  %v219_v19 = vld [vmem:[#allocation4 + $0x3a] sm:$0xf]  ;;  %v226_v25 = vsel %vm167_vm1, %v224_v55, %v225_v15 }
  0x5f   :  { %258 = vrot.lane.b32.xlu1 %v251_v32, %s2105_s11  ;;  %1726 = vmatpush3.bf16.msra.mxu0 %v1951_v38  ;;  %154 = vst.msk [vmem:[#allocation2 + $0x10] sm:$0xff] %vm86_vm0, %v150_v8  ;;  %155 = vst.msk [vmem:[#allocation2 + $0x28] sm:$0xff] %vm86_vm0, %v151_v9  ;;  %v227_v16 = vrot.slane %v218_v14, 4  ;;  %v161_v18 = vld [vmem:[#allocation4 + $0x30] sm:$0xff]  ;;  %v229_v22 = vrot.slane %v219_v19, 4  ;;  %v170_v28 = vsel %vm167_vm1, %v168_v11, %v169_v20  ;;  %v1965_v19 = vld [vmem:[#allocation8 + $0x8] sm:$0xff]  }
  0x60   :  { %1727 = vmatprep.subr.bf16.mxu0 %v1952_v39  ;;  %156 = vst.msk [vmem:[#allocation2 + $0x40] sm:$0xff] %vm86_vm0, %v152_v12  ;;  %v171_v21 = vrot.slane %v161_v18, 4  ;;  %v162_v23 = vld [vmem:[#allocation4 + $0x38] sm:$0xf]  ;;  %236 = vst.msk [vmem:[#allocation2 + $0x68] sm:$0xff] %vm86_vm0, %v226_v25  ;;  %v1964_v18 = vld [vmem:[#allocation8 + $0x48] sm:$0xff]  }
  0x61   :  { %180 = vst.msk [vmem:[#allocation2 + $0x48] sm:$0xf0] %vm179_vm3, %v168_v11  ;;  %1876 = vmatpush3.bf16.msra.mxu1 %v1961_v5  ;;  %v228_v26 = vsel %vm167_vm1, %v225_v15, %v227_v16  ;;  %v173_v27 = vrot.slane %v162_v23, 4  ;;  %v230_v30 = vsel %vm167_vm1, %v227_v16, %v229_v22  ;;  %v1968_v22 = vld [vmem:[#allocation8 + $0x58] sm:$0xff]   ;;  %v1972_v25 = vld [vmem:[#allocation8 + $0x20] sm:$0xff]  }
  0x62   :  { %201 = vrot.lane.b32.xlu0 %v194_v40, %s2105_s11  ;;  %237 = vst.msk [vmem:[#allocation2 + $0x80] sm:$0xff] %vm86_vm0, %v228_v26  ;;  %v172_v29 = vsel %vm167_vm1, %v169_v20, %v171_v21  ;;  %1765 = vmatprep.subr.bf16.mxu1 %v1962_v24  ;;  %181 = vst.msk [vmem:[#allocation2 + $0x60] sm:$0xff] %vm86_vm0, %v170_v28  ;;  %v304_v32 = vld [vmem:[#allocation2 + $0x58] sm:$0xff]  ;;  %v1966_v20 = vld [vmem:[#allocation8 + $0x50] sm:$0xff]   ;;  %v2112_v28 = vmov 0.0  }
  0x63   :  { %203 = vrot.lane.b32.xlu1 %v196_v41, %s2105_s11  ;;  %1728 = vmatpush3.bf16.msra.mxu0 %v1954_v48  ;;  %182 = vst.msk [vmem:[#allocation2 + $0x78] sm:$0xff] %vm86_vm0, %v172_v29  ;;  %238 = vst.msk [vmem:[#allocation2 + $0x98] sm:$0xff] %vm86_vm0, %v230_v30  ;;  %v174_v31 = vsel %vm167_vm1, %v171_v21, %v173_v27  ;;  %v307_v33 = vld [vmem:[#allocation2 + $0x70] sm:$0xff]  ;;  %v1967_v21 = vld [vmem:[#allocation8 + $0x10] sm:$0xff]  }
  0x64   :  { %1729 = vmatprep.subr.bf16.mxu0 %v1955_v49  ;;  %183 = vst.msk [vmem:[#allocation2 + $0x90] sm:$0xff] %vm86_vm0, %v174_v31  ;;  %v310_v34 = vld [vmem:[#allocation2 + $0x88] sm:$0xff]  ;;  %v313_v42 = vld [vmem:[#allocation2 + $0xa0] sm:$0xff]  ;;  %v1970_v24 = vld [vmem:[#allocation8 + $0x60] sm:$0xff]  }
  0x65   :  { %v322_v40 = vpack.c.bf16 %v310_v34, %v307_v33  ;;  %v325_v43 = vpack.c.bf16 %v313_v42, %v313_v42  ;;  %v1969_v23 = vld [vmem:[#allocation8 + $0x18] sm:$0xff]   ;;  %v1971_v26 = vld [vmem:[#allocation8 + $0x80] sm:$0xff]   ;;  %v1973_v27 = vld [vmem:[#allocation8 + $0x68] sm:$0xff]   ;;  %662 = vst [vmem:[#allocation3] sm:$0xff] %v2112_v28 }
  0x66   :  { %260 = vrot.lane.b32.xlu0 %v253_v50, %s2105_s11  ;;  %v295_v36 = vld [vmem:[#allocation2 + $0x10] sm:$0xff]  ;;  %v298_v37 = vld [vmem:[#allocation2 + $0x28] sm:$0xff]  ;;  %671 = vst [vmem:[#allocation3 + $0x48] sm:$0xff] %v2112_v28  ;;  %672 = vst [vmem:[#allocation3 + $0x50] sm:$0xff] %v2112_v28 }
  0x67   :  { %205 = vrot.lane.b32.xlu1 %v198_v51, %s2105_s11  ;;  %1730 = vmatpush3.bf16.msra.mxu0 %v1957_v60  ;;  %v316_v38 = vpack.c.bf16 %v298_v37, %v295_v36  ;;  %v301_v39 = vld [vmem:[#allocation2 + $0x40] sm:$0xff]  ;;  %673 = vst [vmem:[#allocation3 + $0x58] sm:$0xff] %v2112_v28  ;;  %682 = vst [vmem:[#allocation3 + $0xa0] sm:$0xff] %v2112_v28  ;;  %v1975_v29 = vld [vmem:[#allocation8 + $0x28] sm:$0xff]  }
  0x68   :  { %1731 = vmatprep.subr.bf16.mxu0 %v1958_v1  ;;  %v319_v41 = vpack.c.bf16 %v304_v32, %v301_v39  ;;  %v1974_v30 = vld [vmem:[#allocation8 + $0x88] sm:$0xff]   ;;  %v1976_v31 = vld [vmem:[#allocation8 + $0x70] sm:$0xff]   ;;  %v1979_v34 = vld [vmem:[#allocation8 + $0x78] sm:$0xff]  }
  0x69   :  { %1877 = vmatprep.mubr.msk.bf16.mxu1 %vm86_vm0, %v316_v38  ;;  %v1978_v32 = vld [vmem:[#allocation8 + $0x30] sm:$0xff]   ;;  %v1980_v36 = vld [vmem:[#allocation8 + $0x98] sm:$0xff]   ;;  %v1982_v37 = vld [vmem:[#allocation8 + $0xa0] sm:$0xff]  }
  0x6a   :  { %1878 = vmatmul.mubr.msk.bf16.vlgmr.msra.gmra.mrb[0].mxu1 %vm86_vm0, %v319_v41  ;;  %v1977_v33 = vld [vmem:[#allocation8 + $0x90] sm:$0xff]   ;;  %v1983_v38 = vld [vmem:[#allocation8 + $0xa8] sm:$0xff]   ;;  %v1985_v42 = vld [vmem:[#allocation8 + $0xb8] sm:$0xff]  }
  0x6b   :  { %1732 = vmatpush3.bf16.msra.mxu0 %v1960_v10  ;;  %1881 = vmatprep.mubr.msk.bf16.mxu1 %vm86_vm0, %v322_v40  ;;  %v1984_v39 = vld [vmem:[#allocation8 + $0xb0] sm:$0xff]  }
  0x6c   :  { %1766 = vmatpush3.bf16.msra.mxu1 %v1963_v35  ;;  %1885 = vmatprep.subr.bf16.mxu0 %v1971_v26  ;;  %v1981_v35 = vld [vmem:[#allocation8 + $0x38] sm:$0xff]  }
  0x6d   :  { %1767 = vmatprep.subr.bf16.mxu1 %v1964_v18 }
  0x70   :  { %1768 = vmatpush3.bf16.msra.mxu1 %v1965_v19 }
  0x71   :  { %1769 = vmatprep.subr.bf16.mxu1 %v1966_v20 }
  0x72   :  { %1882 = vmatmul.mubr.msk.bf16.gmra.mrb[4].mxu1 %vm86_vm0, %v325_v43 }
  0x74   :  { %1770 = vmatpush3.bf16.msra.mxu1 %v1967_v21 }
  0x75   :  { %1771 = vmatprep.subr.bf16.mxu1 %v1968_v22 }
  0x78   :  { %1772 = vmatpush3.bf16.msra.mxu1 %v1969_v23 }
  0x79   :  { %1773 = vmatprep.subr.bf16.mxu1 %v1970_v24 }
  0x7c   :  { %1774 = vmatpush3.bf16.msra.mxu1 %v1972_v25 }
  0x7d   :  { %1775 = vmatprep.subr.bf16.mxu1 %v1973_v27 }
  0x80   :  { %1776 = vmatpush3.bf16.msra.mxu1 %v1975_v29 }
  0x81   :  { %1777 = vmatprep.subr.bf16.mxu1 %v1976_v31 }
  0x84   :  { %1778 = vmatpush3.bf16.msra.mxu1 %v1978_v32 }
  0x85   :  { %1779 = vmatprep.subr.bf16.mxu1 %v1979_v34 }
  0x88   :  { %1780 = vmatpush3.bf16.msra.mxu1 %v1981_v35 }
  0xbc   :  { %v135_v44 = vpop.permute.xlu0 %134 }
  0xbd   :  { %v101_v45 = vpop.permute.xlu1 %100  ;;  %146 = vst.msk [vmem:[#allocation2 + $0x8] sm:$0xff] %vm112_vm4, %v135_v44 }
  0xbe   :  { %113 = vst.msk [vmem:[#allocation2] sm:$0xff] %vm112_vm4, %v101_v45 }
  0xc0   :  { %v137_v46 = vpop.permute.xlu0 %136 }
  0xc1   :  { %v103_v47 = vpop.permute.xlu1 %102  ;;  %147 = vst.msk [vmem:[#allocation2 + $0x20] sm:$0xff] %vm112_vm4, %v137_v46 }
  0xc2   :  { %114 = vst.msk [vmem:[#allocation2 + $0x18] sm:$0xff] %vm112_vm4, %v103_v47 }
  0xc4   :  { %v139_v48 = vpop.permute.xlu0 %138  ;;  %v294_v50 = vld [vmem:[#allocation2 + $0x8] sm:$0xff] }
  0xc5   :  { %v141_v49 = vpop.permute.xlu1 %140  ;;  %148 = vst.msk [vmem:[#allocation2 + $0x38] sm:$0xff] %vm112_vm4, %v139_v48  ;;  %v293_v54 = vld [vmem:[#allocation2] sm:$0xff] }
  0xc6   :  { %149 = vst.msk [vmem:[#allocation2 + $0x50] sm:$0xf] %vm116_vm5, %v141_v49 }
  0xc8   :  { %v255_v51 = vpop.permute.xlu0 %254  ;;  %v297_v53 = vld [vmem:[#allocation2 + $0x20] sm:$0xff] }
  0xc9   :  { %v105_v52 = vpop.permute.xlu1 %104  ;;  %v296_v55 = vld [vmem:[#allocation2 + $0x18] sm:$0xff]  ;;  %266 = vst.msk [vmem:[#allocation2 + $0x50] sm:$0xf0] %vm211_vm6, %v255_v51  ;;  %v315_v56 = vpack.c.bf16 %v297_v53, %v294_v50  ;;  %v2302_v51 = vld [vmem:[%s2477_s2] ss:$0 sm:$0xff] }
  0xca   :  { %115 = vst.msk [vmem:[#allocation2 + $0x30] sm:$0xff] %vm112_vm4, %v105_v52  ;;  %v314_v57 = vpack.c.bf16 %v296_v55, %v293_v54 }
  0xcb   :  { %537 = vmatprep.mubr.bf16.mxu0 %v315_v56 }
  0xcc   :  { %v107_v58 = vpop.permute.xlu0 %106  ;;  %538 = vmatmul.mubr.bf16.vlgmr.msra.gmra.mrb[0].mxu0 %v314_v57  ;;  %v300_v62 = vld [vmem:[#allocation2 + $0x38] sm:$0xff] }
  0xcd   :  { %v200_v59 = vpop.permute.xlu1 %199  ;;  %117 = vst.msk [vmem:[#allocation2 + $0x48] sm:$0xf] %vm116_vm5, %v107_v58  ;;  %1886 = vmatpush3.bf16.msra.mxu0 %v1971_v26 }
  0xce   :  { %212 = vst.msk [vmem:[#allocation2 + $0x48] sm:$0xf0] %vm211_vm6, %v200_v59  ;;  %1887 = vmatprep.subr.bf16.mxu0 %v1974_v30  ;;  %v2309_v59 = vld [vmem:[%s2477_s2 + $0x1] ss:$0 sm:$0xff] }
  0xd0   :  { %v257_v60 = vpop.permute.xlu0 %256  ;;  %v303_v63 = vld [vmem:[#allocation2 + $0x50] sm:$0xff] }
  0xd1   :  { %v259_v61 = vpop.permute.xlu1 %258  ;;  %267 = vst.msk [vmem:[#allocation2 + $0x68] sm:$0xff] %vm112_vm4, %v257_v60  ;;  %v318_v0 = vpack.c.bf16 %v303_v63, %v300_v62  ;;  %v299_v3 = vld [vmem:[#allocation2 + $0x30] sm:$0xff]  ;;  %1888 = vmatpush3.bf16.msra.mxu0 %v1974_v30  ;;  %v2314_v62 = vld [vmem:[%s2477_s2 + $0x2] ss:$0 sm:$0xff] }
  0xd2   :  { %268 = vst.msk [vmem:[#allocation2 + $0x80] sm:$0xff] %vm112_vm4, %v259_v61  ;;  %1889 = vmatprep.subr.bf16.mxu0 %v1977_v33 }
  0xd3   :  { %545 = vmatprep.mubr.bf16.mxu0 %v318_v0 }
  0xd4   :  { %v202_v1 = vpop.permute.xlu0 %201 }
  0xd5   :  { %v204_v2 = vpop.permute.xlu1 %203  ;;  %v302_v4 = vld [vmem:[#allocation2 + $0x48] sm:$0xff]  ;;  %213 = vst.msk [vmem:[#allocation2 + $0x60] sm:$0xff] %vm112_vm4, %v202_v1  ;;  %1890 = vmatpush3.bf16.msra.mxu0 %v1977_v33 }
  0xd6   :  { %214 = vst.msk [vmem:[#allocation2 + $0x78] sm:$0xff] %vm112_vm4, %v204_v2  ;;  %v317_v5 = vpack.c.bf16 %v302_v4, %v299_v3  ;;  %1891 = vmatprep.subr.bf16.mxu0 %v1980_v36 }
  0xd8   :  { %546 = vmatmul.mubr.bf16.gmra.mrb[4].mxu0 %v317_v5  ;;  %v261_v6 = vpop.permute.xlu0 %260  ;;  %v306_v7 = vld [vmem:[#allocation2 + $0x68] sm:$0xff] }
  0xd9   :  { %v309_v8 = vld [vmem:[#allocation2 + $0x80] sm:$0xff]  ;;  %v206_v9 = vpop.permute.xlu1 %205  ;;  %269 = vst.msk [vmem:[#allocation2 + $0x98] sm:$0xff] %vm112_vm4, %v261_v6  ;;  %1892 = vmatpush3.bf16.msra.mxu0 %v1980_v36 }
  0xda   :  { %v321_v10 = vpack.c.bf16 %v309_v8, %v306_v7  ;;  %215 = vst.msk [vmem:[#allocation2 + $0x90] sm:$0xff] %vm112_vm4, %v206_v9  ;;  %1893 = vmatprep.subr.bf16.mxu0 %v1982_v37 }
  0xdc   :  { %553 = vmatprep.mubr.bf16.mxu0 %v321_v10  ;;  %v305_v11 = vld [vmem:[#allocation2 + $0x60] sm:$0xff] }
  0xdd   :  { %v308_v12 = vld [vmem:[#allocation2 + $0x78] sm:$0xff]  ;;  %1894 = vmatpush3.bf16.msra.mxu0 %v1982_v37 }
  0xde   :  { %v320_v13 = vpack.c.bf16 %v308_v12, %v305_v11  ;;  %1895 = vmatprep.subr.bf16.mxu0 %v1983_v38 }
  0xe0   :  { %554 = vmatmul.mubr.bf16.gmra.mrb[8].mxu0 %v320_v13  ;;  %v312_v14 = vld [vmem:[#allocation2 + $0x98] sm:$0xff] }
  0xe1   :  { %v311_v15 = vld [vmem:[#allocation2 + $0x90] sm:$0xff]  ;;  %v324_v16 = vpack.c.bf16 %v312_v14, %v312_v14  ;;  %1896 = vmatpush3.bf16.msra.mxu0 %v1983_v38 }
  0xe2   :  { %v323_v17 = vpack.c.bf16 %v311_v15, %v311_v15  ;;  %1897 = vmatprep.subr.bf16.mxu0 %v1984_v39 }
  0xe3   :  { %561 = vmatprep.mubr.bf16.mxu0 %v324_v16 }
  0xe5   :  { %1898 = vmatpush3.bf16.msra.mxu0 %v1984_v39 }
  0xe6   :  { %1899 = vmatprep.subr.bf16.mxu0 %v1985_v42 }
  0xe8   :  { %562 = vmatmul.mubr.bf16.gmra.mrb[12].mxu0 %v323_v17 }
  0xe9   :  { %1900 = vmatpush3.bf16.msra.mxu0 %v1985_v42 }
 0x13d   :  { %v1879_v40 = vpop.f32.mrb[0].mxu1 }
 0x13e   :  { %v603_v41 = vpop.f32.mrb[1].mxu1 }
 0x13f   :  { %v1880_v43 = vpop.f32.mrb[2].mxu1 }
 0x140   :  { %v606_v44 = vpop.f32.mrb[3].mxu1 }
 0x145   :  { %v2295_v45 = vpop.f32.mrb[4].mxu1 }
 0x146   :  { %v619_v46 = vpop.f32.mrb[5].mxu1 }
 0x147   :  { %v1884_v47 = vpop.f32.mrb[6].mxu1 }
 0x148   :  { %v2297_v48 = vpop.f32.mrb[7].mxu1 }
 0x19f   :  { %v1733_v49 = vpop.f32.mrb[0].mxu0 }
 0x1a0   :  { %v1734_v50 = vpop.f32.mrb[1].mxu0 }
 0x1a1   :  { %v1735_v52 = vadd.f32 %v1734_v50, %v1733_v49  ;;  %v1736_v53 = vpop.f32.mrb[2].mxu0 }
 0x1a2   :  { %v1737_v54 = vpop.f32.mrb[3].mxu0 }
 0x1a3   :  { %v1738_v55 = vadd.f32 %v1737_v54, %v1736_v53  ;;  %v540_v56 = vadd.f32 %v1735_v52, %v2302_v51 }
 0x1a5   :  { %v604_v57 = vadd.f32 %v603_v41, %v540_v56  ;;  %v543_v58 = vadd.f32 %v1738_v55, %v2302_v51 }
 0x1a7   :  { %v633_v60 = vmax.f32 %v604_v57, 0.0  ;;  %v607_v61 = vadd.f32 %v606_v44, %v543_v58 }
 0x1a9   :  { %v644_v63 = vmul.f32 %v2309_v59, %v633_v60  ;;  %v634_v0 = vmax.f32 %v607_v61, 0.0 }
 0x1ab   :  { %v1739_v1 = vpop.f32.mrb[4].mxu0  ;;  %v2318_v2 = vadd.f32 %v2314_v62, %v644_v63  ;;  %v645_v3 = vmul.f32 %v2309_v59, %v634_v0 }
 0x1ac   :  { %v1740_v4 = vpop.f32.mrb[5].mxu0 }
 0x1ad   :  { %v1741_v5 = vadd.f32 %v1740_v4, %v1739_v1  ;;  %v1742_v6 = vpop.f32.mrb[6].mxu0  ;;  %v688_v7 = vrot.slane %v2318_v2, 7  ;;  %v2323_v8 = vadd.f32 %v2314_v62, %v645_v3  ;;  %v708_v32 = vrot.slane %v2318_v2, 1 }
 0x1ae   :  { %v1743_v9 = vpop.f32.mrb[7].mxu0 }
 0x1af   :  { %v548_v10 = vadd.f32 %v1741_v5, %v2302_v51  ;;  %v1744_v11 = vadd.f32 %v1743_v9, %v1742_v6  ;;  %699 = vst [vmem:[#allocation3] sm:$0xfe] %v688_v7  ;;  %v780_v12 = vpack.c.bf16 %v2323_v8, %v2318_v2  ;;  %v689_v15 = vrot.slane %v2323_v8, 7 }
 0x1b0   :  { %v709_v25 = vrot.slane %v2323_v8, 1 }
 0x1b1   :  { %v612_v13 = vadd.f32 %v1879_v40, %v548_v10  ;;  %v551_v14 = vadd.f32 %v1744_v11, %v2302_v51  ;;  %1022 = vmatprep.mubr.bf16.mxu1 %v780_v12  ;;  %v690_v24 = vsel %vm687_vm7, %v688_v7, %v689_v15 }
 0x1b2   :  { %v710_v37 = vsel %vm707_vm8, %v708_v32, %v709_v25  ;;  %v1990_v32 = vld [vmem:[#allocation9 + $0x50] sm:$0xff]  }
 0x1b3   :  { %v635_v16 = vmax.f32 %v612_v13, 0.0  ;;  %v615_v17 = vadd.f32 %v1880_v43, %v551_v14  ;;  %v1745_v18 = vpop.f32.mrb[8].mxu0 }
 0x1b4   :  { %v1746_v19 = vpop.f32.mrb[9].mxu0 }
 0x1b5   :  { %v646_v20 = vmul.f32 %v2309_v59, %v635_v16  ;;  %v636_v21 = vmax.f32 %v615_v17, 0.0  ;;  %v1747_v22 = vadd.f32 %v1746_v19, %v1745_v18  ;;  %v1748_v23 = vpop.f32.mrb[10].mxu0 }
 0x1b6   :  { %v1749_v26 = vpop.f32.mrb[11].mxu0  ;;  %v758_v31 = vld [vmem:[#allocation3] sm:$0xff] }
 0x1b7   :  { %v2334_v27 = vadd.f32 %v2314_v62, %v646_v20  ;;  %v647_v28 = vmul.f32 %v2309_v59, %v636_v21  ;;  %v556_v29 = vadd.f32 %v1747_v22, %v2302_v51  ;;  %v1750_v30 = vadd.f32 %v1749_v26, %v1748_v23 }
 0x1b8   :  { %v779_v33 = vpack.c.bf16 %v690_v24, %v758_v31  ;;  %v1989_v31 = vld [vmem:[#allocation9 + $0x8] sm:$0xff]  }
 0x1b9   :  { %v711_v34 = vrot.slane %v2334_v27, 1  ;;  %v2341_v35 = vadd.f32 %v2314_v62, %v647_v28  ;;  %v620_v36 = vadd.f32 %v619_v46, %v556_v29  ;;  %v559_v38 = vadd.f32 %v1750_v30, %v2302_v51  ;;  %v1986_v28 = vld [vmem:[#allocation9 + $0x40] sm:$0xff]   ;;  %v1988_v30 = vld [vmem:[#allocation9 + $0x48] sm:$0xff]  }
 0x1ba   :  { %1023 = vmatmul.mubr.bf16.vlgmr.msra.gmra.mrb[8].mxu1 %v779_v33  ;;  %v691_v39 = vrot.slane %v2334_v27, 7  ;;  %v1987_v29 = vld [vmem:[#allocation9] sm:$0xff]   ;;  %1817 = vmatprep.subr.bf16.mxu1 %v1986_v28 }
 0x1bb   :  { %v712_v40 = vsel %vm707_vm8, %v709_v25, %v711_v34  ;;  %v693_v41 = vrot.slane %v2341_v35, 7  ;;  %706 = vst [vmem:[#allocation3 + $0x50] sm:$0xff] %v2341_v35   ;;  %v713_v42 = vrot.slane %v2341_v35, 1  ;;  %v1751_v43 = vpop.f32.mrb[12].mxu0  ;;  %v637_v44 = vmax.f32 %v620_v36, 0.0  ;;  %1818 = vmatpush3.bf16.msra.mxu1 %v1987_v29  ;;  %v1991_v33 = vld [vmem:[#allocation9 + $0x80] sm:$0xff]  }
 0x1bc   :  { %v623_v47 = vadd.f32 %v2297_v48, %v559_v38  ;;  %v1752_v46 = vpop.f32.mrb[13].mxu0  ;;  %v781_v49 = vpack.c.bf16 %v712_v40, %v710_v37  ;;  %1819 = vmatprep.subr.bf16.mxu1 %v1988_v30  ;;  %1909 = vmatprep.subr.bf16.mxu0 %v1991_v33  ;;  %v1993_v36 = vld [vmem:[#allocation9 + $0x58] sm:$0xff]   ;;  %v1994_v37 = vld [vmem:[#allocation9 + $0x88] sm:$0xff]   ;;  %v1997_v40 = vld [vmem:[#allocation9 + $0x90] sm:$0xff]  }
 0x1bd   :  { %v694_v50 = vsel %vm687_vm7, %v691_v39, %v693_v41  ;;  %736 = vst [vmem:[#allocation3 + $0x48] sm:$0xe0] %v693_v41  ;;  %722 = vst [vmem:[#allocation3 + $0x58] sm:$0x7] %v713_v42  ;;  %v1753_v52 = vadd.f32 %v1752_v46, %v1751_v43  ;;  %v1754_v53 = vpop.f32.mrb[14].mxu0  ;;  %v648_v54 = vmul.f32 %v2309_v59, %v637_v44  ;;  %v1995_v38 = vld [vmem:[#allocation9 + $0x18] sm:$0xff]  }
 0x1be   :  { %702 = vst [vmem:[#allocation3 + $0x48] sm:$0xf] %v694_v50  ;;  %v638_v55 = vmax.f32 %v623_v47, 0.0  ;;  %v1755_v56 = vpop.f32.mrb[15].mxu0  ;;  %1901 = vmatprep.mubr.bf16.mxu0 %v781_v49  ;;  %v714_v16 = vsel %vm707_vm8, %v711_v34, %v713_v42  ;;  %v1992_v34 = vld [vmem:[#allocation9 + $0x10] sm:$0xff]   ;;  %v2000_v43 = vld [vmem:[#allocation9 + $0x98] sm:$0xff]  }
 0x1bf   :  { %v564_v57 = vadd.f32 %v1753_v52, %v2302_v51  ;;  %v2355_v58 = vadd.f32 %v2314_v62, %v648_v54  ;;  %v692_v51 = vsel %vm687_vm7, %v689_v15, %v691_v39  ;;  %1820 = vmatpush3.bf16.msra.mxu1 %v1989_v31  ;;  %v1996_v39 = vld [vmem:[#allocation9 + $0x60] sm:$0xff]   ;;  %v2001_v44 = vld [vmem:[#allocation9 + $0x28] sm:$0xff]   ;;  %v2002_v47 = vld [vmem:[#allocation9 + $0x70] sm:$0xff]  }
 0x1c0   :  { %v649_v48 = vmul.f32 %v2309_v59, %v638_v55  ;;  %1821 = vmatprep.subr.bf16.mxu1 %v1990_v32  ;;  %v2003_v46 = vld [vmem:[#allocation9 + $0xa0] sm:$0xff]   ;;  %v2004_v49 = vld [vmem:[#allocation9 + $0x30] sm:$0xff]   ;;  %v2005_v50 = vld [vmem:[#allocation9 + $0x78] sm:$0xff]  }
 0x1c1   :  { %v628_v60 = vadd.f32 %v2295_v45, %v564_v57  ;;  %v744_v61 = vrot.slane %v2355_v58, 1  ;;  %v726_v12 = vrot.slane %v2355_v58, 7  ;;  %v2006_v52 = vld [vmem:[#allocation9 + $0xa8] sm:$0xff]   ;;  %v2007_v53 = vld [vmem:[#allocation9 + $0x38] sm:$0xff]   ;;  %v2008_v54 = vld [vmem:[#allocation9 + $0xb0] sm:$0xff]  }
 0x1c2   :  { %v768_v63 = vld [vmem:[#allocation3 + $0x50] sm:$0xff]  ;;  %v2361_v0 = vadd.f32 %v2314_v62, %v649_v48  ;;  %v2009_v55 = vld [vmem:[#allocation9 + $0xb8] sm:$0xff]  }
 0x1c3   :  { %v639_v1 = vmax.f32 %v628_v60, 0.0  ;;  %v783_v3 = vpack.c.bf16 %v768_v63, %v2334_v27  ;;  %v745_v4 = vsel %vm707_vm8, %v713_v42, %v744_v61  ;;  %v727_v18 = vsel %vm687_vm7, %v693_v41, %v726_v12  ;;  %1822 = vmatpush3.bf16.msra.mxu1 %v1992_v34  ;;  %v1998_v41 = vld [vmem:[#allocation9 + $0x20] sm:$0xff]   ;;  %v1999_v42 = vld [vmem:[#allocation9 + $0x68] sm:$0xff]  }
 0x1c4   :  { %754 = vst [vmem:[#allocation3 + $0x58] sm:$0xf0] %v745_v4  ;;  %v728_v45 = vrot.slane %v2361_v0, 7  ;;  %v746_v9 = vrot.slane %v2361_v0, 1  ;;  %v786_v11 = vpack.c.bf16 %v2361_v0, %v2355_v58  ;;  %1823 = vmatprep.subr.bf16.mxu1 %v1993_v36 }
 0x1c5   :  { %v650_v5 = vmul.f32 %v2309_v59, %v639_v1  ;;  %1030 = vmatprep.mubr.bf16.mxu1 %v783_v3  ;;  %v767_v6 = vld [vmem:[#allocation3 + $0x48] sm:$0xff] }
 0x1c6   :  { %v782_v7 = vpack.c.bf16 %v767_v6, %v692_v51  ;;  %v729_v59 = vsel %vm687_vm7, %v726_v12, %v728_v45  ;;  %v747_v14 = vsel %vm707_vm8, %v744_v61, %v746_v9  ;;  %v1659_v6 = vld [vmem:[%s2479_s4] ss:$0 sm:$0xff] }
 0x1c7   :  { %v2370_v10 = vadd.f32 %v2314_v62, %v650_v5  ;;  %v785_v20 = vpack.c.bf16 %v729_v59, %v727_v18  ;;  %1824 = vmatpush3.bf16.msra.mxu1 %v1995_v38 }
 0x1c8   :  { %1031 = vmatmul.mubr.bf16.gmra.mrb[12].mxu1 %v782_v7  ;;  %1825 = vmatprep.subr.bf16.mxu1 %v1996_v39 }
 0x1c9   :  { %v748_v13 = vrot.slane %v2370_v10, 1  ;;  %1038 = vmatprep.mubr.bf16.mxu1 %v786_v11  ;;  %v730_v21 = vrot.slane %v2370_v10, 7  ;;  %v789_v22 = vpack.c.bf16 %v2370_v10, %v2370_v10 }
 0x1cb   :  { %v749_v15 = vsel %vm707_vm8, %v746_v9, %v748_v13  ;;  %757 = vst [vmem:[#allocation3 + $0xa0] sm:$0x7f] %v748_v13  ;;  %v769_v62 = vld [vmem:[#allocation3 + $0x58] sm:$0xff]  ;;  %v731_v24 = vsel %vm687_vm7, %v728_v45, %v730_v21  ;;  %1826 = vmatpush3.bf16.msra.mxu1 %v1998_v41 }
 0x1cc   :  { %v787_v17 = vpack.c.bf16 %v749_v15, %v747_v14  ;;  %v784_v19 = vpack.c.bf16 %v769_v62, %v714_v16  ;;  %v788_v26 = vpack.c.bf16 %v731_v24, %v731_v24  ;;  %1827 = vmatprep.subr.bf16.mxu1 %v1999_v42  ;;  %v2391_v15 = vld [vmem:[%s2479_s4 + $0x1] ss:$0 sm:$0xff]  ;;  %v2396_v24 = vld [vmem:[%s2479_s4 + $0x2] ss:$0 sm:$0xff] }
 0x1ce   :  { %1902 = vmatmul.mubr.bf16.vlgmr.msra.gmra.mrb[16].mxu0 %v784_v19 }
 0x1cf   :  { %1905 = vmatprep.mubr.bf16.mxu0 %v787_v17  ;;  %1910 = vmatpush3.bf16.msra.mxu0 %v1991_v33 }
 0x1d0   :  { %1039 = vmatmul.mubr.bf16.gmra.mrb[16].mxu1 %v785_v20  ;;  %1911 = vmatprep.subr.bf16.mxu0 %v1994_v37 }
 0x1d1   :  { %1046 = vmatprep.mubr.bf16.mxu1 %v789_v22  ;;  %1828 = vmatpush3.bf16.msra.mxu1 %v2001_v44 }
 0x1d2   :  { %v778_v23 = vld [vmem:[#allocation3 + $0xa0] sm:$0xff]  ;;  %1829 = vmatprep.subr.bf16.mxu1 %v2002_v47 }
 0x1d3   :  { %v790_v25 = vpack.c.bf16 %v778_v23, %v778_v23  ;;  %1912 = vmatpush3.bf16.msra.mxu0 %v1994_v37 }
 0x1d4   :  { %1913 = vmatprep.subr.bf16.mxu0 %v1997_v40 }
 0x1d5   :  { %1830 = vmatpush3.bf16.msra.mxu1 %v2004_v49 }
 0x1d6   :  { %1906 = vmatmul.mubr.bf16.gmra.mrb[20].mxu0 %v790_v25  ;;  %1831 = vmatprep.subr.bf16.mxu1 %v2005_v50 }
 0x1d7   :  { %1914 = vmatpush3.bf16.msra.mxu0 %v1997_v40 }
 0x1d8   :  { %1047 = vmatmul.mubr.bf16.gmra.mrb[20].mxu1 %v788_v26  ;;  %1915 = vmatprep.subr.bf16.mxu0 %v2000_v43 }
 0x1d9   :  { %1832 = vmatpush3.bf16.msra.mxu1 %v2007_v53 }
 0x1db   :  { %1916 = vmatpush3.bf16.msra.mxu0 %v2000_v43 }
 0x1dc   :  { %1917 = vmatprep.subr.bf16.mxu0 %v2003_v46 }
 0x1df   :  { %1918 = vmatpush3.bf16.msra.mxu0 %v2003_v46 }
 0x1e0   :  { %1919 = vmatprep.subr.bf16.mxu0 %v2006_v52 }
 0x1e3   :  { %1920 = vmatpush3.bf16.msra.mxu0 %v2006_v52 }
 0x1e4   :  { %1921 = vmatprep.subr.bf16.mxu0 %v2008_v54 }
 0x1e7   :  { %1922 = vmatpush3.bf16.msra.mxu0 %v2008_v54 }
 0x1e8   :  { %1923 = vmatprep.subr.bf16.mxu0 %v2009_v55 }
 0x1eb   :  { %1924 = vmatpush3.bf16.msra.mxu0 %v2009_v55 }
 0x28d   :  { %v1781_v56 = vpop.f32.mrb[8].mxu1 }
 0x28e   :  { %v1782_v57 = vpop.f32.mrb[9].mxu1 }
 0x28f   :  { %v1783_v48 = vadd.f32 %v1782_v57, %v1781_v56  ;;  %v1784_v60 = vpop.f32.mrb[10].mxu1 }
 0x290   :  { %v1785_v61 = vpop.f32.mrb[11].mxu1 }
 0x291   :  { %v1786_v63 = vadd.f32 %v1785_v61, %v1784_v60  ;;  %v1025_v12 = vadd.f32 %v1783_v48, %v1659_v6 }
 0x293   :  { %v1028_v18 = vadd.f32 %v1786_v63, %v1659_v6 }
 0x29b   :  { %v1787_v1 = vpop.f32.mrb[12].mxu1 }
 0x29c   :  { %v1788_v3 = vpop.f32.mrb[13].mxu1 }
 0x29d   :  { %v1789_v4 = vadd.f32 %v1788_v3, %v1787_v1  ;;  %v1790_v51 = vpop.f32.mrb[14].mxu1 }
 0x29e   :  { %v1791_v5 = vpop.f32.mrb[15].mxu1 }
 0x29f   :  { %v1792_v7 = vadd.f32 %v1791_v5, %v1790_v51  ;;  %v1033_v45 = vadd.f32 %v1789_v4, %v1659_v6 }
 0x2a1   :  { %v1036_v9 = vadd.f32 %v1792_v7, %v1659_v6  ;;  %v1903_v11 = vpop.f32.mrb[16].mxu0 }
 0x2a2   :  { %v1097_v13 = vadd.f32 %v1903_v11, %v1033_v45  ;;  %v1088_v59 = vpop.f32.mrb[17].mxu0 }
 0x2a3   :  { %v1793_v14 = vpop.f32.mrb[16].mxu1  ;;  %v1089_v16 = vadd.f32 %v1088_v59, %v1025_v12  ;;  %v1904_v62 = vpop.f32.mrb[18].mxu0 }
 0x2a4   :  { %v1794_v17 = vpop.f32.mrb[17].mxu1  ;;  %v1120_v19 = vmax.f32 %v1097_v13, 0.0  ;;  %v1100_v20 = vadd.f32 %v1904_v62, %v1036_v9  ;;  %v1091_v22 = vpop.f32.mrb[19].mxu0 }
 0x2a5   :  { %v1795_v21 = vadd.f32 %v1794_v17, %v1793_v14  ;;  %v1796_v23 = vpop.f32.mrb[18].mxu1  ;;  %v1118_v25 = vmax.f32 %v1089_v16, 0.0  ;;  %v1092_v26 = vadd.f32 %v1091_v22, %v1028_v18 }
 0x2a6   :  { %v1797_v28 = vpop.f32.mrb[19].mxu1  ;;  %v1131_v29 = vmul.f32 %v2391_v15, %v1120_v19  ;;  %v1121_v30 = vmax.f32 %v1100_v20, 0.0 }
 0x2a7   :  { %v1798_v31 = vadd.f32 %v1797_v28, %v1796_v23  ;;  %v1129_v32 = vmul.f32 %v2391_v15, %v1118_v25  ;;  %v1119_v33 = vmax.f32 %v1092_v26, 0.0  ;;  %v1041_v40 = vadd.f32 %v1795_v21, %v1659_v6 }
 0x2a8   :  { %v2401_v34 = vadd.f32 %v2396_v24, %v1131_v29  ;;  %v1132_v36 = vmul.f32 %v2391_v15, %v1121_v30 }
 0x2a9   :  { %v1140_v37 = vadd.f32 %v2396_v24, %v1129_v32  ;;  %v1130_v38 = vmul.f32 %v2391_v15, %v1119_v33  ;;  %v1907_v39 = vpop.f32.mrb[20].mxu0  ;;  %v1044_v47 = vadd.f32 %v1798_v31, %v1659_v6 }
 0x2aa   :  { %v1154_v41 = vrot.slane %v2401_v34, 7  ;;  %v1143_v42 = vadd.f32 %v2396_v24, %v1132_v36  ;;  %v1104_v44 = vpop.f32.mrb[21].mxu0  ;;  %v1173_v46 = vrot.slane %v2401_v34, 1 }
 0x2ab   :  { %v1799_v43 = vpop.f32.mrb[20].mxu1  ;;  %v1151_v49 = vrot.slane %v1140_v37, 7  ;;  %v1141_v50 = vadd.f32 %v2396_v24, %v1130_v38  ;;  %v1105_v52 = vadd.f32 %v1104_v44, %v1041_v40  ;;  %v1908_v54 = vpop.f32.mrb[22].mxu0  ;;  %v1170_v55 = vrot.slane %v1140_v37, 1 }
 0x2ac   :  { %v1800_v53 = vpop.f32.mrb[21].mxu1  ;;  %v1156_v56 = vrot.slane %v1143_v42, 7  ;;  %1169 = vst [vmem:[#allocation3 + $0x50] sm:$0xff] %v1143_v42   ;;  %v1175_v57 = vrot.slane %v1143_v42, 1  ;;  %v1107_v61 = vpop.f32.mrb[23].mxu0 }
 0x2ad   :  { %v1801_v48 = vadd.f32 %v1800_v53, %v1799_v43  ;;  %v1802_v60 = vpop.f32.mrb[22].mxu1  ;;  %1162 = vst [vmem:[#allocation3] sm:$0xfe] %v1151_v49  ;;  %v1152_v63 = vrot.slane %v1141_v50, 7  ;;  %v1171_v1 = vrot.slane %v1141_v50, 1  ;;  %v1122_v3 = vmax.f32 %v1105_v52, 0.0 }
 0x2ae   :  { %v1108_v4 = vadd.f32 %v1107_v61, %v1044_v47  ;;  %v1803_v51 = vpop.f32.mrb[23].mxu1  ;;  %v1157_v5 = vsel %vm687_vm7, %v1154_v41, %v1156_v56  ;;  %v1176_v7 = vsel %vm707_vm8, %v1173_v46, %v1175_v57  ;;  %1184 = vst [vmem:[#allocation3 + $0x58] sm:$0x7] %v1175_v57  ;;  %1198 = vst [vmem:[#allocation3 + $0x48] sm:$0xe0] %v1156_v56 }
 0x2af   :  { %v1049_v45 = vadd.f32 %v1801_v48, %v1659_v6  ;;  %v1242_v9 = vpack.c.bf16 %v1141_v50, %v1140_v37  ;;  %1165 = vst [vmem:[#allocation3 + $0x48] sm:$0xf] %v1157_v5  ;;  %v1153_v11 = vsel %vm687_vm7, %v1151_v49, %v1152_v63  ;;  %v1155_v12 = vsel %vm687_vm7, %v1152_v63, %v1154_v41  ;;  %v2432_v61 = vld [vmem:[%s2481_s6] ss:$0 sm:$0xff] }
 0x2b0   :  { %v1172_v13 = vsel %vm707_vm8, %v1170_v55, %v1171_v1  ;;  %v1174_v59 = vsel %vm707_vm8, %v1171_v1, %v1173_v46  ;;  %v1133_v14 = vmul.f32 %v2391_v15, %v1122_v3  ;;  %v1123_v62 = vmax.f32 %v1108_v4, 0.0 }
 0x2b1   :  { %v1113_v16 = vadd.f32 %v1907_v39, %v1049_v45  ;;  %1484 = vmatprep.mubr.bf16.mxu1 %v1242_v9  ;;  %v1243_v17 = vpack.c.bf16 %v1174_v59, %v1172_v13 }
 0x2b2   :  { %v1144_v18 = vadd.f32 %v2396_v24, %v1133_v14  ;;  %v1134_v6 = vmul.f32 %v2391_v15, %v1123_v62  ;;  %v1711_v14 = vld [vmem:[%s2481_s6 + $0x1] ss:$0 sm:$0xff] }
 0x2b3   :  { %v1124_v19 = vmax.f32 %v1113_v16, 0.0  ;;  %1925 = vmatprep.mubr.bf16.mxu0 %v1243_v17  ;;  %v1230_v20 = vld [vmem:[#allocation3 + $0x50] sm:$0xff] }
 0x2b4   :  { %v1188_v21 = vrot.slane %v1144_v18, 7  ;;  %v1206_v22 = vrot.slane %v1144_v18, 1  ;;  %v1145_v25 = vadd.f32 %v2396_v24, %v1134_v6  ;;  %v1220_v26 = vld [vmem:[#allocation3] sm:$0xff]  ;;  %v1245_v29 = vpack.c.bf16 %v1230_v20, %v2401_v34  ;;  %v1712_v6 = vld [vmem:[%s2481_s6 + $0x2] ss:$0 sm:$0xff] }
 0x2b5   :  { %v1135_v23 = vmul.f32 %v2391_v15, %v1124_v19  ;;  %v1241_v28 = vpack.c.bf16 %v1153_v11, %v1220_v26 }
 0x2b6   :  { %v1189_v30 = vsel %vm687_vm7, %v1156_v56, %v1188_v21  ;;  %v1207_v31 = vsel %vm707_vm8, %v1175_v57, %v1206_v22  ;;  %v1190_v33 = vrot.slane %v1145_v25, 7  ;;  %v1208_v36 = vrot.slane %v1145_v25, 1  ;;  %v1229_v43 = vld [vmem:[#allocation3 + $0x48] sm:$0xff] }
 0x2b7   :  { %v1146_v32 = vadd.f32 %v2396_v24, %v1135_v23  ;;  %1216 = vst [vmem:[#allocation3 + $0x58] sm:$0xf0] %v1207_v31  ;;  %1485 = vmatmul.mubr.bf16.vlgmr.msra.gmra.mrb[24].mxu1 %v1241_v28  ;;  %v1248_v37 = vpack.c.bf16 %v1145_v25, %v1144_v18  ;;  %v1244_v44 = vpack.c.bf16 %v1229_v43, %v1155_v12 }
 0x2b8   :  { %v1191_v15 = vsel %vm687_vm7, %v1188_v21, %v1190_v33  ;;  %1492 = vmatprep.mubr.bf16.mxu1 %v1245_v29  ;;  %v1209_v40 = vsel %vm707_vm8, %v1206_v22, %v1208_v36 }
 0x2b9   :  { %v1192_v38 = vrot.slane %v1146_v32, 7  ;;  %v1210_v39 = vrot.slane %v1146_v32, 1  ;;  %v1247_v41 = vpack.c.bf16 %v1191_v15, %v1189_v30  ;;  %v1251_v50 = vpack.c.bf16 %v1146_v32, %v1146_v32 }
 0x2bb   :  { %1219 = vst [vmem:[#allocation3 + $0xa0] sm:$0x7f] %v1210_v39  ;;  %v1193_v34 = vsel %vm687_vm7, %v1190_v33, %v1192_v38  ;;  %v1211_v42 = vsel %vm707_vm8, %v1208_v36, %v1210_v39 }
 0x2bc   :  { %v1249_v24 = vpack.c.bf16 %v1211_v42, %v1209_v40  ;;  %v1250_v53 = vpack.c.bf16 %v1193_v34, %v1193_v34 }
 0x2be   :  { %v1231_v47 = vld [vmem:[#allocation3 + $0x58] sm:$0xff] }
 0x2bf   :  { %v1246_v46 = vpack.c.bf16 %v1231_v47, %v1176_v7  ;;  %1493 = vmatmul.mubr.bf16.gmra.mrb[28].mxu1 %v1244_v44 }
 0x2c0   :  { %1500 = vmatprep.mubr.bf16.mxu1 %v1248_v37 }
 0x2c1   :  { %1926 = vmatmul.mubr.bf16.vlgmr.msra.gmra.mrb[24].mxu0 %v1246_v46 }
 0x2c2   :  { %1929 = vmatprep.mubr.bf16.mxu0 %v1249_v24  ;;  %v1240_v49 = vld [vmem:[#allocation3 + $0xa0] sm:$0xff] }
 0x2c3   :  { %v1252_v52 = vpack.c.bf16 %v1240_v49, %v1240_v49 }
 0x2c7   :  { %1501 = vmatmul.mubr.bf16.gmra.mrb[32].mxu1 %v1247_v41 }
 0x2c8   :  { %1508 = vmatprep.mubr.bf16.mxu1 %v1251_v50 }
 0x2c9   :  { %1930 = vmatmul.mubr.bf16.gmra.mrb[28].mxu0 %v1252_v52 }
 0x2cf   :  { %1509 = vmatmul.mubr.bf16.gmra.mrb[36].mxu1 %v1250_v53 }
 0x38a   :  { %v1833_v54 = vpop.f32.mrb[24].mxu1 }
 0x38b   :  { %v1834_v55 = vpop.f32.mrb[25].mxu1 }
 0x38c   :  { %v1835_v56 = vadd.f32 %v1834_v55, %v1833_v54  ;;  %v1836_v57 = vpop.f32.mrb[26].mxu1 }
 0x38d   :  { %v1837_v48 = vpop.f32.mrb[27].mxu1 }
 0x38e   :  { %v1838_v60 = vadd.f32 %v1837_v48, %v1836_v57  ;;  %v1487_v4 = vadd.f32 %v1835_v56, %v2432_v61 }
 0x390   :  { %v1490_v13 = vadd.f32 %v1838_v60, %v2432_v61 }
 0x392   :  { %v1839_v63 = vpop.f32.mrb[28].mxu1 }
 0x393   :  { %v1840_v1 = vpop.f32.mrb[29].mxu1 }
 0x394   :  { %v1927_v3 = vpop.f32.mrb[24].mxu0  ;;  %v1841_v51 = vadd.f32 %v1840_v1, %v1839_v63  ;;  %v1842_v5 = vpop.f32.mrb[30].mxu1 }
 0x395   :  { %v1550_v7 = vpop.f32.mrb[25].mxu0  ;;  %v1843_v45 = vpop.f32.mrb[31].mxu1 }
 0x396   :  { %v1551_v9 = vadd.f32 %v1550_v7, %v1487_v4  ;;  %v1495_v11 = vadd.f32 %v1841_v51, %v2432_v61  ;;  %v1928_v12 = vpop.f32.mrb[26].mxu0  ;;  %v1844_v59 = vadd.f32 %v1843_v45, %v1842_v5 }
 0x397   :  { %v1553_v16 = vpop.f32.mrb[27].mxu0 }
 0x398   :  { %v1580_v62 = vmax.f32 %v1551_v9, 0.0  ;;  %v1559_v17 = vadd.f32 %v1927_v3, %v1495_v11  ;;  %v1554_v18 = vadd.f32 %v1553_v16, %v1490_v13  ;;  %v1498_v19 = vadd.f32 %v1844_v59, %v2432_v61 }
 0x39a   :  { %v1591_v20 = vmul.f32 %v1711_v14, %v1580_v62  ;;  %v1582_v21 = vmax.f32 %v1559_v17, 0.0  ;;  %v1581_v22 = vmax.f32 %v1554_v18, 0.0  ;;  %v1562_v23 = vadd.f32 %v1928_v12, %v1498_v19  ;;  %v1845_v25 = vpop.f32.mrb[32].mxu1 }
 0x39b   :  { %v1846_v26 = vpop.f32.mrb[33].mxu1 }
 0x39c   :  { %v1602_v28 = vadd.f32 %v1712_v6, %v1591_v20  ;;  %v1593_v29 = vmul.f32 %v1711_v14, %v1582_v21  ;;  %v1592_v30 = vmul.f32 %v1711_v14, %v1581_v22  ;;  %v1583_v31 = vmax.f32 %v1562_v23, 0.0  ;;  %v1931_v32 = vpop.f32.mrb[28].mxu0  ;;  %v1848_v33 = vpop.f32.mrb[34].mxu1 }
 0x39d   :  { %v1566_v36 = vpop.f32.mrb[29].mxu0  ;;  %v1847_v37 = vadd.f32 %v1846_v26, %v1845_v25  ;;  %v1849_v38 = vpop.f32.mrb[35].mxu1 }
 0x39e   :  { %v1609_v39 = vadd.f32 %v1602_v28, %v2318_v2  ;;  %v1604_v15 = vadd.f32 %v1712_v6, %v1593_v29  ;;  %v1603_v40 = vadd.f32 %v1712_v6, %v1592_v30  ;;  %v1594_v41 = vmul.f32 %v1711_v14, %v1583_v31  ;;  %v1932_v34 = vpop.f32.mrb[30].mxu0 }
 0x39f   :  { %v1503_v42 = vadd.f32 %v1847_v37, %v2432_v61  ;;  %v1569_v43 = vpop.f32.mrb[31].mxu0  ;;  %v1850_v24 = vadd.f32 %v1849_v38, %v1848_v33 }
 0x3a0   :  { %1616 = vst [vmem:[%s2482_s7] sm:$0xff] %v1609_v39  ;;  %v1611_v44 = vadd.f32 %v1604_v15, %v2334_v27  ;;  %v1610_v47 = vadd.f32 %v1603_v40, %v2323_v8  ;;  %v1605_v46 = vadd.f32 %v1712_v6, %v1594_v41 }
 0x3a1   :  { %v1567_v49 = vadd.f32 %v1566_v36, %v1503_v42  ;;  %v1506_v2 = vadd.f32 %v1850_v24, %v2432_v61 }
 0x3a2   :  { %1618 = vst [vmem:[%s2482_s7 + $0x10] sm:$0xff] %v1611_v44  ;;  %1617 = vst [vmem:[%s2482_s7 + $0x8] sm:$0xff] %v1610_v47  ;;  %v1612_v50 = vadd.f32 %v1605_v46, %v2341_v35  ;;  %v1851_v52 = vpop.f32.mrb[36].mxu1 }
 0x3a3   :  { %v1584_v53 = vmax.f32 %v1567_v49, 0.0  ;;  %v1570_v54 = vadd.f32 %v1569_v43, %v1506_v2  ;;  %v1852_v27 = vpop.f32.mrb[37].mxu1 }
 0x3a4   :  { %1619 = vst [vmem:[%s2482_s7 + $0x18] ss:$8 sps:$4 sm:$0xff] %v1612_v50   ;;  %v1853_v8 = vadd.f32 %v1852_v27, %v1851_v52  ;;  %v1854_v55 = vpop.f32.mrb[38].mxu1 }
 0x3a5   :  { %v1595_v56 = vmul.f32 %v1711_v14, %v1584_v53  ;;  %v1585_v57 = vmax.f32 %v1570_v54, 0.0  ;;  %v1855_v48 = vpop.f32.mrb[39].mxu1 }
 0x3a6   :  { %v1511_v60 = vadd.f32 %v1853_v8, %v2432_v61 }
 0x3a7   :  { %v1606_v63 = vadd.f32 %v1712_v6, %v1595_v56  ;;  %v1596_v1 = vmul.f32 %v1711_v14, %v1585_v57 }
 0x3a8   :  { %v1575_v3 = vadd.f32 %v1931_v32, %v1511_v60 }
 0x3a9   :  { %v1613_v35 = vadd.f32 %v1606_v63, %v2355_v58  ;;  %v1607_v4 = vadd.f32 %v1712_v6, %v1596_v1 }
 0x3aa   :  { %v1586_v51 = vmax.f32 %v1575_v3, 0.0 }
 0x3ab   :  { %1714 = vst [vmem:[%s2482_s7 + $0x24] sm:$0xff] %v1613_v35  ;;  %v1614_v5 = vadd.f32 %v1607_v4, %v2361_v0 }
 0x3ac   :  { %v1597_v7 = vmul.f32 %v1711_v14, %v1586_v51 }
 0x3ad   :  { %1715 = vst [vmem:[%s2482_s7 + $0x2c] sm:$0xff] %v1614_v5 }
 0x3ae   :  { %v1608_v45 = vadd.f32 %v1712_v6, %v1597_v7 }
 0x3b0   :  { %v1615_v61 = vadd.f32 %v1608_v45, %v2370_v10 }
 0x3b2   :  { %1716 = vst [vmem:[%s2482_s7 + $0x34] sm:$0xff] %v1615_v61 }
 0x3b3   :  { %1629 = vsyncpa [#allocation5], 1 }
 0x3b4   :  { %1630 = vsyncpa [#allocation7], 1 }
 0x3b5   :  { %1631 = vsyncpa [#allocation10], 1 }

// kernel: _lambda_.8
= control target key start
LH: loop header
LB: loop body
LE: loop exit
PB: predicated region body
PF: predicated region fallthrough
CT: control target
= control target key end

     0   :  { %v2032_v1 = vmov 0.0   ;;  %vm64_vm0 = vcmask 1043456   ;;  %vm2033_vm1 = vmmov 0   ;;  %vm720_vm2 = vcmask 1040384   ;;  %s2630_s1 = inlined_call_operand.vmem [shape: bf16[640,128], index: 1, kind: input, shape index: {}]   ;;  %s2631_s0 = inlined_call_operand.vmem [shape: f32[2,24,128], index: 0, kind: input, shape index: {}]   ;;  %s2632_s3 = inlined_call_operand.vmem [shape: bf16[384,128], index: 3, kind: input, shape index: {}]   ;;  %s2633_s5 = inlined_call_operand.vmem [shape: bf16[384,128], index: 5, kind: input, shape index: {}]   ;;  %s2634_s2 = inlined_call_operand.vmem [shape: f32[3,128], index: 2, kind: input, shape index: {}]   ;;  %s2635_s4 = inlined_call_operand.vmem [shape: f32[3,128], index: 4, kind: input, shape index: {}]   ;;  %s2636_s6 = inlined_call_operand.vmem [shape: f32[3,128], index: 6, kind: input, shape index: {}]   ;;  %s2637_s7 = inlined_call_operand.vmem [shape: f32[2,20,128], index: 7, kind: output, shape index: {}]  }
   0x1   :  { %v1943_v0 = vld [vmem:[%s2630_s1 + $0x40] sm:$0xff]   ;;  %702 = vst [vmem:[#allocation3] sm:$0xff] %v2032_v1  ;;  %708 = vst [vmem:[#allocation3 + $0x30] sm:$0xff] %v2032_v1  ;;  %v1947_v5 = vld [vmem:[%s2630_s1 + $0x48] sm:$0xff]   ;;  %vm735_vm3 = vcmask 1046528  }
   0x2   :  { %709 = vst [vmem:[#allocation3 + $0x38] sm:$0xff] %v2032_v1  ;;  %710 = vst [vmem:[#allocation3 + $0x40] sm:$0xff] %v2032_v1  ;;  %v1944_v2 = vld [vmem:[%s2630_s1] sm:$0xff]   ;;  %1672 = vmatprep.subr.bf16.mxu0 %v1943_v0  ;;  %v1948_v6 = vld [vmem:[%s2630_s1 + $0x8] sm:$0xff]  }
   0x3   :  { %716 = vst [vmem:[#allocation3 + $0x70] sm:$0xff] %v2032_v1  ;;  %v1945_v3 = vld [vmem:[%s2630_s1 + $0xc0] sm:$0xff]   ;;  %1673 = vmatpush3.bf16.msra.mxu0 %v1944_v2  ;;  %v1949_v7 = vld [vmem:[%s2630_s1 + $0xc8] sm:$0xff]   ;;  %v1951_v9 = vld [vmem:[%s2630_s1 + $0x50] sm:$0xff]  }
   0x4   :  { %v1946_v4 = vld [vmem:[%s2630_s1 + $0x80] sm:$0xff]   ;;  %1706 = vmatprep.subr.bf16.mxu1 %v1945_v3  ;;  %1674 = vmatprep.subr.bf16.mxu0 %v1947_v5  ;;  %v1950_v8 = vld [vmem:[%s2630_s1 + $0x88] sm:$0xff]   ;;  %v1952_v10 = vld [vmem:[%s2630_s1 + $0x10] sm:$0xff]  }
   0x5   :  { %1707 = vmatpush3.bf16.msra.mxu1 %v1946_v4  ;;  %v1953_v11 = vld [vmem:[%s2630_s1 + $0xd0] sm:$0xff]   ;;  %v1955_v13 = vld [vmem:[%s2630_s1 + $0x58] sm:$0xff]   ;;  %v1959_v17 = vld [vmem:[%s2630_s1 + $0x60] sm:$0xff]  }
   0x6   :  { %1708 = vmatprep.subr.bf16.mxu1 %v1949_v7  ;;  %v1954_v12 = vld [vmem:[%s2630_s1 + $0x90] sm:$0xff]   ;;  %v1956_v14 = vld [vmem:[%s2630_s1 + $0x18] sm:$0xff]   ;;  %v1960_v18 = vld [vmem:[%s2630_s1 + $0x20] sm:$0xff]  }
   0x7   :  { %1675 = vmatpush3.bf16.msra.mxu0 %v1948_v6  ;;  %v1957_v15 = vld [vmem:[%s2630_s1 + $0xd8] sm:$0xff]   ;;  %v1961_v19 = vld [vmem:[%s2630_s1 + $0xe0] sm:$0xff]   ;;  %v1963_v21 = vld [vmem:[%s2630_s1 + $0x68] sm:$0xff]  }
   0x8   :  { %1676 = vmatprep.subr.bf16.mxu0 %v1951_v9  ;;  %v1958_v16 = vld [vmem:[%s2630_s1 + $0x98] sm:$0xff]   ;;  %v1962_v20 = vld [vmem:[%s2630_s1 + $0xa0] sm:$0xff]   ;;  %v1964_v22 = vld [vmem:[%s2630_s1 + $0x28] sm:$0xff]  }
   0x9   :  { %1709 = vmatpush3.bf16.msra.mxu1 %v1950_v8  ;;  %v1965_v23 = vld [vmem:[%s2630_s1 + $0xe8] sm:$0xff]   ;;  %v1967_v25 = vld [vmem:[%s2630_s1 + $0x70] sm:$0xff]   ;;  %v1971_v29 = vld [vmem:[%s2630_s1 + $0x78] sm:$0xff]  }
   0xa   :  { %1710 = vmatprep.subr.bf16.mxu1 %v1953_v11  ;;  %v1966_v24 = vld [vmem:[%s2630_s1 + $0xa8] sm:$0xff]   ;;  %v1968_v26 = vld [vmem:[%s2630_s1 + $0x30] sm:$0xff]   ;;  %v1972_v30 = vld [vmem:[%s2630_s1 + $0x38] sm:$0xff]  }
   0xb   :  { %1677 = vmatpush3.bf16.msra.mxu0 %v1952_v10  ;;  %v1969_v27 = vld [vmem:[%s2630_s1 + $0xf0] sm:$0xff]   ;;  %v1973_v31 = vld [vmem:[%s2630_s1 + $0xf8] sm:$0xff]   ;;  %v33_v32 = vld [vmem:[%s2631_s0 + $0x1] sm:$0xff] }
   0xc   :  { %1678 = vmatprep.subr.bf16.mxu0 %v1955_v13  ;;  %v1970_v28 = vld [vmem:[%s2630_s1 + $0xb0] sm:$0xff]   ;;  %v1974_v35 = vld [vmem:[%s2630_s1 + $0xb8] sm:$0xff]   ;;  %v27_v36 = vld [vmem:[%s2631_s0] sm:$0xff] }
   0xd   :  { %1711 = vmatpush3.bf16.msra.mxu1 %v1954_v12  ;;  %v34_v33 = vld [vmem:[%s2631_s0 + $0x9] sm:$0xff]  ;;  %v1975_v42 = vld [vmem:[%s2630_s1 + $0x100] sm:$0xff]   ;;  %v35_v47 = vld [vmem:[%s2631_s0 + $0x11] sm:$0xf] }
   0xe   :  { %1712 = vmatprep.subr.bf16.mxu1 %v1957_v15  ;;  %v170_v34 = vpack.c.bf16 %v34_v33, %v33_v32  ;;  %v28_v37 = vld [vmem:[%s2631_s0 + $0x8] sm:$0xff]  ;;  %38 = vst [vmem:[#allocation2 + $0x58] sm:$0xf] %v35_v47  ;;  %v1560_v48 = vld [vmem:[%s2631_s0 + $0x19] sm:$0xff]  ;;  %v29_v50 = vld [vmem:[%s2631_s0 + $0x10] sm:$0xf] }
   0xf   :  { %1679 = vmatpush3.bf16.msra.mxu0 %v1956_v14  ;;  %v45_v38 = vld [vmem:[%s2631_s0 + $0x3] sm:$0xff]  ;;  %v46_v39 = vld [vmem:[%s2631_s0 + $0xb] sm:$0xff]  ;;  %v169_v40 = vpack.c.bf16 %v28_v37, %v27_v36  ;;  %v82_v51 = vrot.slane %v1560_v48, 4  ;;  %32 = vst [vmem:[#allocation2 + $0x50] sm:$0xf] %v29_v50  ;;  %v1557_v53 = vld [vmem:[%s2631_s0 + $0x18] sm:$0xff] }
  0x10   :  { %1680 = vmatprep.subr.bf16.mxu0 %v1959_v17  ;;  %543 = vmatprep.mubr.bf16.mxu0 %v170_v34  ;;  %v172_v41 = vpack.c.bf16 %v46_v39, %v45_v38  ;;  %v39_v43 = vld [vmem:[%s2631_s0 + $0x2] sm:$0xff]  ;;  %v40_v44 = vld [vmem:[%s2631_s0 + $0xa] sm:$0xff]  ;;  %v65_v56 = vrot.slane %v1557_v53, 4  ;;  %v47_v60 = vld [vmem:[%s2631_s0 + $0x13] sm:$0xf] }
  0x11   :  { %1713 = vmatpush3.bf16.msra.mxu1 %v1958_v16  ;;  %v171_v45 = vpack.c.bf16 %v40_v44, %v39_v43  ;;  %v1976_v46 = vld [vmem:[%s2630_s1 + $0x108] sm:$0xff]   ;;  %v1558_v54 = vld [vmem:[%s2631_s0 + $0x20] sm:$0xff]  ;;  %v1977_v55 = vld [vmem:[%s2630_s1 + $0x110] sm:$0xff]   ;;  %90 = vst [vmem:[#allocation2 + $0x58] sm:$0xf0] %v82_v51 }
  0x12   :  { %1714 = vmatprep.subr.bf16.mxu1 %v1961_v19  ;;  %599 = vmatprep.mubr.bf16.mxu1 %v172_v41  ;;  %v1561_v49 = vld [vmem:[%s2631_s0 + $0x21] sm:$0xff]  ;;  %v66_v57 = vrot.slane %v1558_v54, 4  ;;  %v41_v63 = vld [vmem:[%s2631_s0 + $0x12] sm:$0xf]  ;;  %73 = vst [vmem:[#allocation2 + $0x50] sm:$0xf0] %v65_v56 }
  0x13   :  { %1681 = vmatpush3.bf16.msra.mxu0 %v1960_v18  ;;  %v83_v52 = vrot.slane %v1561_v49, 4  ;;  %v1566_v58 = vld [vmem:[%s2631_s0 + $0x1b] sm:$0xff]  ;;  %v1567_v61 = vld [vmem:[%s2631_s0 + $0x23] sm:$0xff]  ;;  %50 = vst [vmem:[#allocation2 + $0x68] sm:$0xf] %v47_v60  ;;  %v1989_v60 = vld [vmem:[%s2632_s3 + $0x10] sm:$0xff]  }
  0x14   :  { %1682 = vmatprep.subr.bf16.mxu0 %v1963_v21  ;;  %v116_v62 = vrot.slane %v1566_v58, 4  ;;  %v67_v0 = vsel %vm64_vm0, %v65_v56, %v66_v57  ;;  %v117_v2 = vrot.slane %v1567_v61, 4  ;;  %44 = vst [vmem:[#allocation2 + $0x60] sm:$0xf] %v41_v63  ;;  %v1563_v3 = vld [vmem:[%s2631_s0 + $0x1a] sm:$0xff]  ;;  %v1564_v4 = vld [vmem:[%s2631_s0 + $0x22] sm:$0xff] }
  0x15   :  { %1715 = vmatpush3.bf16.msra.mxu1 %v1962_v20  ;;  %v84_v59 = vsel %vm64_vm0, %v82_v51, %v83_v52  ;;  %v1978_v5 = vld [vmem:[%s2630_s1 + $0x118] sm:$0xff]   ;;  %v99_v6 = vrot.slane %v1563_v3, 4  ;;  %v100_v7 = vrot.slane %v1564_v4, 4  ;;  %v1562_v9 = vld [vmem:[%s2631_s0 + $0x29] sm:$0xf]  ;;  %v1979_v17 = vld [vmem:[%s2630_s1 + $0x120] sm:$0xff]  }
  0x16   :  { %1716 = vmatprep.subr.bf16.mxu1 %v1965_v23  ;;  %124 = vst [vmem:[#allocation2 + $0x68] sm:$0xf0] %v116_v62  ;;  %v118_v8 = vsel %vm64_vm0, %v116_v62, %v117_v2  ;;  %v1559_v10 = vld [vmem:[%s2631_s0 + $0x28] sm:$0xf]  ;;  %v85_v12 = vrot.slane %v1562_v9, 4  ;;  %v1569_v32 = vld [vmem:[%s2631_s0 + $0x1c] sm:$0xff] }
  0x17   :  { %1683 = vmatpush3.bf16.msra.mxu0 %v1964_v22  ;;  %v101_v11 = vsel %vm64_vm0, %v99_v6, %v100_v7  ;;  %107 = vst [vmem:[#allocation2 + $0x60] sm:$0xf0] %v99_v6  ;;  %v68_v13 = vrot.slane %v1559_v10, 4  ;;  %v1568_v14 = vld [vmem:[%s2631_s0 + $0x2b] sm:$0xf]  ;;  %v1982_v48 = vld [vmem:[%s2630_s1 + $0x138] sm:$0xff]  }
  0x18   :  { %1684 = vmatprep.subr.bf16.mxu0 %v1967_v25  ;;  %v119_v15 = vrot.slane %v1568_v14, 4  ;;  %v1565_v16 = vld [vmem:[%s2631_s0 + $0x2a] sm:$0xf]  ;;  %v86_v18 = vsel %vm64_vm0, %v83_v52, %v85_v12  ;;  %v155_v21 = vld [vmem:[#allocation2 + $0x58] sm:$0xff]  ;;  %v1983_v53 = vld [vmem:[%s2632_s3 + $0x40] sm:$0xff]  }
  0x19   :  { %1717 = vmatpush3.bf16.msra.mxu1 %v1966_v24  ;;  %v69_v19 = vsel %vm64_vm0, %v66_v57, %v68_v13  ;;  %v102_v20 = vrot.slane %v1565_v16, 4  ;;  %v51_v23 = vld [vmem:[%s2631_s0 + $0x4] sm:$0xff]  ;;  %v175_v24 = vpack.c.bf16 %v84_v59, %v155_v21  ;;  %v154_v25 = vld [vmem:[#allocation2 + $0x50] sm:$0xff]  ;;  %v1571_v37 = vld [vmem:[%s2631_s0 + $0x2c] sm:$0xf] }
  0x1a   :  { %1718 = vmatprep.subr.bf16.mxu1 %v1969_v27  ;;  %v120_v22 = vsel %vm64_vm0, %v117_v2, %v119_v15  ;;  %v52_v27 = vld [vmem:[%s2631_s0 + $0xc] sm:$0xff]  ;;  %v1570_v33 = vld [vmem:[%s2631_s0 + $0x24] sm:$0xff]  ;;  %v1991_v62 = vld [vmem:[%s2632_s3 + $0x58] sm:$0xff]  }
  0x1b   :  { %1685 = vmatpush3.bf16.msra.mxu0 %v1968_v26  ;;  %v103_v26 = vsel %vm64_vm0, %v100_v7, %v102_v20  ;;  %v134_v36 = vrot.slane %v1570_v33, 4  ;;  %v182_v39 = vpack.c.bf16 %v120_v22, %v120_v22  ;;  %v173_v49 = vpack.c.bf16 %v52_v27, %v51_v23  ;;  %v1984_v54 = vld [vmem:[%s2632_s3] sm:$0xff]   ;;  %v1986_v57 = vld [vmem:[%s2632_s3 + $0x8] sm:$0xff]   ;;  %v1988_v59 = vld [vmem:[%s2632_s3 + $0x50] sm:$0xff]  }
  0x1c   :  { %1686 = vmatprep.subr.bf16.mxu0 %v1971_v29  ;;  %v174_v29 = vpack.c.bf16 %v67_v0, %v154_v25  ;;  %v181_v47 = vpack.c.bf16 %v103_v26, %v103_v26  ;;  %v1987_v56 = vld [vmem:[%s2632_s3 + $0x80] sm:$0xff]   ;;  %v1990_v58 = vld [vmem:[%s2632_s3 + $0x88] sm:$0xff]   ;;  %v1993_v61 = vld [vmem:[%s2632_s3 + $0x90] sm:$0xff]  }
  0x1d   :  { %1719 = vmatpush3.bf16.msra.mxu1 %v1970_v28  ;;  %v53_v28 = vld [vmem:[%s2631_s0 + $0x14] sm:$0xf]  ;;  %v1992_v63 = vld [vmem:[%s2632_s3 + $0x18] sm:$0xff]   ;;  %v1994_v2 = vld [vmem:[%s2632_s3 + $0x60] sm:$0xff]  }
  0x1e   :  { %1720 = vmatprep.subr.bf16.mxu1 %v1973_v31  ;;  %v180_v31 = vpack.c.bf16 %v86_v18, %v86_v18  ;;  %56 = vst [vmem:[#allocation2 + $0x70] sm:$0xf] %v53_v28  ;;  %v156_v38 = vld [vmem:[#allocation2 + $0x60] sm:$0xff]  ;;  %v1996_v0 = vld [vmem:[%s2632_s3 + $0x98] sm:$0xff]   ;;  %v1998_v6 = vld [vmem:[%s2632_s3 + $0x28] sm:$0xff]  }
  0x1f   :  { %1687 = vmatpush3.bf16.msra.mxu0 %v1972_v30  ;;  %v157_v30 = vld [vmem:[#allocation2 + $0x68] sm:$0xff]  ;;  %v176_v41 = vpack.c.bf16 %v101_v11, %v156_v38  ;;  %v1995_v3 = vld [vmem:[%s2632_s3 + $0x20] sm:$0xff]   ;;  %v2001_v9 = vld [vmem:[%s2632_s3 + $0x30] sm:$0xff]  }
  0x20   :  { %1841 = vmatprep.subr.bf16.mxu0 %v2032_v1  ;;  %v177_v34 = vpack.c.bf16 %v118_v8, %v157_v30  ;;  %v1999_v4 = vld [vmem:[%s2632_s3 + $0xa0] sm:$0xff]   ;;  %v2002_v7 = vld [vmem:[%s2632_s3 + $0xa8] sm:$0xff]   ;;  %v2000_v8 = vld [vmem:[%s2632_s3 + $0x70] sm:$0xff]  }
  0x21   :  { %1721 = vmatpush3.bf16.msra.mxu1 %v1974_v35  ;;  %v133_v35 = vrot.slane %v1569_v32, 4  ;;  %v2005_v10 = vld [vmem:[%s2632_s3 + $0xb0] sm:$0xff]   ;;  %v2003_v11 = vld [vmem:[%s2632_s3 + $0x78] sm:$0xff]   ;;  %v2007_v14 = vld [vmem:[%s2633_s5 + $0x40] sm:$0xff]  }
  0x22   :  { %544 = vmatmul.mubr.bf16.vlgmr.msra.gmra.mrb[0].mxu0 %v169_v40  ;;  %v136_v40 = vrot.slane %v1571_v37, 4  ;;  %1751 = vmatprep.subr.bf16.mxu1 %v1983_v53  ;;  %v2004_v12 = vld [vmem:[%s2632_s3 + $0x38] sm:$0xff]   ;;  %v1572_v16 = vld [vmem:[%s2634_s2] ss:$0 sm:$0xff] }
  0x23   :  { %1842 = vmatpush3.bf16.msra.mxu0 %v1975_v42  ;;  %551 = vmatprep.mubr.bf16.mxu0 %v175_v24  ;;  %v1980_v42 = vld [vmem:[%s2630_s1 + $0x128] sm:$0xff]   ;;  %v135_v43 = vsel %vm64_vm0, %v133_v35, %v134_v36  ;;  %141 = vst [vmem:[#allocation2 + $0x70] sm:$0xf0] %v133_v35  ;;  %v2006_v13 = vld [vmem:[%s2632_s3 + $0xb8] sm:$0xff]  }
  0x24   :  { %600 = vmatmul.mubr.bf16.vlgmr.msra.gmra.mrb[0].mxu1 %v171_v45  ;;  %1843 = vmatprep.subr.bf16.mxu0 %v2032_v1  ;;  %v137_v44 = vsel %vm64_vm0, %v134_v36, %v136_v40  ;;  %v179_v45 = vpack.c.bf16 %v69_v19, %v69_v19 }
  0x25   :  { %607 = vmatprep.mubr.bf16.mxu1 %v177_v34  ;;  %v183_v52 = vpack.c.bf16 %v137_v44, %v137_v44  ;;  %1752 = vmatpush3.bf16.msra.mxu1 %v1984_v54 }
  0x27   :  { %1844 = vmatpush3.bf16.msra.mxu0 %v1976_v46  ;;  %v1981_v46 = vld [vmem:[%s2630_s1 + $0x130] sm:$0xff]  }
  0x28   :  { %1845 = vmatprep.subr.bf16.mxu0 %v2032_v1 }
  0x2a   :  { %552 = vmatmul.mubr.bf16.gmra.mrb[4].mxu0 %v174_v29  ;;  %v158_v50 = vld [vmem:[#allocation2 + $0x70] sm:$0xff] }
  0x2b   :  { %1846 = vmatpush3.bf16.msra.mxu0 %v1977_v55  ;;  %559 = vmatprep.mubr.bf16.mxu0 %v180_v31  ;;  %v178_v51 = vpack.c.bf16 %v135_v43, %v158_v50  ;;  %v1985_v55 = vld [vmem:[%s2632_s3 + $0x48] sm:$0xff]  }
  0x2c   :  { %1847 = vmatprep.subr.bf16.mxu0 %v2032_v1  ;;  %608 = vmatmul.mubr.bf16.gmra.mrb[4].mxu1 %v176_v41 }
  0x2d   :  { %615 = vmatprep.mubr.bf16.mxu1 %v182_v39  ;;  %1753 = vmatprep.subr.bf16.mxu1 %v1985_v55 }
  0x2e   :  { %1754 = vmatpush3.bf16.msra.mxu1 %v1986_v57 }
  0x2f   :  { %1848 = vmatpush3.bf16.msra.mxu0 %v1978_v5  ;;  %1755 = vmatprep.subr.bf16.mxu1 %v1988_v59  ;;  %v1997_v5 = vld [vmem:[%s2632_s3 + $0x68] sm:$0xff]  }
  0x30   :  { %1849 = vmatprep.subr.bf16.mxu0 %v2032_v1 }
  0x32   :  { %560 = vmatmul.mubr.bf16.gmra.mrb[8].mxu0 %v179_v45  ;;  %1756 = vmatpush3.bf16.msra.mxu1 %v1989_v60 }
  0x33   :  { %1850 = vmatpush3.bf16.msra.mxu0 %v1979_v17  ;;  %1857 = vmatprep.mubr.msk.bf16.mxu0 %vm2033_vm1, %v2032_v1 }
  0x34   :  { %1851 = vmatprep.subr.bf16.mxu0 %v2032_v1  ;;  %616 = vmatmul.mubr.bf16.gmra.mrb[8].mxu1 %v181_v47 }
  0x35   :  { %1757 = vmatprep.subr.bf16.mxu1 %v1991_v62  ;;  %v1613_v62 = vld [vmem:[%s2634_s2 + $0x1] ss:$0 sm:$0xff] }
  0x36   :  { %1758 = vmatpush3.bf16.msra.mxu1 %v1992_v63 }
  0x37   :  { %1852 = vmatpush3.bf16.msra.mxu0 %v1980_v42  ;;  %1759 = vmatprep.subr.bf16.mxu1 %v1994_v2 }
  0x38   :  { %1853 = vmatprep.subr.bf16.mxu0 %v2032_v1 }
  0x3a   :  { %1760 = vmatpush3.bf16.msra.mxu1 %v1995_v3 }
  0x3b   :  { %1854 = vmatpush3.bf16.msra.mxu0 %v1981_v46  ;;  %1761 = vmatprep.subr.bf16.mxu1 %v1997_v5 }
  0x3c   :  { %1855 = vmatprep.subr.bf16.mxu0 %v2032_v1 }
  0x3e   :  { %1762 = vmatpush3.bf16.msra.mxu1 %v1998_v6 }
  0x3f   :  { %1856 = vmatpush3.bf16.msra.mxu0 %v1982_v48  ;;  %1763 = vmatprep.subr.bf16.mxu1 %v2000_v8 }
  0x40   :  { %1869 = vmatprep.subr.bf16.mxu0 %v2032_v1 }
  0x42   :  { %1858 = vmatmul.mubr.bf16.vlgmr.msra.gmra.mrb[12].mxu0 %v173_v49  ;;  %1764 = vmatpush3.bf16.msra.mxu1 %v2001_v9 }
  0x43   :  { %1861 = vmatprep.mubr.msk.bf16.mxu0 %vm2033_vm1, %v2032_v1  ;;  %1870 = vmatpush3.bf16.msra.mxu0 %v1987_v56 }
  0x44   :  { %1871 = vmatprep.subr.bf16.mxu0 %v2032_v1  ;;  %1765 = vmatprep.subr.bf16.mxu1 %v2003_v11 }
  0x46   :  { %1766 = vmatpush3.bf16.msra.mxu1 %v2004_v12 }
  0x47   :  { %1872 = vmatpush3.bf16.msra.mxu0 %v1990_v58  ;;  %1796 = vmatprep.subr.bf16.mxu1 %v2007_v14 }
  0x48   :  { %1873 = vmatprep.subr.bf16.mxu0 %v2032_v1 }
  0x4a   :  { %1862 = vmatmul.mubr.bf16.gmra.mrb[16].mxu0 %v178_v51 }
  0x4b   :  { %1865 = vmatprep.mubr.msk.bf16.mxu0 %vm2033_vm1, %v2032_v1  ;;  %1874 = vmatpush3.bf16.msra.mxu0 %v1993_v61 }
  0x4c   :  { %1875 = vmatprep.subr.bf16.mxu0 %v2032_v1 }
  0x4f   :  { %1876 = vmatpush3.bf16.msra.mxu0 %v1996_v0 }
  0x50   :  { %1877 = vmatprep.subr.bf16.mxu0 %v2032_v1 }
  0x52   :  { %1866 = vmatmul.mubr.bf16.gmra.mrb[20].mxu0 %v183_v52 }
  0x53   :  { %1885 = vmatprep.mubr.msk.bf16.mxu0 %vm2033_vm1, %v2032_v1  ;;  %1878 = vmatpush3.bf16.msra.mxu0 %v1999_v4  ;;  %v1614_v4 = vld [vmem:[%s2634_s2 + $0x2] ss:$0 sm:$0xff] }
  0x54   :  { %1879 = vmatprep.subr.bf16.mxu0 %v2032_v1 }
  0x57   :  { %1880 = vmatpush3.bf16.msra.mxu0 %v2002_v7 }
  0x58   :  { %1881 = vmatprep.subr.bf16.mxu0 %v2032_v1 }
  0x5b   :  { %1882 = vmatpush3.bf16.msra.mxu0 %v2005_v10 }
  0x5c   :  { %1883 = vmatprep.subr.bf16.mxu0 %v2032_v1 }
  0x5f   :  { %1884 = vmatpush3.bf16.msra.mxu0 %v2006_v13 }
  0x60   :  { %1897 = vmatprep.subr.bf16.mxu0 %v2032_v1 }
  0xf5   :  { %v1688_v15 = vpop.f32.mrb[0].mxu0 }
  0xf6   :  { %v1689_v17 = vpop.f32.mrb[1].mxu0 }
  0xf7   :  { %v1690_v18 = vadd.f32 %v1689_v17, %v1688_v15  ;;  %v1691_v19 = vpop.f32.mrb[2].mxu0  ;;  %v1722_v20 = vpop.f32.mrb[0].mxu1 }
  0xf8   :  { %v1692_v21 = vpop.f32.mrb[3].mxu0  ;;  %v1723_v22 = vpop.f32.mrb[1].mxu1 }
  0xf9   :  { %v546_v23 = vadd.f32 %v1690_v18, %v1572_v16  ;;  %v1693_v24 = vadd.f32 %v1692_v21, %v1691_v19  ;;  %v1724_v25 = vadd.f32 %v1723_v22, %v1722_v20  ;;  %v1725_v1 = vpop.f32.mrb[2].mxu1 }
  0xfa   :  { %v1726_v26 = vpop.f32.mrb[3].mxu1 }
  0xfb   :  { %v549_v27 = vadd.f32 %v1693_v24, %v1572_v16  ;;  %v1727_v28 = vadd.f32 %v1726_v26, %v1725_v1  ;;  %v602_v29 = vadd.f32 %v1724_v25, %v546_v23 }
  0xfd   :  { %v605_v30 = vadd.f32 %v1727_v28, %v549_v27  ;;  %v1694_v31 = vpop.f32.mrb[4].mxu0 }
  0xfe   :  { %v1695_v32 = vpop.f32.mrb[5].mxu0 }
  0xff   :  { %v1696_v33 = vadd.f32 %v1695_v32, %v1694_v31  ;;  %v1697_v34 = vpop.f32.mrb[6].mxu0  ;;  %v1728_v35 = vpop.f32.mrb[4].mxu1 }
 0x100   :  { %v1698_v36 = vpop.f32.mrb[7].mxu0  ;;  %v1729_v39 = vpop.f32.mrb[5].mxu1 }
 0x101   :  { %v554_v37 = vadd.f32 %v1696_v33, %v1572_v16  ;;  %v1699_v38 = vadd.f32 %v1698_v36, %v1697_v34  ;;  %v1730_v40 = vadd.f32 %v1729_v39, %v1728_v35  ;;  %v1731_v41 = vpop.f32.mrb[6].mxu1  ;;  %v2008_v39 = vld [vmem:[%s2633_s5] sm:$0xff]  }
 0x102   :  { %v1732_v43 = vpop.f32.mrb[7].mxu1 }
 0x103   :  { %v557_v42 = vadd.f32 %v1699_v38, %v1572_v16  ;;  %v1733_v44 = vadd.f32 %v1732_v43, %v1731_v41  ;;  %v610_v45 = vadd.f32 %v1730_v40, %v554_v37 }
 0x105   :  { %v1700_v46 = vpop.f32.mrb[8].mxu0  ;;  %v613_v48 = vadd.f32 %v1733_v44, %v557_v42 }
 0x106   :  { %v1701_v47 = vpop.f32.mrb[9].mxu0 }
 0x107   :  { %v1702_v49 = vadd.f32 %v1701_v47, %v1700_v46  ;;  %v1703_v50 = vpop.f32.mrb[10].mxu0  ;;  %v1734_v52 = vpop.f32.mrb[8].mxu1  ;;  %v2435_v46 = vld [vmem:[#allocation3 + $0x70] sm:$0xff] }
 0x108   :  { %v1704_v51 = vpop.f32.mrb[11].mxu0  ;;  %v1735_v54 = vpop.f32.mrb[9].mxu1 }
 0x109   :  { %v562_v53 = vadd.f32 %v1702_v49, %v1572_v16  ;;  %v1736_v55 = vadd.f32 %v1735_v54, %v1734_v52  ;;  %v1737_v56 = vpop.f32.mrb[10].mxu1 }
 0x10a   :  { %v1738_v57 = vpop.f32.mrb[11].mxu1 }
 0x10b   :  { %v618_v58 = vadd.f32 %v1736_v55, %v562_v53 }
 0x115   :  { %v657_v59 = vpop.f32.mrb[12].mxu0 }
 0x116   :  { %v658_v60 = vadd.f32 %v657_v59, %v602_v29  ;;  %v1859_v61 = vpop.f32.mrb[13].mxu0 }
 0x117   :  { %v660_v63 = vpop.f32.mrb[14].mxu0 }
 0x118   :  { %v679_v0 = vmax.f32 %v658_v60, 0.0  ;;  %v661_v2 = vadd.f32 %v660_v63, %v605_v30  ;;  %v1860_v3 = vpop.f32.mrb[15].mxu0  ;;  %v2009_v63 = vld [vmem:[%s2633_s5 + $0x48] sm:$0xff]  }
 0x119   :  { %v2011_v3 = vld [vmem:[%s2633_s5 + $0x50] sm:$0xff]  }
 0x11a   :  { %v688_v5 = vmul.f32 %v1613_v62, %v679_v0  ;;  %v680_v6 = vmax.f32 %v661_v2, 0.0  ;;  %v2459_v0 = vld [vmem:[%s2633_s5 + $0x80] sm:$0xff]   ;;  %v2010_v2 = vld [vmem:[%s2633_s5 + $0x8] sm:$0xff]  }
 0x11c   :  { %v2408_v7 = vadd.f32 %v1614_v4, %v688_v5  ;;  %v689_v8 = vmul.f32 %v1613_v62, %v680_v6  ;;  %v2013_v5 = vld [vmem:[%s2633_s5 + $0x10] sm:$0xff]   ;;  %v2014_v6 = vld [vmem:[%s2633_s5 + $0x58] sm:$0xff]  }
 0x11d   :  { %v665_v9 = vpop.f32.mrb[16].mxu0 }
 0x11e   :  { %v721_v10 = vrot.slane %v2408_v7, 7  ;;  %v2411_v11 = vadd.f32 %v1614_v4, %v689_v8  ;;  %v666_v12 = vadd.f32 %v665_v9, %v610_v45  ;;  %v1863_v13 = vpop.f32.mrb[17].mxu0  ;;  %v736_v25 = vrot.slane %v2408_v7, 1  ;;  %v2485_v8 = vld [vmem:[%s2633_s5 + $0x90] sm:$0xff]   ;;  %v2016_v9 = vld [vmem:[%s2633_s5 + $0x18] sm:$0xff]  }
 0x11f   :  { %v668_v14 = vpop.f32.mrb[18].mxu0  ;;  %v2019_v13 = vld [vmem:[%s2633_s5 + $0x20] sm:$0xff]  }
 0x120   :  { %729 = vst [vmem:[#allocation3] sm:$0xfe] %v721_v10  ;;  %v681_v15 = vmax.f32 %v666_v12, 0.0  ;;  %v669_v16 = vadd.f32 %v668_v14, %v613_v48  ;;  %v1864_v17 = vpop.f32.mrb[19].mxu0  ;;  %v788_v18 = vpack.c.bf16 %v2411_v11, %v2408_v7  ;;  %v722_v21 = vrot.slane %v2411_v11, 7  ;;  %v2498_v12 = vld [vmem:[%s2633_s5 + $0x98] sm:$0xff]  }
 0x121   :  { %v737_v22 = vrot.slane %v2411_v11, 1  ;;  %v2020_v14 = vld [vmem:[%s2633_s5 + $0x68] sm:$0xff]   ;;  %v2023_v17 = vld [vmem:[%s2633_s5 + $0x70] sm:$0xff]  }
 0x122   :  { %v690_v19 = vmul.f32 %v1613_v62, %v681_v15  ;;  %v682_v20 = vmax.f32 %v669_v16, 0.0  ;;  %1027 = vmatprep.mubr.bf16.mxu1 %v788_v18  ;;  %v723_v31 = vsel %vm720_vm2, %v721_v10, %v722_v21  ;;  %v2017_v10 = vld [vmem:[%s2633_s5 + $0x60] sm:$0xff]   ;;  %v2022_v16 = vld [vmem:[%s2633_s5 + $0x28] sm:$0xff]  }
 0x123   :  { %v738_v34 = vsel %vm735_vm3, %v736_v25, %v737_v22  ;;  %v2511_v15 = vld [vmem:[%s2633_s5 + $0xa0] sm:$0xff]   ;;  %v2524_v18 = vld [vmem:[%s2633_s5 + $0xa8] sm:$0xff]  }
 0x124   :  { %v2417_v23 = vadd.f32 %v1614_v4, %v690_v19  ;;  %v691_v24 = vmul.f32 %v1613_v62, %v682_v20  ;;  %v2025_v19 = vld [vmem:[%s2633_s5 + $0x30] sm:$0xff]   ;;  %v2026_v20 = vld [vmem:[%s2633_s5 + $0x78] sm:$0xff]  }
 0x125   :  { %v673_v1 = vpop.f32.mrb[20].mxu0 }
 0x126   :  { %v724_v26 = vrot.slane %v2417_v23, 7  ;;  %734 = vst [vmem:[#allocation3 + $0x38] sm:$0xff] %v2417_v23   ;;  %v739_v27 = vrot.slane %v2417_v23, 1  ;;  %v2423_v28 = vadd.f32 %v1614_v4, %v691_v24  ;;  %v674_v29 = vadd.f32 %v673_v1, %v618_v58  ;;  %v1867_v30 = vpop.f32.mrb[21].mxu0  ;;  %v2548_v24 = vld [vmem:[%s2633_s5 + $0xb8] sm:$0xff]  }
 0x127   :  { %v676_v32 = vpop.f32.mrb[22].mxu0  ;;  %v772_v33 = vld [vmem:[#allocation3] sm:$0xff] }
 0x128   :  { %v725_v35 = vsel %vm720_vm2, %v722_v21, %v724_v26  ;;  %v740_v36 = vsel %vm735_vm3, %v737_v22, %v739_v27  ;;  %746 = vst [vmem:[#allocation3 + $0x40] sm:$0x7] %v739_v27  ;;  %756 = vst [vmem:[#allocation3 + $0x30] sm:$0xe0] %v724_v26  ;;  %v762_v37 = vrot.slane %v2423_v28, 1  ;;  %v1868_v38 = vpop.f32.mrb[23].mxu0  ;;  %v787_v41 = vpack.c.bf16 %v723_v31, %v772_v33 }
 0x129   :  { %731 = vst [vmem:[#allocation3 + $0x30] sm:$0xf] %v725_v35  ;;  %v683_v40 = vmax.f32 %v674_v29, 0.0  ;;  %v789_v42 = vpack.c.bf16 %v740_v36, %v738_v34  ;;  %v749_v45 = vrot.slane %v2423_v28, 7  ;;  %v2537_v21 = vld [vmem:[%s2633_s5 + $0xb0] sm:$0xff]   ;;  %v2028_v22 = vld [vmem:[%s2633_s5 + $0x38] sm:$0xff]  }
 0x12a   :  { %v763_v43 = vsel %vm735_vm3, %v739_v27, %v762_v37  ;;  %1028 = vmatmul.mubr.bf16.vlgmr.msra.gmra.mrb[12].mxu1 %v787_v41  ;;  %v1615_v27 = vld [vmem:[%s2635_s4] ss:$0 sm:$0xff] }
 0x12b   :  { %769 = vst [vmem:[#allocation3 + $0x40] sm:$0xf0] %v763_v43  ;;  %v692_v44 = vmul.f32 %v1613_v62, %v683_v40  ;;  %1886 = vmatmul.mubr.bf16.vlgmr.msra.gmra.mrb[24].mxu0 %v789_v42  ;;  %1797 = vmatpush3.bf16.msra.mxu1 %v2008_v39  ;;  %v750_v51 = vsel %vm720_vm2, %v724_v26, %v749_v45  ;;  %v2557_v39 = vld [vmem:[%s2635_s4 + $0x1] ss:$0 sm:$0xff]  ;;  %v2562_v43 = vld [vmem:[%s2635_s4 + $0x2] ss:$0 sm:$0xff] }
 0x12c   :  { %1889 = vmatprep.mubr.msk.bf16.mxu0 %vm2033_vm1, %v2435_v46  ;;  %1798 = vmatprep.subr.bf16.mxu1 %v2009_v63 }
 0x12d   :  { %v2439_v47 = vadd.f32 %v1614_v4, %v692_v44  ;;  %v779_v48 = vld [vmem:[#allocation3 + $0x38] sm:$0xff]  ;;  %1898 = vmatpush3.bf16.msra.mxu0 %v2459_v0  ;;  %v2472_v4 = vld [vmem:[%s2633_s5 + $0x88] sm:$0xff]  }
 0x12e   :  { %v791_v49 = vpack.c.bf16 %v2423_v28, %v779_v48  ;;  %1899 = vmatprep.subr.bf16.mxu0 %v2435_v46 }
 0x12f   :  { %v764_v50 = vrot.slane %v2439_v47, 1  ;;  %v751_v54 = vrot.slane %v2439_v47, 7  ;;  %v794_v56 = vpack.c.bf16 %v2439_v47, %v2439_v47  ;;  %1799 = vmatpush3.bf16.msra.mxu1 %v2010_v2 }
 0x130   :  { %1035 = vmatprep.mubr.bf16.mxu1 %v791_v49  ;;  %v778_v52 = vld [vmem:[#allocation3 + $0x30] sm:$0xff]  ;;  %1800 = vmatprep.subr.bf16.mxu1 %v2011_v3 }
 0x131   :  { %771 = vst [vmem:[#allocation3 + $0x70] sm:$0x7f] %v764_v50  ;;  %v790_v53 = vpack.c.bf16 %v750_v51, %v778_v52  ;;  %v765_v55 = vsel %vm735_vm3, %v762_v37, %v764_v50  ;;  %v752_v59 = vsel %vm720_vm2, %v749_v45, %v751_v54  ;;  %1900 = vmatpush3.bf16.msra.mxu0 %v2472_v4 }
 0x132   :  { %v780_v57 = vld [vmem:[#allocation3 + $0x40] sm:$0xff]  ;;  %v793_v61 = vpack.c.bf16 %v752_v59, %v752_v59  ;;  %1901 = vmatprep.subr.bf16.mxu0 %v2435_v46 }
 0x133   :  { %1036 = vmatmul.mubr.bf16.gmra.mrb[16].mxu1 %v790_v53  ;;  %v792_v58 = vpack.c.bf16 %v765_v55, %v780_v57 }
 0x134   :  { %1043 = vmatprep.mubr.bf16.mxu1 %v794_v56  ;;  %1801 = vmatpush3.bf16.msra.mxu1 %v2013_v5 }
 0x135   :  { %1890 = vmatmul.mubr.bf16.gmra.mrb[28].mxu0 %v792_v58  ;;  %1802 = vmatprep.subr.bf16.mxu1 %v2014_v6 }
 0x136   :  { %1893 = vmatprep.mubr.msk.bf16.mxu0 %vm2033_vm1, %v2435_v46  ;;  %1902 = vmatpush3.bf16.msra.mxu0 %v2485_v8 }
 0x137   :  { %1903 = vmatprep.subr.bf16.mxu0 %v2435_v46 }
 0x138   :  { %v786_v60 = vld [vmem:[#allocation3 + $0x70] sm:$0xff]  ;;  %1803 = vmatpush3.bf16.msra.mxu1 %v2016_v9 }
 0x139   :  { %v795_v62 = vpack.c.bf16 %v786_v60, %v786_v60  ;;  %1804 = vmatprep.subr.bf16.mxu1 %v2017_v10 }
 0x13a   :  { %1904 = vmatpush3.bf16.msra.mxu0 %v2498_v12 }
 0x13b   :  { %1044 = vmatmul.mubr.bf16.gmra.mrb[20].mxu1 %v793_v61  ;;  %1905 = vmatprep.subr.bf16.mxu0 %v2435_v46 }
 0x13c   :  { %1805 = vmatpush3.bf16.msra.mxu1 %v2019_v13 }
 0x13d   :  { %1894 = vmatmul.mubr.bf16.gmra.mrb[32].mxu0 %v795_v62  ;;  %1806 = vmatprep.subr.bf16.mxu1 %v2020_v14 }
 0x13e   :  { %1913 = vmatprep.mubr.msk.bf16.mxu0 %vm2033_vm1, %v2435_v46  ;;  %1906 = vmatpush3.bf16.msra.mxu0 %v2511_v15 }
 0x13f   :  { %1907 = vmatprep.subr.bf16.mxu0 %v2435_v46 }
 0x140   :  { %1807 = vmatpush3.bf16.msra.mxu1 %v2022_v16 }
 0x141   :  { %1808 = vmatprep.subr.bf16.mxu1 %v2023_v17 }
 0x142   :  { %1908 = vmatpush3.bf16.msra.mxu0 %v2524_v18 }
 0x143   :  { %1909 = vmatprep.subr.bf16.mxu0 %v2435_v46 }
 0x144   :  { %1809 = vmatpush3.bf16.msra.mxu1 %v2025_v19 }
 0x145   :  { %1810 = vmatprep.subr.bf16.mxu1 %v2026_v20 }
 0x146   :  { %1910 = vmatpush3.bf16.msra.mxu0 %v2537_v21 }
 0x147   :  { %1911 = vmatprep.subr.bf16.mxu0 %v2435_v46 }
 0x148   :  { %1811 = vmatpush3.bf16.msra.mxu1 %v2028_v22 }
 0x149   :  { %1925 = vmatprep.subr.bf16.mxu1 %v2435_v46 }
 0x14a   :  { %1912 = vmatpush3.bf16.msra.mxu0 %v2548_v24 }
 0x1fd   :  { %v1767_v25 = vpop.f32.mrb[12].mxu1 }
 0x1fe   :  { %v1085_v1 = vpop.f32.mrb[24].mxu0  ;;  %v1768_v26 = vpop.f32.mrb[13].mxu1 }
 0x1ff   :  { %v1887_v29 = vpop.f32.mrb[25].mxu0  ;;  %v1769_v30 = vadd.f32 %v1768_v26, %v1767_v25  ;;  %v1770_v31 = vpop.f32.mrb[14].mxu1 }
 0x200   :  { %v1088_v32 = vpop.f32.mrb[26].mxu0  ;;  %v1771_v33 = vpop.f32.mrb[15].mxu1 }
 0x201   :  { %v1888_v34 = vpop.f32.mrb[27].mxu0  ;;  %v1772_v35 = vadd.f32 %v1771_v33, %v1770_v31  ;;  %v1030_v36 = vadd.f32 %v1769_v30, %v1615_v27 }
 0x203   :  { %v1086_v37 = vadd.f32 %v1085_v1, %v1030_v36  ;;  %v1033_v38 = vadd.f32 %v1772_v35, %v1615_v27 }
 0x205   :  { %v1107_v40 = vmax.f32 %v1086_v37, 0.0  ;;  %v1089_v42 = vadd.f32 %v1088_v32, %v1033_v38 }
 0x206   :  { %v1773_v41 = vpop.f32.mrb[16].mxu1 }
 0x207   :  { %v1774_v44 = vpop.f32.mrb[17].mxu1  ;;  %v1116_v45 = vmul.f32 %v2557_v39, %v1107_v40  ;;  %v1108_v48 = vmax.f32 %v1089_v42, 0.0 }
 0x208   :  { %v1775_v49 = vadd.f32 %v1774_v44, %v1773_v41  ;;  %v1776_v50 = vpop.f32.mrb[18].mxu1  ;;  %v1093_v51 = vpop.f32.mrb[28].mxu0 }
 0x209   :  { %v1777_v52 = vpop.f32.mrb[19].mxu1  ;;  %v1891_v53 = vpop.f32.mrb[29].mxu0  ;;  %v1125_v54 = vadd.f32 %v2562_v43, %v1116_v45  ;;  %v1117_v55 = vmul.f32 %v2557_v39, %v1108_v48 }
 0x20a   :  { %v1778_v56 = vadd.f32 %v1777_v52, %v1776_v50  ;;  %v1038_v57 = vadd.f32 %v1775_v49, %v1615_v27  ;;  %v1096_v58 = vpop.f32.mrb[30].mxu0 }
 0x20b   :  { %v1892_v59 = vpop.f32.mrb[31].mxu0  ;;  %v1133_v60 = vrot.slane %v1125_v54, 7  ;;  %v1126_v61 = vadd.f32 %v2562_v43, %v1117_v55  ;;  %v1147_v63 = vrot.slane %v1125_v54, 1 }
 0x20c   :  { %v1094_v62 = vadd.f32 %v1093_v51, %v1038_v57  ;;  %v1041_v2 = vadd.f32 %v1778_v56, %v1615_v27 }
 0x20d   :  { %1141 = vst [vmem:[#allocation3] sm:$0xfe] %v1133_v60  ;;  %v1134_v3 = vrot.slane %v1126_v61, 7  ;;  %v1148_v5 = vrot.slane %v1126_v61, 1  ;;  %v1199_v10 = vpack.c.bf16 %v1126_v61, %v1125_v54 }
 0x20e   :  { %v1109_v6 = vmax.f32 %v1094_v62, 0.0  ;;  %v1779_v9 = vpop.f32.mrb[20].mxu1  ;;  %v1097_v13 = vadd.f32 %v1096_v58, %v1041_v2 }
 0x20f   :  { %v1780_v14 = vpop.f32.mrb[21].mxu1  ;;  %v1135_v16 = vsel %vm720_vm2, %v1133_v60, %v1134_v3  ;;  %v1149_v17 = vsel %vm735_vm3, %v1147_v63, %v1148_v5  ;;  %1438 = vmatprep.mubr.bf16.mxu1 %v1199_v10 }
 0x210   :  { %v1118_v19 = vmul.f32 %v2557_v39, %v1109_v6  ;;  %v1781_v20 = vadd.f32 %v1780_v14, %v1779_v9  ;;  %v1782_v22 = vpop.f32.mrb[22].mxu1  ;;  %v1101_v25 = vpop.f32.mrb[32].mxu0  ;;  %v1110_v1 = vmax.f32 %v1097_v13, 0.0  ;;  %v1667_v14 = vld [vmem:[%s2636_s6 + $0x1] ss:$0 sm:$0xff] }
 0x211   :  { %v1783_v26 = vpop.f32.mrb[23].mxu1  ;;  %v1895_v29 = vpop.f32.mrb[33].mxu0 }
 0x212   :  { %v1127_v30 = vadd.f32 %v2562_v43, %v1118_v19  ;;  %v1046_v31 = vadd.f32 %v1781_v20, %v1615_v27  ;;  %v1104_v32 = vpop.f32.mrb[34].mxu0  ;;  %v1119_v33 = vmul.f32 %v2557_v39, %v1110_v1  ;;  %v1668_v19 = vld [vmem:[%s2636_s6 + $0x2] ss:$0 sm:$0xff] }
 0x213   :  { %v1896_v34 = vpop.f32.mrb[35].mxu0 }
 0x214   :  { %v1136_v35 = vrot.slane %v1127_v30, 7  ;;  %1146 = vst [vmem:[#allocation3 + $0x38] sm:$0xff] %v1127_v30   ;;  %v1150_v36 = vrot.slane %v1127_v30, 1  ;;  %v1102_v37 = vadd.f32 %v1101_v25, %v1046_v31  ;;  %v1128_v38 = vadd.f32 %v2562_v43, %v1119_v33  ;;  %v1183_v40 = vld [vmem:[#allocation3] sm:$0xff] }
 0x215   :  { %v1198_v45 = vpack.c.bf16 %v1135_v16, %v1183_v40 }
 0x216   :  { %v1137_v41 = vsel %vm720_vm2, %v1134_v3, %v1136_v35  ;;  %v1151_v42 = vsel %vm735_vm3, %v1148_v5, %v1150_v36  ;;  %1157 = vst [vmem:[#allocation3 + $0x40] sm:$0x7] %v1150_v36  ;;  %1167 = vst [vmem:[#allocation3 + $0x30] sm:$0xe0] %v1136_v35  ;;  %v1111_v44 = vmax.f32 %v1102_v37, 0.0  ;;  %v1160_v27 = vrot.slane %v1128_v38, 7 }
 0x217   :  { %1143 = vst [vmem:[#allocation3 + $0x30] sm:$0xf] %v1137_v41  ;;  %v1173_v48 = vrot.slane %v1128_v38, 1  ;;  %v1200_v49 = vpack.c.bf16 %v1151_v42, %v1149_v17  ;;  %1439 = vmatmul.mubr.bf16.vlgmr.msra.gmra.mrb[24].mxu1 %v1198_v45 }
 0x218   :  { %v1120_v50 = vmul.f32 %v2557_v39, %v1111_v44  ;;  %v1161_v51 = vsel %vm720_vm2, %v1136_v35, %v1160_v27  ;;  %1933 = vmatpush3.bf16.msra.mxu1 %v2459_v0 }
 0x219   :  { %v1174_v52 = vsel %vm735_vm3, %v1150_v36, %v1173_v48  ;;  %1914 = vmatmul.mubr.bf16.vlgmr.msra.gmra.mrb[36].mxu0 %v1200_v49  ;;  %1926 = vmatprep.subr.bf16.mxu1 %v2435_v46 }
 0x21a   :  { %1180 = vst [vmem:[#allocation3 + $0x40] sm:$0xf0] %v1174_v52  ;;  %v1129_v53 = vadd.f32 %v2562_v43, %v1120_v50 }
 0x21b   :  { %v1190_v54 = vld [vmem:[#allocation3 + $0x38] sm:$0xff] }
 0x21c   :  { %v1162_v55 = vrot.slane %v1129_v53, 7  ;;  %v1175_v56 = vrot.slane %v1129_v53, 1  ;;  %v1202_v57 = vpack.c.bf16 %v1128_v38, %v1190_v54  ;;  %1934 = vmatpush3.bf16.msra.mxu1 %v2472_v4  ;;  %v1205_v60 = vpack.c.bf16 %v1129_v53, %v1129_v53 }
 0x21d   :  { %1927 = vmatprep.subr.bf16.mxu1 %v2435_v46 }
 0x21e   :  { %v1163_v39 = vsel %vm720_vm2, %v1160_v27, %v1162_v55  ;;  %v1176_v58 = vsel %vm735_vm3, %v1173_v48, %v1175_v56  ;;  %1182 = vst [vmem:[#allocation3 + $0x70] sm:$0x7f] %v1175_v56  ;;  %1446 = vmatprep.mubr.bf16.mxu1 %v1202_v57  ;;  %v1189_v0 = vld [vmem:[#allocation3 + $0x30] sm:$0xff] }
 0x21f   :  { %v1201_v59 = vpack.c.bf16 %v1161_v51, %v1189_v0  ;;  %v1204_v4 = vpack.c.bf16 %v1163_v39, %v1163_v39 }
 0x220   :  { %1935 = vmatpush3.bf16.msra.mxu1 %v2485_v8 }
 0x221   :  { %1447 = vmatmul.mubr.bf16.gmra.mrb[28].mxu1 %v1201_v59  ;;  %1928 = vmatprep.subr.bf16.mxu1 %v2435_v46  ;;  %v1191_v8 = vld [vmem:[#allocation3 + $0x40] sm:$0xff] }
 0x222   :  { %1454 = vmatprep.mubr.bf16.mxu1 %v1205_v60 }
 0x224   :  { %1936 = vmatpush3.bf16.msra.mxu1 %v2498_v12  ;;  %v1203_v12 = vpack.c.bf16 %v1176_v58, %v1191_v8 }
 0x225   :  { %1929 = vmatprep.subr.bf16.mxu1 %v2435_v46 }
 0x228   :  { %1937 = vmatpush3.bf16.msra.mxu1 %v2511_v15  ;;  %v1197_v15 = vld [vmem:[#allocation3 + $0x70] sm:$0xff] }
 0x229   :  { %1455 = vmatmul.mubr.bf16.gmra.mrb[32].mxu1 %v1204_v4  ;;  %1930 = vmatprep.subr.bf16.mxu1 %v2435_v46  ;;  %v1206_v43 = vpack.c.bf16 %v1197_v15, %v1197_v15 }
 0x22a   :  { %1917 = vmatprep.mubr.msk.bf16.mxu1 %vm2033_vm1, %v2435_v46 }
 0x22c   :  { %1938 = vmatpush3.bf16.msra.mxu1 %v2524_v18  ;;  %v1642_v18 = vld [vmem:[%s2636_s6] ss:$0 sm:$0xff] }
 0x22d   :  { %1931 = vmatprep.subr.bf16.mxu1 %v2435_v46 }
 0x230   :  { %1939 = vmatpush3.bf16.msra.mxu1 %v2537_v21 }
 0x231   :  { %1932 = vmatprep.subr.bf16.mxu1 %v2435_v46 }
 0x234   :  { %1940 = vmatpush3.bf16.msra.mxu1 %v2548_v24 }
 0x237   :  { %1918 = vmatmul.mubr.bf16.vlgmr.msra.gmra.mrb[36].mxu1 %v1203_v12 }
 0x238   :  { %1921 = vmatprep.mubr.msk.bf16.mxu1 %vm2033_vm1, %v2435_v46 }
 0x23f   :  { %1922 = vmatmul.mubr.bf16.gmra.mrb[40].mxu1 %v1206_v43 }
 0x2ea   :  { %v1812_v61 = vpop.f32.mrb[24].mxu1 }
 0x2eb   :  { %v1813_v62 = vpop.f32.mrb[25].mxu1 }
 0x2ec   :  { %v1496_v21 = vpop.f32.mrb[36].mxu0  ;;  %v1814_v63 = vadd.f32 %v1813_v62, %v1812_v61  ;;  %v1815_v2 = vpop.f32.mrb[26].mxu1 }
 0x2ed   :  { %v1915_v3 = vpop.f32.mrb[37].mxu0  ;;  %v1816_v5 = vpop.f32.mrb[27].mxu1 }
 0x2ee   :  { %v1499_v24 = vpop.f32.mrb[38].mxu0  ;;  %v1817_v6 = vadd.f32 %v1816_v5, %v1815_v2  ;;  %v1441_v9 = vadd.f32 %v1814_v63, %v1642_v18 }
 0x2ef   :  { %v1916_v10 = vpop.f32.mrb[39].mxu0 }
 0x2f0   :  { %v1497_v13 = vadd.f32 %v1496_v21, %v1441_v9  ;;  %v1444_v46 = vadd.f32 %v1817_v6, %v1642_v18 }
 0x2f2   :  { %v1518_v16 = vmax.f32 %v1497_v13, 0.0  ;;  %v1500_v17 = vadd.f32 %v1499_v24, %v1444_v46 }
 0x2f4   :  { %v1818_v20 = vpop.f32.mrb[28].mxu1  ;;  %v1527_v22 = vmul.f32 %v1667_v14, %v1518_v16  ;;  %v1519_v25 = vmax.f32 %v1500_v17, 0.0 }
 0x2f5   :  { %v1819_v1 = vpop.f32.mrb[29].mxu1 }
 0x2f6   :  { %v1820_v26 = vadd.f32 %v1819_v1, %v1818_v20  ;;  %v1821_v29 = vpop.f32.mrb[30].mxu1  ;;  %v1536_v30 = vadd.f32 %v1668_v19, %v1527_v22  ;;  %v1528_v31 = vmul.f32 %v1667_v14, %v1519_v25 }
 0x2f7   :  { %v1822_v32 = vpop.f32.mrb[31].mxu1 }
 0x2f8   :  { %v1823_v33 = vadd.f32 %v1822_v32, %v1821_v29  ;;  %v1541_v34 = vadd.f32 %v1536_v30, %v2408_v7  ;;  %v1537_v35 = vadd.f32 %v1668_v19, %v1528_v31  ;;  %v1449_v44 = vadd.f32 %v1820_v26, %v1642_v18 }
 0x2fa   :  { %1546 = vst [vmem:[%s2637_s7] sm:$0xff] %v1541_v34  ;;  %v1542_v36 = vadd.f32 %v1537_v35, %v2411_v11  ;;  %v1452_v48 = vadd.f32 %v1823_v33, %v1642_v18 }
 0x2fc   :  { %v1824_v37 = vpop.f32.mrb[32].mxu1  ;;  %1547 = vst [vmem:[%s2637_s7 + $0x8] sm:$0xff] %v1542_v36 }
 0x2fd   :  { %v1825_v38 = vpop.f32.mrb[33].mxu1 }
 0x2fe   :  { %v1826_v40 = vadd.f32 %v1825_v38, %v1824_v37  ;;  %v1827_v41 = vpop.f32.mrb[34].mxu1 }
 0x2ff   :  { %v1828_v42 = vpop.f32.mrb[35].mxu1 }
 0x300   :  { %v1457_v56 = vadd.f32 %v1826_v40, %v1642_v18 }
 0x30a   :  { %v1504_v45 = vpop.f32.mrb[36].mxu1 }
 0x30b   :  { %v1505_v27 = vadd.f32 %v1504_v45, %v1449_v44  ;;  %v1919_v7 = vpop.f32.mrb[37].mxu1 }
 0x30c   :  { %v1507_v49 = vpop.f32.mrb[38].mxu1 }
 0x30d   :  { %v1520_v50 = vmax.f32 %v1505_v27, 0.0  ;;  %v1508_v51 = vadd.f32 %v1507_v49, %v1452_v48  ;;  %v1920_v52 = vpop.f32.mrb[39].mxu1 }
 0x30f   :  { %v1529_v53 = vmul.f32 %v1667_v14, %v1520_v50  ;;  %v1521_v11 = vmax.f32 %v1508_v51, 0.0 }
 0x311   :  { %v1538_v54 = vadd.f32 %v1668_v19, %v1529_v53  ;;  %v1530_v55 = vmul.f32 %v1667_v14, %v1521_v11 }
 0x312   :  { %v1512_v57 = vpop.f32.mrb[40].mxu1 }
 0x313   :  { %v1543_v39 = vadd.f32 %v1538_v54, %v2417_v23  ;;  %v1539_v58 = vadd.f32 %v1668_v19, %v1530_v55  ;;  %v1513_v0 = vadd.f32 %v1512_v57, %v1457_v56  ;;  %v1923_v59 = vpop.f32.mrb[41].mxu1 }
 0x314   :  { %v1515_v60 = vpop.f32.mrb[42].mxu1 }
 0x315   :  { %1548 = vst [vmem:[%s2637_s7 + $0x10] ss:$8 sps:$4 sm:$0xff] %v1543_v39   ;;  %v1544_v4 = vadd.f32 %v1539_v58, %v2423_v28  ;;  %v1522_v8 = vmax.f32 %v1513_v0, 0.0  ;;  %v1924_v12 = vpop.f32.mrb[43].mxu1 }
 0x317   :  { %1670 = vst [vmem:[%s2637_s7 + $0x1c] sm:$0xff] %v1544_v4  ;;  %v1531_v15 = vmul.f32 %v1667_v14, %v1522_v8 }
 0x319   :  { %v1540_v43 = vadd.f32 %v1668_v19, %v1531_v15 }
 0x31b   :  { %v1545_v23 = vadd.f32 %v1540_v43, %v2439_v47 }
 0x31d   :  { %1671 = vst [vmem:[%s2637_s7 + $0x24] sm:$0xff] %v1545_v23 }

// kernel: _lambda_.6
= control target key start
LH: loop header
LB: loop body
LE: loop exit
PB: predicated region body
PF: predicated region fallthrough
CT: control target
= control target key end

     0   :  { %vm60_vm0 = vcmask 1041408   ;;  %vm536_vm1 = vcmask 1040384   ;;  %vm556_vm2 = vcmask 1046528   ;;  %s2399_s1 = inlined_call_operand.vmem [shape: bf16[384,128], index: 1, kind: input, shape index: {}]   ;;  %s2400_s0 = inlined_call_operand.vmem [shape: f32[2,28,128], index: 0, kind: input, shape index: {}]   ;;  %s2401_s3 = inlined_call_operand.vmem [shape: bf16[384,128], index: 3, kind: input, shape index: {}]   ;;  %s2402_s2 = inlined_call_operand.vmem [shape: f32[3,128], index: 2, kind: input, shape index: {}]   ;;  %s2403_s5 = inlined_call_operand.vmem [shape: bf16[384,128], index: 5, kind: input, shape index: {}]   ;;  %s2404_s4 = inlined_call_operand.vmem [shape: f32[3,128], index: 4, kind: input, shape index: {}]   ;;  %s2405_s6 = inlined_call_operand.vmem [shape: f32[3,128], index: 6, kind: input, shape index: {}]   ;;  %s2406_s7 = inlined_call_operand.vmem [shape: f32[2,26,128], index: 7, kind: output, shape index: {}]  }
   0x1   :  { %v1804_v0 = vld [vmem:[%s2399_s1 + $0x40] sm:$0xff]   ;;  %v1806_v2 = vld [vmem:[%s2399_s1 + $0x48] sm:$0xff]   ;;  %v1809_v5 = vld [vmem:[%s2399_s1 + $0x50] sm:$0xff]  }
   0x2   :  { %v1805_v1 = vld [vmem:[%s2399_s1] sm:$0xff]   ;;  %1575 = vmatprep.subr.bf16.mxu0 %v1804_v0  ;;  %v1808_v4 = vld [vmem:[%s2399_s1 + $0x8] sm:$0xff]   ;;  %v1811_v7 = vld [vmem:[%s2399_s1 + $0x10] sm:$0xff]  }
   0x3   :  { %1576 = vmatpush3.bf16.msra.mxu0 %v1805_v1  ;;  %v1807_v3 = vld [vmem:[%s2399_s1 + $0x80] sm:$0xff]   ;;  %v1810_v6 = vld [vmem:[%s2399_s1 + $0x88] sm:$0xff]   ;;  %v1812_v8 = vld [vmem:[%s2399_s1 + $0x58] sm:$0xff]  }
   0x4   :  { %1577 = vmatprep.subr.bf16.mxu0 %v1806_v2  ;;  %1731 = vmatprep.subr.bf16.mxu1 %v1807_v3  ;;  %v1813_v9 = vld [vmem:[%s2399_s1 + $0x90] sm:$0xff]   ;;  %v1814_v10 = vld [vmem:[%s2399_s1 + $0x18] sm:$0xff]   ;;  %v1815_v11 = vld [vmem:[%s2399_s1 + $0x60] sm:$0xff]  }
   0x5   :  { %1732 = vmatpush3.bf16.msra.mxu1 %v1807_v3  ;;  %v1816_v12 = vld [vmem:[%s2399_s1 + $0x98] sm:$0xff]   ;;  %v1817_v13 = vld [vmem:[%s2399_s1 + $0x20] sm:$0xff]   ;;  %v1818_v15 = vld [vmem:[%s2399_s1 + $0x68] sm:$0xff]  }
   0x6   :  { %1733 = vmatprep.subr.bf16.mxu1 %v1810_v6  ;;  %v1819_v14 = vld [vmem:[%s2399_s1 + $0xa0] sm:$0xff]   ;;  %v1820_v16 = vld [vmem:[%s2399_s1 + $0x28] sm:$0xff]   ;;  %v1821_v18 = vld [vmem:[%s2399_s1 + $0x70] sm:$0xff]  }
   0x7   :  { %1578 = vmatpush3.bf16.msra.mxu0 %v1808_v4  ;;  %v1822_v17 = vld [vmem:[%s2399_s1 + $0xa8] sm:$0xff]   ;;  %v1823_v19 = vld [vmem:[%s2399_s1 + $0x30] sm:$0xff]   ;;  %v1824_v20 = vld [vmem:[%s2399_s1 + $0x78] sm:$0xff]  }
   0x8   :  { %1579 = vmatprep.subr.bf16.mxu0 %v1809_v5  ;;  %v1825_v21 = vld [vmem:[%s2399_s1 + $0xb0] sm:$0xff]   ;;  %v35_v22 = vld [vmem:[%s2400_s0 + $0x1] sm:$0xff]  ;;  %v1826_v27 = vld [vmem:[%s2399_s1 + $0x38] sm:$0xff]  }
   0x9   :  { %1734 = vmatpush3.bf16.msra.mxu1 %v1810_v6  ;;  %v36_v23 = vld [vmem:[%s2400_s0 + $0x9] sm:$0xff]  ;;  %v1992_v24 = vld [vmem:[%s2400_s0] sm:$0xff]  ;;  %v1827_v28 = vld [vmem:[%s2399_s1 + $0xb8] sm:$0xff]  }
   0xa   :  { %1735 = vmatprep.subr.bf16.mxu1 %v1813_v9  ;;  %v144_v25 = vpack.c.bf16 %v36_v23, %v35_v22  ;;  %v28_v26 = vld [vmem:[%s2400_s0 + $0x8] sm:$0xff]  ;;  %v2012_v32 = vld [vmem:[%s2400_s0 + $0x12] sm:$0xff]  ;;  %v46_v33 = vld [vmem:[%s2400_s0 + $0x1a] sm:$0x3] }
   0xb   :  { %1580 = vmatpush3.bf16.msra.mxu0 %v1811_v7  ;;  %v43_v29 = vld [vmem:[%s2400_s0 + $0x2] sm:$0xff]  ;;  %v44_v30 = vld [vmem:[%s2400_s0 + $0xa] sm:$0xff]  ;;  %50 = vst [vmem:[#allocation2 + $0x58] sm:$0x3] %v46_v33  ;;  %v38_v37 = vld [vmem:[%s2400_s0 + $0x19] sm:$0x3]  ;;  %v143_v47 = vpack.c.bf16 %v28_v26, %v1992_v24 }
   0xc   :  { %1581 = vmatprep.subr.bf16.mxu0 %v1812_v8  ;;  %386 = vmatprep.mubr.bf16.mxu0 %v144_v25  ;;  %v145_v31 = vpack.c.bf16 %v44_v30, %v43_v29  ;;  %v1486_v34 = vld [vmem:[%s2400_s0 + $0x22] sm:$0xff]  ;;  %v2023_v36 = vld [vmem:[%s2400_s0 + $0x11] sm:$0xff]  ;;  %42 = vst [vmem:[#allocation2 + $0x50] sm:$0x3] %v38_v37  ;;  %v1489_v57 = vld [vmem:[%s2400_s0 + $0x3a] sm:$0x3] }
   0xd   :  { %1736 = vmatpush3.bf16.msra.mxu1 %v1813_v9  ;;  %v107_v35 = vrot.slane %v1486_v34, 6  ;;  %v1482_v38 = vld [vmem:[%s2400_s0 + $0x21] sm:$0xff]  ;;  %v29_v40 = vld [vmem:[%s2400_s0 + $0x10] sm:$0xff]  ;;  %v30_v41 = vld [vmem:[%s2400_s0 + $0x18] sm:$0x3]  ;;  %v112_v62 = vrot.slane %v1489_v57, 6 }
   0xe   :  { %1737 = vmatprep.subr.bf16.mxu1 %v1816_v12  ;;  %1747 = vmatprep.mubr.bf16.mxu1 %v145_v31  ;;  %v84_v39 = vrot.slane %v1482_v38, 6  ;;  %v1478_v42 = vld [vmem:[%s2400_s0 + $0x20] sm:$0xff]  ;;  %34 = vst [vmem:[#allocation2 + $0x48] sm:$0x3] %v30_v41  ;;  %v1483_v44 = vld [vmem:[%s2400_s0 + $0x29] sm:$0xff]  ;;  %v1484_v45 = vld [vmem:[%s2400_s0 + $0x31] sm:$0xff] }
   0xf   :  { %1582 = vmatpush3.bf16.msra.mxu0 %v1814_v10  ;;  %118 = vst [vmem:[#allocation2 + $0x58] sm:$0xfc] %v107_v35  ;;  %v61_v43 = vrot.slane %v1478_v42, 6  ;;  %v1479_v46 = vld [vmem:[%s2400_s0 + $0x28] sm:$0xff]  ;;  %v85_v48 = vrot.slane %v1483_v44, 6  ;;  %v87_v49 = vrot.slane %v1484_v45, 6 }
  0x10   :  { %1583 = vmatprep.subr.bf16.mxu0 %v1815_v11  ;;  %95 = vst [vmem:[#allocation2 + $0x50] sm:$0xfc] %v84_v39  ;;  %v1480_v50 = vld [vmem:[%s2400_s0 + $0x30] sm:$0xff]  ;;  %v62_v51 = vrot.slane %v1479_v46, 6  ;;  %v1828_v58 = vld [vmem:[%s2401_s3 + $0x40] sm:$0xff]   ;;  %v1830_v25 = vld [vmem:[%s2401_s3 + $0x48] sm:$0xff]  }
  0x11   :  { %1738 = vmatpush3.bf16.msra.mxu1 %v1816_v12  ;;  %v1487_v52 = vld [vmem:[%s2400_s0 + $0x2a] sm:$0xff]  ;;  %v1488_v53 = vld [vmem:[%s2400_s0 + $0x32] sm:$0xff]  ;;  %72 = vst [vmem:[#allocation2 + $0x48] sm:$0xfc] %v61_v43  ;;  %v64_v54 = vrot.slane %v1480_v50, 6  ;;  %v86_v59 = vsel %vm60_vm0, %v84_v39, %v85_v48  ;;  %v88_v60 = vsel %vm60_vm0, %v85_v48, %v87_v49  ;;  %v1829_v1 = vld [vmem:[%s2401_s3] sm:$0xff]  }
  0x12   :  { %1739 = vmatprep.subr.bf16.mxu1 %v1819_v14  ;;  %v108_v55 = vrot.slane %v1487_v52, 6  ;;  %v110_v56 = vrot.slane %v1488_v53, 6  ;;  %v63_v61 = vsel %vm60_vm0, %v61_v43, %v62_v51  ;;  %v1485_v63 = vld [vmem:[%s2400_s0 + $0x39] sm:$0x3]  ;;  %v1831_v26 = vld [vmem:[%s2401_s3 + $0x8] sm:$0xff]   ;;  %v1837_v31 = vld [vmem:[%s2401_s3 + $0x60] sm:$0xff]  }
  0x13   :  { %1584 = vmatpush3.bf16.msra.mxu0 %v1817_v13  ;;  %v1481_v0 = vld [vmem:[%s2400_s0 + $0x38] sm:$0x3]  ;;  %v65_v2 = vsel %vm60_vm0, %v62_v51, %v64_v54  ;;  %v89_v6 = vrot.slane %v1485_v63, 6  ;;  %v1838_v33 = vld [vmem:[%s2401_s3 + $0x20] sm:$0xff]   ;;  %v1840_v34 = vld [vmem:[%s2401_s3 + $0x68] sm:$0xff]  }
  0x14   :  { %1585 = vmatprep.subr.bf16.mxu0 %v1818_v15  ;;  %v109_v3 = vsel %vm60_vm0, %v107_v35, %v108_v55  ;;  %v111_v4 = vsel %vm60_vm0, %v108_v55, %v110_v56  ;;  %v113_v5 = vsel %vm60_vm0, %v110_v56, %v112_v62  ;;  %v66_v7 = vrot.slane %v1481_v0, 6  ;;  %v1834_v29 = vld [vmem:[%s2401_s3 + $0x58] sm:$0xff]   ;;  %v1841_v37 = vld [vmem:[%s2401_s3 + $0x28] sm:$0xff]   ;;  %v1843_v38 = vld [vmem:[%s2401_s3 + $0x70] sm:$0xff]  }
  0x15   :  { %1740 = vmatpush3.bf16.msra.mxu1 %v1819_v14  ;;  %121 = vst [vmem:[#allocation2 + $0xa0] sm:$0xf] %v113_v5  ;;  %v151_v9 = vpack.c.bf16 %v111_v4, %v109_v3  ;;  %v90_v10 = vsel %vm60_vm0, %v87_v49, %v89_v6  ;;  %v1835_v30 = vld [vmem:[%s2401_s3 + $0x18] sm:$0xff]   ;;  %v1876_v35 = vmov 0.0   ;;  %v1842_v39 = vld [vmem:[%s2401_s3 + $0x90] sm:$0xff]   ;;  %v1848_v44 = vld [vmem:[%s2401_s3 + $0xa0] sm:$0xff]  }
  0x16   :  { %1741 = vmatprep.subr.bf16.mxu1 %v1822_v17  ;;  %v133_v8 = vld [vmem:[#allocation2 + $0x58] sm:$0xff]  ;;  %98 = vst [vmem:[#allocation2 + $0x98] sm:$0xf] %v90_v10  ;;  %v67_v13 = vsel %vm60_vm0, %v64_v54, %v66_v7  ;;  %511 = vst [vmem:[#allocation3] sm:$0xff] %v1876_v35  ;;  %v1849_v45 = vld [vmem:[%s2401_s3 + $0xa8] sm:$0xff]  }
  0x17   :  { %1586 = vmatpush3.bf16.msra.mxu0 %v1820_v16  ;;  %v148_v11 = vpack.c.bf16 %v133_v8, %v2012_v32  ;;  %v132_v12 = vld [vmem:[#allocation2 + $0x50] sm:$0xff]  ;;  %75 = vst [vmem:[#allocation2 + $0x90] sm:$0xf] %v67_v13  ;;  %v1836_v32 = vld [vmem:[%s2401_s3 + $0x80] sm:$0xff]   ;;  %520 = vst [vmem:[#allocation3 + $0x48] sm:$0xff] %v1876_v35 }
  0x18   :  { %1587 = vmatprep.subr.bf16.mxu0 %v1821_v18  ;;  %v147_v14 = vpack.c.bf16 %v132_v12, %v2023_v36  ;;  %v131_v15 = vld [vmem:[#allocation2 + $0x48] sm:$0xff]  ;;  %521 = vst [vmem:[#allocation3 + $0x50] sm:$0xff] %v1876_v35  ;;  %522 = vst [vmem:[#allocation3 + $0x58] sm:$0xff] %v1876_v35  ;;  %v1846_v41 = vld [vmem:[%s2401_s3 + $0x78] sm:$0xff]  }
  0x19   :  { %1742 = vmatpush3.bf16.msra.mxu1 %v1822_v17  ;;  %v146_v16 = vpack.c.bf16 %v131_v15, %v29_v40  ;;  %v150_v17 = vpack.c.bf16 %v88_v60, %v86_v59  ;;  %529 = vst [vmem:[#allocation3 + $0x90] sm:$0xf] %v1876_v35  ;;  %530 = vst [vmem:[#allocation3 + $0x98] sm:$0xf] %v1876_v35  ;;  %v1839_v36 = vld [vmem:[%s2401_s3 + $0x88] sm:$0xff]   ;;  %v1844_v40 = vld [vmem:[%s2401_s3 + $0x30] sm:$0xff]  }
  0x1a   :  { %1743 = vmatprep.subr.bf16.mxu1 %v1825_v21  ;;  %531 = vst [vmem:[#allocation3 + $0xa0] sm:$0xf] %v1876_v35  ;;  %v1845_v42 = vld [vmem:[%s2401_s3 + $0x98] sm:$0xff]   ;;  %v1850_v46 = vld [vmem:[%s2401_s3 + $0xb0] sm:$0xff]   ;;  %v2154_v50 = vld [vmem:[%s2402_s2] ss:$0 sm:$0xff] }
  0x1b   :  { %1588 = vmatpush3.bf16.msra.mxu0 %v1823_v19  ;;  %v1847_v43 = vld [vmem:[%s2401_s3 + $0x38] sm:$0xff]   ;;  %v2166_v3 = vld [vmem:[%s2402_s2 + $0x2] ss:$0 sm:$0xff] }
  0x1c   :  { %1589 = vmatprep.subr.bf16.mxu0 %v1824_v20  ;;  %v142_v18 = vld [vmem:[#allocation2 + $0xa0] sm:$0xf] }
  0x1d   :  { %1744 = vmatpush3.bf16.msra.mxu1 %v1825_v21  ;;  %v154_v19 = vpack.c.bf16 %v142_v18, %v142_v18  ;;  %v141_v20 = vld [vmem:[#allocation2 + $0x98] sm:$0xf]  ;;  %v149_v21 = vpack.c.bf16 %v65_v2, %v63_v61  ;;  %v2161_v61 = vld [vmem:[%s2402_s2 + $0x1] ss:$0 sm:$0xff] }
  0x1e   :  { %1745 = vmatprep.subr.bf16.mxu1 %v1827_v28  ;;  %v153_v22 = vpack.c.bf16 %v141_v20, %v141_v20  ;;  %v140_v23 = vld [vmem:[#allocation2 + $0x90] sm:$0xf] }
  0x1f   :  { %1590 = vmatpush3.bf16.msra.mxu0 %v1826_v27  ;;  %v152_v24 = vpack.c.bf16 %v140_v23, %v140_v23  ;;  %v1832_v27 = vld [vmem:[%s2401_s3 + $0x50] sm:$0xff]  }
  0x20   :  { %1627 = vmatprep.subr.bf16.mxu0 %v1828_v58 }
  0x21   :  { %1746 = vmatpush3.bf16.msra.mxu1 %v1827_v28  ;;  %v1833_v28 = vld [vmem:[%s2401_s3 + $0x10] sm:$0xff]  }
  0x22   :  { %387 = vmatmul.mubr.bf16.vlgmr.msra.gmra.mrb[0].mxu0 %v143_v47  ;;  %1755 = vmatprep.subr.bf16.mxu1 %v1836_v32  ;;  %v1851_v47 = vld [vmem:[%s2401_s3 + $0xb8] sm:$0xff]  }
  0x23   :  { %1628 = vmatpush3.bf16.msra.mxu0 %v1829_v1  ;;  %394 = vmatprep.mubr.bf16.mxu0 %v147_v14 }
  0x24   :  { %1748 = vmatmul.mubr.bf16.vlgmr.msra.gmra.mrb[0].mxu1 %v148_v11  ;;  %1629 = vmatprep.subr.bf16.mxu0 %v1830_v25 }
  0x25   :  { %1751 = vmatprep.mubr.bf16.mxu1 %v151_v9  ;;  %1756 = vmatpush3.bf16.msra.mxu1 %v1836_v32 }
  0x26   :  { %1757 = vmatprep.subr.bf16.mxu1 %v1839_v36 }
  0x27   :  { %1630 = vmatpush3.bf16.msra.mxu0 %v1831_v26 }
  0x28   :  { %1631 = vmatprep.subr.bf16.mxu0 %v1832_v27 }
  0x29   :  { %1758 = vmatpush3.bf16.msra.mxu1 %v1839_v36 }
  0x2a   :  { %395 = vmatmul.mubr.bf16.gmra.mrb[4].mxu0 %v146_v16  ;;  %1759 = vmatprep.subr.bf16.mxu1 %v1842_v39 }
  0x2b   :  { %402 = vmatprep.mubr.bf16.mxu0 %v150_v17  ;;  %1632 = vmatpush3.bf16.msra.mxu0 %v1833_v28 }
  0x2c   :  { %1752 = vmatmul.mubr.bf16.gmra.mrb[4].mxu1 %v154_v19  ;;  %1633 = vmatprep.subr.bf16.mxu0 %v1834_v29 }
  0x2d   :  { %1760 = vmatpush3.bf16.msra.mxu1 %v1842_v39 }
  0x2e   :  { %1761 = vmatprep.subr.bf16.mxu1 %v1845_v42 }
  0x2f   :  { %1634 = vmatpush3.bf16.msra.mxu0 %v1835_v30 }
  0x30   :  { %1635 = vmatprep.subr.bf16.mxu0 %v1837_v31 }
  0x31   :  { %1762 = vmatpush3.bf16.msra.mxu1 %v1845_v42 }
  0x32   :  { %403 = vmatmul.mubr.bf16.gmra.mrb[8].mxu0 %v149_v21  ;;  %1763 = vmatprep.subr.bf16.mxu1 %v1848_v44 }
  0x33   :  { %410 = vmatprep.mubr.bf16.mxu0 %v153_v22  ;;  %1636 = vmatpush3.bf16.msra.mxu0 %v1838_v33 }
  0x34   :  { %1637 = vmatprep.subr.bf16.mxu0 %v1840_v34 }
  0x35   :  { %1764 = vmatpush3.bf16.msra.mxu1 %v1848_v44 }
  0x36   :  { %1765 = vmatprep.subr.bf16.mxu1 %v1849_v45 }
  0x37   :  { %1638 = vmatpush3.bf16.msra.mxu0 %v1841_v37 }
  0x38   :  { %1639 = vmatprep.subr.bf16.mxu0 %v1843_v38 }
  0x39   :  { %1766 = vmatpush3.bf16.msra.mxu1 %v1849_v45 }
  0x3a   :  { %411 = vmatmul.mubr.bf16.gmra.mrb[12].mxu0 %v152_v24  ;;  %1767 = vmatprep.subr.bf16.mxu1 %v1850_v46 }
  0x3b   :  { %1640 = vmatpush3.bf16.msra.mxu0 %v1844_v40 }
  0x3c   :  { %1641 = vmatprep.subr.bf16.mxu0 %v1846_v41 }
  0x3d   :  { %1768 = vmatpush3.bf16.msra.mxu1 %v1850_v46 }
  0x3e   :  { %1769 = vmatprep.subr.bf16.mxu1 %v1851_v47 }
  0x3f   :  { %1642 = vmatpush3.bf16.msra.mxu0 %v1847_v43 }
  0x41   :  { %1770 = vmatpush3.bf16.msra.mxu1 %v1851_v47 }
  0xf5   :  { %v1591_v48 = vpop.f32.mrb[0].mxu0 }
  0xf6   :  { %v1592_v49 = vpop.f32.mrb[1].mxu0 }
  0xf7   :  { %v1593_v51 = vadd.f32 %v1592_v49, %v1591_v48  ;;  %v1594_v52 = vpop.f32.mrb[2].mxu0  ;;  %v1749_v56 = vpop.f32.mrb[0].mxu1 }
  0xf8   :  { %v1595_v53 = vpop.f32.mrb[3].mxu0  ;;  %v452_v57 = vpop.f32.mrb[1].mxu1 }
  0xf9   :  { %v1596_v54 = vadd.f32 %v1595_v53, %v1594_v52  ;;  %v389_v55 = vadd.f32 %v1593_v51, %v2154_v50  ;;  %v1750_v60 = vpop.f32.mrb[2].mxu1 }
  0xfa   :  { %v455_v62 = vpop.f32.mrb[3].mxu1 }
  0xfb   :  { %v392_v58 = vadd.f32 %v1596_v54, %v2154_v50  ;;  %v453_v59 = vadd.f32 %v452_v57, %v389_v55 }
  0xfd   :  { %v1597_v63 = vpop.f32.mrb[4].mxu0  ;;  %v482_v0 = vmax.f32 %v453_v59, 0.0  ;;  %v456_v1 = vadd.f32 %v455_v62, %v392_v58 }
  0xfe   :  { %v1598_v2 = vpop.f32.mrb[5].mxu0 }
  0xff   :  { %v1599_v4 = vadd.f32 %v1598_v2, %v1597_v63  ;;  %v1600_v5 = vpop.f32.mrb[6].mxu0  ;;  %v493_v6 = vmul.f32 %v2161_v61, %v482_v0  ;;  %v483_v7 = vmax.f32 %v456_v1, 0.0  ;;  %v1753_v13 = vpop.f32.mrb[4].mxu1 }
 0x100   :  { %v1601_v8 = vpop.f32.mrb[7].mxu0  ;;  %v468_v16 = vpop.f32.mrb[5].mxu1 }
 0x101   :  { %v397_v9 = vadd.f32 %v1599_v4, %v2154_v50  ;;  %v1602_v10 = vadd.f32 %v1601_v8, %v1600_v5  ;;  %v2171_v11 = vadd.f32 %v2166_v3, %v493_v6  ;;  %v494_v12 = vmul.f32 %v2161_v61, %v483_v7  ;;  %v1754_v19 = vpop.f32.mrb[6].mxu1 }
 0x102   :  { %v471_v23 = vpop.f32.mrb[7].mxu1 }
 0x103   :  { %v461_v14 = vadd.f32 %v1749_v56, %v397_v9  ;;  %v400_v15 = vadd.f32 %v1602_v10, %v2154_v50  ;;  %v537_v17 = vrot.slane %v2171_v11, 7  ;;  %v2177_v18 = vadd.f32 %v2166_v3, %v494_v12 }
 0x104   :  { %v557_v37 = vrot.slane %v2171_v11, 1 }
 0x105   :  { %v484_v20 = vmax.f32 %v461_v14, 0.0  ;;  %v464_v21 = vadd.f32 %v1750_v60, %v400_v15  ;;  %v1603_v22 = vpop.f32.mrb[8].mxu0  ;;  %548 = vst [vmem:[#allocation3] sm:$0xfe] %v537_v17  ;;  %v629_v25 = vpack.c.bf16 %v2177_v18, %v2171_v11  ;;  %v538_v30 = vrot.slane %v2177_v18, 7 }
 0x106   :  { %v1604_v24 = vpop.f32.mrb[9].mxu0  ;;  %v558_v31 = vrot.slane %v2177_v18, 1 }
 0x107   :  { %v495_v26 = vmul.f32 %v2161_v61, %v484_v20  ;;  %v485_v27 = vmax.f32 %v464_v21, 0.0  ;;  %v1605_v28 = vadd.f32 %v1604_v24, %v1603_v22  ;;  %v1606_v29 = vpop.f32.mrb[10].mxu0  ;;  %871 = vmatprep.mubr.bf16.mxu0 %v629_v25  ;;  %v539_v41 = vsel %vm536_vm1, %v537_v17, %v538_v30 }
 0x108   :  { %v1607_v32 = vpop.f32.mrb[11].mxu0  ;;  %v559_v42 = vsel %vm556_vm2, %v557_v37, %v558_v31  ;;  %v1852_v37 = vld [vmem:[%s2403_s5 + $0x40] sm:$0xff]  }
 0x109   :  { %v2185_v33 = vadd.f32 %v2166_v3, %v495_v26  ;;  %v496_v34 = vmul.f32 %v2161_v61, %v485_v27  ;;  %v405_v35 = vadd.f32 %v1605_v28, %v2154_v50  ;;  %v1608_v36 = vadd.f32 %v1607_v32, %v1606_v29  ;;  %1679 = vmatprep.subr.bf16.mxu0 %v1852_v37 }
 0x10b   :  { %v560_v38 = vrot.slane %v2185_v33, 1  ;;  %v2192_v39 = vadd.f32 %v2166_v3, %v496_v34  ;;  %v469_v40 = vadd.f32 %v468_v16, %v405_v35  ;;  %v408_v43 = vadd.f32 %v1608_v36, %v2154_v50 }
 0x10c   :  { %v540_v44 = vrot.slane %v2185_v33, 7  ;;  %v607_v49 = vld [vmem:[#allocation3] sm:$0xff] }
 0x10d   :  { %v561_v45 = vsel %vm556_vm2, %v558_v31, %v560_v38  ;;  %v542_v46 = vrot.slane %v2192_v39, 7  ;;  %555 = vst [vmem:[#allocation3 + $0x50] sm:$0xff] %v2192_v39   ;;  %v562_v47 = vrot.slane %v2192_v39, 1  ;;  %v1609_v48 = vpop.f32.mrb[12].mxu0  ;;  %v486_v51 = vmax.f32 %v469_v40, 0.0  ;;  %v1854_v40 = vld [vmem:[%s2403_s5 + $0x48] sm:$0xff]  }
 0x10e   :  { %v472_v52 = vadd.f32 %v471_v23, %v408_v43  ;;  %v1610_v53 = vpop.f32.mrb[13].mxu0  ;;  %v628_v54 = vpack.c.bf16 %v539_v41, %v607_v49  ;;  %v630_v55 = vpack.c.bf16 %v561_v45, %v559_v42  ;;  %v541_v10 = vsel %vm536_vm1, %v538_v30, %v540_v44  ;;  %v1855_v41 = vld [vmem:[%s2403_s5 + $0x8] sm:$0xff]   ;;  %v1856_v42 = vld [vmem:[%s2403_s5 + $0x50] sm:$0xff]   ;;  %v1857_v43 = vld [vmem:[%s2403_s5 + $0x80] sm:$0xff]  }
 0x10f   :  { %v543_v56 = vsel %vm536_vm1, %v540_v44, %v542_v46  ;;  %585 = vst [vmem:[#allocation3 + $0x48] sm:$0xf8] %v542_v46  ;;  %571 = vst [vmem:[#allocation3 + $0x58] sm:$0x1] %v562_v47  ;;  %v1611_v57 = vadd.f32 %v1610_v53, %v1609_v48  ;;  %v1612_v58 = vpop.f32.mrb[14].mxu0  ;;  %v497_v59 = vmul.f32 %v2161_v61, %v486_v51  ;;  %v1858_v44 = vld [vmem:[%s2403_s5 + $0x10] sm:$0xff]   ;;  %1779 = vmatprep.subr.bf16.mxu1 %v1857_v43 }
 0x110   :  { %551 = vst [vmem:[#allocation3 + $0x48] sm:$0x3] %v543_v56  ;;  %v487_v60 = vmax.f32 %v472_v52, 0.0  ;;  %872 = vmatmul.mubr.bf16.vlgmr.msra.gmra.mrb[16].mxu0 %v628_v54  ;;  %v1613_v62 = vpop.f32.mrb[15].mxu0  ;;  %1771 = vmatprep.mubr.bf16.mxu1 %v630_v55  ;;  %v563_v24 = vsel %vm556_vm2, %v560_v38, %v562_v47  ;;  %v1853_v38 = vld [vmem:[%s2403_s5] sm:$0xff]   ;;  %v1859_v45 = vld [vmem:[%s2403_s5 + $0x58] sm:$0xff]  }
 0x111   :  { %v413_v63 = vadd.f32 %v1611_v57, %v2154_v50  ;;  %v2206_v0 = vadd.f32 %v2166_v3, %v497_v59  ;;  %1680 = vmatpush3.bf16.msra.mxu0 %v1853_v38  ;;  %v1862_v48 = vld [vmem:[%s2403_s5 + $0x60] sm:$0xff]   ;;  %v1863_v49 = vld [vmem:[%s2403_s5 + $0x90] sm:$0xff]   ;;  %v1865_v52 = vld [vmem:[%s2403_s5 + $0x68] sm:$0xff]  }
 0x112   :  { %v498_v1 = vmul.f32 %v2161_v61, %v487_v60  ;;  %1681 = vmatprep.subr.bf16.mxu0 %v1854_v40  ;;  %v1864_v51 = vld [vmem:[%s2403_s5 + $0x20] sm:$0xff]   ;;  %v1866_v53 = vld [vmem:[%s2403_s5 + $0x98] sm:$0xff]   ;;  %v1867_v54 = vld [vmem:[%s2403_s5 + $0x28] sm:$0xff]  }
 0x113   :  { %v477_v2 = vadd.f32 %v1753_v13, %v413_v63  ;;  %v593_v4 = vrot.slane %v2206_v0, 1  ;;  %v575_v19 = vrot.slane %v2206_v0, 7  ;;  %v1868_v55 = vld [vmem:[%s2403_s5 + $0x70] sm:$0xff]   ;;  %v1869_v56 = vld [vmem:[%s2403_s5 + $0xa0] sm:$0xff]   ;;  %v1871_v58 = vld [vmem:[%s2403_s5 + $0x78] sm:$0xff]  }
 0x114   :  { %v617_v5 = vld [vmem:[#allocation3 + $0x50] sm:$0xff]  ;;  %v2211_v6 = vadd.f32 %v2166_v3, %v498_v1  ;;  %v1870_v57 = vld [vmem:[%s2403_s5 + $0x30] sm:$0xff]   ;;  %v1872_v59 = vld [vmem:[%s2403_s5 + $0xa8] sm:$0xff]  }
 0x115   :  { %v488_v7 = vmax.f32 %v477_v2, 0.0  ;;  %v632_v8 = vpack.c.bf16 %v617_v5, %v2185_v33  ;;  %v594_v9 = vsel %vm556_vm2, %v562_v47, %v593_v4  ;;  %v576_v27 = vsel %vm536_vm1, %v542_v46, %v575_v19  ;;  %1682 = vmatpush3.bf16.msra.mxu0 %v1855_v41  ;;  %v1860_v46 = vld [vmem:[%s2403_s5 + $0x88] sm:$0xff]   ;;  %v1861_v47 = vld [vmem:[%s2403_s5 + $0x18] sm:$0xff]   ;;  %v1874_v62 = vld [vmem:[%s2403_s5 + $0xb0] sm:$0xff]  }
 0x116   :  { %603 = vst [vmem:[#allocation3 + $0x58] sm:$0xfc] %v594_v9  ;;  %v577_v13 = vrot.slane %v2211_v6, 7  ;;  %v595_v15 = vrot.slane %v2211_v6, 1  ;;  %v635_v17 = vpack.c.bf16 %v2211_v6, %v2206_v0  ;;  %1683 = vmatprep.subr.bf16.mxu0 %v1856_v42  ;;  %v1873_v60 = vld [vmem:[%s2403_s5 + $0x38] sm:$0xff]  }
 0x117   :  { %v499_v50 = vmul.f32 %v2161_v61, %v488_v7  ;;  %879 = vmatprep.mubr.bf16.mxu0 %v632_v8  ;;  %v616_v12 = vld [vmem:[#allocation3 + $0x48] sm:$0xff]  ;;  %v1875_v63 = vld [vmem:[%s2403_s5 + $0xb8] sm:$0xff]  }
 0x118   :  { %v631_v14 = vpack.c.bf16 %v616_v12, %v541_v10  ;;  %v578_v21 = vsel %vm536_vm1, %v575_v19, %v577_v13  ;;  %v596_v22 = vsel %vm556_vm2, %v593_v4, %v595_v15 }
 0x119   :  { %v2220_v16 = vadd.f32 %v2166_v3, %v499_v50  ;;  %v634_v29 = vpack.c.bf16 %v578_v21, %v576_v27  ;;  %1684 = vmatpush3.bf16.msra.mxu0 %v1858_v44 }
 0x11a   :  { %880 = vmatmul.mubr.bf16.gmra.mrb[20].mxu0 %v631_v14  ;;  %1685 = vmatprep.subr.bf16.mxu0 %v1859_v45 }
 0x11b   :  { %v579_v20 = vrot.slane %v2220_v16, 7  ;;  %592 = vst [vmem:[#allocation3 + $0x98] sm:$0xf] %v2220_v16  ;;  %v597_v61 = vrot.slane %v2220_v16, 1  ;;  %887 = vmatprep.mubr.bf16.mxu0 %v635_v17 }
 0x11d   :  { %v580_v3 = vsel %vm536_vm1, %v577_v13, %v579_v20  ;;  %v598_v23 = vsel %vm556_vm2, %v595_v15, %v597_v61  ;;  %606 = vst [vmem:[#allocation3 + $0xa0] sm:$0x7] %v597_v61  ;;  %v618_v25 = vld [vmem:[#allocation3 + $0x58] sm:$0xff]  ;;  %1686 = vmatpush3.bf16.msra.mxu0 %v1861_v47 }
 0x11e   :  { %588 = vst [vmem:[#allocation3 + $0x90] sm:$0xf] %v580_v3  ;;  %v636_v26 = vpack.c.bf16 %v598_v23, %v596_v22  ;;  %v633_v28 = vpack.c.bf16 %v618_v25, %v563_v24  ;;  %1687 = vmatprep.subr.bf16.mxu0 %v1862_v48  ;;  %v1517_v13 = vld [vmem:[%s2404_s4] ss:$0 sm:$0xff]  ;;  %v2312_v23 = vld [vmem:[%s2404_s4 + $0x1] ss:$0 sm:$0xff] }
 0x120   :  { %1772 = vmatmul.mubr.bf16.vlgmr.msra.gmra.mrb[8].mxu1 %v633_v28 }
 0x121   :  { %1775 = vmatprep.mubr.bf16.mxu1 %v636_v26  ;;  %1780 = vmatpush3.bf16.msra.mxu1 %v1857_v43 }
 0x122   :  { %888 = vmatmul.mubr.bf16.gmra.mrb[24].mxu0 %v634_v29  ;;  %v626_v30 = vld [vmem:[#allocation3 + $0x98] sm:$0xf]  ;;  %1781 = vmatprep.subr.bf16.mxu1 %v1860_v46 }
 0x123   :  { %v638_v31 = vpack.c.bf16 %v626_v30, %v626_v30  ;;  %1688 = vmatpush3.bf16.msra.mxu0 %v1864_v51 }
 0x124   :  { %v627_v32 = vld [vmem:[#allocation3 + $0xa0] sm:$0xf]  ;;  %1689 = vmatprep.subr.bf16.mxu0 %v1865_v52 }
 0x125   :  { %895 = vmatprep.mubr.bf16.mxu0 %v638_v31  ;;  %v639_v34 = vpack.c.bf16 %v627_v32, %v627_v32  ;;  %v625_v35 = vld [vmem:[#allocation3 + $0x90] sm:$0xf]  ;;  %1782 = vmatpush3.bf16.msra.mxu1 %v1860_v46 }
 0x126   :  { %v637_v36 = vpack.c.bf16 %v625_v35, %v625_v35  ;;  %1783 = vmatprep.subr.bf16.mxu1 %v1863_v49 }
 0x127   :  { %1690 = vmatpush3.bf16.msra.mxu0 %v1867_v54 }
 0x128   :  { %1776 = vmatmul.mubr.bf16.gmra.mrb[12].mxu1 %v639_v34  ;;  %1691 = vmatprep.subr.bf16.mxu0 %v1868_v55  ;;  %v2317_v34 = vld [vmem:[%s2404_s4 + $0x2] ss:$0 sm:$0xff] }
 0x129   :  { %1784 = vmatpush3.bf16.msra.mxu1 %v1863_v49 }
 0x12a   :  { %896 = vmatmul.mubr.bf16.gmra.mrb[28].mxu0 %v637_v36  ;;  %1785 = vmatprep.subr.bf16.mxu1 %v1866_v53 }
 0x12b   :  { %1692 = vmatpush3.bf16.msra.mxu0 %v1870_v57 }
 0x12c   :  { %1693 = vmatprep.subr.bf16.mxu0 %v1871_v58 }
 0x12d   :  { %1786 = vmatpush3.bf16.msra.mxu1 %v1866_v53 }
 0x12e   :  { %1787 = vmatprep.subr.bf16.mxu1 %v1869_v56 }
 0x12f   :  { %1694 = vmatpush3.bf16.msra.mxu0 %v1873_v60 }
 0x131   :  { %1788 = vmatpush3.bf16.msra.mxu1 %v1869_v56 }
 0x132   :  { %1789 = vmatprep.subr.bf16.mxu1 %v1872_v59 }
 0x135   :  { %1790 = vmatpush3.bf16.msra.mxu1 %v1872_v59 }
 0x136   :  { %1791 = vmatprep.subr.bf16.mxu1 %v1874_v62 }
 0x139   :  { %1792 = vmatpush3.bf16.msra.mxu1 %v1874_v62 }
 0x13a   :  { %1793 = vmatprep.subr.bf16.mxu1 %v1875_v63 }
 0x13d   :  { %1794 = vmatpush3.bf16.msra.mxu1 %v1875_v63 }
 0x1e3   :  { %v1643_v1 = vpop.f32.mrb[16].mxu0 }
 0x1e4   :  { %v1644_v2 = vpop.f32.mrb[17].mxu0 }
 0x1e5   :  { %v1645_v4 = vadd.f32 %v1644_v2, %v1643_v1  ;;  %v1646_v5 = vpop.f32.mrb[18].mxu0 }
 0x1e6   :  { %v1647_v7 = vpop.f32.mrb[19].mxu0 }
 0x1e7   :  { %v1648_v8 = vadd.f32 %v1647_v7, %v1646_v5  ;;  %v874_v61 = vadd.f32 %v1645_v4, %v1517_v13 }
 0x1e9   :  { %v877_v27 = vadd.f32 %v1648_v8, %v1517_v13 }
 0x1ed   :  { %v1649_v9 = vpop.f32.mrb[20].mxu0 }
 0x1ee   :  { %v1650_v10 = vpop.f32.mrb[21].mxu0 }
 0x1ef   :  { %v1651_v50 = vadd.f32 %v1650_v10, %v1649_v9  ;;  %v1652_v12 = vpop.f32.mrb[22].mxu0 }
 0x1f0   :  { %v1653_v14 = vpop.f32.mrb[23].mxu0 }
 0x1f1   :  { %v1654_v15 = vadd.f32 %v1653_v14, %v1652_v12  ;;  %v882_v17 = vadd.f32 %v1651_v50, %v1517_v13 }
 0x1f3   :  { %v885_v19 = vadd.f32 %v1654_v15, %v1517_v13  ;;  %v1773_v20 = vpop.f32.mrb[8].mxu1 }
 0x1f4   :  { %v946_v21 = vadd.f32 %v1773_v20, %v882_v17  ;;  %v937_v22 = vpop.f32.mrb[9].mxu1 }
 0x1f5   :  { %v1655_v3 = vpop.f32.mrb[24].mxu0  ;;  %v938_v24 = vadd.f32 %v937_v22, %v874_v61  ;;  %v1774_v25 = vpop.f32.mrb[10].mxu1 }
 0x1f6   :  { %v1656_v26 = vpop.f32.mrb[25].mxu0  ;;  %v969_v28 = vmax.f32 %v946_v21, 0.0  ;;  %v949_v29 = vadd.f32 %v1774_v25, %v885_v19  ;;  %v940_v31 = vpop.f32.mrb[11].mxu1 }
 0x1f7   :  { %v1657_v30 = vadd.f32 %v1656_v26, %v1655_v3  ;;  %v1658_v32 = vpop.f32.mrb[26].mxu0  ;;  %v967_v35 = vmax.f32 %v938_v24, 0.0  ;;  %v941_v36 = vadd.f32 %v940_v31, %v877_v27 }
 0x1f8   :  { %v1659_v37 = vpop.f32.mrb[27].mxu0  ;;  %v980_v38 = vmul.f32 %v2312_v23, %v969_v28  ;;  %v970_v40 = vmax.f32 %v949_v29, 0.0 }
 0x1f9   :  { %v1660_v41 = vadd.f32 %v1659_v37, %v1658_v32  ;;  %v978_v42 = vmul.f32 %v2312_v23, %v967_v35  ;;  %v968_v43 = vmax.f32 %v941_v36, 0.0  ;;  %v890_v49 = vadd.f32 %v1657_v30, %v1517_v13 }
 0x1fa   :  { %v2322_v44 = vadd.f32 %v2317_v34, %v980_v38  ;;  %v981_v45 = vmul.f32 %v2312_v23, %v970_v40 }
 0x1fb   :  { %v989_v46 = vadd.f32 %v2317_v34, %v978_v42  ;;  %v979_v47 = vmul.f32 %v2312_v23, %v968_v43  ;;  %v1777_v48 = vpop.f32.mrb[12].mxu1  ;;  %v893_v55 = vadd.f32 %v1660_v41, %v1517_v13 }
 0x1fc   :  { %v1003_v51 = vrot.slane %v2322_v44, 7  ;;  %v992_v52 = vadd.f32 %v2317_v34, %v981_v45  ;;  %v953_v54 = vpop.f32.mrb[13].mxu1  ;;  %v1022_v56 = vrot.slane %v2322_v44, 1 }
 0x1fd   :  { %v1661_v53 = vpop.f32.mrb[28].mxu0  ;;  %v1000_v57 = vrot.slane %v989_v46, 7  ;;  %v990_v58 = vadd.f32 %v2317_v34, %v979_v47  ;;  %v954_v59 = vadd.f32 %v953_v54, %v890_v49  ;;  %v1778_v62 = vpop.f32.mrb[14].mxu1  ;;  %v1019_v63 = vrot.slane %v989_v46, 1 }
 0x1fe   :  { %v1662_v60 = vpop.f32.mrb[29].mxu0  ;;  %v1005_v1 = vrot.slane %v992_v52, 7  ;;  %1018 = vst [vmem:[#allocation3 + $0x50] sm:$0xff] %v992_v52   ;;  %v1024_v2 = vrot.slane %v992_v52, 1  ;;  %v956_v7 = vpop.f32.mrb[15].mxu1 }
 0x1ff   :  { %v1663_v4 = vadd.f32 %v1662_v60, %v1661_v53  ;;  %v1664_v5 = vpop.f32.mrb[30].mxu0  ;;  %1011 = vst [vmem:[#allocation3] sm:$0xfe] %v1000_v57  ;;  %v1001_v8 = vrot.slane %v990_v58, 7  ;;  %v1020_v9 = vrot.slane %v990_v58, 1  ;;  %v971_v10 = vmax.f32 %v954_v59, 0.0 }
 0x200   :  { %v957_v50 = vadd.f32 %v956_v7, %v893_v55  ;;  %v1665_v12 = vpop.f32.mrb[31].mxu0  ;;  %v1006_v14 = vsel %vm536_vm1, %v1003_v51, %v1005_v1  ;;  %v1025_v15 = vsel %vm556_vm2, %v1022_v56, %v1024_v2  ;;  %1033 = vst [vmem:[#allocation3 + $0x58] sm:$0x1] %v1024_v2  ;;  %1047 = vst [vmem:[#allocation3 + $0x48] sm:$0xf8] %v1005_v1 }
 0x201   :  { %v898_v17 = vadd.f32 %v1663_v4, %v1517_v13  ;;  %v1091_v19 = vpack.c.bf16 %v990_v58, %v989_v46  ;;  %1014 = vst [vmem:[#allocation3 + $0x48] sm:$0x3] %v1006_v14  ;;  %v1002_v20 = vsel %vm536_vm1, %v1000_v57, %v1001_v8  ;;  %v1004_v61 = vsel %vm536_vm1, %v1001_v8, %v1003_v51 }
 0x202   :  { %v1021_v21 = vsel %vm556_vm2, %v1019_v63, %v1020_v9  ;;  %v1023_v22 = vsel %vm556_vm2, %v1020_v9, %v1022_v56  ;;  %v982_v3 = vmul.f32 %v2312_v23, %v971_v10  ;;  %v972_v25 = vmax.f32 %v957_v50, 0.0  ;;  %v2353_v9 = vld [vmem:[%s2405_s6] ss:$0 sm:$0xff] }
 0x203   :  { %v962_v24 = vadd.f32 %v1777_v48, %v898_v17  ;;  %1333 = vmatprep.mubr.bf16.mxu0 %v1091_v19  ;;  %v1092_v26 = vpack.c.bf16 %v1023_v22, %v1021_v21 }
 0x204   :  { %v993_v27 = vadd.f32 %v2317_v34, %v982_v3  ;;  %v983_v13 = vmul.f32 %v2312_v23, %v972_v25  ;;  %v1569_v25 = vld [vmem:[%s2405_s6 + $0x1] ss:$0 sm:$0xff] }
 0x205   :  { %v973_v28 = vmax.f32 %v962_v24, 0.0  ;;  %1795 = vmatprep.mubr.bf16.mxu1 %v1092_v26  ;;  %v1079_v29 = vld [vmem:[#allocation3 + $0x50] sm:$0xff] }
 0x206   :  { %v1037_v30 = vrot.slane %v993_v27, 7  ;;  %v1055_v31 = vrot.slane %v993_v27, 1  ;;  %v994_v35 = vadd.f32 %v2317_v34, %v983_v13  ;;  %v1069_v36 = vld [vmem:[#allocation3] sm:$0xff]  ;;  %v1094_v38 = vpack.c.bf16 %v1079_v29, %v2322_v44 }
 0x207   :  { %v984_v32 = vmul.f32 %v2312_v23, %v973_v28  ;;  %v1090_v37 = vpack.c.bf16 %v1002_v20, %v1069_v36 }
 0x208   :  { %v1038_v40 = vsel %vm536_vm1, %v1005_v1, %v1037_v30  ;;  %v1056_v41 = vsel %vm556_vm2, %v1024_v2, %v1055_v31  ;;  %v1039_v43 = vrot.slane %v994_v35, 7  ;;  %v1057_v45 = vrot.slane %v994_v35, 1 }
 0x209   :  { %v995_v42 = vadd.f32 %v2317_v34, %v984_v32  ;;  %1065 = vst [vmem:[#allocation3 + $0x58] sm:$0xfc] %v1056_v41  ;;  %1334 = vmatmul.mubr.bf16.vlgmr.msra.gmra.mrb[32].mxu0 %v1090_v37  ;;  %v1097_v46 = vpack.c.bf16 %v994_v35, %v993_v27  ;;  %v1078_v34 = vld [vmem:[#allocation3 + $0x48] sm:$0xff] }
 0x20a   :  { %v1040_v48 = vsel %vm536_vm1, %v1037_v30, %v1039_v43  ;;  %1341 = vmatprep.mubr.bf16.mxu0 %v1094_v38  ;;  %v1058_v49 = vsel %vm556_vm2, %v1055_v31, %v1057_v45  ;;  %v1093_v54 = vpack.c.bf16 %v1078_v34, %v1004_v61  ;;  %v1570_v30 = vld [vmem:[%s2405_s6 + $0x2] ss:$0 sm:$0xff] }
 0x20b   :  { %v1041_v47 = vrot.slane %v995_v42, 7  ;;  %1054 = vst [vmem:[#allocation3 + $0x98] sm:$0xf] %v995_v42  ;;  %v1059_v23 = vrot.slane %v995_v42, 1  ;;  %v1096_v44 = vpack.c.bf16 %v1040_v48, %v1038_v40 }
 0x20d   :  { %1068 = vst [vmem:[#allocation3 + $0xa0] sm:$0x7] %v1059_v23  ;;  %v1042_v51 = vsel %vm536_vm1, %v1039_v43, %v1041_v47  ;;  %v1060_v52 = vsel %vm556_vm2, %v1057_v45, %v1059_v23 }
 0x20e   :  { %1050 = vst [vmem:[#allocation3 + $0x90] sm:$0xf] %v1042_v51  ;;  %v1098_v53 = vpack.c.bf16 %v1060_v52, %v1058_v49 }
 0x210   :  { %v1080_v55 = vld [vmem:[#allocation3 + $0x58] sm:$0xff] }
 0x211   :  { %v1095_v56 = vpack.c.bf16 %v1080_v55, %v1025_v15  ;;  %1342 = vmatmul.mubr.bf16.gmra.mrb[36].mxu0 %v1093_v54 }
 0x212   :  { %1349 = vmatprep.mubr.bf16.mxu0 %v1097_v46  ;;  %v1088_v57 = vld [vmem:[#allocation3 + $0x98] sm:$0xf] }
 0x213   :  { %1796 = vmatmul.mubr.bf16.vlgmr.msra.gmra.mrb[16].mxu1 %v1095_v56  ;;  %v1100_v59 = vpack.c.bf16 %v1088_v57, %v1088_v57 }
 0x214   :  { %1799 = vmatprep.mubr.bf16.mxu1 %v1098_v53  ;;  %v1089_v58 = vld [vmem:[#allocation3 + $0xa0] sm:$0xf] }
 0x215   :  { %v1101_v60 = vpack.c.bf16 %v1089_v58, %v1089_v58  ;;  %v1087_v62 = vld [vmem:[#allocation3 + $0x90] sm:$0xf] }
 0x216   :  { %v1099_v63 = vpack.c.bf16 %v1087_v62, %v1087_v62 }
 0x219   :  { %1350 = vmatmul.mubr.bf16.gmra.mrb[40].mxu0 %v1096_v44 }
 0x21a   :  { %1357 = vmatprep.mubr.bf16.mxu0 %v1100_v59 }
 0x21b   :  { %1800 = vmatmul.mubr.bf16.gmra.mrb[20].mxu1 %v1101_v60 }
 0x221   :  { %1358 = vmatmul.mubr.bf16.gmra.mrb[44].mxu0 %v1099_v63 }
 0x2dc   :  { %v1695_v1 = vpop.f32.mrb[32].mxu0 }
 0x2dd   :  { %v1696_v2 = vpop.f32.mrb[33].mxu0 }
 0x2de   :  { %v1697_v4 = vadd.f32 %v1696_v2, %v1695_v1  ;;  %v1698_v5 = vpop.f32.mrb[34].mxu0 }
 0x2df   :  { %v1699_v7 = vpop.f32.mrb[35].mxu0 }
 0x2e0   :  { %v1700_v8 = vadd.f32 %v1699_v7, %v1698_v5  ;;  %v1336_v14 = vadd.f32 %v1697_v4, %v2353_v9 }
 0x2e2   :  { %v1339_v3 = vadd.f32 %v1700_v8, %v2353_v9 }
 0x2e4   :  { %v1701_v10 = vpop.f32.mrb[36].mxu0 }
 0x2e5   :  { %v1702_v50 = vpop.f32.mrb[37].mxu0 }
 0x2e6   :  { %v1797_v12 = vpop.f32.mrb[16].mxu1  ;;  %v1703_v15 = vadd.f32 %v1702_v50, %v1701_v10  ;;  %v1704_v17 = vpop.f32.mrb[38].mxu0 }
 0x2e7   :  { %v1399_v19 = vpop.f32.mrb[17].mxu1  ;;  %v1705_v20 = vpop.f32.mrb[39].mxu0 }
 0x2e8   :  { %v1400_v61 = vadd.f32 %v1399_v19, %v1336_v14  ;;  %v1344_v21 = vadd.f32 %v1703_v15, %v2353_v9  ;;  %v1798_v22 = vpop.f32.mrb[18].mxu1  ;;  %v1706_v24 = vadd.f32 %v1705_v20, %v1704_v17 }
 0x2e9   :  { %v1402_v26 = vpop.f32.mrb[19].mxu1 }
 0x2ea   :  { %v1429_v27 = vmax.f32 %v1400_v61, 0.0  ;;  %v1408_v28 = vadd.f32 %v1797_v12, %v1344_v21  ;;  %v1403_v13 = vadd.f32 %v1402_v26, %v1339_v3  ;;  %v1347_v29 = vadd.f32 %v1706_v24, %v2353_v9 }
 0x2ec   :  { %v1440_v31 = vmul.f32 %v1569_v25, %v1429_v27  ;;  %v1431_v32 = vmax.f32 %v1408_v28, 0.0  ;;  %v1430_v35 = vmax.f32 %v1403_v13, 0.0  ;;  %v1411_v36 = vadd.f32 %v1798_v22, %v1347_v29  ;;  %v1707_v37 = vpop.f32.mrb[40].mxu0 }
 0x2ed   :  { %v1708_v38 = vpop.f32.mrb[41].mxu0 }
 0x2ee   :  { %v1451_v40 = vadd.f32 %v1570_v30, %v1440_v31  ;;  %v1442_v41 = vmul.f32 %v1569_v25, %v1431_v32  ;;  %v1441_v42 = vmul.f32 %v1569_v25, %v1430_v35  ;;  %v1432_v43 = vmax.f32 %v1411_v36, 0.0  ;;  %v1801_v45 = vpop.f32.mrb[20].mxu1  ;;  %v1710_v46 = vpop.f32.mrb[42].mxu0 }
 0x2ef   :  { %v1415_v47 = vpop.f32.mrb[21].mxu1  ;;  %v1709_v23 = vadd.f32 %v1708_v38, %v1707_v37  ;;  %v1711_v48 = vpop.f32.mrb[43].mxu0 }
 0x2f0   :  { %v1458_v49 = vadd.f32 %v1451_v40, %v2171_v11  ;;  %v1453_v44 = vadd.f32 %v1570_v30, %v1442_v41  ;;  %v1452_v51 = vadd.f32 %v1570_v30, %v1441_v42  ;;  %v1443_v52 = vmul.f32 %v1569_v25, %v1432_v43  ;;  %v1802_v34 = vpop.f32.mrb[22].mxu1 }
 0x2f1   :  { %v1352_v53 = vadd.f32 %v1709_v23, %v2353_v9  ;;  %v1418_v54 = vpop.f32.mrb[23].mxu1  ;;  %v1712_v55 = vadd.f32 %v1711_v48, %v1710_v46 }
 0x2f2   :  { %1465 = vst [vmem:[%s2406_s7] sm:$0xff] %v1458_v49  ;;  %v1460_v56 = vadd.f32 %v1453_v44, %v2185_v33  ;;  %v1459_v57 = vadd.f32 %v1452_v51, %v2177_v18  ;;  %v1454_v58 = vadd.f32 %v1570_v30, %v1443_v52 }
 0x2f3   :  { %v1416_v59 = vadd.f32 %v1415_v47, %v1352_v53  ;;  %v1355_v11 = vadd.f32 %v1712_v55, %v2353_v9 }
 0x2f4   :  { %1467 = vst [vmem:[%s2406_s7 + $0x10] sm:$0xff] %v1460_v56  ;;  %1466 = vst [vmem:[%s2406_s7 + $0x8] sm:$0xff] %v1459_v57  ;;  %v1461_v60 = vadd.f32 %v1454_v58, %v2192_v39  ;;  %v1713_v62 = vpop.f32.mrb[44].mxu0 }
 0x2f5   :  { %v1433_v63 = vmax.f32 %v1416_v59, 0.0  ;;  %v1419_v1 = vadd.f32 %v1418_v54, %v1355_v11  ;;  %v1714_v33 = vpop.f32.mrb[45].mxu0 }
 0x2f6   :  { %1468 = vst [vmem:[%s2406_s7 + $0x18] sm:$0x3] %v1461_v60  ;;  %1571 = vst [vmem:[%s2406_s7 + $0x1e] sm:$0xfc] %v1461_v60  ;;  %v1715_v18 = vadd.f32 %v1714_v33, %v1713_v62  ;;  %v1716_v2 = vpop.f32.mrb[46].mxu0 }
 0x2f7   :  { %v1444_v4 = vmul.f32 %v1569_v25, %v1433_v63  ;;  %v1434_v5 = vmax.f32 %v1419_v1, 0.0  ;;  %v1717_v7 = vpop.f32.mrb[47].mxu0 }
 0x2f8   :  { %v1360_v8 = vadd.f32 %v1715_v18, %v2353_v9 }
 0x2f9   :  { %v1455_v39 = vadd.f32 %v1570_v30, %v1444_v4  ;;  %v1445_v10 = vmul.f32 %v1569_v25, %v1434_v5 }
 0x2fa   :  { %v1424_v50 = vadd.f32 %v1801_v45, %v1360_v8 }
 0x2fb   :  { %v1462_v12 = vadd.f32 %v1455_v39, %v2206_v0  ;;  %v1456_v14 = vadd.f32 %v1570_v30, %v1445_v10 }
 0x2fc   :  { %v1435_v15 = vmax.f32 %v1424_v50, 0.0 }
 0x2fd   :  { %1572 = vst [vmem:[%s2406_s7 + $0x26] sm:$0xff] %v1462_v12  ;;  %v1463_v17 = vadd.f32 %v1456_v14, %v2211_v6 }
 0x2fe   :  { %v1446_v19 = vmul.f32 %v1569_v25, %v1435_v15 }
 0x2ff   :  { %1573 = vst [vmem:[%s2406_s7 + $0x2e] sm:$0xff] %v1463_v17 }
 0x300   :  { %v1457_v20 = vadd.f32 %v1570_v30, %v1446_v19 }
 0x302   :  { %v1464_v9 = vadd.f32 %v1457_v20, %v2220_v16 }
 0x304   :  { %1574 = vst [vmem:[%s2406_s7 + $0x36] sm:$0xf] %v1464_v9 }

// kernel: _lambda_.7
= control target key start
LH: loop header
LB: loop body
LE: loop exit
PB: predicated region body
PF: predicated region fallthrough
CT: control target
= control target key end

     0   :  { %v1697_v1 = vmov 0.0   ;;  %vm1698_vm0 = vmmov 0   ;;  %vm451_vm1 = vcmask 1040384   ;;  %vm466_vm2 = vcmask 1046528   ;;  %s2192_s1 = inlined_call_operand.vmem [shape: bf16[384,128], index: 1, kind: input, shape index: {}]   ;;  %s2193_s0 = inlined_call_operand.vmem [shape: f32[2,26,128], index: 0, kind: input, shape index: {}]   ;;  %s2194_s3 = inlined_call_operand.vmem [shape: bf16[384,128], index: 3, kind: input, shape index: {}]   ;;  %s2195_s5 = inlined_call_operand.vmem [shape: bf16[384,128], index: 5, kind: input, shape index: {}]   ;;  %s2196_s2 = inlined_call_operand.vmem [shape: f32[3,128], index: 2, kind: input, shape index: {}]   ;;  %s2197_s4 = inlined_call_operand.vmem [shape: f32[3,128], index: 4, kind: input, shape index: {}]   ;;  %s2198_s6 = inlined_call_operand.vmem [shape: f32[3,128], index: 6, kind: input, shape index: {}]   ;;  %s2199_s7 = inlined_call_operand.vmem [shape: f32[2,24,128], index: 7, kind: output, shape index: {}]  }
   0x1   :  { %v1625_v0 = vld [vmem:[%s2192_s1 + $0x40] sm:$0xff]   ;;  %1539 = vmatprep.subr.bf16.mxu1 %v1697_v1  ;;  %430 = vst [vmem:[#allocation3] sm:$0xff] %v1697_v1  ;;  %438 = vst [vmem:[#allocation3 + $0x40] sm:$0xff] %v1697_v1  ;;  %1555 = vmatprep.mubr.msk.bf16.mxu1 %vm1698_vm0, %v1697_v1  ;;  %v1628_v4 = vld [vmem:[%s2192_s1 + $0x48] sm:$0xff]  }
   0x2   :  { %439 = vst [vmem:[#allocation3 + $0x48] sm:$0xff] %v1697_v1  ;;  %447 = vst [vmem:[#allocation3 + $0x88] sm:$0xff] %v1697_v1  ;;  %v1626_v2 = vld [vmem:[%s2192_s1] sm:$0xff]   ;;  %1404 = vmatprep.subr.bf16.mxu0 %v1625_v0  ;;  %v1629_v5 = vld [vmem:[%s2192_s1 + $0x8] sm:$0xff]  }
   0x3   :  { %v1627_v3 = vld [vmem:[%s2192_s1 + $0x80] sm:$0xff]   ;;  %1405 = vmatpush3.bf16.msra.mxu0 %v1626_v2  ;;  %v1630_v6 = vld [vmem:[%s2192_s1 + $0x88] sm:$0xff]   ;;  %v1631_v7 = vld [vmem:[%s2192_s1 + $0x50] sm:$0xff]  }
   0x4   :  { %1540 = vmatpush3.bf16.msra.mxu1 %v1627_v3  ;;  %1406 = vmatprep.subr.bf16.mxu0 %v1628_v4  ;;  %v1632_v8 = vld [vmem:[%s2192_s1 + $0x10] sm:$0xff]   ;;  %v1634_v10 = vld [vmem:[%s2192_s1 + $0x58] sm:$0xff]   ;;  %v1637_v13 = vld [vmem:[%s2192_s1 + $0x60] sm:$0xff]  }
   0x5   :  { %1541 = vmatprep.subr.bf16.mxu1 %v1697_v1  ;;  %v1633_v9 = vld [vmem:[%s2192_s1 + $0x90] sm:$0xff]   ;;  %v1635_v11 = vld [vmem:[%s2192_s1 + $0x18] sm:$0xff]   ;;  %v1638_v14 = vld [vmem:[%s2192_s1 + $0x20] sm:$0xff]  }
   0x6   :  { %v1636_v12 = vld [vmem:[%s2192_s1 + $0x98] sm:$0xff]   ;;  %v1639_v15 = vld [vmem:[%s2192_s1 + $0xa0] sm:$0xff]   ;;  %v1640_v16 = vld [vmem:[%s2192_s1 + $0x68] sm:$0xff]  }
   0x7   :  { %1407 = vmatpush3.bf16.msra.mxu0 %v1629_v5  ;;  %v1641_v17 = vld [vmem:[%s2192_s1 + $0x28] sm:$0xff]   ;;  %v1643_v19 = vld [vmem:[%s2192_s1 + $0x70] sm:$0xff]   ;;  %v1646_v24 = vld [vmem:[%s2192_s1 + $0x78] sm:$0xff]  }
   0x8   :  { %1542 = vmatpush3.bf16.msra.mxu1 %v1630_v6  ;;  %1408 = vmatprep.subr.bf16.mxu0 %v1631_v7  ;;  %v1642_v18 = vld [vmem:[%s2192_s1 + $0xa8] sm:$0xff]   ;;  %v1644_v20 = vld [vmem:[%s2192_s1 + $0x30] sm:$0xff]   ;;  %v1647_v26 = vld [vmem:[%s2192_s1 + $0x38] sm:$0xff]  }
   0x9   :  { %1543 = vmatprep.subr.bf16.mxu1 %v1697_v1  ;;  %v33_v21 = vld [vmem:[%s2193_s0 + $0x1] sm:$0xff]  ;;  %v34_v22 = vld [vmem:[%s2193_s0 + $0x9] sm:$0xff]  ;;  %v1648_v27 = vld [vmem:[%s2192_s1 + $0xb8] sm:$0xff]  }
   0xa   :  { %v1645_v23 = vld [vmem:[%s2192_s1 + $0xb0] sm:$0xff]   ;;  %v83_v25 = vpack.c.bf16 %v34_v22, %v33_v21  ;;  %v27_v28 = vld [vmem:[%s2193_s0] sm:$0xff]  ;;  %v28_v29 = vld [vmem:[%s2193_s0 + $0x8] sm:$0xff] }
   0xb   :  { %1409 = vmatpush3.bf16.msra.mxu0 %v1632_v8  ;;  %v39_v30 = vld [vmem:[%s2193_s0 + $0x2] sm:$0xff]  ;;  %v40_v31 = vld [vmem:[%s2193_s0 + $0xa] sm:$0xff]  ;;  %v82_v34 = vpack.c.bf16 %v28_v29, %v27_v28  ;;  %v41_v41 = vld [vmem:[%s2193_s0 + $0x12] sm:$0xff] }
   0xc   :  { %1544 = vmatpush3.bf16.msra.mxu1 %v1633_v9  ;;  %1410 = vmatprep.subr.bf16.mxu0 %v1634_v10  ;;  %v35_v32 = vld [vmem:[%s2193_s0 + $0x11] sm:$0xff]  ;;  %v1314_v33 = vld [vmem:[%s2193_s0 + $0x21] sm:$0xff]  ;;  %v84_v36 = vpack.c.bf16 %v40_v31, %v39_v30  ;;  %v1315_v43 = vld [vmem:[%s2193_s0 + $0x29] sm:$0xff] }
   0xd   :  { %1545 = vmatprep.subr.bf16.mxu1 %v1697_v1  ;;  %322 = vmatprep.mubr.bf16.mxu0 %v83_v25  ;;  %v1649_v35 = vld [vmem:[%s2194_s3 + $0x40] sm:$0xff]   ;;  %v86_v37 = vpack.c.bf16 %v1314_v33, %v35_v32  ;;  %v29_v39 = vld [vmem:[%s2193_s0 + $0x10] sm:$0xff]  ;;  %v1312_v48 = vld [vmem:[%s2193_s0 + $0x28] sm:$0xff] }
   0xe   :  { %v1650_v38 = vld [vmem:[%s2194_s3] sm:$0xff]   ;;  %v1316_v44 = vld [vmem:[%s2193_s0 + $0x31] sm:$0xff]  ;;  %v1651_v55 = vld [vmem:[%s2194_s3 + $0x48] sm:$0xff]  }
   0xf   :  { %1411 = vmatpush3.bf16.msra.mxu0 %v1635_v11  ;;  %v1311_v40 = vld [vmem:[%s2193_s0 + $0x20] sm:$0xff]  ;;  %v89_v47 = vpack.c.bf16 %v1316_v44, %v1315_v43  ;;  %v1313_v49 = vld [vmem:[%s2193_s0 + $0x30] sm:$0xff]  ;;  %v1652_v56 = vld [vmem:[%s2194_s3 + $0x8] sm:$0xff]  }
  0x10   :  { %1546 = vmatpush3.bf16.msra.mxu1 %v1636_v12  ;;  %1412 = vmatprep.subr.bf16.mxu0 %v1637_v13  ;;  %v1317_v42 = vld [vmem:[%s2193_s0 + $0x22] sm:$0xff]  ;;  %v85_v45 = vpack.c.bf16 %v1311_v40, %v29_v39  ;;  %v1318_v50 = vld [vmem:[%s2193_s0 + $0x2a] sm:$0xff]  ;;  %v1319_v51 = vld [vmem:[%s2193_s0 + $0x32] sm:$0xff]  ;;  %v88_v52 = vpack.c.bf16 %v1313_v49, %v1312_v48 }
  0x11   :  { %1547 = vmatprep.subr.bf16.mxu1 %v1697_v1  ;;  %v87_v46 = vpack.c.bf16 %v1317_v42, %v41_v41  ;;  %v90_v53 = vpack.c.bf16 %v1319_v51, %v1318_v50  ;;  %v1653_v54 = vld [vmem:[%s2194_s3 + $0x80] sm:$0xff]   ;;  %v1656_v57 = vld [vmem:[%s2194_s3 + $0x88] sm:$0xff]   ;;  %v1654_v58 = vld [vmem:[%s2194_s3 + $0x50] sm:$0xff]  }
  0x12   :  { %v1655_v59 = vld [vmem:[%s2194_s3 + $0x10] sm:$0xff]   ;;  %v1657_v60 = vld [vmem:[%s2194_s3 + $0x58] sm:$0xff]   ;;  %v1660_v0 = vld [vmem:[%s2194_s3 + $0x60] sm:$0xff]  }
  0x13   :  { %1413 = vmatpush3.bf16.msra.mxu0 %v1638_v14  ;;  %v1659_v61 = vld [vmem:[%s2194_s3 + $0x90] sm:$0xff]   ;;  %v1658_v62 = vld [vmem:[%s2194_s3 + $0x18] sm:$0xff]   ;;  %v1661_v2 = vld [vmem:[%s2194_s3 + $0x20] sm:$0xff]  }
  0x14   :  { %1548 = vmatpush3.bf16.msra.mxu1 %v1639_v15  ;;  %1414 = vmatprep.subr.bf16.mxu0 %v1640_v16  ;;  %v1662_v63 = vld [vmem:[%s2194_s3 + $0x98] sm:$0xff]   ;;  %v1665_v3 = vld [vmem:[%s2194_s3 + $0xa0] sm:$0xff]   ;;  %v1663_v4 = vld [vmem:[%s2194_s3 + $0x68] sm:$0xff]  }
  0x15   :  { %1549 = vmatprep.subr.bf16.mxu1 %v1697_v1  ;;  %v1664_v5 = vld [vmem:[%s2194_s3 + $0x28] sm:$0xff]   ;;  %v1666_v7 = vld [vmem:[%s2194_s3 + $0x70] sm:$0xff]   ;;  %v1669_v10 = vld [vmem:[%s2194_s3 + $0x78] sm:$0xff]  }
  0x16   :  { %v1668_v6 = vld [vmem:[%s2194_s3 + $0xa8] sm:$0xff]   ;;  %v1667_v8 = vld [vmem:[%s2194_s3 + $0x30] sm:$0xff]   ;;  %v1670_v11 = vld [vmem:[%s2194_s3 + $0x38] sm:$0xff]  }
  0x17   :  { %1415 = vmatpush3.bf16.msra.mxu0 %v1641_v17  ;;  %v1671_v9 = vld [vmem:[%s2194_s3 + $0xb0] sm:$0xff]   ;;  %v1672_v12 = vld [vmem:[%s2194_s3 + $0xb8] sm:$0xff]   ;;  %v1673_v13 = vld [vmem:[%s2195_s5 + $0x40] sm:$0xff]  }
  0x18   :  { %1550 = vmatpush3.bf16.msra.mxu1 %v1642_v18  ;;  %1416 = vmatprep.subr.bf16.mxu0 %v1643_v19  ;;  %v1320_v16 = vld [vmem:[%s2196_s2] ss:$0 sm:$0xff]  ;;  %v1975_v28 = vld [vmem:[%s2196_s2 + $0x1] ss:$0 sm:$0xff]  ;;  %v1980_v32 = vld [vmem:[%s2196_s2 + $0x2] ss:$0 sm:$0xff] }
  0x19   :  { %1551 = vmatprep.subr.bf16.mxu1 %v1697_v1 }
  0x1b   :  { %1417 = vmatpush3.bf16.msra.mxu0 %v1644_v20 }
  0x1c   :  { %1552 = vmatpush3.bf16.msra.mxu1 %v1645_v23  ;;  %1418 = vmatprep.subr.bf16.mxu0 %v1646_v24 }
  0x1d   :  { %1553 = vmatprep.subr.bf16.mxu1 %v1697_v1 }
  0x1f   :  { %1419 = vmatpush3.bf16.msra.mxu0 %v1647_v26 }
  0x20   :  { %1554 = vmatpush3.bf16.msra.mxu1 %v1648_v27  ;;  %1449 = vmatprep.subr.bf16.mxu0 %v1649_v35 }
  0x21   :  { %1567 = vmatprep.subr.bf16.mxu1 %v1697_v1 }
  0x22   :  { %323 = vmatmul.mubr.bf16.vlgmr.msra.gmra.mrb[0].mxu0 %v82_v34 }
  0x23   :  { %1556 = vmatmul.mubr.bf16.vlgmr.msra.gmra.mrb[0].mxu1 %v84_v36  ;;  %330 = vmatprep.mubr.bf16.mxu0 %v86_v37 }
  0x24   :  { %1559 = vmatprep.mubr.msk.bf16.mxu1 %vm1698_vm0, %v1697_v1  ;;  %1450 = vmatpush3.bf16.msra.mxu0 %v1650_v38 }
  0x25   :  { %1568 = vmatpush3.bf16.msra.mxu1 %v1653_v54  ;;  %1451 = vmatprep.subr.bf16.mxu0 %v1651_v55 }
  0x26   :  { %1569 = vmatprep.subr.bf16.mxu1 %v1697_v1 }
  0x28   :  { %1452 = vmatpush3.bf16.msra.mxu0 %v1652_v56 }
  0x29   :  { %1570 = vmatpush3.bf16.msra.mxu1 %v1656_v57  ;;  %1453 = vmatprep.subr.bf16.mxu0 %v1654_v58 }
  0x2a   :  { %331 = vmatmul.mubr.bf16.gmra.mrb[4].mxu0 %v85_v45  ;;  %1571 = vmatprep.subr.bf16.mxu1 %v1697_v1 }
  0x2b   :  { %1560 = vmatmul.mubr.bf16.gmra.mrb[4].mxu1 %v87_v46  ;;  %338 = vmatprep.mubr.bf16.mxu0 %v89_v47 }
  0x2c   :  { %1563 = vmatprep.mubr.msk.bf16.mxu1 %vm1698_vm0, %v1697_v1  ;;  %1454 = vmatpush3.bf16.msra.mxu0 %v1655_v59 }
  0x2d   :  { %1455 = vmatprep.subr.bf16.mxu0 %v1657_v60  ;;  %1572 = vmatpush3.bf16.msra.mxu1 %v1659_v61 }
  0x2e   :  { %1573 = vmatprep.subr.bf16.mxu1 %v1697_v1 }
  0x30   :  { %1456 = vmatpush3.bf16.msra.mxu0 %v1658_v62 }
  0x31   :  { %1574 = vmatpush3.bf16.msra.mxu1 %v1662_v63  ;;  %1457 = vmatprep.subr.bf16.mxu0 %v1660_v0 }
  0x32   :  { %339 = vmatmul.mubr.bf16.gmra.mrb[8].mxu0 %v88_v52  ;;  %1575 = vmatprep.subr.bf16.mxu1 %v1697_v1 }
  0x33   :  { %1564 = vmatmul.mubr.bf16.gmra.mrb[8].mxu1 %v90_v53 }
  0x34   :  { %1583 = vmatprep.mubr.msk.bf16.mxu1 %vm1698_vm0, %v1697_v1  ;;  %1458 = vmatpush3.bf16.msra.mxu0 %v1661_v2 }
  0x35   :  { %1576 = vmatpush3.bf16.msra.mxu1 %v1665_v3  ;;  %1459 = vmatprep.subr.bf16.mxu0 %v1663_v4 }
  0x36   :  { %1577 = vmatprep.subr.bf16.mxu1 %v1697_v1 }
  0x38   :  { %1460 = vmatpush3.bf16.msra.mxu0 %v1664_v5 }
  0x39   :  { %1578 = vmatpush3.bf16.msra.mxu1 %v1668_v6  ;;  %1461 = vmatprep.subr.bf16.mxu0 %v1666_v7 }
  0x3a   :  { %1579 = vmatprep.subr.bf16.mxu1 %v1697_v1 }
  0x3c   :  { %1462 = vmatpush3.bf16.msra.mxu0 %v1667_v8 }
  0x3d   :  { %1580 = vmatpush3.bf16.msra.mxu1 %v1671_v9  ;;  %1463 = vmatprep.subr.bf16.mxu0 %v1669_v10 }
  0x3e   :  { %1581 = vmatprep.subr.bf16.mxu1 %v1697_v1 }
  0x40   :  { %1464 = vmatpush3.bf16.msra.mxu0 %v1670_v11 }
  0x41   :  { %1582 = vmatpush3.bf16.msra.mxu1 %v1672_v12  ;;  %1494 = vmatprep.subr.bf16.mxu0 %v1673_v13 }
  0x42   :  { %1595 = vmatprep.subr.bf16.mxu1 %v1697_v1 }
  0xf5   :  { %v1420_v14 = vpop.f32.mrb[0].mxu0 }
  0xf6   :  { %v1421_v15 = vpop.f32.mrb[1].mxu0  ;;  %v381_v17 = vpop.f32.mrb[0].mxu1 }
  0xf7   :  { %v1422_v18 = vadd.f32 %v1421_v15, %v1420_v14  ;;  %v1423_v19 = vpop.f32.mrb[2].mxu0  ;;  %v1557_v20 = vpop.f32.mrb[1].mxu1 }
  0xf8   :  { %v1424_v21 = vpop.f32.mrb[3].mxu0  ;;  %v384_v22 = vpop.f32.mrb[2].mxu1 }
  0xf9   :  { %v325_v23 = vadd.f32 %v1422_v18, %v1320_v16  ;;  %v1425_v24 = vadd.f32 %v1424_v21, %v1423_v19  ;;  %v1558_v25 = vpop.f32.mrb[3].mxu1 }
  0xfb   :  { %v382_v26 = vadd.f32 %v381_v17, %v325_v23  ;;  %v328_v27 = vadd.f32 %v1425_v24, %v1320_v16 }
  0xfd   :  { %v404_v29 = vmax.f32 %v382_v26, 0.0  ;;  %v385_v30 = vadd.f32 %v384_v22, %v328_v27  ;;  %v1426_v31 = vpop.f32.mrb[4].mxu0  ;;  %v1674_v22 = vld [vmem:[%s2195_s5] sm:$0xff]  }
  0xfe   :  { %v1427_v33 = vpop.f32.mrb[5].mxu0  ;;  %v389_v34 = vpop.f32.mrb[4].mxu1 }
  0xff   :  { %v414_v35 = vmul.f32 %v1975_v28, %v404_v29  ;;  %v405_v36 = vmax.f32 %v385_v30, 0.0  ;;  %v1428_v37 = vadd.f32 %v1427_v33, %v1426_v31  ;;  %v1429_v38 = vpop.f32.mrb[6].mxu0  ;;  %v1561_v39 = vpop.f32.mrb[5].mxu1 }
 0x100   :  { %v1430_v40 = vpop.f32.mrb[7].mxu0  ;;  %v392_v41 = vpop.f32.mrb[6].mxu1 }
 0x101   :  { %v1984_v42 = vadd.f32 %v1980_v32, %v414_v35  ;;  %v415_v43 = vmul.f32 %v1975_v28, %v405_v36  ;;  %v333_v44 = vadd.f32 %v1428_v37, %v1320_v16  ;;  %v1431_v45 = vadd.f32 %v1430_v40, %v1429_v38  ;;  %v1562_v46 = vpop.f32.mrb[7].mxu1 }
 0x103   :  { %v452_v47 = vrot.slane %v1984_v42, 7  ;;  %v1989_v48 = vadd.f32 %v1980_v32, %v415_v43  ;;  %v390_v49 = vadd.f32 %v389_v34, %v333_v44  ;;  %v336_v50 = vadd.f32 %v1431_v45, %v1320_v16 }
 0x104   :  { %v467_v11 = vrot.slane %v1984_v42, 1 }
 0x105   :  { %460 = vst [vmem:[#allocation3] sm:$0xfe] %v452_v47  ;;  %v406_v51 = vmax.f32 %v390_v49, 0.0  ;;  %v1432_v52 = vpop.f32.mrb[8].mxu0  ;;  %v525_v53 = vpack.c.bf16 %v1989_v48, %v1984_v42  ;;  %v393_v54 = vadd.f32 %v392_v41, %v336_v50  ;;  %v453_v0 = vrot.slane %v1989_v48, 7  ;;  %v1675_v50 = vld [vmem:[%s2195_s5 + $0x48] sm:$0xff]  }
 0x106   :  { %v1433_v55 = vpop.f32.mrb[9].mxu0  ;;  %v397_v56 = vpop.f32.mrb[8].mxu1  ;;  %v468_v6 = vrot.slane %v1989_v48, 1 }
 0x107   :  { %v416_v57 = vmul.f32 %v1975_v28, %v406_v51  ;;  %v1434_v58 = vadd.f32 %v1433_v55, %v1432_v52  ;;  %v1435_v59 = vpop.f32.mrb[10].mxu0  ;;  %v1565_v60 = vpop.f32.mrb[9].mxu1  ;;  %764 = vmatprep.mubr.bf16.mxu0 %v525_v53  ;;  %v407_v61 = vmax.f32 %v393_v54, 0.0  ;;  %v454_v14 = vsel %vm451_vm1, %v452_v47, %v453_v0  ;;  %v1677_v51 = vld [vmem:[%s2195_s5 + $0x80] sm:$0xff]   ;;  %v1676_v52 = vld [vmem:[%s2195_s5 + $0x8] sm:$0xff]   ;;  %v1678_v53 = vld [vmem:[%s2195_s5 + $0x50] sm:$0xff]  }
 0x108   :  { %v1436_v62 = vpop.f32.mrb[11].mxu0  ;;  %v400_v63 = vpop.f32.mrb[10].mxu1  ;;  %v469_v19 = vsel %vm466_vm2, %v467_v11, %v468_v6  ;;  %v1680_v54 = vld [vmem:[%s2195_s5 + $0x88] sm:$0xff]   ;;  %v1679_v55 = vld [vmem:[%s2195_s5 + $0x10] sm:$0xff]   ;;  %v1686_v60 = vld [vmem:[%s2195_s5 + $0x98] sm:$0xff]  }
 0x109   :  { %v1996_v2 = vadd.f32 %v1980_v32, %v416_v57  ;;  %v341_v3 = vadd.f32 %v1434_v58, %v1320_v16  ;;  %v1437_v4 = vadd.f32 %v1436_v62, %v1435_v59  ;;  %v1566_v5 = vpop.f32.mrb[11].mxu1  ;;  %v417_v7 = vmul.f32 %v1975_v28, %v407_v61  ;;  %v1682_v57 = vld [vmem:[%s2195_s5 + $0x18] sm:$0xff]   ;;  %v1683_v58 = vld [vmem:[%s2195_s5 + $0x90] sm:$0xff]   ;;  %v1684_v59 = vld [vmem:[%s2195_s5 + $0x60] sm:$0xff]  }
 0x10a   :  { %v1685_v61 = vld [vmem:[%s2195_s5 + $0x20] sm:$0xff]   ;;  %v1687_v62 = vld [vmem:[%s2195_s5 + $0x68] sm:$0xff]   ;;  %v1691_v5 = vld [vmem:[%s2195_s5 + $0x30] sm:$0xff]  }
 0x10b   :  { %v470_v8 = vrot.slane %v1996_v2, 1  ;;  %v398_v9 = vadd.f32 %v397_v56, %v341_v3  ;;  %v344_v10 = vadd.f32 %v1437_v4, %v1320_v16  ;;  %v2003_v12 = vadd.f32 %v1980_v32, %v417_v7  ;;  %v1681_v56 = vld [vmem:[%s2195_s5 + $0x58] sm:$0xff]   ;;  %v1690_v3 = vld [vmem:[%s2195_s5 + $0x70] sm:$0xff]   ;;  %v1692_v4 = vld [vmem:[%s2195_s5 + $0xa8] sm:$0xff]  }
 0x10c   :  { %v506_v13 = vld [vmem:[#allocation3] sm:$0xff]  ;;  %v455_v29 = vrot.slane %v1996_v2, 7  ;;  %v1695_v7 = vld [vmem:[%s2195_s5 + $0xb0] sm:$0xff]  }
 0x10d   :  { %v471_v15 = vsel %vm466_vm2, %v468_v6, %v470_v8  ;;  %477 = vst [vmem:[#allocation3 + $0x40] sm:$0x7f] %v470_v8  ;;  %v408_v17 = vmax.f32 %v398_v9, 0.0  ;;  %v401_v18 = vadd.f32 %v400_v63, %v344_v10  ;;  %v481_v20 = vrot.slane %v2003_v12, 7  ;;  %v1689_v63 = vld [vmem:[%s2195_s5 + $0xa0] sm:$0xff]   ;;  %v1693_v6 = vld [vmem:[%s2195_s5 + $0x78] sm:$0xff]  }
 0x10e   :  { %v524_v21 = vpack.c.bf16 %v454_v14, %v506_v13  ;;  %v528_v16 = vpack.c.bf16 %v2003_v12, %v1996_v2  ;;  %v526_v25 = vpack.c.bf16 %v471_v15, %v469_v19  ;;  %v495_v30 = vrot.slane %v2003_v12, 1  ;;  %v1694_v8 = vld [vmem:[%s2195_s5 + $0x38] sm:$0xff]   ;;  %v2117_v13 = vld [vmem:[%s2197_s4] ss:$0 sm:$0xff] }
 0x10f   :  { %v418_v23 = vmul.f32 %v1975_v28, %v408_v17  ;;  %v409_v24 = vmax.f32 %v401_v18, 0.0  ;;  %489 = vst [vmem:[#allocation3 + $0x48] sm:$0xfe] %v481_v20  ;;  %v456_v37 = vsel %vm451_vm1, %v453_v0, %v455_v29  ;;  %v1688_v0 = vld [vmem:[%s2195_s5 + $0x28] sm:$0xff]   ;;  %v1696_v9 = vld [vmem:[%s2195_s5 + $0xb8] sm:$0xff]  }
 0x110   :  { %765 = vmatmul.mubr.bf16.vlgmr.msra.gmra.mrb[12].mxu0 %v524_v21  ;;  %1584 = vmatmul.mubr.bf16.vlgmr.msra.gmra.mrb[12].mxu1 %v526_v25  ;;  %v2124_v25 = vld [vmem:[%s2197_s4 + $0x1] ss:$0 sm:$0xff] }
 0x111   :  { %v2016_v26 = vadd.f32 %v1980_v32, %v418_v23  ;;  %v419_v27 = vmul.f32 %v1975_v28, %v409_v24  ;;  %772 = vmatprep.mubr.bf16.mxu0 %v528_v16  ;;  %1587 = vmatprep.mubr.msk.bf16.mxu1 %vm1698_vm0, %v1697_v1 }
 0x112   :  { %1495 = vmatpush3.bf16.msra.mxu0 %v1674_v22  ;;  %1596 = vmatpush3.bf16.msra.mxu1 %v1677_v51 }
 0x113   :  { %v496_v31 = vrot.slane %v2016_v26, 1  ;;  %v2025_v33 = vadd.f32 %v1980_v32, %v419_v27  ;;  %v482_v32 = vrot.slane %v2016_v26, 7  ;;  %1496 = vmatprep.subr.bf16.mxu0 %v1675_v50  ;;  %1597 = vmatprep.subr.bf16.mxu1 %v1697_v1 }
 0x114   :  { %v514_v34 = vld [vmem:[#allocation3 + $0x40] sm:$0xff] }
 0x115   :  { %v497_v35 = vsel %vm466_vm2, %v495_v30, %v496_v31  ;;  %v498_v28 = vrot.slane %v2025_v33, 1  ;;  %v531_v39 = vpack.c.bf16 %v2025_v33, %v2016_v26  ;;  %v484_v41 = vrot.slane %v2025_v33, 7  ;;  %v2129_v30 = vld [vmem:[%s2197_s4 + $0x2] ss:$0 sm:$0xff] }
 0x116   :  { %v529_v36 = vpack.c.bf16 %v497_v35, %v514_v34  ;;  %v515_v38 = vld [vmem:[#allocation3 + $0x48] sm:$0xff]  ;;  %v483_v46 = vsel %vm451_vm1, %v481_v20, %v482_v32  ;;  %1497 = vmatpush3.bf16.msra.mxu0 %v1676_v52  ;;  %1598 = vmatpush3.bf16.msra.mxu1 %v1680_v54 }
 0x117   :  { %505 = vst [vmem:[#allocation3 + $0x88] sm:$0x7f] %v498_v28  ;;  %v527_v40 = vpack.c.bf16 %v515_v38, %v456_v37  ;;  %v485_v43 = vsel %vm451_vm1, %v482_v32, %v484_v41  ;;  %v499_v44 = vsel %vm466_vm2, %v496_v31, %v498_v28  ;;  %1498 = vmatprep.subr.bf16.mxu0 %v1678_v53 }
 0x118   :  { %1588 = vmatmul.mubr.bf16.gmra.mrb[16].mxu1 %v529_v36  ;;  %v530_v49 = vpack.c.bf16 %v485_v43, %v483_v46  ;;  %1599 = vmatprep.subr.bf16.mxu1 %v1697_v1 }
 0x119   :  { %773 = vmatmul.mubr.bf16.gmra.mrb[16].mxu0 %v527_v40  ;;  %1591 = vmatprep.mubr.msk.bf16.mxu1 %vm1698_vm0, %v1697_v1 }
 0x11a   :  { %780 = vmatprep.mubr.bf16.mxu0 %v531_v39  ;;  %1499 = vmatpush3.bf16.msra.mxu0 %v1679_v55 }
 0x11b   :  { %1500 = vmatprep.subr.bf16.mxu0 %v1681_v56  ;;  %1600 = vmatpush3.bf16.msra.mxu1 %v1683_v58 }
 0x11c   :  { %1601 = vmatprep.subr.bf16.mxu1 %v1697_v1 }
 0x11e   :  { %v523_v45 = vld [vmem:[#allocation3 + $0x88] sm:$0xff]  ;;  %1501 = vmatpush3.bf16.msra.mxu0 %v1682_v57 }
 0x11f   :  { %v532_v47 = vpack.c.bf16 %v523_v45, %v499_v44  ;;  %1502 = vmatprep.subr.bf16.mxu0 %v1684_v59  ;;  %1602 = vmatpush3.bf16.msra.mxu1 %v1686_v60 }
 0x120   :  { %1603 = vmatprep.subr.bf16.mxu1 %v1697_v1 }
 0x121   :  { %1592 = vmatmul.mubr.bf16.gmra.mrb[20].mxu1 %v532_v47  ;;  %781 = vmatmul.mubr.bf16.gmra.mrb[20].mxu0 %v530_v49 }
 0x122   :  { %1611 = vmatprep.mubr.msk.bf16.mxu1 %vm1698_vm0, %v1697_v1  ;;  %1503 = vmatpush3.bf16.msra.mxu0 %v1685_v61 }
 0x123   :  { %1504 = vmatprep.subr.bf16.mxu0 %v1687_v62  ;;  %1604 = vmatpush3.bf16.msra.mxu1 %v1689_v63 }
 0x124   :  { %1605 = vmatprep.subr.bf16.mxu1 %v1697_v1 }
 0x126   :  { %1505 = vmatpush3.bf16.msra.mxu0 %v1688_v0 }
 0x127   :  { %1506 = vmatprep.subr.bf16.mxu0 %v1690_v3  ;;  %1606 = vmatpush3.bf16.msra.mxu1 %v1692_v4 }
 0x128   :  { %1607 = vmatprep.subr.bf16.mxu1 %v1697_v1 }
 0x12a   :  { %1507 = vmatpush3.bf16.msra.mxu0 %v1691_v5 }
 0x12b   :  { %1508 = vmatprep.subr.bf16.mxu0 %v1693_v6  ;;  %1608 = vmatpush3.bf16.msra.mxu1 %v1695_v7 }
 0x12c   :  { %1609 = vmatprep.subr.bf16.mxu1 %v1697_v1 }
 0x12e   :  { %1509 = vmatpush3.bf16.msra.mxu0 %v1694_v8 }
 0x12f   :  { %1610 = vmatpush3.bf16.msra.mxu1 %v1696_v9 }
 0x1e3   :  { %v1465_v10 = vpop.f32.mrb[12].mxu0  ;;  %v823_v14 = vpop.f32.mrb[12].mxu1 }
 0x1e4   :  { %v1466_v11 = vpop.f32.mrb[13].mxu0  ;;  %v1585_v18 = vpop.f32.mrb[13].mxu1 }
 0x1e5   :  { %v1467_v15 = vadd.f32 %v1466_v11, %v1465_v10  ;;  %v1468_v17 = vpop.f32.mrb[14].mxu0  ;;  %v826_v20 = vpop.f32.mrb[14].mxu1 }
 0x1e6   :  { %v1469_v19 = vpop.f32.mrb[15].mxu0  ;;  %v1586_v22 = vpop.f32.mrb[15].mxu1 }
 0x1e7   :  { %v1470_v21 = vadd.f32 %v1469_v19, %v1468_v17  ;;  %v767_v16 = vadd.f32 %v1467_v15, %v2117_v13 }
 0x1e9   :  { %v824_v23 = vadd.f32 %v823_v14, %v767_v16  ;;  %v770_v24 = vadd.f32 %v1470_v21, %v2117_v13 }
 0x1eb   :  { %v846_v27 = vmax.f32 %v824_v23, 0.0  ;;  %v827_v29 = vadd.f32 %v826_v20, %v770_v24  ;;  %v831_v31 = vpop.f32.mrb[16].mxu1 }
 0x1ec   :  { %v1471_v35 = vpop.f32.mrb[16].mxu0  ;;  %v1589_v36 = vpop.f32.mrb[17].mxu1 }
 0x1ed   :  { %v856_v34 = vmul.f32 %v2124_v25, %v846_v27  ;;  %v847_v28 = vmax.f32 %v827_v29, 0.0  ;;  %v1472_v37 = vpop.f32.mrb[17].mxu0  ;;  %v834_v38 = vpop.f32.mrb[18].mxu1 }
 0x1ee   :  { %v1473_v41 = vadd.f32 %v1472_v37, %v1471_v35  ;;  %v1474_v32 = vpop.f32.mrb[18].mxu0  ;;  %v1590_v43 = vpop.f32.mrb[19].mxu1 }
 0x1ef   :  { %v866_v39 = vadd.f32 %v2129_v30, %v856_v34  ;;  %v857_v40 = vmul.f32 %v2124_v25, %v847_v28  ;;  %v1475_v44 = vpop.f32.mrb[19].mxu0 }
 0x1f0   :  { %v1476_v47 = vadd.f32 %v1475_v44, %v1474_v32  ;;  %v775_v50 = vadd.f32 %v1473_v41, %v2117_v13 }
 0x1f1   :  { %v875_v45 = vrot.slane %v866_v39, 7  ;;  %v867_v46 = vadd.f32 %v2129_v30, %v857_v40  ;;  %v889_v49 = vrot.slane %v866_v39, 1 }
 0x1f2   :  { %v778_v53 = vadd.f32 %v1476_v47, %v2117_v13  ;;  %v832_v55 = vadd.f32 %v831_v31, %v775_v50 }
 0x1f3   :  { %883 = vst [vmem:[#allocation3] sm:$0xfe] %v875_v45  ;;  %v876_v51 = vrot.slane %v867_v46, 7  ;;  %v890_v52 = vrot.slane %v867_v46, 1  ;;  %v947_v54 = vpack.c.bf16 %v867_v46, %v866_v39 }
 0x1f4   :  { %v839_v56 = vpop.f32.mrb[20].mxu1  ;;  %v1477_v59 = vpop.f32.mrb[20].mxu0  ;;  %v835_v60 = vadd.f32 %v834_v38, %v778_v53  ;;  %v848_v62 = vmax.f32 %v832_v55, 0.0 }
 0x1f5   :  { %v877_v57 = vsel %vm451_vm1, %v875_v45, %v876_v51  ;;  %v891_v58 = vsel %vm466_vm2, %v889_v49, %v890_v52  ;;  %v1593_v61 = vpop.f32.mrb[21].mxu1  ;;  %1186 = vmatprep.mubr.bf16.mxu0 %v947_v54  ;;  %v1478_v63 = vpop.f32.mrb[21].mxu0 }
 0x1f6   :  { %v842_v0 = vpop.f32.mrb[22].mxu1  ;;  %v849_v3 = vmax.f32 %v835_v60, 0.0  ;;  %v1479_v4 = vadd.f32 %v1478_v63, %v1477_v59  ;;  %v1480_v5 = vpop.f32.mrb[22].mxu0  ;;  %v858_v7 = vmul.f32 %v2124_v25, %v848_v62 }
 0x1f7   :  { %v1594_v6 = vpop.f32.mrb[23].mxu1  ;;  %v1481_v8 = vpop.f32.mrb[23].mxu0 }
 0x1f8   :  { %v859_v9 = vmul.f32 %v2124_v25, %v849_v3  ;;  %v1482_v10 = vadd.f32 %v1481_v8, %v1480_v5  ;;  %v783_v11 = vadd.f32 %v1479_v4, %v2117_v13  ;;  %v868_v14 = vadd.f32 %v2129_v30, %v858_v7  ;;  %v1399_v4 = vld [vmem:[%s2198_s6 + $0x1] ss:$0 sm:$0xff]  ;;  %v1400_v8 = vld [vmem:[%s2198_s6 + $0x2] ss:$0 sm:$0xff] }
 0x1fa   :  { %v928_v15 = vld [vmem:[#allocation3] sm:$0xff]  ;;  %v869_v17 = vadd.f32 %v2129_v30, %v859_v9  ;;  %v840_v18 = vadd.f32 %v839_v56, %v783_v11  ;;  %v786_v19 = vadd.f32 %v1482_v10, %v2117_v13  ;;  %v878_v21 = vrot.slane %v868_v14, 7 }
 0x1fb   :  { %v946_v20 = vpack.c.bf16 %v877_v57, %v928_v15  ;;  %v892_v16 = vrot.slane %v868_v14, 1  ;;  %v1374_v56 = vld [vmem:[%s2198_s6] ss:$0 sm:$0xff] }
 0x1fc   :  { %v903_v22 = vrot.slane %v869_v17, 7  ;;  %v850_v23 = vmax.f32 %v840_v18, 0.0  ;;  %v843_v24 = vadd.f32 %v842_v0, %v786_v19  ;;  %v879_v27 = vsel %vm451_vm1, %v876_v51, %v878_v21 }
 0x1fd   :  { %1187 = vmatmul.mubr.bf16.vlgmr.msra.gmra.mrb[24].mxu0 %v946_v20  ;;  %v893_v29 = vsel %vm466_vm2, %v890_v52, %v892_v16  ;;  %899 = vst [vmem:[#allocation3 + $0x40] sm:$0x7f] %v892_v16  ;;  %v950_v31 = vpack.c.bf16 %v869_v17, %v868_v14  ;;  %v917_v37 = vrot.slane %v869_v17, 1 }
 0x1fe   :  { %911 = vst [vmem:[#allocation3 + $0x48] sm:$0xfe] %v903_v22  ;;  %v860_v34 = vmul.f32 %v2124_v25, %v850_v23  ;;  %v851_v35 = vmax.f32 %v843_v24, 0.0  ;;  %v948_v28 = vpack.c.bf16 %v893_v29, %v891_v58 }
 0x1ff   :  { %1194 = vmatprep.mubr.bf16.mxu0 %v950_v31 }
 0x200   :  { %v870_v13 = vadd.f32 %v2129_v30, %v860_v34  ;;  %v861_v36 = vmul.f32 %v2124_v25, %v851_v35  ;;  %1612 = vmatmul.mubr.bf16.vlgmr.msra.gmra.mrb[24].mxu1 %v948_v28 }
 0x201   :  { %1615 = vmatprep.mubr.msk.bf16.mxu1 %vm1698_vm0, %v1697_v1 }
 0x202   :  { %v904_v38 = vrot.slane %v870_v13, 7  ;;  %v918_v39 = vrot.slane %v870_v13, 1  ;;  %v871_v40 = vadd.f32 %v2129_v30, %v861_v36 }
 0x204   :  { %v905_v41 = vsel %vm451_vm1, %v903_v22, %v904_v38  ;;  %v919_v32 = vsel %vm466_vm2, %v917_v37, %v918_v39  ;;  %v906_v43 = vrot.slane %v871_v40, 7  ;;  %v920_v44 = vrot.slane %v871_v40, 1  ;;  %v936_v45 = vld [vmem:[#allocation3 + $0x40] sm:$0xff] }
 0x205   :  { %v937_v46 = vld [vmem:[#allocation3 + $0x48] sm:$0xff]  ;;  %v953_v47 = vpack.c.bf16 %v871_v40, %v870_v13  ;;  %v951_v49 = vpack.c.bf16 %v919_v32, %v936_v45 }
 0x206   :  { %v907_v25 = vsel %vm451_vm1, %v904_v38, %v906_v43  ;;  %v921_v50 = vsel %vm466_vm2, %v918_v39, %v920_v44  ;;  %927 = vst [vmem:[#allocation3 + $0x88] sm:$0x7f] %v920_v44  ;;  %v949_v51 = vpack.c.bf16 %v937_v46, %v879_v27 }
 0x207   :  { %v952_v52 = vpack.c.bf16 %v907_v25, %v905_v41 }
 0x208   :  { %1195 = vmatmul.mubr.bf16.gmra.mrb[28].mxu0 %v949_v51  ;;  %1616 = vmatmul.mubr.bf16.gmra.mrb[28].mxu1 %v951_v49 }
 0x209   :  { %1202 = vmatprep.mubr.bf16.mxu0 %v953_v47  ;;  %1619 = vmatprep.mubr.msk.bf16.mxu1 %vm1698_vm0, %v1697_v1 }
 0x20d   :  { %v945_v30 = vld [vmem:[#allocation3 + $0x88] sm:$0xff] }
 0x20e   :  { %v954_v53 = vpack.c.bf16 %v945_v30, %v921_v50 }
 0x210   :  { %1203 = vmatmul.mubr.bf16.gmra.mrb[32].mxu0 %v952_v52  ;;  %1620 = vmatmul.mubr.bf16.gmra.mrb[32].mxu1 %v954_v53 }
 0x2d0   :  { %v1510_v54 = vpop.f32.mrb[24].mxu0 }
 0x2d1   :  { %v1511_v55 = vpop.f32.mrb[25].mxu0 }
 0x2d2   :  { %v1512_v57 = vadd.f32 %v1511_v55, %v1510_v54  ;;  %v1513_v58 = vpop.f32.mrb[26].mxu0 }
 0x2d3   :  { %v1514_v59 = vpop.f32.mrb[27].mxu0  ;;  %v1245_v62 = vpop.f32.mrb[24].mxu1 }
 0x2d4   :  { %v1515_v60 = vadd.f32 %v1514_v59, %v1513_v58  ;;  %v1189_v61 = vadd.f32 %v1512_v57, %v1374_v56  ;;  %v1613_v63 = vpop.f32.mrb[25].mxu1 }
 0x2d5   :  { %v1248_v1 = vpop.f32.mrb[26].mxu1 }
 0x2d6   :  { %v1246_v0 = vadd.f32 %v1245_v62, %v1189_v61  ;;  %v1192_v3 = vadd.f32 %v1515_v60, %v1374_v56  ;;  %v1614_v5 = vpop.f32.mrb[27].mxu1 }
 0x2d8   :  { %v1268_v6 = vmax.f32 %v1246_v0, 0.0  ;;  %v1249_v7 = vadd.f32 %v1248_v1, %v1192_v3 }
 0x2da   :  { %v1278_v9 = vmul.f32 %v1399_v4, %v1268_v6  ;;  %v1269_v10 = vmax.f32 %v1249_v7, 0.0 }
 0x2db   :  { %v1516_v14 = vpop.f32.mrb[28].mxu0  ;;  %v1253_v17 = vpop.f32.mrb[28].mxu1 }
 0x2dc   :  { %v1288_v11 = vadd.f32 %v1400_v8, %v1278_v9  ;;  %v1279_v15 = vmul.f32 %v1399_v4, %v1269_v10  ;;  %v1517_v18 = vpop.f32.mrb[29].mxu0  ;;  %v1617_v19 = vpop.f32.mrb[29].mxu1 }
 0x2dd   :  { %v1518_v16 = vadd.f32 %v1517_v18, %v1516_v14  ;;  %v1519_v22 = vpop.f32.mrb[30].mxu0  ;;  %v1256_v23 = vpop.f32.mrb[30].mxu1 }
 0x2de   :  { %v1294_v20 = vadd.f32 %v1288_v11, %v1984_v42  ;;  %v1289_v21 = vadd.f32 %v1400_v8, %v1279_v15  ;;  %v1520_v24 = vpop.f32.mrb[31].mxu0  ;;  %v1618_v27 = vpop.f32.mrb[31].mxu1 }
 0x2df   :  { %v1521_v31 = vadd.f32 %v1520_v24, %v1519_v22  ;;  %v1197_v34 = vadd.f32 %v1518_v16, %v1374_v56 }
 0x2e0   :  { %1300 = vst [vmem:[%s2199_s7] sm:$0xff] %v1294_v20  ;;  %v1295_v29 = vadd.f32 %v1289_v21, %v1989_v48 }
 0x2e1   :  { %v1254_v35 = vadd.f32 %v1253_v17, %v1197_v34  ;;  %v1200_v42 = vadd.f32 %v1521_v31, %v1374_v56 }
 0x2e2   :  { %1301 = vst [vmem:[%s2199_s7 + $0x8] sm:$0xff] %v1295_v29 }
 0x2e3   :  { %v1270_v28 = vmax.f32 %v1254_v35, 0.0  ;;  %v1522_v13 = vpop.f32.mrb[32].mxu0  ;;  %v1257_v36 = vadd.f32 %v1256_v23, %v1200_v42  ;;  %v1261_v37 = vpop.f32.mrb[32].mxu1 }
 0x2e4   :  { %v1523_v38 = vpop.f32.mrb[33].mxu0  ;;  %v1621_v39 = vpop.f32.mrb[33].mxu1 }
 0x2e5   :  { %v1280_v40 = vmul.f32 %v1399_v4, %v1270_v28  ;;  %v1271_v41 = vmax.f32 %v1257_v36, 0.0  ;;  %v1524_v32 = vadd.f32 %v1523_v38, %v1522_v13  ;;  %v1525_v43 = vpop.f32.mrb[34].mxu0  ;;  %v1264_v44 = vpop.f32.mrb[34].mxu1 }
 0x2e6   :  { %v1526_v48 = vpop.f32.mrb[35].mxu0  ;;  %v1622_v45 = vpop.f32.mrb[35].mxu1 }
 0x2e7   :  { %v1290_v46 = vadd.f32 %v1400_v8, %v1280_v40  ;;  %v1281_v47 = vmul.f32 %v1399_v4, %v1271_v41  ;;  %v1527_v49 = vadd.f32 %v1526_v48, %v1525_v43  ;;  %v1205_v25 = vadd.f32 %v1524_v32, %v1374_v56 }
 0x2e9   :  { %v1296_v50 = vadd.f32 %v1290_v46, %v1996_v2  ;;  %v1291_v51 = vadd.f32 %v1400_v8, %v1281_v47  ;;  %v1262_v52 = vadd.f32 %v1261_v37, %v1205_v25  ;;  %v1208_v30 = vadd.f32 %v1527_v49, %v1374_v56 }
 0x2eb   :  { %1302 = vst [vmem:[%s2199_s7 + $0x10] sm:$0xff] %v1296_v50  ;;  %v1297_v53 = vadd.f32 %v1291_v51, %v2003_v12  ;;  %v1272_v54 = vmax.f32 %v1262_v52, 0.0  ;;  %v1265_v55 = vadd.f32 %v1264_v44, %v1208_v30 }
 0x2ed   :  { %1401 = vst [vmem:[%s2199_s7 + $0x18] sm:$0xff] %v1297_v53  ;;  %v1282_v57 = vmul.f32 %v1399_v4, %v1272_v54  ;;  %v1273_v58 = vmax.f32 %v1265_v55, 0.0 }
 0x2ef   :  { %v1292_v59 = vadd.f32 %v1400_v8, %v1282_v57  ;;  %v1283_v60 = vmul.f32 %v1399_v4, %v1273_v58 }
 0x2f1   :  { %v1298_v2 = vadd.f32 %v1292_v59, %v2016_v26  ;;  %v1293_v61 = vadd.f32 %v1400_v8, %v1283_v60 }
 0x2f3   :  { %1402 = vst [vmem:[%s2199_s7 + $0x20] sm:$0xff] %v1298_v2  ;;  %v1299_v56 = vadd.f32 %v1293_v61, %v2025_v33 }
 0x2f5   :  { %1403 = vst [vmem:[%s2199_s7 + $0x28] sm:$0xff] %v1299_v56 }

// kernel: _lambda_.9
= control target key start
LH: loop header
LB: loop body
LE: loop exit
PB: predicated region body
PF: predicated region fallthrough
CT: control target
= control target key end

     0   :  { %18 = vsyncpa [#allocation4], 0  ;;  %s4088_s0 = inlined_call_operand.vmem [shape: f32[2,20,128], index: 0, kind: input, shape index: {}]   ;;  %s4089_s1 = inlined_call_operand.vmem [shape: bf16[128,128], index: 1, kind: input, shape index: {}]   ;;  %s4090_s2 = inlined_call_operand.vmem [shape: f32[3,128], index: 2, kind: input, shape index: {}]   ;;  %s4091_s3 = inlined_call_operand.vmem [shape: bf16[128,256], index: 3, kind: input, shape index: {}]   ;;  %s4092_s4 = inlined_call_operand.vmem [shape: f32[3,256], index: 4, kind: input, shape index: {}]   ;;  %s4093_s5 = inlined_call_operand.vmem [shape: bf16[512,512], index: 5, kind: input, shape index: {}]   ;;  %s4094_s6 = inlined_call_operand.vmem [shape: f32[3,512], index: 6, kind: input, shape index: {}]   ;;  %s4095_s7 = inlined_call_operand.vmem [shape: bf16[512,128], index: 7, kind: input, shape index: {}]   ;;  %s4096_s8 = inlined_call_operand.vmem [shape: f32[3,128], index: 8, kind: input, shape index: {}]   ;;  %s4097_s9 = inlined_call_operand.vmem [shape: bf16[128,16], index: 9, kind: input, shape index: {}]   ;;  %s4098_s10 = inlined_call_operand.vmem [shape: f32[1,16], index: 10, kind: input, shape index: {}]   ;;  %s4099_s11 = inlined_call_operand.hbm [shape: f32[2,16], index: 11, kind: output, shape index: {0}]   ;;  %s4100_s12 = inlined_call_operand.hbm [shape: f32[2,128], index: 12, kind: output, shape index: {1}]  }
   0x1   :  { %v2879_v0 = vld [vmem:[%s4089_s1] sm:$0xff]   ;;  %v2880_v1 = vld [vmem:[%s4089_s1 + $0x8] sm:$0xff]   ;;  %v2881_v2 = vld [vmem:[%s4089_s1 + $0x10] sm:$0xff]  }
   0x2   :  { %2800 = vmatprep.subr.bf16.mxu0 %v2879_v0  ;;  %v2882_v3 = vld [vmem:[%s4089_s1 + $0x18] sm:$0xff]   ;;  %v43_v4 = vld [vmem:[%s4088_s0] sm:$0xff]  ;;  %v44_v5 = vld [vmem:[%s4088_s0 + $0x8] sm:$0xff] }
   0x3   :  { %2801 = vmatpush3.bf16.msra.mxu0 %v2879_v0  ;;  %v46_v6 = vpack.c.bf16 %v44_v5, %v43_v4  ;;  %v2883_v7 = vld [vmem:[%s4089_s1 + $0x20] sm:$0xff]   ;;  %v2884_v8 = vld [vmem:[%s4089_s1 + $0x28] sm:$0xff]   ;;  %v2885_v11 = vld [vmem:[%s4089_s1 + $0x30] sm:$0xff]  }
   0x4   :  { %2802 = vmatprep.subr.bf16.mxu0 %v2880_v1  ;;  %v3307_v9 = vld [vmem:[%s4091_s3 + $0x4] ss:$8 sps:$4 sm:$0xff]   ;;  %v3312_v10 = vld [vmem:[%s4091_s3] ss:$8 sps:$4 sm:$0xff]   ;;  %v3321_v12 = vld [vmem:[%s4091_s3 + $0x14] ss:$8 sps:$4 sm:$0xff]  }
   0x5   :  { %2816 = vmatprep.mubr.bf16.mxu0 %v46_v6  ;;  %298 = vmatprep.subr.bf16.mxu1 %v3307_v9  ;;  %v3327_v13 = vld [vmem:[%s4091_s3 + $0x10] ss:$8 sps:$4 sm:$0xff]   ;;  %v3333_v14 = vld [vmem:[%s4091_s3 + $0x24] ss:$8 sps:$4 sm:$0xff]   ;;  %v3341_v16 = vld [vmem:[%s4091_s3 + $0x20] ss:$8 sps:$4 sm:$0xff]  }
   0x6   :  { %299 = vmatpush1.bf16.msra.mxu1 %v3312_v10  ;;  %v2886_v15 = vld [vmem:[%s4089_s1 + $0x38] sm:$0xff]   ;;  %v45_v18 = vld [vmem:[%s4088_s0 + $0x10] sm:$0xf]  ;;  %v2887_v19 = vld [vmem:[%s4089_s1] sm:$0xff]  }
   0x7   :  { %2803 = vmatpush3.bf16.msra.mxu0 %v2880_v1  ;;  %300 = vmatprep.subr.bf16.mxu1 %v3321_v12  ;;  %v3346_v17 = vld [vmem:[%s4091_s3 + $0x34] ss:$8 sps:$4 sm:$0xff]   ;;  %v2522_v21 = vld [vmem:[%s4088_s0 + $0x20] sm:$0xff]  ;;  %v3365_v22 = vld [vmem:[%s4091_s3 + $0x30] ss:$8 sps:$4 sm:$0xff]   ;;  %v47_v24 = vpack.c.bf16 %v45_v18, %v45_v18 }
   0x8   :  { %2804 = vmatprep.subr.bf16.mxu0 %v2881_v2  ;;  %v2521_v20 = vld [vmem:[%s4088_s0 + $0x18] sm:$0xff]  ;;  %v3370_v23 = vld [vmem:[%s4091_s3 + $0x44] ss:$8 sps:$4 sm:$0xff]   ;;  %v3380_v27 = vld [vmem:[%s4091_s3 + $0x40] ss:$8 sps:$4 sm:$0xff]  }
   0x9   :  { %v2888_v25 = vld [vmem:[%s4089_s1 + $0x8] sm:$0xff]   ;;  %v505_v26 = vpack.c.bf16 %v2522_v21, %v2521_v20  ;;  %v2889_v28 = vld [vmem:[%s4089_s1 + $0x10] sm:$0xff]   ;;  %v2890_v29 = vld [vmem:[%s4089_s1 + $0x18] sm:$0xff]  }
   0xa   :  { %301 = vmatpush1.bf16.msra.mxu1 %v3327_v13  ;;  %v2891_v30 = vld [vmem:[%s4089_s1 + $0x20] sm:$0xff]   ;;  %v2892_v31 = vld [vmem:[%s4089_s1 + $0x28] sm:$0xff]   ;;  %v2893_v32 = vld [vmem:[%s4089_s1 + $0x30] sm:$0xff]  }
   0xb   :  { %2805 = vmatpush3.bf16.msra.mxu0 %v2881_v2  ;;  %302 = vmatprep.subr.bf16.mxu1 %v3333_v14  ;;  %v2894_v33 = vld [vmem:[%s4089_s1 + $0x38] sm:$0xff]   ;;  %v2523_v34 = vld [vmem:[%s4088_s0 + $0x28] sm:$0xf] }
   0xc   :  { %2806 = vmatprep.subr.bf16.mxu0 %v2882_v3  ;;  %v506_v35 = vpack.c.bf16 %v2523_v34, %v2523_v34 }
   0xe   :  { %303 = vmatpush1.bf16.msra.mxu1 %v3341_v16 }
   0xf   :  { %2807 = vmatpush3.bf16.msra.mxu0 %v2882_v3  ;;  %304 = vmatprep.subr.bf16.mxu1 %v3346_v17 }
  0x10   :  { %2808 = vmatprep.subr.bf16.mxu0 %v2883_v7 }
  0x12   :  { %305 = vmatpush1.bf16.msra.mxu1 %v3365_v22 }
  0x13   :  { %2809 = vmatpush3.bf16.msra.mxu0 %v2883_v7  ;;  %306 = vmatprep.subr.bf16.mxu1 %v3370_v23 }
  0x14   :  { %2810 = vmatprep.subr.bf16.mxu0 %v2884_v8 }
  0x16   :  { %307 = vmatpush1.bf16.msra.mxu1 %v3380_v27 }
  0x17   :  { %2811 = vmatpush3.bf16.msra.mxu0 %v2884_v8 }
  0x18   :  { %2812 = vmatprep.subr.bf16.mxu0 %v2885_v11 }
  0x1b   :  { %2813 = vmatpush3.bf16.msra.mxu0 %v2885_v11 }
  0x1c   :  { %2814 = vmatprep.subr.bf16.mxu0 %v2886_v15 }
  0x1f   :  { %2815 = vmatpush3.bf16.msra.mxu0 %v2886_v15 }
  0x20   :  { %2820 = vmatprep.subr.bf16.mxu0 %v2887_v19 }
  0x22   :  { %2817 = vmatmul.mubr.bf16.vlgmr.msra.gmra.mrb[0].mxu0 %v47_v24 }
  0x23   :  { %2821 = vmatpush3.bf16.msra.mxu0 %v2887_v19  ;;  %2836 = vmatprep.mubr.bf16.mxu0 %v505_v26 }
  0x24   :  { %2822 = vmatprep.subr.bf16.mxu0 %v2888_v25 }
  0x27   :  { %2823 = vmatpush3.bf16.msra.mxu0 %v2888_v25 }
  0x28   :  { %2824 = vmatprep.subr.bf16.mxu0 %v2889_v28 }
  0x2b   :  { %2825 = vmatpush3.bf16.msra.mxu0 %v2889_v28 }
  0x2c   :  { %2826 = vmatprep.subr.bf16.mxu0 %v2890_v29 }
  0x2f   :  { %2827 = vmatpush3.bf16.msra.mxu0 %v2890_v29 }
  0x30   :  { %2828 = vmatprep.subr.bf16.mxu0 %v2891_v30 }
  0x33   :  { %2829 = vmatpush3.bf16.msra.mxu0 %v2891_v30 }
  0x34   :  { %2830 = vmatprep.subr.bf16.mxu0 %v2892_v31 }
  0x37   :  { %2831 = vmatpush3.bf16.msra.mxu0 %v2892_v31 }
  0x38   :  { %2832 = vmatprep.subr.bf16.mxu0 %v2893_v32 }
  0x3b   :  { %2833 = vmatpush3.bf16.msra.mxu0 %v2893_v32 }
  0x3c   :  { %2834 = vmatprep.subr.bf16.mxu0 %v2894_v33 }
  0x3f   :  { %2835 = vmatpush3.bf16.msra.mxu0 %v2894_v33 }
  0x42   :  { %2837 = vmatmul.mubr.bf16.vlgmr.msra.gmra.mrb[4].mxu0 %v506_v35 }
  0x43   :  { %19 = vsyncpa [#allocation6], 0  ;;  %v2910_v36 = vld [vmem:[%s4091_s3 + $0x54] ss:$8 sps:$4 sm:$0xff]   ;;  %v2912_v37 = vld [vmem:[%s4091_s3 + $0x50] ss:$8 sps:$4 sm:$0xff]  }
  0x44   :  { %308 = vmatprep.subr.bf16.mxu1 %v2910_v36  ;;  %v2913_v38 = vld [vmem:[%s4091_s3 + $0x64] ss:$8 sps:$4 sm:$0xff]   ;;  %v2915_v39 = vld [vmem:[%s4091_s3 + $0x60] ss:$8 sps:$4 sm:$0xff]   ;;  %v2916_v40 = vld [vmem:[%s4091_s3 + $0x74] ss:$8 sps:$4 sm:$0xff]  }
  0x45   :  { %309 = vmatpush1.bf16.msra.mxu1 %v2912_v37  ;;  %v2918_v41 = vld [vmem:[%s4091_s3 + $0x70] ss:$8 sps:$4 sm:$0xff]   ;;  %v3208_v42 = vmov 0   ;;  %v2492_v43 = vld [vmem:[%s4090_s2] ss:$0 sm:$0xff]  ;;  %vm390_vm0 = vcmask 1043456  }
  0x46   :  { %310 = vmatprep.subr.bf16.mxu1 %v2913_v38  ;;  %330 = vmatprep.mubr.bf16.mxu1 %v3208_v42  ;;  %v2501_v48 = vld [vmem:[%s4090_s2 + $0x1] ss:$0 sm:$0xff]  ;;  %v2502_v55 = vld [vmem:[%s4090_s2 + $0x2] ss:$0 sm:$0xff]  ;;  %v2921_v18 = vld [vmem:[%s4093_s5 + $0x4] ss:$16 sps:$4 sm:$0xff]  }
  0x47   :  { %v2924_v19 = vld [vmem:[%s4093_s5 + $0xc] ss:$16 sps:$4 sm:$0xff]   ;;  %v2919_v20 = vld [vmem:[%s4093_s5] ss:$16 sps:$4 sm:$0xff]   ;;  %v2922_v21 = vld [vmem:[%s4093_s5 + $0x8] ss:$16 sps:$4 sm:$0xff]   ;;  %1773 = vmatprep.subr.bf16.mxu0 %v2921_v18 }
  0x48   :  { %1774 = vmatpush1.bf16.msra.mxu0 %v2919_v20  ;;  %v2925_v24 = vld [vmem:[%s4093_s5 + $0x20] ss:$16 sps:$4 sm:$0xff]   ;;  %v2928_v25 = vld [vmem:[%s4093_s5 + $0x28] ss:$16 sps:$4 sm:$0xff]   ;;  %v2933_v26 = vld [vmem:[%s4093_s5 + $0x44] ss:$16 sps:$4 sm:$0xff]  }
  0x49   :  { %311 = vmatpush1.bf16.msra.mxu1 %v2915_v39  ;;  %v2931_v28 = vld [vmem:[%s4093_s5 + $0x40] ss:$16 sps:$4 sm:$0xff]   ;;  %v2934_v29 = vld [vmem:[%s4093_s5 + $0x48] ss:$16 sps:$4 sm:$0xff]   ;;  %v2939_v30 = vld [vmem:[%s4093_s5 + $0x64] ss:$16 sps:$4 sm:$0xff]  }
  0x4a   :  { %312 = vmatprep.subr.bf16.mxu1 %v2916_v40  ;;  %v2942_v31 = vld [vmem:[%s4093_s5 + $0x6c] ss:$16 sps:$4 sm:$0xff]   ;;  %v2937_v32 = vld [vmem:[%s4093_s5 + $0x60] ss:$16 sps:$4 sm:$0xff]   ;;  %v2940_v33 = vld [vmem:[%s4093_s5 + $0x68] ss:$16 sps:$4 sm:$0xff]  }
  0x4b   :  { %v2945_v34 = vld [vmem:[%s4093_s5 + $0x84] ss:$16 sps:$4 sm:$0xff]   ;;  %v2948_v35 = vld [vmem:[%s4093_s5 + $0x8c] ss:$16 sps:$4 sm:$0xff]   ;;  %vm3212_vm10 = vmmov 0   ;;  %s3213_s20 = smov [#allocation5]  }
  0x4c   :  { %v202_v18 = vld [vmem:[%s4092_s4] ss:$4 sm:$0x3]  ;;  %s2480_s21 = sshll.u32 %s3213_s20, 4  ;;  %s2481_s21 = int_to_ptr.vmem [resolvable:$true] %s2480_s21 }
  0x4d   :  { %313 = vmatpush1.bf16.msra.mxu1 %v2918_v41  ;;  %p3165_p1 = scmp.lt.s32.totalorder %s2481_s21, %s2481_s21 }
  0x4e   :  { %755 = vmatprep.subr.bf16.mxu1 %v3307_v9 }
  0xf5   :  { %v2818_v44 = vpop.f32.mrb[0].mxu0 }
  0xf6   :  { %v153_v45 = vpop.f32.mrb[1].mxu0  ;;  %v162_v50 = vadd.f32 %v2818_v44, %v2492_v43  ;;  %v2955_v44 = vld [vmem:[%s4093_s5 + $0xc0] ss:$16 sps:$4 sm:$0xff]  }
  0xf7   :  { %v154_v46 = vadd.f32 %v2492_v43, %v153_v45  ;;  %v2819_v47 = vpop.f32.mrb[2].mxu0  ;;  %v2958_v45 = vld [vmem:[%s4093_s5 + $0xc8] ss:$16 sps:$4 sm:$0xff]  }
  0xf8   :  { %v156_v49 = vpop.f32.mrb[3].mxu0  ;;  %v169_v56 = vmax.f32 %v162_v50, 0.0  ;;  %v2966_v47 = vld [vmem:[%s4093_s5 + $0xec] ss:$16 sps:$4 sm:$0xff]   ;;  %v2969_v50 = vld [vmem:[%s4093_s5 + $0x104] ss:$16 sps:$4 sm:$0xff]  }
  0xf9   :  { %v167_v51 = vmax.f32 %v154_v46, 0.0  ;;  %v157_v52 = vadd.f32 %v2492_v43, %v156_v49  ;;  %v2963_v46 = vld [vmem:[%s4093_s5 + $0xe4] ss:$16 sps:$4 sm:$0xff]   ;;  %v2964_v49 = vld [vmem:[%s4093_s5 + $0xe8] ss:$16 sps:$4 sm:$0xff]  }
  0xfa   :  { %v176_v60 = vmul.f32 %v2501_v48, %v169_v56  ;;  %v2973_v56 = vld [vmem:[%s4093_s5 + $0x120] ss:$16 sps:$4 sm:$0xff]  }
  0xfb   :  { %v174_v53 = vmul.f32 %v2501_v48, %v167_v51  ;;  %v168_v54 = vmax.f32 %v157_v52, 0.0  ;;  %v2972_v51 = vld [vmem:[%s4093_s5 + $0x10c] ss:$16 sps:$4 sm:$0xff]   ;;  %v2967_v52 = vld [vmem:[%s4093_s5 + $0x100] ss:$16 sps:$4 sm:$0xff]  }
  0xfc   :  { %v183_v62 = vadd.f32 %v2502_v55, %v176_v60  ;;  %v2979_v60 = vld [vmem:[%s4093_s5 + $0x140] ss:$16 sps:$4 sm:$0xff]  }
  0xfd   :  { %v175_v57 = vmul.f32 %v2501_v48, %v168_v54  ;;  %v181_v58 = vadd.f32 %v2502_v55, %v174_v53  ;;  %v2970_v53 = vld [vmem:[%s4093_s5 + $0x108] ss:$16 sps:$4 sm:$0xff]   ;;  %v2975_v54 = vld [vmem:[%s4093_s5 + $0x124] ss:$16 sps:$4 sm:$0xff]  }
  0xfe   :  { %v185_v63 = vpack.c.bf16 %v183_v62, %v183_v62  ;;  %v2987_v62 = vld [vmem:[%s4093_s5 + $0x164] ss:$16 sps:$4 sm:$0xff]  }
  0xff   :  { %v182_v59 = vadd.f32 %v2502_v55, %v175_v57  ;;  %v2976_v57 = vld [vmem:[%s4093_s5 + $0x128] ss:$16 sps:$4 sm:$0xff]  }
 0x101   :  { %v184_v61 = vpack.c.bf16 %v182_v59, %v181_v58  ;;  %v2981_v58 = vld [vmem:[%s4093_s5 + $0x144] ss:$16 sps:$4 sm:$0xff]   ;;  %v2984_v59 = vld [vmem:[%s4093_s5 + $0x14c] ss:$16 sps:$4 sm:$0xff]  }
 0x103   :  { %331 = vmatmul.mubr.bf16.vlgmr.msra.gmra.mrb[0].mxu1 %v184_v61  ;;  %v2982_v61 = vld [vmem:[%s4093_s5 + $0x148] ss:$16 sps:$4 sm:$0xff]  }
 0x104   :  { %756 = vmatpush1.bf16.msra.mxu1 %v3312_v10  ;;  %340 = vmatprep.mubr.bf16.mxu1 %v3208_v42 }
 0x105   :  { %757 = vmatprep.subr.bf16.mxu1 %v3321_v12 }
 0x108   :  { %758 = vmatpush1.bf16.msra.mxu1 %v3327_v13 }
 0x109   :  { %759 = vmatprep.subr.bf16.mxu1 %v3333_v14 }
 0x10b   :  { %341 = vmatmul.mubr.bf16.gmra.mrb[4].mxu1 %v185_v63  ;;  %v2990_v63 = vld [vmem:[%s4093_s5 + $0x16c] ss:$16 sps:$4 sm:$0xff]  }
 0x10c   :  { %760 = vmatpush1.bf16.msra.mxu1 %v3341_v16  ;;  %787 = vmatprep.mubr.bf16.mxu1 %v3208_v42 }
 0x10d   :  { %761 = vmatprep.subr.bf16.mxu1 %v3346_v17 }
 0x110   :  { %762 = vmatpush1.bf16.msra.mxu1 %v3365_v22  ;;  %v2927_v22 = vld [vmem:[%s4093_s5 + $0x24] ss:$16 sps:$4 sm:$0xff]  }
 0x111   :  { %763 = vmatprep.subr.bf16.mxu1 %v3370_v23  ;;  %v2930_v23 = vld [vmem:[%s4093_s5 + $0x2c] ss:$16 sps:$4 sm:$0xff]   ;;  %1775 = vmatprep.subr.bf16.mxu0 %v2927_v22  ;;  %v3012_v22 = vld [vmem:[%s4093_s5 + $0x1e8] ss:$16 sps:$4 sm:$0xff]  }
 0x112   :  { %1776 = vmatpush1.bf16.msra.mxu0 %v2925_v24  ;;  %v2503_v24 = vld [vmem:[%s4092_s4 + $0x1] ss:$4 sm:$0x3] }
 0x113   :  { %1777 = vmatprep.subr.bf16.mxu0 %v2933_v26  ;;  %v3017_v26 = vld [vmem:[%s4093_s5 + $0x204] ss:$16 sps:$4 sm:$0xff]  }
 0x114   :  { %764 = vmatpush1.bf16.msra.mxu1 %v3380_v27  ;;  %v2936_v27 = vld [vmem:[%s4093_s5 + $0x4c] ss:$16 sps:$4 sm:$0xff]  }
 0x115   :  { %v2838_v0 = vpop.f32.mrb[4].mxu0  ;;  %765 = vmatprep.subr.bf16.mxu1 %v2910_v36  ;;  %v2943_v36 = vld [vmem:[%s4093_s5 + $0x80] ss:$16 sps:$4 sm:$0xff]  }
 0x116   :  { %v612_v1 = vpop.f32.mrb[5].mxu0  ;;  %v621_v5 = vadd.f32 %v2838_v0, %v2492_v43  ;;  %1778 = vmatpush1.bf16.msra.mxu0 %v2931_v28  ;;  %v2985_v0 = vld [vmem:[%s4093_s5 + $0x160] ss:$16 sps:$4 sm:$0xff]  }
 0x117   :  { %v613_v2 = vadd.f32 %v2492_v43, %v612_v1  ;;  %v2839_v3 = vpop.f32.mrb[6].mxu0  ;;  %1779 = vmatprep.subr.bf16.mxu0 %v2939_v30  ;;  %v2988_v1 = vld [vmem:[%s4093_s5 + $0x168] ss:$16 sps:$4 sm:$0xff]  }
 0x118   :  { %v615_v4 = vpop.f32.mrb[7].mxu0  ;;  %766 = vmatpush1.bf16.msra.mxu1 %v2912_v37  ;;  %v628_v10 = vmax.f32 %v621_v5, 0.0  ;;  %v2946_v37 = vld [vmem:[%s4093_s5 + $0x88] ss:$16 sps:$4 sm:$0xff]   ;;  %v2996_v3 = vld [vmem:[%s4093_s5 + $0x18c] ss:$16 sps:$4 sm:$0xff]  }
 0x119   :  { %v626_v6 = vmax.f32 %v613_v2, 0.0  ;;  %v616_v7 = vadd.f32 %v2492_v43, %v615_v4  ;;  %767 = vmatprep.subr.bf16.mxu1 %v2913_v38  ;;  %v2951_v38 = vld [vmem:[%s4093_s5 + $0xa4] ss:$16 sps:$4 sm:$0xff]   ;;  %v2960_v43 = vld [vmem:[%s4093_s5 + $0xcc] ss:$16 sps:$4 sm:$0xff]  }
 0x11a   :  { %v635_v14 = vmul.f32 %v2501_v48, %v628_v10  ;;  %1780 = vmatpush1.bf16.msra.mxu0 %v2937_v32  ;;  %v2993_v2 = vld [vmem:[%s4093_s5 + $0x184] ss:$16 sps:$4 sm:$0xff]   ;;  %v2991_v4 = vld [vmem:[%s4093_s5 + $0x180] ss:$16 sps:$4 sm:$0xff]   ;;  %v2994_v5 = vld [vmem:[%s4093_s5 + $0x188] ss:$16 sps:$4 sm:$0xff]  }
 0x11b   :  { %v633_v8 = vmul.f32 %v2501_v48, %v626_v6  ;;  %v627_v9 = vmax.f32 %v616_v7, 0.0  ;;  %1781 = vmatprep.subr.bf16.mxu0 %v2945_v34  ;;  %v2999_v6 = vld [vmem:[%s4093_s5 + $0x1a4] ss:$16 sps:$4 sm:$0xff]   ;;  %v3002_v7 = vld [vmem:[%s4093_s5 + $0x1ac] ss:$16 sps:$4 sm:$0xff]  }
 0x11c   :  { %768 = vmatpush1.bf16.msra.mxu1 %v2915_v39  ;;  %v642_v16 = vadd.f32 %v2502_v55, %v635_v14  ;;  %v2954_v39 = vld [vmem:[%s4093_s5 + $0xac] ss:$16 sps:$4 sm:$0xff]   ;;  %v3000_v10 = vld [vmem:[%s4093_s5 + $0x1a8] ss:$16 sps:$4 sm:$0xff]   ;;  %v3003_v14 = vld [vmem:[%s4093_s5 + $0x1c0] ss:$16 sps:$4 sm:$0xff]  }
 0x11d   :  { %v634_v11 = vmul.f32 %v2501_v48, %v627_v9  ;;  %769 = vmatprep.subr.bf16.mxu1 %v2916_v40  ;;  %v640_v12 = vadd.f32 %v2502_v55, %v633_v8  ;;  %v2949_v40 = vld [vmem:[%s4093_s5 + $0xa0] ss:$16 sps:$4 sm:$0xff]   ;;  %v208_v8 = vlaneseq }
 0x11e   :  { %v644_v17 = vpack.c.bf16 %v642_v16, %v642_v16  ;;  %1782 = vmatpush1.bf16.msra.mxu0 %v2943_v36  ;;  %v2961_v48 = vld [vmem:[%s4093_s5 + $0xe0] ss:$16 sps:$4 sm:$0xff]   ;;  %v3011_v16 = vld [vmem:[%s4093_s5 + $0x1e4] ss:$16 sps:$4 sm:$0xff]  }
 0x11f   :  { %v641_v13 = vadd.f32 %v2502_v55, %v634_v11  ;;  %1783 = vmatprep.subr.bf16.mxu0 %v2951_v38  ;;  %v2978_v55 = vld [vmem:[%s4093_s5 + $0x12c] ss:$16 sps:$4 sm:$0xff]   ;;  %v2997_v9 = vld [vmem:[%s4093_s5 + $0x1a0] ss:$16 sps:$4 sm:$0xff]   ;;  %v3005_v11 = vld [vmem:[%s4093_s5 + $0x1c4] ss:$16 sps:$4 sm:$0xff]  }
 0x120   :  { %770 = vmatpush1.bf16.msra.mxu1 %v2918_v41  ;;  %v2952_v41 = vld [vmem:[%s4093_s5 + $0xa8] ss:$16 sps:$4 sm:$0xff]   ;;  %v2504_v32 = vld [vmem:[%s4092_s4 + $0x2] ss:$4 sm:$0x3]  ;;  %vm3686_vm1 = vcmp.lt.s32.totalorder %v208_v8, 256 }
 0x121   :  { %v643_v15 = vpack.c.bf16 %v641_v13, %v640_v12  ;;  %1855 = vmatprep.subr.bf16.mxu1 %v2924_v19  ;;  %v3008_v12 = vld [vmem:[%s4093_s5 + $0x1cc] ss:$16 sps:$4 sm:$0xff]   ;;  %v3618_v13 = vshrl.u32 %v208_v8, 7 }
 0x122   :  { %1784 = vmatpush1.bf16.msra.mxu0 %v2949_v40 }
 0x123   :  { %788 = vmatmul.mubr.bf16.vlgmr.msra.gmra.mrb[8].mxu1 %v643_v15  ;;  %v3006_v15 = vld [vmem:[%s4093_s5 + $0x1c8] ss:$16 sps:$4 sm:$0xff]   ;;  %v3636_v19 = vsub.s32 0, %v3618_v13  ;;  %v3639_v20 = vsub.s32 1, %v3618_v13 }
 0x124   :  { %797 = vmatprep.mubr.bf16.mxu1 %v3208_v42  ;;  %1856 = vmatpush1.bf16.msra.mxu1 %v2922_v21  ;;  %v2957_v42 = vld [vmem:[%s4093_s5 + $0xc4] ss:$16 sps:$4 sm:$0xff]   ;;  %v3009_v21 = vld [vmem:[%s4093_s5 + $0x1e0] ss:$16 sps:$4 sm:$0xff]  }
 0x125   :  { %1857 = vmatprep.subr.bf16.mxu1 %v2930_v23  ;;  %1785 = vmatprep.subr.bf16.mxu0 %v2957_v42  ;;  %v211_v23 = vrot.slane %v202_v18, %v3636_v19  ;;  %v359_v30 = vrot.slane %v2503_v24, %v3636_v19  ;;  %v363_v34 = vrot.slane %v2503_v24, %v3639_v20 }
 0x126   :  { %1786 = vmatpush1.bf16.msra.mxu0 %v2955_v44  ;;  %v376_v42 = vrot.slane %v2504_v32, %v3636_v19 }
 0x127   :  { %1787 = vmatprep.subr.bf16.mxu0 %v2963_v46 }
 0x128   :  { %1858 = vmatpush1.bf16.msra.mxu1 %v2928_v25  ;;  %v215_v25 = vrot.slane %v202_v18, %v3639_v20  ;;  %v661_v18 = vld [vmem:[%s4092_s4] ss:$4 sm:$0x3] }
 0x129   :  { %1859 = vmatprep.subr.bf16.mxu1 %v2936_v27  ;;  %v3020_v27 = vld [vmem:[%s4093_s5 + $0x20c] ss:$16 sps:$4 sm:$0xff]  }
 0x12a   :  { %1788 = vmatpush1.bf16.msra.mxu0 %v2961_v48 }
 0x12b   :  { %798 = vmatmul.mubr.bf16.gmra.mrb[12].mxu1 %v644_v17  ;;  %1789 = vmatprep.subr.bf16.mxu0 %v2969_v50  ;;  %v3014_v17 = vld [vmem:[%s4093_s5 + $0x1ec] ss:$16 sps:$4 sm:$0xff]  }
 0x12c   :  { %1860 = vmatpush1.bf16.msra.mxu1 %v2934_v29 }
 0x12d   :  { %1861 = vmatprep.subr.bf16.mxu1 %v2942_v31 }
 0x12e   :  { %1790 = vmatpush1.bf16.msra.mxu0 %v2967_v52 }
 0x12f   :  { %1791 = vmatprep.subr.bf16.mxu0 %v2975_v54 }
 0x130   :  { %1862 = vmatpush1.bf16.msra.mxu1 %v2940_v33 }
 0x131   :  { %1863 = vmatprep.subr.bf16.mxu1 %v2948_v35 }
 0x132   :  { %1792 = vmatpush1.bf16.msra.mxu0 %v2973_v56 }
 0x133   :  { %1793 = vmatprep.subr.bf16.mxu0 %v2981_v58 }
 0x134   :  { %1864 = vmatpush1.bf16.msra.mxu1 %v2946_v37 }
 0x135   :  { %1865 = vmatprep.subr.bf16.mxu1 %v2954_v39 }
 0x136   :  { %1794 = vmatpush1.bf16.msra.mxu0 %v2979_v60 }
 0x137   :  { %1795 = vmatprep.subr.bf16.mxu0 %v2987_v62 }
 0x138   :  { %1866 = vmatpush1.bf16.msra.mxu1 %v2952_v41 }
 0x139   :  { %1867 = vmatprep.subr.bf16.mxu1 %v2960_v43 }
 0x13a   :  { %1796 = vmatpush1.bf16.msra.mxu0 %v2985_v0 }
 0x13b   :  { %1797 = vmatprep.subr.bf16.mxu0 %v2993_v2 }
 0x13c   :  { %1868 = vmatpush1.bf16.msra.mxu1 %v2958_v45  ;;  %v380_v45 = vrot.slane %v2504_v32, %v3639_v20 }
 0x13d   :  { %1869 = vmatprep.subr.bf16.mxu1 %v2966_v47 }
 0x13e   :  { %1798 = vmatpush1.bf16.msra.mxu0 %v2991_v4 }
 0x13f   :  { %1799 = vmatprep.subr.bf16.mxu0 %v2999_v6 }
 0x140   :  { %1870 = vmatpush1.bf16.msra.mxu1 %v2964_v49 }
 0x141   :  { %1871 = vmatprep.subr.bf16.mxu1 %v2972_v51 }
 0x142   :  { %1800 = vmatpush1.bf16.msra.mxu0 %v2997_v9 }
 0x143   :  { %1801 = vmatprep.subr.bf16.mxu0 %v3005_v11 }
 0x144   :  { %1872 = vmatpush1.bf16.msra.mxu1 %v2970_v53 }
 0x145   :  { %1873 = vmatprep.subr.bf16.mxu1 %v2978_v55 }
 0x146   :  { %1802 = vmatpush1.bf16.msra.mxu0 %v3003_v14  ;;  %v3209_v14 = vmov 1966171168  }
 0x147   :  { %1803 = vmatprep.subr.bf16.mxu0 %v3011_v16 }
 0x148   :  { %1874 = vmatpush1.bf16.msra.mxu1 %v2976_v57 }
 0x149   :  { %1875 = vmatprep.subr.bf16.mxu1 %v2984_v59 }
 0x14a   :  { %1804 = vmatpush1.bf16.msra.mxu0 %v3009_v21 }
 0x14b   :  { %1814 = vmatprep.subr.bf16.mxu0 %v3017_v26 }
 0x14c   :  { %1876 = vmatpush1.bf16.msra.mxu1 %v2982_v61 }
 0x14d   :  { %1877 = vmatprep.subr.bf16.mxu1 %v2990_v63 }
 0x150   :  { %1878 = vmatpush1.bf16.msra.mxu1 %v2988_v1 }
 0x151   :  { %1879 = vmatprep.subr.bf16.mxu1 %v2996_v3 }
 0x154   :  { %1880 = vmatpush1.bf16.msra.mxu1 %v2994_v5 }
 0x155   :  { %1881 = vmatprep.subr.bf16.mxu1 %v3002_v7 }
 0x158   :  { %1882 = vmatpush1.bf16.msra.mxu1 %v3000_v10 }
 0x159   :  { %1883 = vmatprep.subr.bf16.mxu1 %v3008_v12 }
 0x15c   :  { %1884 = vmatpush1.bf16.msra.mxu1 %v3006_v15  ;;  %v462_v15 = vunpack.c.l.s4 %v3209_v14 }
 0x15d   :  { %1885 = vmatprep.subr.bf16.mxu1 %v3014_v17 }
 0x160   :  { %1886 = vmatpush1.bf16.msra.mxu1 %v3012_v22 }
 0x161   :  { %1896 = vmatprep.subr.bf16.mxu1 %v3020_v27  ;;  %v2535_v27 = vld [vmem:[%s4092_s4 + $0x1] ss:$4 sm:$0x3] }
 0x1d6   :  { %v332_v28 = vpop.f32.mrb[0].mxu1 }
 0x1d7   :  { %v333_v29 = vadd.f32 %v332_v28, %v211_v23  ;;  %v334_v31 = vpop.f32.mrb[1].mxu1  ;;  %v672_v28 = vrot.slane %v661_v18, %v3639_v20 }
 0x1d8   :  { %v335_v33 = vadd.f32 %v334_v31, %v215_v25  ;;  %v336_v35 = vpop.f32.mrb[2].mxu1 }
 0x1d9   :  { %v349_v36 = vmax.f32 %v333_v29, 0.0  ;;  %v337_v37 = vadd.f32 %v336_v35, %v211_v23  ;;  %v338_v38 = vpop.f32.mrb[3].mxu1  ;;  %v816_v35 = vrot.slane %v2535_v27, %v3636_v19 }
 0x1da   :  { %v350_v39 = vmax.f32 %v335_v33, 0.0  ;;  %v339_v40 = vadd.f32 %v338_v38, %v215_v25 }
 0x1db   :  { %v366_v41 = vmul.f32 %v359_v30, %v349_v36  ;;  %v351_v43 = vmax.f32 %v337_v37, 0.0  ;;  %v820_v37 = vrot.slane %v2535_v27, %v3639_v20 }
 0x1dc   :  { %v367_v44 = vmul.f32 %v363_v34, %v350_v39  ;;  %v352_v46 = vmax.f32 %v339_v40, 0.0 }
 0x1dd   :  { %v368_v47 = vmul.f32 %v359_v30, %v351_v43  ;;  %v383_v50 = vadd.f32 %v376_v42, %v366_v41 }
 0x1de   :  { %v369_v48 = vmul.f32 %v363_v34, %v352_v46  ;;  %v342_v49 = vpop.f32.mrb[4].mxu1  ;;  %v384_v54 = vadd.f32 %v380_v45, %v367_v44 }
 0x1df   :  { %v385_v51 = vadd.f32 %v376_v42, %v368_v47  ;;  %v343_v52 = vadd.f32 %v342_v49, %v211_v23  ;;  %v344_v53 = vpop.f32.mrb[5].mxu1  ;;  %v463_v23 = vunpack.c.0.s8 %v462_v15 }
 0x1e0   :  { %v386_v55 = vadd.f32 %v380_v45, %v369_v48  ;;  %v345_v56 = vadd.f32 %v344_v53, %v215_v25  ;;  %v346_v57 = vpop.f32.mrb[6].mxu1  ;;  %v668_v25 = vrot.slane %v661_v18, %v3636_v19 }
 0x1e1   :  { %v389_v58 = vadd.f32 %v385_v51, %v383_v50  ;;  %v353_v59 = vmax.f32 %v343_v52, 0.0  ;;  %v347_v60 = vpop.f32.mrb[7].mxu1  ;;  %v3676_v31 = vsub.s32 %v463_v23, %v3618_v13 }
 0x1e2   :  { %v399_v61 = vadd.f32 %v386_v55, %v384_v54  ;;  %v354_v62 = vmax.f32 %v345_v56, 0.0 }
 0x1e3   :  { %v370_v63 = vmul.f32 %v359_v30, %v353_v59 }
 0x1e4   :  { %v371_v0 = vmul.f32 %v363_v34, %v354_v62 }
 0x1e5   :  { %v387_v1 = vadd.f32 %v376_v42, %v370_v63 }
 0x1e6   :  { %v388_v2 = vadd.f32 %v380_v45, %v371_v0 }
 0x1e7   :  { %v391_v3 = vsel %vm390_vm0, %v387_v1, 0.0 }
 0x1e8   :  { %v392_v4 = vadd.f32 %v391_v3, %v389_v58  ;;  %v400_v5 = vsel %vm390_vm0, %v388_v2, 0.0 }
 0x1e9   :  { %v401_v6 = vadd.f32 %v400_v5, %v399_v61 }
 0x1ea   :  { %v393_v7 = vrot.slane %v392_v4, 4 }
 0x1eb   :  { %v402_v9 = vrot.slane %v401_v6, 4 }
 0x1ec   :  { %v394_v10 = vadd.f32 %v393_v7, %v392_v4 }
 0x1ed   :  { %v403_v11 = vadd.f32 %v402_v9, %v401_v6 }
 0x1ee   :  { %v395_v12 = vrot.slane %v394_v10, 2 }
 0x1ef   :  { %v404_v16 = vrot.slane %v403_v11, 2 }
 0x1f0   :  { %v396_v17 = vadd.f32 %v395_v12, %v394_v10 }
 0x1f1   :  { %v405_v21 = vadd.f32 %v404_v16, %v403_v11 }
 0x1f2   :  { %v397_v22 = vrot.slane %v396_v17, 1 }
 0x1f3   :  { %v406_v24 = vrot.slane %v405_v21, 1 }
 0x1f4   :  { %v398_v26 = vadd.f32 %v397_v22, %v396_v17 }
 0x1f5   :  { %v407_v29 = vadd.f32 %v406_v24, %v405_v21 }
 0x1f6   :  { %v409_v30 = vmul.f32 0.05, %v398_v26  ;;  %v789_v32 = vpop.f32.mrb[8].mxu1 }
 0x1f7   :  { %v410_v33 = vmul.f32 0.05, %v407_v29  ;;  %v790_v34 = vadd.f32 %v789_v32, %v668_v25  ;;  %v791_v36 = vpop.f32.mrb[9].mxu1 }
 0x1f8   :  { %v411_v38 = vsub.f32 %v383_v50, %v409_v30  ;;  %v413_v39 = vsub.f32 %v385_v51, %v409_v30  ;;  %v415_v40 = vsub.f32 %v387_v1, %v409_v30  ;;  %v792_v41 = vadd.f32 %v791_v36, %v672_v28  ;;  %v793_v42 = vpop.f32.mrb[10].mxu1  ;;  %v2536_v50 = vld [vmem:[%s4092_s4 + $0x2] ss:$4 sm:$0x3] }
 0x1f9   :  { %v412_v43 = vsub.f32 %v384_v54, %v410_v33  ;;  %v414_v44 = vsub.f32 %v386_v55, %v410_v33  ;;  %v416_v45 = vsub.f32 %v388_v2, %v410_v33  ;;  %v460_v46 = vcombine.low %v409_v30, %v410_v33  ;;  %v795_v47 = vpop.f32.mrb[11].mxu1 }
 0x1fa   :  { %v417_v48 = vmul.f32 %v411_v38, %v411_v38  ;;  %v419_v49 = vmul.f32 %v413_v39, %v413_v39  ;;  %v421_v52 = vmul.f32 %v415_v40, %v415_v40  ;;  %v806_v53 = vmax.f32 %v790_v34, 0.0 }
 0x1fb   :  { %v418_v56 = vmul.f32 %v412_v43, %v412_v43  ;;  %v420_v57 = vmul.f32 %v414_v44, %v414_v44  ;;  %v422_v58 = vmul.f32 %v416_v45, %v416_v45  ;;  %v467_v59 = vrot.slane %v460_v46, %v3676_v31 }
 0x1fc   :  { %v423_v51 = vadd.f32 %v419_v49, %v417_v48  ;;  %v424_v54 = vsel %vm390_vm0, %v421_v52, 0.0  ;;  %v807_v60 = vmax.f32 %v792_v41, 0.0  ;;  %v794_v0 = vadd.f32 %v793_v42, %v668_v25 }
 0x1fd   :  { %v432_v61 = vadd.f32 %v420_v57, %v418_v56  ;;  %v433_v62 = vsel %vm390_vm0, %v422_v58, 0.0  ;;  %v474_v63 = vrot.slane %v467_v59, %v3676_v31  ;;  %v833_v2 = vrot.slane %v2536_v50, %v3636_v19 }
 0x1fe   :  { %v425_v1 = vadd.f32 %v424_v54, %v423_v51  ;;  %v837_v3 = vrot.slane %v2536_v50, %v3639_v20  ;;  %v796_v4 = vadd.f32 %v795_v47, %v672_v28  ;;  %v799_v5 = vpop.f32.mrb[12].mxu1  ;;  %v823_v8 = vmul.f32 %v816_v35, %v806_v53 }
 0x1ff   :  { %v434_v6 = vadd.f32 %v433_v62, %v432_v61  ;;  %480 = vst.msk [vmem:[#allocation2] ss:$2 sm:$0x3] %vm3686_vm1, %v474_v63  ;;  %v808_v7 = vmax.f32 %v794_v0, 0.0  ;;  %v800_v9 = vadd.f32 %v799_v5, %v668_v25  ;;  %v801_v10 = vpop.f32.mrb[13].mxu1  ;;  %v824_v12 = vmul.f32 %v820_v37, %v807_v60 }
 0x200   :  { %v426_v11 = vrot.slane %v425_v1, 4  ;;  %v809_v14 = vmax.f32 %v796_v4, 0.0  ;;  %v802_v15 = vadd.f32 %v801_v10, %v672_v28  ;;  %v803_v16 = vpop.f32.mrb[14].mxu1  ;;  %v840_v29 = vadd.f32 %v833_v2, %v823_v8 }
 0x201   :  { %v435_v17 = vrot.slane %v434_v6, 4  ;;  %v825_v18 = vmul.f32 %v816_v35, %v808_v7  ;;  %v810_v21 = vmax.f32 %v800_v9, 0.0  ;;  %v804_v22 = vpop.f32.mrb[15].mxu1  ;;  %v841_v34 = vadd.f32 %v837_v3, %v824_v12 }
 0x202   :  { %v427_v23 = vadd.f32 %v426_v11, %v425_v1  ;;  %v826_v24 = vmul.f32 %v820_v37, %v809_v14  ;;  %v811_v26 = vmax.f32 %v802_v15, 0.0 }
 0x203   :  { %v436_v27 = vadd.f32 %v435_v17, %v434_v6  ;;  %v842_v30 = vadd.f32 %v833_v2, %v825_v18  ;;  %v827_v32 = vmul.f32 %v816_v35, %v810_v21 }
 0x204   :  { %v428_v33 = vrot.slane %v427_v23, 2  ;;  %v843_v25 = vadd.f32 %v837_v3, %v826_v24  ;;  %v828_v36 = vmul.f32 %v820_v37, %v811_v26 }
 0x205   :  { %v437_v38 = vrot.slane %v436_v27, 2  ;;  %v846_v39 = vadd.f32 %v842_v30, %v840_v29  ;;  %v844_v40 = vadd.f32 %v833_v2, %v827_v32 }
 0x206   :  { %v429_v28 = vadd.f32 %v428_v33, %v427_v23  ;;  %v855_v41 = vadd.f32 %v843_v25, %v841_v34  ;;  %v845_v42 = vadd.f32 %v837_v3, %v828_v36 }
 0x207   :  { %v438_v43 = vadd.f32 %v437_v38, %v436_v27  ;;  %v847_v44 = vsel %vm390_vm0, %v844_v40, 0.0 }
 0x208   :  { %v430_v45 = vrot.slane %v429_v28, 1  ;;  %v848_v46 = vadd.f32 %v847_v44, %v846_v39  ;;  %v856_v47 = vsel %vm390_vm0, %v845_v42, 0.0 }
 0x209   :  { %v439_v48 = vrot.slane %v438_v43, 1  ;;  %v857_v49 = vadd.f32 %v856_v47, %v855_v41 }
 0x20a   :  { %v431_v35 = vadd.f32 %v430_v45, %v429_v28  ;;  %v849_v52 = vrot.slane %v848_v46, 4 }
 0x20b   :  { %v440_v53 = vadd.f32 %v439_v48, %v438_v43  ;;  %v858_v56 = vrot.slane %v857_v49, 4 }
 0x20c   :  { %v442_v37 = vmul.f32 0.05263158, %v431_v35  ;;  %v850_v57 = vadd.f32 %v849_v52, %v848_v46 }
 0x20d   :  { %v443_v58 = vmul.f32 0.05263158, %v440_v53  ;;  %v859_v59 = vadd.f32 %v858_v56, %v857_v49 }
 0x20e   :  { %3152 = vrsqrt.f32 %v442_v37  ;;  %v851_v50 = vrot.slane %v850_v57, 2  ;;  %vm446_vm2 = vcmp.eq.f32.partialorder %v442_v37, inf  ;;  %vm448_vm3 = vcmp.eq.f32.partialorder %v442_v37, 0.0 }
 0x20f   :  { %3154 = vrsqrt.f32 %v443_v58  ;;  %v860_v51 = vrot.slane %v859_v59, 2  ;;  %v449_v2 = vand.u32 2147483648, %v442_v37  ;;  %vm453_vm4 = vcmp.eq.f32.partialorder %v443_v58, inf }
 0x210   :  { %v852_v54 = vadd.f32 %v851_v50, %v850_v57  ;;  %vm455_vm5 = vcmp.eq.f32.partialorder %v443_v58, 0.0  ;;  %v456_v8 = vand.u32 2147483648, %v443_v58 }
 0x211   :  { %v861_v60 = vadd.f32 %v860_v51, %v859_v59 }
 0x212   :  { %v853_v61 = vrot.slane %v852_v54, 1 }
 0x213   :  { %v862_v62 = vrot.slane %v861_v60, 1 }
 0x214   :  { %v854_v63 = vadd.f32 %v853_v61, %v852_v54 }
 0x215   :  { %v863_v0 = vadd.f32 %v862_v62, %v861_v60 }
 0x216   :  { %v864_v3 = vmul.f32 0.05, %v854_v63 }
 0x217   :  { %v865_v4 = vmul.f32 0.05, %v863_v0 }
 0x218   :  { %v3153_v1 = vpop.eup %3152  ;;  %v866_v9 = vsub.f32 %v840_v29, %v864_v3  ;;  %v868_v10 = vsub.f32 %v842_v30, %v864_v3  ;;  %v870_v11 = vsub.f32 %v844_v40, %v864_v3 }
 0x219   :  { %v3155_v5 = vpop.eup %3154  ;;  %v445_v6 = vmul.f32 %v3153_v1, %v442_v37  ;;  %v867_v14 = vsub.f32 %v841_v34, %v865_v4  ;;  %v869_v15 = vsub.f32 %v843_v25, %v865_v4  ;;  %v871_v16 = vsub.f32 %v845_v42, %v865_v4 }
 0x21a   :  { %v452_v7 = vmul.f32 %v3155_v5, %v443_v58  ;;  %v872_v21 = vmul.f32 %v866_v9, %v866_v9  ;;  %v874_v22 = vmul.f32 %v868_v10, %v868_v10  ;;  %v876_v24 = vmul.f32 %v870_v11, %v870_v11 }
 0x21b   :  { %v447_v12 = vsel %vm446_vm2, %v442_v37, %v445_v6  ;;  %v873_v26 = vmul.f32 %v867_v14, %v867_v14  ;;  %v875_v27 = vmul.f32 %v869_v15, %v869_v15  ;;  %v877_v36 = vmul.f32 %v871_v16, %v871_v16  ;;  %v3015_v16 = vld [vmem:[%s4093_s5 + $0x200] ss:$16 sps:$4 sm:$0xff]  }
 0x21c   :  { %v450_v17 = vsel %vm448_vm3, %v449_v2, %v447_v12  ;;  %v454_v18 = vsel %vm453_vm4, %v443_v58, %v452_v7  ;;  %v878_v33 = vadd.f32 %v874_v22, %v872_v21  ;;  %v914_v38 = vcombine.low %v864_v3, %v865_v4  ;;  %v3024_v21 = vld [vmem:[%s4093_s5 + $0x224] ss:$16 sps:$4 sm:$0xff]   ;;  %v3027_v22 = vld [vmem:[%s4093_s5 + $0x22c] ss:$16 sps:$4 sm:$0xff]  }
 0x21d   :  { %v457_v23 = vsel %vm455_vm5, %v456_v8, %v454_v18  ;;  %v879_v29 = vsel %vm390_vm0, %v876_v24, 0.0  ;;  %v887_v30 = vadd.f32 %v875_v27, %v873_v26  ;;  %v888_v39 = vsel %vm390_vm0, %v877_v36, 0.0  ;;  %v3025_v24 = vld [vmem:[%s4093_s5 + $0x228] ss:$16 sps:$4 sm:$0xff]   ;;  %v3030_v26 = vld [vmem:[%s4093_s5 + $0x244] ss:$16 sps:$4 sm:$0xff]  }
 0x21e   :  { %v483_v32 = vcombine.low %v450_v17, %v457_v23  ;;  %v880_v25 = vadd.f32 %v879_v29, %v878_v33  ;;  %v921_v40 = vrot.slane %v914_v38, %v3676_v31  ;;  %v3210_v4 = vmov 1983009808   ;;  %v3022_v23 = vld [vmem:[%s4093_s5 + $0x220] ss:$16 sps:$4 sm:$0xff]   ;;  %v3033_v27 = vld [vmem:[%s4093_s5 + $0x24c] ss:$16 sps:$4 sm:$0xff]  }
 0x21f   :  { %v889_v28 = vadd.f32 %v888_v39, %v887_v30  ;;  %v956_v5 = vunpack.c.l.s4 %v3210_v4  ;;  %v3031_v33 = vld [vmem:[%s4093_s5 + $0x248] ss:$16 sps:$4 sm:$0xff]   ;;  %v3036_v36 = vld [vmem:[%s4093_s5 + $0x264] ss:$16 sps:$4 sm:$0xff]   ;;  %v3039_v38 = vld [vmem:[%s4093_s5 + $0x26c] ss:$16 sps:$4 sm:$0xff]  }
 0x220   :  { %v490_v34 = vrot.slane %v483_v32, %v3676_v31  ;;  %v881_v42 = vrot.slane %v880_v25, 4  ;;  %v928_v43 = vrot.slane %v921_v40, %v3676_v31  ;;  %v3028_v32 = vld [vmem:[%s4093_s5 + $0x240] ss:$16 sps:$4 sm:$0xff]   ;;  %v3037_v30 = vld [vmem:[%s4093_s5 + $0x268] ss:$16 sps:$4 sm:$0xff]  }
 0x221   :  { %v890_v44 = vrot.slane %v889_v28, 4  ;;  %v957_v8 = vunpack.c.0.s8 %v956_v5  ;;  %v3034_v29 = vld [vmem:[%s4093_s5 + $0x260] ss:$16 sps:$4 sm:$0xff]   ;;  %v3043_v40 = vld [vmem:[%s4093_s5 + $0x288] ss:$16 sps:$4 sm:$0xff]  }
 0x222   :  { %v497_v41 = vrot.slane %v490_v34, %v3676_v31  ;;  %v882_v45 = vadd.f32 %v881_v42, %v880_v25  ;;  %931 = vst.msk [vmem:[#allocation2 + $0x1] ss:$2 sm:$0x3] %vm3686_vm1, %v928_v43  ;;  %v3042_v34 = vld [vmem:[%s4093_s5 + $0x284] ss:$16 sps:$4 sm:$0xff]  }
 0x223   :  { %v891_v46 = vadd.f32 %v890_v44, %v889_v28  ;;  %v960_v7 = vsub.s32 %v957_v8, %v3618_v13  ;;  %v3045_v25 = vld [vmem:[%s4093_s5 + $0x28c] ss:$16 sps:$4 sm:$0xff]   ;;  %v3040_v39 = vld [vmem:[%s4093_s5 + $0x280] ss:$16 sps:$4 sm:$0xff]   ;;  %v3048_v28 = vld [vmem:[%s4093_s5 + $0x2a4] ss:$16 sps:$4 sm:$0xff]  }
 0x224   :  { %500 = vst.msk [vmem:[#allocation2 + $0x4] ss:$2 sm:$0x3] %vm3686_vm1, %v497_v41  ;;  %v883_v47 = vrot.slane %v882_v45, 2  ;;  %v3051_v41 = vld [vmem:[%s4093_s5 + $0x2ac] ss:$16 sps:$4 sm:$0xff]  }
 0x225   :  { %v892_v48 = vrot.slane %v891_v46, 2  ;;  %v3046_v42 = vld [vmem:[%s4093_s5 + $0x2a0] ss:$16 sps:$4 sm:$0xff]   ;;  %v3049_v43 = vld [vmem:[%s4093_s5 + $0x2a8] ss:$16 sps:$4 sm:$0xff]  }
 0x226   :  { %v884_v49 = vadd.f32 %v883_v47, %v882_v45  ;;  %v3054_v44 = vld [vmem:[%s4093_s5 + $0x2c4] ss:$16 sps:$4 sm:$0xff]   ;;  %v3057_v45 = vld [vmem:[%s4093_s5 + $0x2cc] ss:$16 sps:$4 sm:$0xff]   ;;  %v3055_v47 = vld [vmem:[%s4093_s5 + $0x2c8] ss:$16 sps:$4 sm:$0xff]  }
 0x227   :  { %v893_v35 = vadd.f32 %v892_v48, %v891_v46  ;;  %v3052_v46 = vld [vmem:[%s4093_s5 + $0x2c0] ss:$16 sps:$4 sm:$0xff]   ;;  %v3060_v48 = vld [vmem:[%s4093_s5 + $0x2e4] ss:$16 sps:$4 sm:$0xff]   ;;  %v3093_v4 = vld [vmem:[%s4093_s5 + $0x38c] ss:$16 sps:$4 sm:$0xff]  }
 0x228   :  { %v885_v52 = vrot.slane %v884_v49, 1  ;;  %v3088_v5 = vld [vmem:[%s4093_s5 + $0x380] ss:$16 sps:$4 sm:$0xff]   ;;  %v3096_v8 = vld [vmem:[%s4093_s5 + $0x3a4] ss:$16 sps:$4 sm:$0xff]  }
 0x229   :  { %v894_v53 = vrot.slane %v893_v35, 1 }
 0x22a   :  { %v886_v56 = vadd.f32 %v885_v52, %v884_v49  ;;  %v3063_v49 = vld [vmem:[%s4093_s5 + $0x2ec] ss:$16 sps:$4 sm:$0xff]   ;;  %v3061_v52 = vld [vmem:[%s4093_s5 + $0x2e8] ss:$16 sps:$4 sm:$0xff]  }
 0x22b   :  { %v895_v37 = vadd.f32 %v894_v53, %v893_v35  ;;  %v3058_v35 = vld [vmem:[%s4093_s5 + $0x2e0] ss:$16 sps:$4 sm:$0xff]   ;;  %v3066_v53 = vld [vmem:[%s4093_s5 + $0x304] ss:$16 sps:$4 sm:$0xff]  }
 0x22c   :  { %v896_v57 = vmul.f32 0.05263158, %v886_v56  ;;  %v3069_v56 = vld [vmem:[%s4093_s5 + $0x30c] ss:$16 sps:$4 sm:$0xff]  }
 0x22d   :  { %v897_v58 = vmul.f32 0.05263158, %v895_v37  ;;  %v3064_v37 = vld [vmem:[%s4093_s5 + $0x300] ss:$16 sps:$4 sm:$0xff]  }
 0x22e   :  { %3156 = vrsqrt.f32 %v896_v57  ;;  %vm900_vm6 = vcmp.eq.f32.partialorder %v896_v57, inf  ;;  %v903_v54 = vand.u32 2147483648, %v896_v57  ;;  %vm902_vm7 = vcmp.eq.f32.partialorder %v896_v57, 0.0 }
 0x22f   :  { %3158 = vrsqrt.f32 %v897_v58  ;;  %vm907_vm8 = vcmp.eq.f32.partialorder %v897_v58, inf  ;;  %v910_v62 = vand.u32 2147483648, %v897_v58  ;;  %vm909_vm9 = vcmp.eq.f32.partialorder %v897_v58, 0.0 }
 0x238   :  { %v3157_v59 = vpop.eup %3156 }
 0x239   :  { %v3159_v50 = vpop.eup %3158  ;;  %v899_v51 = vmul.f32 %v3157_v59, %v896_v57  ;;  %v3075_v59 = vld [vmem:[%s4093_s5 + $0x32c] ss:$16 sps:$4 sm:$0xff]  }
 0x23a   :  { %v906_v60 = vmul.f32 %v3159_v50, %v897_v58  ;;  %v3070_v50 = vld [vmem:[%s4093_s5 + $0x320] ss:$16 sps:$4 sm:$0xff]  }
 0x23b   :  { %v901_v61 = vsel %vm900_vm6, %v896_v57, %v899_v51  ;;  %v3067_v57 = vld [vmem:[%s4093_s5 + $0x308] ss:$16 sps:$4 sm:$0xff]  }
 0x23c   :  { %v904_v63 = vsel %vm902_vm7, %v903_v54, %v901_v61  ;;  %v908_v0 = vsel %vm907_vm8, %v897_v58, %v906_v60  ;;  %v3072_v58 = vld [vmem:[%s4093_s5 + $0x324] ss:$16 sps:$4 sm:$0xff]   ;;  %v3073_v51 = vld [vmem:[%s4093_s5 + $0x328] ss:$16 sps:$4 sm:$0xff]   ;;  %v3081_v60 = vld [vmem:[%s4093_s5 + $0x34c] ss:$16 sps:$4 sm:$0xff]  }
 0x23d   :  { %v911_v1 = vsel %vm909_vm9, %v910_v62, %v908_v0  ;;  %v3078_v54 = vld [vmem:[%s4093_s5 + $0x344] ss:$16 sps:$4 sm:$0xff]   ;;  %v3076_v61 = vld [vmem:[%s4093_s5 + $0x340] ss:$16 sps:$4 sm:$0xff]   ;;  %v3079_v62 = vld [vmem:[%s4093_s5 + $0x348] ss:$16 sps:$4 sm:$0xff]  }
 0x23e   :  { %v934_v2 = vcombine.low %v904_v63, %v911_v1  ;;  %v3084_v63 = vld [vmem:[%s4093_s5 + $0x364] ss:$16 sps:$4 sm:$0xff]   ;;  %v3087_v0 = vld [vmem:[%s4093_s5 + $0x36c] ss:$16 sps:$4 sm:$0xff]   ;;  %v3082_v1 = vld [vmem:[%s4093_s5 + $0x360] ss:$16 sps:$4 sm:$0xff]  }
 0x240   :  { %v941_v3 = vrot.slane %v934_v2, %v3676_v31  ;;  %v3085_v2 = vld [vmem:[%s4093_s5 + $0x368] ss:$16 sps:$4 sm:$0xff]  }
 0x242   :  { %v948_v6 = vrot.slane %v941_v3, %v3676_v31  ;;  %v3018_v31 = vld [vmem:[%s4093_s5 + $0x208] ss:$16 sps:$4 sm:$0xff]   ;;  %v3090_v3 = vld [vmem:[%s4093_s5 + $0x384] ss:$16 sps:$4 sm:$0xff]  }
 0x244   :  { %951 = vst.msk [vmem:[#allocation2 + $0x5] ss:$2 sm:$0x3] %vm3686_vm1, %v948_v6  ;;  %v3091_v6 = vld [vmem:[%s4093_s5 + $0x388] ss:$16 sps:$4 sm:$0xff]  }
 0x24b   :  { %v952_v9 = vld [vmem:[#allocation2] sm:$0xff] }
 0x24c   :  { %v961_v10 = vrot.slane %v952_v9, %v960_v7  ;;  %v954_v11 = vcombine.high %v952_v9, %v952_v9  ;;  %v3094_v9 = vld [vmem:[%s4093_s5 + $0x3a0] ss:$16 sps:$4 sm:$0xff]  }
 0x24e   :  { %v969_v12 = vcombine.high %v961_v10, %v961_v10  ;;  %v3714_v14 = vrot.slane %v954_v11, %v960_v7  ;;  %v975_v17 = vpack.c.bf16 %v961_v10, %v961_v10  ;;  %v3099_v7 = vld [vmem:[%s4093_s5 + $0x3ac] ss:$16 sps:$4 sm:$0xff]   ;;  %v3097_v10 = vld [vmem:[%s4093_s5 + $0x3a8] ss:$16 sps:$4 sm:$0xff]   ;;  %v3102_v11 = vld [vmem:[%s4093_s5 + $0x3c4] ss:$16 sps:$4 sm:$0xff]  }
 0x250   :  { %v976_v15 = vpack.c.bf16 %v969_v12, %v969_v12  ;;  %v970_v55 = vcombine.high %v3714_v14, %v3714_v14  ;;  %v3105_v12 = vld [vmem:[%s4093_s5 + $0x3cc] ss:$16 sps:$4 sm:$0xff]  }
 0x252   :  { %1805 = vmatprep.mubr.bf16.mxu0 %v976_v15  ;;  %1887 = vmatprep.mubr.bf16.mxu1 %v976_v15  ;;  %v978_v18 = vpack.c.bf16 %v970_v55, %v970_v55  ;;  %v3100_v15 = vld [vmem:[%s4093_s5 + $0x3c0] ss:$16 sps:$4 sm:$0xff]   ;;  %v3111_v55 = vld [vmem:[%s4093_s5 + $0x3ec] ss:$16 sps:$4 sm:$0xff]  }
 0x253   :  { %1806 = vmatmul.mubr.bf16.vlgmr.msra.gmra.mrb[8].mxu0 %v975_v17  ;;  %1888 = vmatmul.mubr.bf16.vlgmr.msra.gmra.mrb[16].mxu1 %v975_v17  ;;  %v3106_v17 = vld [vmem:[%s4093_s5 + $0x3e0] ss:$16 sps:$4 sm:$0xff]  }
 0x254   :  { %1815 = vmatpush1.bf16.msra.mxu0 %v3015_v16  ;;  %1897 = vmatpush1.bf16.msra.mxu1 %v3018_v31  ;;  %v3103_v16 = vld [vmem:[%s4093_s5 + $0x3c8] ss:$16 sps:$4 sm:$0xff]   ;;  %v3108_v31 = vld [vmem:[%s4093_s5 + $0x3e4] ss:$16 sps:$4 sm:$0xff]  }
 0x255   :  { %1846 = vmatprep.mubr.bf16.mxu0 %v978_v18  ;;  %1928 = vmatprep.mubr.bf16.mxu1 %v978_v18  ;;  %v3109_v18 = vld [vmem:[%s4093_s5 + $0x3e8] ss:$16 sps:$4 sm:$0xff]  }
 0x256   :  { %1816 = vmatprep.subr.bf16.mxu0 %v3024_v21  ;;  %1898 = vmatprep.subr.bf16.mxu1 %v3027_v22  ;;  %v3112_v21 = vld [vmem:[%s4095_s7 + $0x40] sm:$0xff]  }
 0x257   :  { %v3113_v22 = vld [vmem:[%s4095_s7 + $0xc0] sm:$0xff]  }
 0x258   :  { %1817 = vmatpush1.bf16.msra.mxu0 %v3022_v23  ;;  %1899 = vmatpush1.bf16.msra.mxu1 %v3025_v24  ;;  %v3114_v23 = vld [vmem:[%s4095_s7] sm:$0xff]  }
 0x259   :  { %1818 = vmatprep.subr.bf16.mxu0 %v3030_v26  ;;  %1900 = vmatprep.subr.bf16.mxu1 %v3033_v27  ;;  %v3115_v24 = vld [vmem:[%s4095_s7 + $0x80] sm:$0xff]   ;;  %v977_v26 = vpack.c.bf16 %v3714_v14, %v3714_v14  ;;  %v3116_v27 = vld [vmem:[%s4095_s7 + $0x48] sm:$0xff]  }
 0x25a   :  { %v3119_v14 = vld [vmem:[%s4095_s7 + $0x88] sm:$0xff]  }
 0x25c   :  { %1819 = vmatpush1.bf16.msra.mxu0 %v3028_v32  ;;  %1901 = vmatpush1.bf16.msra.mxu1 %v3031_v33  ;;  %v3117_v32 = vld [vmem:[%s4095_s7 + $0xc8] sm:$0xff]  }
 0x25d   :  { %1820 = vmatprep.subr.bf16.mxu0 %v3036_v36  ;;  %1902 = vmatprep.subr.bf16.mxu1 %v3039_v38  ;;  %v3118_v33 = vld [vmem:[%s4095_s7 + $0x8] sm:$0xff]   ;;  %v3120_v36 = vld [vmem:[%s4095_s7 + $0x50] sm:$0xff]  }
 0x25e   :  { %v3121_v38 = vld [vmem:[%s4095_s7 + $0xd0] sm:$0xff]  }
 0x260   :  { %1821 = vmatpush1.bf16.msra.mxu0 %v3034_v29  ;;  %1903 = vmatpush1.bf16.msra.mxu1 %v3037_v30  ;;  %v3122_v29 = vld [vmem:[%s4095_s7 + $0x10] sm:$0xff]  }
 0x261   :  { %1822 = vmatprep.subr.bf16.mxu0 %v3042_v34  ;;  %1904 = vmatprep.subr.bf16.mxu1 %v3045_v25  ;;  %v3123_v30 = vld [vmem:[%s4095_s7 + $0x90] sm:$0xff]   ;;  %v3124_v34 = vld [vmem:[%s4095_s7 + $0x58] sm:$0xff]  }
 0x262   :  { %v3125_v25 = vld [vmem:[%s4095_s7 + $0xd8] sm:$0xff]  }
 0x264   :  { %1823 = vmatpush1.bf16.msra.mxu0 %v3040_v39  ;;  %1905 = vmatpush1.bf16.msra.mxu1 %v3043_v40  ;;  %v3126_v39 = vld [vmem:[%s4095_s7 + $0x18] sm:$0xff]  }
 0x265   :  { %1824 = vmatprep.subr.bf16.mxu0 %v3048_v28  ;;  %1906 = vmatprep.subr.bf16.mxu1 %v3051_v41  ;;  %v3127_v40 = vld [vmem:[%s4095_s7 + $0x98] sm:$0xff]   ;;  %v3128_v28 = vld [vmem:[%s4095_s7 + $0x60] sm:$0xff]  }
 0x266   :  { %v3129_v41 = vld [vmem:[%s4095_s7 + $0xe0] sm:$0xff]  }
 0x268   :  { %1825 = vmatpush1.bf16.msra.mxu0 %v3046_v42  ;;  %1907 = vmatpush1.bf16.msra.mxu1 %v3049_v43  ;;  %v3130_v42 = vld [vmem:[%s4095_s7 + $0x20] sm:$0xff]  }
 0x269   :  { %1826 = vmatprep.subr.bf16.mxu0 %v3054_v44  ;;  %1908 = vmatprep.subr.bf16.mxu1 %v3057_v45  ;;  %v3131_v43 = vld [vmem:[%s4095_s7 + $0xa0] sm:$0xff]   ;;  %v3132_v44 = vld [vmem:[%s4095_s7 + $0x68] sm:$0xff]  }
 0x26a   :  { %v3133_v45 = vld [vmem:[%s4095_s7 + $0xe8] sm:$0xff]  }
 0x26c   :  { %1827 = vmatpush1.bf16.msra.mxu0 %v3052_v46  ;;  %1909 = vmatpush1.bf16.msra.mxu1 %v3055_v47  ;;  %v3134_v46 = vld [vmem:[%s4095_s7 + $0x28] sm:$0xff]  }
 0x26d   :  { %1828 = vmatprep.subr.bf16.mxu0 %v3060_v48  ;;  %1910 = vmatprep.subr.bf16.mxu1 %v3063_v49  ;;  %v3135_v47 = vld [vmem:[%s4095_s7 + $0xa8] sm:$0xff]   ;;  %v3136_v48 = vld [vmem:[%s4095_s7 + $0x70] sm:$0xff]  }
 0x26e   :  { %v3137_v49 = vld [vmem:[%s4095_s7 + $0xf0] sm:$0xff]  }
 0x270   :  { %1829 = vmatpush1.bf16.msra.mxu0 %v3058_v35  ;;  %1911 = vmatpush1.bf16.msra.mxu1 %v3061_v52  ;;  %v3138_v35 = vld [vmem:[%s4095_s7 + $0x30] sm:$0xff]  }
 0x271   :  { %1830 = vmatprep.subr.bf16.mxu0 %v3066_v53  ;;  %1912 = vmatprep.subr.bf16.mxu1 %v3069_v56  ;;  %v3139_v52 = vld [vmem:[%s4095_s7 + $0xb0] sm:$0xff]   ;;  %v3140_v53 = vld [vmem:[%s4095_s7 + $0x78] sm:$0xff]  }
 0x272   :  { %v3141_v56 = vld [vmem:[%s4095_s7 + $0xf8] sm:$0xff]  }
 0x274   :  { %1831 = vmatpush1.bf16.msra.mxu0 %v3064_v37  ;;  %1913 = vmatpush1.bf16.msra.mxu1 %v3067_v57  ;;  %v3142_v37 = vld [vmem:[%s4095_s7 + $0x38] sm:$0xff]  }
 0x275   :  { %1832 = vmatprep.subr.bf16.mxu0 %v3072_v58  ;;  %1914 = vmatprep.subr.bf16.mxu1 %v3075_v59  ;;  %v3143_v57 = vld [vmem:[%s4095_s7 + $0xb8] sm:$0xff]   ;;  %v3211_v58 = vmov 0.0   ;;  %v1123_v59 = vsub.s32 2, %v3618_v13  ;;  %s3160_s7 = scalar_lea.vmem %s2481_s21, 32 }
 0x276   :  { %p3161_p0 = scmp.ne.s32.totalorder %s2481_s21, %s3160_s7  ;;  %p3166_p2 = scmp.lt.s32.totalorder %s3160_s7, %s3160_s7 }
 0x278   :  { %1833 = vmatpush1.bf16.msra.mxu0 %v3070_v50  ;;  %1915 = vmatpush1.bf16.msra.mxu1 %v3073_v51  ;;  %v1107_v50 = vld [vmem:[%s4094_s6] ss:$4 sm:$0xf]  ;;  %v1127_v51 = vsub.s32 3, %v3618_v13  ;;  %p3167_p3 = por %p3166_p2, %p3165_p1 }
 0x279   :  { %1834 = vmatprep.subr.bf16.mxu0 %v3078_v54  ;;  %1916 = vmatprep.subr.bf16.mxu1 %v3081_v60  ;;  %v1116_v54 = vrot.slane %v1107_v50, %v3636_v19  ;;  %v1124_v60 = vrot.slane %v1107_v50, %v1123_v59 }
 0x27a   :  { %p3168_p4 = pnand %p3167_p3, %p3161_p0 }
 0x27c   :  { %1835 = vmatpush1.bf16.msra.mxu0 %v3076_v61  ;;  %1917 = vmatpush1.bf16.msra.mxu1 %v3079_v62  ;;  %v2553_v61 = vld [vmem:[%s4094_s6 + $0x1] ss:$4 sm:$0xf]  ;;  %v1120_v62 = vrot.slane %v1107_v50, %v3639_v20 }
 0x27d   :  { %1836 = vmatprep.subr.bf16.mxu0 %v3084_v63  ;;  %1918 = vmatprep.subr.bf16.mxu1 %v3087_v0  ;;  %v1128_v63 = vrot.slane %v1107_v50, %v1127_v51  ;;  %v2554_v0 = vld [vmem:[%s4094_s6 + $0x2] ss:$4 sm:$0xf] }
 0x280   :  { %1837 = vmatpush1.bf16.msra.mxu0 %v3082_v1  ;;  %1919 = vmatpush1.bf16.msra.mxu1 %v3085_v2 }
 0x281   :  { %1838 = vmatprep.subr.bf16.mxu0 %v3090_v3  ;;  %1920 = vmatprep.subr.bf16.mxu1 %v3093_v4  ;;  %v1945_v4 = vrot.slane %v2553_v61, %v3636_v19 }
 0x284   :  { %1839 = vmatpush1.bf16.msra.mxu0 %v3088_v5  ;;  %1921 = vmatpush1.bf16.msra.mxu1 %v3091_v6  ;;  %v1953_v5 = vrot.slane %v2553_v61, %v1123_v59 }
 0x285   :  { %1840 = vmatprep.subr.bf16.mxu0 %v3096_v8  ;;  %1922 = vmatprep.subr.bf16.mxu1 %v3099_v7 }
 0x288   :  { %1841 = vmatpush1.bf16.msra.mxu0 %v3094_v9  ;;  %1923 = vmatpush1.bf16.msra.mxu1 %v3097_v10  ;;  %v1949_v9 = vrot.slane %v2553_v61, %v3639_v20 }
 0x289   :  { %1842 = vmatprep.subr.bf16.mxu0 %v3102_v11  ;;  %1924 = vmatprep.subr.bf16.mxu1 %v3105_v12  ;;  %v1957_v11 = vrot.slane %v2553_v61, %v1127_v51 }
 0x28c   :  { %1843 = vmatpush1.bf16.msra.mxu0 %v3100_v15  ;;  %1925 = vmatpush1.bf16.msra.mxu1 %v3103_v16 }
 0x28d   :  { %1844 = vmatprep.subr.bf16.mxu0 %v3108_v31  ;;  %1926 = vmatprep.subr.bf16.mxu1 %v3111_v55  ;;  %v1970_v31 = vrot.slane %v2554_v0, %v3636_v19  ;;  %v3144_v19 = vld [vmem:[%s4097_s9] sm:$0xff]  }
 0x290   :  { %1845 = vmatpush1.bf16.msra.mxu0 %v3106_v17  ;;  %1927 = vmatpush1.bf16.msra.mxu1 %v3109_v18  ;;  %v1978_v17 = vrot.slane %v2554_v0, %v1123_v59 }
 0x291   :  { %2747 = vmatprep.subr.bf16.mxu0 %v3112_v21  ;;  %2769 = vmatprep.subr.bf16.mxu1 %v3113_v22 }
 0x293   :  { %1847 = vmatmul.mubr.bf16.vlgmr.msra.gmra.mrb[8].mxu0 %v977_v26  ;;  %1929 = vmatmul.mubr.bf16.vlgmr.msra.gmra.mrb[16].mxu1 %v977_v26  ;;  %v1982_v26 = vrot.slane %v2554_v0, %v1127_v51 }
 0x294   :  { %2748 = vmatpush3.bf16.msra.mxu0 %v3114_v23  ;;  %2770 = vmatpush3.bf16.msra.mxu1 %v3115_v24  ;;  %v1974_v24 = vrot.slane %v2554_v0, %v3639_v20  ;;  %v3145_v20 = vld [vmem:[%s4097_s9 + $0x8] sm:$0xff]  }
 0x295   :  { %2749 = vmatprep.subr.bf16.mxu0 %v3116_v27  ;;  %2771 = vmatprep.subr.bf16.mxu1 %v3117_v32 }
 0x298   :  { %2750 = vmatpush3.bf16.msra.mxu0 %v3118_v33  ;;  %2772 = vmatpush3.bf16.msra.mxu1 %v3119_v14 }
 0x299   :  { %2751 = vmatprep.subr.bf16.mxu0 %v3120_v36  ;;  %2773 = vmatprep.subr.bf16.mxu1 %v3121_v38 }
 0x29c   :  { %2752 = vmatpush3.bf16.msra.mxu0 %v3122_v29  ;;  %2774 = vmatpush3.bf16.msra.mxu1 %v3123_v30 }
 0x29d   :  { %2753 = vmatprep.subr.bf16.mxu0 %v3124_v34  ;;  %2775 = vmatprep.subr.bf16.mxu1 %v3125_v25 }
 0x2a0   :  { %2754 = vmatpush3.bf16.msra.mxu0 %v3126_v39  ;;  %2776 = vmatpush3.bf16.msra.mxu1 %v3127_v40 }
 0x2a1   :  { %2755 = vmatprep.subr.bf16.mxu0 %v3128_v28  ;;  %2777 = vmatprep.subr.bf16.mxu1 %v3129_v41  ;;  %v3146_v28 = vld [vmem:[%s4097_s9 + $0x10] sm:$0xff]   ;;  %v3147_v41 = vld [vmem:[%s4097_s9 + $0x18] sm:$0xff]  }
 0x2a4   :  { %2756 = vmatpush3.bf16.msra.mxu0 %v3130_v42  ;;  %2778 = vmatpush3.bf16.msra.mxu1 %v3131_v43  ;;  %v3148_v42 = vld [vmem:[%s4097_s9 + $0x20] sm:$0xff]   ;;  %v3149_v43 = vld [vmem:[%s4097_s9 + $0x28] sm:$0xff]  }
 0x2a5   :  { %2757 = vmatprep.subr.bf16.mxu0 %v3132_v44  ;;  %2779 = vmatprep.subr.bf16.mxu1 %v3133_v45  ;;  %v3150_v44 = vld [vmem:[%s4097_s9 + $0x30] sm:$0xff]   ;;  %v3151_v45 = vld [vmem:[%s4097_s9 + $0x38] sm:$0xff]  }
 0x2a8   :  { %2758 = vmatpush3.bf16.msra.mxu0 %v3134_v46  ;;  %2780 = vmatpush3.bf16.msra.mxu1 %v3135_v47 }
 0x2a9   :  { %2759 = vmatprep.subr.bf16.mxu0 %v3136_v48  ;;  %2781 = vmatprep.subr.bf16.mxu1 %v3137_v49  ;;  %v2683_v48 = vld [vmem:[%s4096_s8] ss:$0 sm:$0xff] }
 0x2ac   :  { %2760 = vmatpush3.bf16.msra.mxu0 %v3138_v35  ;;  %2782 = vmatpush3.bf16.msra.mxu1 %v3139_v52 }
 0x2ad   :  { %2761 = vmatprep.subr.bf16.mxu0 %v3140_v53  ;;  %2783 = vmatprep.subr.bf16.mxu1 %v3141_v56 }
 0x2b0   :  { %2762 = vmatpush3.bf16.msra.mxu0 %v3142_v37  ;;  %2784 = vmatpush3.bf16.msra.mxu1 %v3143_v57 }
 0x2b1   :  { %2840 = vmatprep.subr.bf16.mxu0 %v3211_v58 }
 0x366   :  { %v1848_v1 = vpop.f32.mrb[8].mxu0  ;;  %v1930_v2 = vpop.f32.mrb[16].mxu1 }
 0x367   :  { %v2860_v3 = vadd.f32 %v1848_v1, %v1116_v54  ;;  %v2862_v13 = vadd.f32 %v1930_v2, %v1124_v60  ;;  %v1850_v6 = vpop.f32.mrb[9].mxu0  ;;  %v1932_v8 = vpop.f32.mrb[17].mxu1  ;;  %v2717_v60 = vld [vmem:[%s4096_s8 + $0x2] ss:$0 sm:$0xff] }
 0x368   :  { %v2861_v7 = vadd.f32 %v1850_v6, %v1120_v62  ;;  %v2863_v10 = vadd.f32 %v1932_v8, %v1128_v63  ;;  %v1852_v12 = vpop.f32.mrb[10].mxu0  ;;  %v1934_v15 = vpop.f32.mrb[18].mxu1 }
 0x369   :  { %v1937_v16 = vmax.f32 %v2860_v3, 0.0  ;;  %v1939_v55 = vmax.f32 %v2862_v13, 0.0  ;;  %v1853_v18 = vpop.f32.mrb[11].mxu0  ;;  %v1935_v21 = vpop.f32.mrb[19].mxu1 }
 0x36a   :  { %v1938_v22 = vmax.f32 %v2861_v7, 0.0  ;;  %v1940_v23 = vmax.f32 %v2863_v10, 0.0 }
 0x36b   :  { %v1962_v27 = vmul.f32 %v1945_v4, %v1937_v16  ;;  %v1964_v32 = vmul.f32 %v1953_v5, %v1939_v55 }
 0x36c   :  { %v1963_v33 = vmul.f32 %v1949_v9, %v1938_v22  ;;  %v1965_v14 = vmul.f32 %v1957_v11, %v1940_v23 }
 0x36d   :  { %v1987_v36 = vadd.f32 %v1970_v31, %v1962_v27  ;;  %v1989_v38 = vadd.f32 %v1978_v17, %v1964_v32 }
 0x36e   :  { %v1988_v29 = vadd.f32 %v1974_v24, %v1963_v33  ;;  %v1990_v30 = vadd.f32 %v1982_v26, %v1965_v14 }
 0x36f   :  { %v1991_v39 = vpack.c.bf16 %v1987_v36, %v1987_v36  ;;  %v1993_v40 = vpack.c.bf16 %v1989_v38, %v1989_v38 }
 0x370   :  { %v1992_v34 = vpack.c.bf16 %v1988_v29, %v1988_v29  ;;  %v1994_v25 = vpack.c.bf16 %v1990_v30, %v1990_v30 }
 0x372   :  { %2290 = vmatprep.mubr.bf16.mxu0 %v1992_v34  ;;  %2330 = vmatprep.mubr.bf16.mxu1 %v1994_v25 }
 0x373   :  { %2291 = vmatmul.mubr.bf16.vlgmr.msra.gmra.mrb[12].mxu0 %v1991_v39  ;;  %2331 = vmatmul.mubr.bf16.vlgmr.msra.gmra.mrb[20].mxu1 %v1993_v40 }
 0x374   :  { %2841 = vmatpush3.bf16.msra.mxu0 %v3144_v19  ;;  %2856 = vmatprep.mubr.msk.bf16.mxu0 %vm3212_vm10, %v3211_v58 }
 0x375   :  { %2842 = vmatprep.subr.bf16.mxu0 %v3211_v58 }
 0x378   :  { %2843 = vmatpush3.bf16.msra.mxu0 %v3145_v20 }
 0x379   :  { %2844 = vmatprep.subr.bf16.mxu0 %v3211_v58 }
 0x37c   :  { %2845 = vmatpush3.bf16.msra.mxu0 %v3146_v28 }
 0x37d   :  { %2846 = vmatprep.subr.bf16.mxu0 %v3211_v58 }
 0x380   :  { %2847 = vmatpush3.bf16.msra.mxu0 %v3147_v41 }
 0x381   :  { %2848 = vmatprep.subr.bf16.mxu0 %v3211_v58 }
 0x384   :  { %2849 = vmatpush3.bf16.msra.mxu0 %v3148_v42 }
 0x385   :  { %2850 = vmatprep.subr.bf16.mxu0 %v3211_v58 }
 0x388   :  { %2851 = vmatpush3.bf16.msra.mxu0 %v3149_v43 }
 0x389   :  { %2852 = vmatprep.subr.bf16.mxu0 %v3211_v58 }
 0x38c   :  { %2853 = vmatpush3.bf16.msra.mxu0 %v3150_v44 }
 0x38d   :  { %2854 = vmatprep.subr.bf16.mxu0 %v3211_v58  ;;  %v2716_v58 = vld [vmem:[%s4096_s8 + $0x1] ss:$0 sm:$0xff] }
 0x390   :  { %2855 = vmatpush3.bf16.msra.mxu0 %v3151_v45 }
 0x446   :  { %v2763_v46 = vpop.f32.mrb[12].mxu0  ;;  %v2785_v47 = vpop.f32.mrb[20].mxu1 }
 0x447   :  { %v2764_v49 = vpop.f32.mrb[13].mxu0  ;;  %v2786_v35 = vpop.f32.mrb[21].mxu1 }
 0x448   :  { %v2765_v52 = vadd.f32 %v2764_v49, %v2763_v46  ;;  %v2787_v53 = vadd.f32 %v2786_v35, %v2785_v47  ;;  %v2766_v56 = vpop.f32.mrb[14].mxu0  ;;  %v2788_v37 = vpop.f32.mrb[22].mxu1 }
 0x449   :  { %v2767_v57 = vpop.f32.mrb[15].mxu0  ;;  %v2789_v59 = vpop.f32.mrb[23].mxu1 }
 0x44a   :  { %v2293_v50 = vadd.f32 %v2765_v52, %v2683_v48 }
 0x44c   :  { %v2333_v51 = vadd.f32 %v2787_v53, %v2293_v50 }
 0x44e   :  { %v2338_v54 = vmax.f32 %v2333_v51, 0.0 }
 0x450   :  { %v2343_v61 = vmul.f32 %v2716_v58, %v2338_v54 }
 0x452   :  { %v2348_v62 = vadd.f32 %v2717_v60, %v2343_v61 }
 0x454   :  { %2349 = vst [vmem:[#allocation5] sm:$0x3] %v2348_v62  ;;  %v2350_v63 = vpack.c.bf16 %v2348_v62, %v2348_v62 }
 0x456   :  { %2857 = vmatmul.mubr.bf16.vlgmr.msra.gmra.mrb[16].mxu0 %v2350_v63 }
 0x457   :  { %3171 = shalt.err (!%p3168_p4)
}
 0x458   :  { %s3172_s6 = scalar_lea.hbm %s4100_s12, 32 }
 0x459   :  { %p3173_p5 = scmp.ne.s32.totalorder %s4100_s12, %s3172_s6  ;;  %p3176_p6 = scmp.lt.u32.totalorder %s3172_s6, %s4100_s12 }
 0x45b   :  { %p3178_p7 = pnand %p3176_p6, %p3173_p5 }
 0x45d   :  { %3181 = shalt.err (!%p3178_p7)
}
 0x45e   :  { %2483 = dma.vmem_to_hbm [thread:$0]  %s2481_s21, 32, %s4100_s12, [#allocation6]   ;;  %v2718_v0 = vld [vmem:[%s4098_s10] ss:$0 sm:$0xff]  ;;  %vm2462_vm11 = vcmask 123904  }
 0x45f   :  { %s3214_s29 = smov [#allocation3]  }
 0x460   :  { %s2470_s30 = sshll.u32 %s3214_s29, 4  ;;  %s2471_s30 = int_to_ptr.vmem [resolvable:$true] %s2470_s30 }
 0x461   :  { %s3182_s13 = scalar_lea.vmem %s2471_s30, 32  ;;  %p3187_p9 = scmp.lt.s32.totalorder %s2471_s30, %s2471_s30 }
 0x462   :  { %p3183_p8 = scmp.ne.s32.totalorder %s2471_s30, %s3182_s13  ;;  %p3188_p10 = scmp.lt.s32.totalorder %s3182_s13, %s3182_s13 }
 0x464   :  { %p3189_p11 = por %p3188_p10, %p3187_p9 }
 0x466   :  { %p3190_p12 = pnand %p3189_p11, %p3183_p8 }
 0x529   :  { %v2456_v1 = vpop.f32.mrb[16].mxu0 }
 0x52a   :  { %v2457_v2 = vadd.f32 %v2718_v0, %v2456_v1  ;;  %v2858_v3 = vpop.f32.mrb[17].mxu0 }
 0x52b   :  { %v2459_v4 = vpop.f32.mrb[18].mxu0 }
 0x52c   :  { %v2859_v13 = vpop.f32.mrb[19].mxu0  ;;  %2463 = vst.msk [vmem:[#allocation3] sm:$0x3] %vm2462_vm11, %v2457_v2 }
 0x52d   :  { %3193 = shalt.err (!%p3190_p12)
}
 0x52e   :  { %s3194_s10 = scalar_lea.hbm %s4099_s11, 32 }
 0x52f   :  { %p3195_p13 = scmp.ne.s32.totalorder %s4099_s11, %s3194_s10  ;;  %p3198_p0 = scmp.lt.u32.totalorder %s3194_s10, %s4099_s11 }
 0x531   :  { %p3200_p1 = pnand %p3198_p0, %p3195_p13 }
 0x533   :  { %3203 = shalt.err (!%p3200_p1)
}
 0x534   :  { %2473 = dma.vmem_to_hbm [thread:$0]  %s2471_s30, 32, %s4099_s11, [#allocation4]  }
 0x535   :  { %3204 = dma.done.wait [#allocation4], 32  }
 0x536   :  { %3205 = vsyncadd [#allocation4], 4294967264 }
 0x537   :  { %3206 = dma.done.wait [#allocation6], 32  }
 0x538   :  { %3207 = vsyncadd [#allocation6], 4294967264 }
 0x539   :  { %2490 = vsyncpa [#allocation4], 1 }
 0x53a   :  { %2491 = vsyncpa [#allocation6], 1 }

</bundles_post_ra>
